<compile_context>
chip_gen: v5e
topology: v5e:2x2
jax: 0.10.0
libtpu: 0.0.40
codegen_flags: <defaults>
</compile_context>

<pallas_src>
import functools
import math

import jax
import jax.numpy as jnp
from jax import lax
from jax.experimental import pallas as pl
from jax.experimental.pallas import tpu as pltpu

_LANE = 128
_BF16_SUBLANE = 16   # bf16 sublane pack (16, 128) tile


def _round_up(x, m):
    return (x + m - 1) // m * m


def _tpu_vmem_cap():
    try:
        return int(pltpu.get_tpu_info().vmem_capacity_bytes)
    except Exception:
        return 64 * 2**20          # conservative (v7x) fallback


def _vmem_budget():
    cap = _tpu_vmem_cap()
    return int(min(cap - 16 * 2**20, 100 * 2**20))


def _vmem_limit_bytes(usage_bytes):
    cap = _tpu_vmem_cap()
    return int(min(cap, max(usage_bytes + 16 * 2**20, 32 * 2**20)))


def _pick_time_chunk(T, bb, d_in, hidden, max_tc=128):
    """Largest time chunk whose (double-buffered) blocks + scratch fit the VMEM budget."""
    G = 4 * hidden
    budget = _vmem_budget()
    fixed = (2 * (d_in * G * 2 + hidden * G * 2 + G * 4          # Wih, Whh, bias
                  + hidden * _LANE * 2 + _LANE * 4 + bb * _LANE * 4)  # fc weight/bias/out
             + 2 * bb * hidden * 4)                              # h/c carries
    per_tc = bb * (2 * d_in * 2      # x block (bf16, double buffered)
                   + 2 * hidden * 2  # h-seq out block (bf16, double buffered)
                   + G * 4)          # gx scratch (f32)
    avail = budget - fixed
    if avail <= per_tc:
        return 1
    return int(max(1, min(T, max_tc, avail // per_tc)))


# ------------------------------- LSTM cell update ------------------------------------
def _lstm_cell_update(gates, c_prev, hidden):
    """PyTorch gate order (i, f, g, o); all math in f32. Slices are lane aligned."""
    H = hidden
    i_g = jax.nn.sigmoid(gates[:, 0 * H:1 * H])
    f_g = jax.nn.sigmoid(gates[:, 1 * H:2 * H])
    g_g = jnp.tanh(gates[:, 2 * H:3 * H])
    o_g = jax.nn.sigmoid(gates[:, 3 * H:4 * H])
    c_new = f_g * c_prev + i_g * g_g
    h_new = o_g * jnp.tanh(c_new)
    return h_new, c_new


# --------------- fused (input-projection + recurrence) kernel: hidden layers ----------
def _lstm_seq_kernel(x_ref, wih_ref, whh_ref, bias_ref, out_ref,
                     gx_sc, h_sc, c_sc,
                     *, hidden, t_real, needs_mask, unroll):
    tci = pl.program_id(1)
    tc, bb, d = x_ref.shape

    @pl.when(tci == 0)
    def _():
        h_sc[...] = jnp.zeros_like(h_sc)
        c_sc[...] = jnp.zeros_like(c_sc)

    # Fused input projection for the whole chunk: one big row-dense MXU matmul.
    x2d = x_ref[...].reshape(tc * bb, d)
    gx_sc[...] = (jnp.dot(x2d, wih_ref[...], preferred_element_type=jnp.float32)
                  + bias_ref[...])

    def step(i, carry):
        h_prev = h_sc[...]
        c_prev = c_sc[...]
        row = pl.multiple_of(i * bb, bb)
        gates = gx_sc[pl.ds(row, bb), :] + jnp.dot(
            h_prev.astype(jnp.bfloat16), whh_ref[...],
            preferred_element_type=jnp.float32)
        h_new, c_new = _lstm_cell_update(gates, c_prev, hidden)
        if needs_mask:
            valid = (tci * tc + i) < t_real
            h_new = jnp.where(valid, h_new, h_prev)
            c_new = jnp.where(valid, c_new, c_prev)
        h_sc[...] = h_new
        c_sc[...] = c_new
        out_ref[i] = h_new.astype(out_ref.dtype)
        return carry

    lax.fori_loop(0, tc, step, 0, unroll=unroll)


def run_lstm_layer_seq(x_seq, wih_t, whh_t, bias, *, hidden, t_real, tc, bb):
    """x_seq: (Tp, Bp, D) bf16 -> h sequence (Tp, Bp, hidden) bf16."""
    Tp, Bp, D = x_seq.shape
    G = 4 * hidden
    needs_mask = Tp != t_real
    unroll = max(1, min(tc, 8))
    kernel = functools.partial(_lstm_seq_kernel, hidden=hidden, t_real=t_real,
                               needs_mask=needs_mask, unroll=unroll)
    usage = (2 * (tc * bb * D * 2 + D * G * 2 + hidden * G * 2 + G * 4
                  + tc * bb * hidden * 2)
             + tc * bb * G * 4 + 2 * bb * hidden * 4)
    return pl.pallas_call(
        kernel,
        out_shape=jax.ShapeDtypeStruct((Tp, Bp, hidden), jnp.bfloat16),
        grid_spec=pltpu.PrefetchScalarGridSpec(
            num_scalar_prefetch=0,
            grid=(Bp // bb, Tp // tc),
            in_specs=[
                pl.BlockSpec((tc, bb, D), lambda b, c: (c, b, 0)),
                pl.BlockSpec((D, G), lambda b, c: (0, 0)),
                pl.BlockSpec((hidden, G), lambda b, c: (0, 0)),
                pl.BlockSpec((1, G), lambda b, c: (0, 0)),
            ],
            out_specs=pl.BlockSpec((tc, bb, hidden), lambda b, c: (c, b, 0)),
            scratch_shapes=[
                pltpu.VMEM((tc * bb, G), jnp.float32),   # fused gx for the chunk
                pltpu.VMEM((bb, hidden), jnp.float32),   # h carry (f32)
                pltpu.VMEM((bb, hidden), jnp.float32),   # c carry (f32)
            ],
        ),
        compiler_params=pltpu.CompilerParams(
            dimension_semantics=("parallel", "arbitrary"),
            vmem_limit_bytes=_vmem_limit_bytes(usage)),
    )(x_seq, wih_t, whh_t, bias)


# ----------- fused (projection + recurrence + final Linear) kernel: top layer ---------
def _lstm_top_kernel(x_ref, wih_ref, whh_ref, bias_ref, wfc_ref, bfc_ref, out_ref,
                     gx_sc, h_sc, c_sc,
                     *, hidden, t_real, needs_mask, unroll):
    tci = pl.program_id(1)
    tc, bb, d = x_ref.shape

    @pl.when(tci == 0)
    def _():
        h_sc[...] = jnp.zeros_like(h_sc)
        c_sc[...] = jnp.zeros_like(c_sc)

    x2d = x_ref[...].reshape(tc * bb, d)
    gx_sc[...] = (jnp.dot(x2d, wih_ref[...], preferred_element_type=jnp.float32)
                  + bias_ref[...])

    def step(i, carry):
        h_prev = h_sc[...]
        c_prev = c_sc[...]
        row = pl.multiple_of(i * bb, bb)
        gates = gx_sc[pl.ds(row, bb), :] + jnp.dot(
            h_prev.astype(jnp.bfloat16), whh_ref[...],
            preferred_element_type=jnp.float32)
        h_new, c_new = _lstm_cell_update(gates, c_prev, hidden)
        if needs_mask:
            valid = (tci * tc + i) < t_real
            h_new = jnp.where(valid, h_new, h_prev)
            c_new = jnp.where(valid, c_new, c_prev)
        h_sc[...] = h_new
        c_sc[...] = c_new
        return carry

    lax.fori_loop(0, tc, step, 0, unroll=unroll)

    @pl.when(tci == pl.num_programs(1) - 1)
    def _():
        out_ref[...] = (jnp.dot(h_sc[...].astype(jnp.bfloat16), wfc_ref[...],
                                preferred_element_type=jnp.float32)
                        + bfc_ref[...])


def run_lstm_layer_top(x_seq, wih_t, whh_t, bias, wfc_t, bfc, *, hidden, t_real, tc, bb):
    """Top LSTM layer + fused fc(h_last). Returns (Bp, Op) f32."""
    Tp, Bp, D = x_seq.shape
    G = 4 * hidden
    Op = wfc_t.shape[1]
    needs_mask = Tp != t_real
    unroll = max(1, min(tc, 8))
    kernel = functools.partial(_lstm_top_kernel, hidden=hidden, t_real=t_real,
                               needs_mask=needs_mask, unroll=unroll)
    usage = (2 * (tc * bb * D * 2 + D * G * 2 + hidden * G * 2 + G * 4
                  + hidden * Op * 2 + Op * 4 + bb * Op * 4)
             + tc * bb * G * 4 + 2 * bb * hidden * 4)
    return pl.pallas_call(
        kernel,
        out_shape=jax.ShapeDtypeStruct((Bp, Op), jnp.float32),
        grid_spec=pltpu.PrefetchScalarGridSpec(
            num_scalar_prefetch=0,
            grid=(Bp // bb, Tp // tc),
            in_specs=[
                pl.BlockSpec((tc, bb, D), lambda b, c: (c, b, 0)),
                pl.BlockSpec((D, G), lambda b, c: (0, 0)),
                pl.BlockSpec((hidden, G), lambda b, c: (0, 0)),
                pl.BlockSpec((1, G), lambda b, c: (0, 0)),
                pl.BlockSpec((hidden, Op), lambda b, c: (0, 0)),
                pl.BlockSpec((1, Op), lambda b, c: (0, 0)),
            ],
            out_specs=pl.BlockSpec((bb, Op), lambda b, c: (b, 0)),   # resident across time
            scratch_shapes=[
                pltpu.VMEM((tc * bb, G), jnp.float32),
                pltpu.VMEM((bb, hidden), jnp.float32),
                pltpu.VMEM((bb, hidden), jnp.float32),
            ],
        ),
        compiler_params=pltpu.CompilerParams(
            dimension_semantics=("parallel", "arbitrary"),
            vmem_limit_bytes=_vmem_limit_bytes(usage)),
    )(x_seq, wih_t, whh_t, bias, wfc_t, bfc)


# ---------------------------------- parameters ---------------------------------------
def _pad_gate_mat(w, h, hp, d, dp):
    """Pad (4h, d) PyTorch gate-stacked weight to (4hp, dp), per gate block."""
    w4 = w.reshape(4, h, d)
    w4 = jnp.pad(w4, ((0, 0), (0, hp - h), (0, dp - d)))
    return w4.reshape(4 * hp, dp)


def _pad_gate_vec(b, h, hp):
    b4 = b.reshape(4, h)
    b4 = jnp.pad(b4, ((0, 0), (0, hp - h)))
    return b4.reshape(4 * hp)


def init_params(key, input_dim, hidden_dim, num_layers, output_dim):
    """nn.LSTM / nn.Linear init U(-1/sqrt(H), 1/sqrt(H)); returns (padded params, raw f32 ref)."""
    Hp = _round_up(hidden_dim, _LANE)
    Op = _round_up(output_dim, _LANE)
    k_lstm = 1.0 / math.sqrt(hidden_dim)

    layers, raw_layers = [], []
    for layer in range(num_layers):
        d_in = input_dim if layer == 0 else hidden_dim
        d_in_p = input_dim if layer == 0 else Hp
        key, k1, k2, k3, k4 = jax.random.split(key, 5)
        w_ih = jax.random.uniform(k1, (4 * hidden_dim, d_in),
                                  minval=-k_lstm, maxval=k_lstm, dtype=jnp.float32)
        w_hh = jax.random.uniform(k2, (4 * hidden_dim, hidden_dim),
                                  minval=-k_lstm, maxval=k_lstm, dtype=jnp.float32)
        b_ih = jax.random.uniform(k3, (4 * hidden_dim,),
                                  minval=-k_lstm, maxval=k_lstm, dtype=jnp.float32)
        b_hh = jax.random.uniform(k4, (4 * hidden_dim,),
                                  minval=-k_lstm, maxval=k_lstm, dtype=jnp.float32)
        raw_layers.append((w_ih, w_hh, b_ih, b_hh))

        w_ih_p = _pad_gate_mat(w_ih, hidden_dim, Hp, d_in, d_in_p)
        w_hh_p = _pad_gate_mat(w_hh, hidden_dim, Hp, hidden_dim, Hp)
        bias_p = _pad_gate_vec(b_ih + b_hh, hidden_dim, Hp)

        layers.append({
            "wih_t": jnp.asarray(w_ih_p.T, dtype=jnp.bfloat16),   # (d_in_p, 4Hp)
            "whh_t": jnp.asarray(w_hh_p.T, dtype=jnp.bfloat16),   # (Hp, 4Hp)
            "bias": bias_p.reshape(1, -1).astype(jnp.float32),    # (1, 4Hp)
        })

    key, k5, k6 = jax.random.split(key, 3)
    k_fc = 1.0 / math.sqrt(hidden_dim)
    w_fc = jax.random.uniform(k5, (output_dim, hidden_dim),
                              minval=-k_fc, maxval=k_fc, dtype=jnp.float32)
    b_fc = jax.random.uniform(k6, (output_dim,),
                              minval=-k_fc, maxval=k_fc, dtype=jnp.float32)
    w_fc_p = jnp.pad(w_fc, ((0, Op - output_dim), (0, Hp - hidden_dim)))
    b_fc_p = jnp.pad(b_fc, (0, Op - output_dim))

    params = {
        "layers": layers,
        "fc_w_t": jnp.asarray(w_fc_p.T, dtype=jnp.bfloat16),      # (Hp, Op)
        "fc_b": b_fc_p.reshape(1, -1).astype(jnp.float32),        # (1, Op)
    }
    raw = {"layers": raw_layers, "fc_w": w_fc, "fc_b": b_fc}
    return params, raw


# ----------------------------------- forward ------------------------------------------
def lstm_forward(x, params, *, output_dim):
    """x: (batch, seq, input_dim) -> (batch, output_dim)."""
    B, T, D = x.shape
    Hp = params["layers"][0]["whh_t"].shape[0]
    n_layers = len(params["layers"])

    Bp = _round_up(B, _BF16_SUBLANE)
    bb = Bp // 2 if Bp % 32 == 0 else Bp       # 2 "parallel" batch blocks (v7x megacore)
    tc = _pick_time_chunk(T, bb, max(D, Hp), Hp)
    Tp = _round_up(T, tc)

    xs = jnp.transpose(x, (1, 0, 2)).astype(jnp.bfloat16)    # (T, B, D), bf16 feed
    xs = jnp.pad(xs, ((0, Tp - T), (0, Bp - B), (0, 0)))      # (Tp, Bp, D)

    layer_in = xs
    out_p = None
    for li, layer in enumerate(params["layers"]):
        if li < n_layers - 1:
            layer_in = run_lstm_layer_seq(
                layer_in, layer["wih_t"], layer["whh_t"], layer["bias"],
                hidden=Hp, t_real=T, tc=tc, bb=bb)
        else:
            out_p = run_lstm_layer_top(
                layer_in, layer["wih_t"], layer["whh_t"], layer["bias"],
                params["fc_w_t"], params["fc_b"],
                hidden=Hp, t_real=T, tc=tc, bb=bb)
    return out_p[:B, :output_dim]


# --------------------------- pure-JAX f32 reference (PyTorch semantics) ----------------
def lstm_reference(x, raw):
    h_seq = x.astype(jnp.float32)
    for (w_ih, w_hh, b_ih, b_hh) in raw["layers"]:
        B, T, _ = h_seq.shape
        H = w_hh.shape[1]
        h = jnp.zeros((B, H), jnp.float32)
        c = jnp.zeros((B, H), jnp.float32)
        outs = []
        for t in range(T):
            gates = h_seq[:, t] @ w_ih.T + h @ w_hh.T + b_ih + b_hh
            i_g, f_g, g_g, o_g = jnp.split(gates, 4, axis=-1)
            i_g, f_g, o_g = jax.nn.sigmoid(i_g), jax.nn.sigmoid(f_g), jax.nn.sigmoid(o_g)
            g_g = jnp.tanh(g_g)
            c = f_g * c + i_g * g_g
            h = o_g * jnp.tanh(c)
            outs.append(h)
        h_seq = jnp.stack(outs, axis=1)
    return h_seq[:, -1] @ raw["fc_w"].T + raw["fc_b"]


# ------------------------------------- main --------------------------------------------
if __name__ == "__main__":
    batch, seq, input_dim = 2, 8, 16
    hidden_dim, num_layers, output_dim = 32, 2, 4

    key = jax.random.PRNGKey(0)
    key, kx = jax.random.split(key)
    x = jax.random.normal(kx, (batch, seq, input_dim), dtype=jnp.float32)

    params, raw = init_params(key, input_dim, hidden_dim, num_layers, output_dim)

    fwd = jax.jit(functools.partial(lstm_forward, output_dim=output_dim))
    out = fwd(x, params)
    jax.block_until_ready(out)
    assert out.shape == (batch, output_dim), out.shape

    # Validate against an f32 reference with an explicit tolerance (bf16 weights drift).
    ref = lstm_reference(x, raw)
    max_err = float(jnp.max(jnp.abs(out - ref)))
    assert max_err < 1e-1, f"max abs error vs f32 reference: {max_err}"

    print("KERNEL_OK")
</pallas_src>

<mosaic_0001>
module attributes {stable_mosaic.version = 11 : i64} {
  func.func @_lstm_seq_kernel(%arg0: i32, %arg1: i32, %arg2: memref<8x16x16xbf16, #tpu.memory_space<vmem>>, %arg3: memref<16x512xbf16, #tpu.memory_space<vmem>>, %arg4: memref<128x512xbf16, #tpu.memory_space<vmem>>, %arg5: memref<1x512xf32, #tpu.memory_space<vmem>>, %arg6: memref<8x16x128xbf16, #tpu.memory_space<vmem>>, %arg7: memref<128x512xf32, #tpu.memory_space<vmem>>, %arg8: memref<16x128xf32, #tpu.memory_space<vmem>>, %arg9: memref<16x128xf32, #tpu.memory_space<vmem>>) attributes {dimension_semantics = [#tpu.dimension_semantics<parallel>, #tpu.dimension_semantics<arbitrary>], iteration_bounds = array<i64: 1, 1>, scalar_prefetch = 0 : i64, scratch_operands = 3 : i64, tpu.core_type = #tpu.core_type<tc>, window_params = [{transform_indices = @transform_0, window_bounds = array<i64: 8, 16, 16>}, {pipeline_mode = #tpu.pipeline_mode<synchronous>, transform_indices = @transform_1, window_bounds = array<i64: 16, 512>}, {pipeline_mode = #tpu.pipeline_mode<synchronous>, transform_indices = @transform_2, window_bounds = array<i64: 128, 512>}, {pipeline_mode = #tpu.pipeline_mode<synchronous>, transform_indices = @transform_3, window_bounds = array<i64: 1, 512>}, {transform_indices = @transform_4, window_bounds = array<i64: 8, 16, 128>}]} {
    %c0_i32 = arith.constant 0 : i32
    %0 = arith.cmpi eq, %arg1, %c0_i32 : i32
    %1 = arith.extui %0 : i1 to i32
    %c0_i32_0 = arith.constant 0 : i32
    %2 = arith.cmpi ne, %1, %c0_i32_0 : i32
    scf.if %2 {
      %cst_153 = arith.constant 0.000000e+00 : f32
      %347 = vector.broadcast %cst_153 : f32 to vector<16x128xf32>
      %c0_154 = arith.constant 0 : index
      %c0_155 = arith.constant 0 : index
      %348 = vector.load %arg8[%c0_154, %c0_155] : memref<16x128xf32, #tpu.memory_space<vmem>>, vector<16x128xf32>
      tpu.vector_store %arg8[%c0_154, %c0_155], %347 {strides = array<i32>} : memref<16x128xf32, #tpu.memory_space<vmem>>, vector<16x128xf32>,
      %cst_156 = arith.constant 0.000000e+00 : f32
      %349 = vector.broadcast %cst_156 : f32 to vector<16x128xf32>
      %c0_157 = arith.constant 0 : index
      %c0_158 = arith.constant 0 : index
      %350 = vector.load %arg9[%c0_157, %c0_158] : memref<16x128xf32, #tpu.memory_space<vmem>>, vector<16x128xf32>
      tpu.vector_store %arg9[%c0_157, %c0_158], %349 {strides = array<i32>} : memref<16x128xf32, #tpu.memory_space<vmem>>, vector<16x128xf32>,
    } else {
    }
    %c0 = arith.constant 0 : index
    %c0_1 = arith.constant 0 : index
    %c0_2 = arith.constant 0 : index
    %3 = vector.load %arg2[%c0, %c0_1, %c0_2] : memref<8x16x16xbf16, #tpu.memory_space<vmem>>, vector<8x16x16xbf16>
    %4 = vector.shape_cast %3 : vector<8x16x16xbf16> to vector<128x16xbf16>
    %c0_3 = arith.constant 0 : index
    %c0_4 = arith.constant 0 : index
    %5 = vector.load %arg3[%c0_3, %c0_4] : memref<16x512xbf16, #tpu.memory_space<vmem>>, vector<16x512xbf16>
    %cst = arith.constant dense<0.000000e+00> : vector<128x512xf32>
    %6 = tpu.matmul %4, %5, %cst {dimension_numbers = #tpu.dot_dimension_numbers<[1], [0], [0], [1], [0, 0, 1, 1], [], []>} : vector<128x16xbf16>, vector<16x512xbf16>, vector<128x512xf32> -> vector<128x512xf32>
    %c0_5 = arith.constant 0 : index
    %c0_6 = arith.constant 0 : index
    %7 = vector.load %arg5[%c0_5, %c0_6] : memref<1x512xf32, #tpu.memory_space<vmem>>, vector<1x512xf32>
    %8 = vector.broadcast %7 : vector<1x512xf32> to vector<128x512xf32>
    %9 = arith.addf %6, %8 : vector<128x512xf32>
    %c0_7 = arith.constant 0 : index
    %c0_8 = arith.constant 0 : index
    %10 = vector.load %arg7[%c0_7, %c0_8] : memref<128x512xf32, #tpu.memory_space<vmem>>, vector<128x512xf32>
    tpu.vector_store %arg7[%c0_7, %c0_8], %9 {strides = array<i32>} : memref<128x512xf32, #tpu.memory_space<vmem>>, vector<128x512xf32>,
    %c0_i32_9 = arith.constant 0 : i32
    %c0_10 = arith.constant 0 : index
    %c0_11 = arith.constant 0 : index
    %11 = vector.load %arg8[%c0_10, %c0_11] : memref<16x128xf32, #tpu.memory_space<vmem>>, vector<16x128xf32>
    %c0_12 = arith.constant 0 : index
    %c0_13 = arith.constant 0 : index
    %12 = vector.load %arg9[%c0_12, %c0_13] : memref<16x128xf32, #tpu.memory_space<vmem>>, vector<16x128xf32>
    %c16_i32 = arith.constant 16 : i32
    %13 = arith.muli %c0_i32_9, %c16_i32 : i32
    %14 = tpu.assume_multiple %13, 16 : i32
    %15 = arith.index_cast %14 : i32 to index
    %c0_14 = arith.constant 0 : index
    %16 = vector.load %arg7[%15, %c0_14] : memref<128x512xf32, #tpu.memory_space<vmem>>, vector<16x512xf32>
    %17 = arith.truncf %11 : vector<16x128xf32> to vector<16x128xbf16>
    %c0_15 = arith.constant 0 : index
    %c0_16 = arith.constant 0 : index
    %18 = vector.load %arg4[%c0_15, %c0_16] : memref<128x512xbf16, #tpu.memory_space<vmem>>, vector<128x512xbf16>
    %cst_17 = arith.constant dense<0.000000e+00> : vector<16x512xf32>
    %19 = tpu.matmul %17, %18, %cst_17 {dimension_numbers = #tpu.dot_dimension_numbers<[1], [0], [0], [1], [0, 0, 1, 1], [], []>} : vector<16x128xbf16>, vector<128x512xbf16>, vector<16x512xf32> -> vector<16x512xf32>
    %20 = arith.addf %16, %19 : vector<16x512xf32>
    %21 = vector.extract_strided_slice %20 {offsets = [0, 0], sizes = [16, 128], strides = [1, 1]} : vector<16x512xf32> to vector<16x128xf32>
    %22 = arith.negf %21 : vector<16x128xf32>
    %23 = math.exp %22 : vector<16x128xf32>
    %cst_18 = arith.constant 1.000000e+00 : f32
    %24 = vector.broadcast %cst_18 : f32 to vector<16x128xf32>
    %25 = arith.addf %24, %23 : vector<16x128xf32>
    %26 = arith.divf %24, %25 : vector<16x128xf32>
    %27 = vector.extract_strided_slice %20 {offsets = [0, 128], sizes = [16, 128], strides = [1, 1]} : vector<16x512xf32> to vector<16x128xf32>
    %28 = arith.negf %27 : vector<16x128xf32>
    %29 = math.exp %28 : vector<16x128xf32>
    %cst_19 = arith.constant 1.000000e+00 : f32
    %30 = vector.broadcast %cst_19 : f32 to vector<16x128xf32>
    %31 = arith.addf %30, %29 : vector<16x128xf32>
    %32 = arith.divf %30, %31 : vector<16x128xf32>
    %33 = vector.extract_strided_slice %20 {offsets = [0, 256], sizes = [16, 128], strides = [1, 1]} : vector<16x512xf32> to vector<16x128xf32>
    %34 = math.tanh %33 : vector<16x128xf32>
    %35 = vector.extract_strided_slice %20 {offsets = [0, 384], sizes = [16, 128], strides = [1, 1]} : vector<16x512xf32> to vector<16x128xf32>
    %36 = arith.negf %35 : vector<16x128xf32>
    %37 = math.exp %36 : vector<16x128xf32>
    %cst_20 = arith.constant 1.000000e+00 : f32
    %38 = vector.broadcast %cst_20 : f32 to vector<16x128xf32>
    %39 = arith.addf %38, %37 : vector<16x128xf32>
    %40 = arith.divf %38, %39 : vector<16x128xf32>
    %41 = arith.mulf %32, %12 : vector<16x128xf32>
    %42 = arith.mulf %26, %34 : vector<16x128xf32>
    %43 = arith.addf %41, %42 : vector<16x128xf32>
    %44 = math.tanh %43 : vector<16x128xf32>
    %45 = arith.mulf %40, %44 : vector<16x128xf32>
    %c0_21 = arith.constant 0 : index
    %c0_22 = arith.constant 0 : index
    %46 = vector.load %arg8[%c0_21, %c0_22] : memref<16x128xf32, #tpu.memory_space<vmem>>, vector<16x128xf32>
    tpu.vector_store %arg8[%c0_21, %c0_22], %45 {strides = array<i32>} : memref<16x128xf32, #tpu.memory_space<vmem>>, vector<16x128xf32>,
    %c0_23 = arith.constant 0 : index
    %c0_24 = arith.constant 0 : index
    %47 = vector.load %arg9[%c0_23, %c0_24] : memref<16x128xf32, #tpu.memory_space<vmem>>, vector<16x128xf32>
    tpu.vector_store %arg9[%c0_23, %c0_24], %43 {strides = array<i32>} : memref<16x128xf32, #tpu.memory_space<vmem>>, vector<16x128xf32>,
    %48 = arith.truncf %45 : vector<16x128xf32> to vector<16x128xbf16>
    %49 = arith.index_cast %c0_i32_9 : i32 to index
    %c0_25 = arith.constant 0 : index
    %c0_26 = arith.constant 0 : index
    %50 = vector.load %arg6[%49, %c0_25, %c0_26] : memref<8x16x128xbf16, #tpu.memory_space<vmem>>, vector<1x16x128xbf16>
    %51 = vector.shape_cast %50 : vector<1x16x128xbf16> to vector<16x128xbf16>
    %52 = vector.shape_cast %48 : vector<16x128xbf16> to vector<1x16x128xbf16>
    tpu.vector_store %arg6[%49, %c0_25, %c0_26], %52 {strides = array<i32>} : memref<8x16x128xbf16, #tpu.memory_space<vmem>>, vector<1x16x128xbf16>,
    %c1_i32 = arith.constant 1 : i32
    %c0_27 = arith.constant 0 : index
    %c0_28 = arith.constant 0 : index
    %53 = vector.load %arg8[%c0_27, %c0_28] : memref<16x128xf32, #tpu.memory_space<vmem>>, vector<16x128xf32>
    %c0_29 = arith.constant 0 : index
    %c0_30 = arith.constant 0 : index
    %54 = vector.load %arg9[%c0_29, %c0_30] : memref<16x128xf32, #tpu.memory_space<vmem>>, vector<16x128xf32>
    %c16_i32_31 = arith.constant 16 : i32
    %55 = arith.muli %c1_i32, %c16_i32_31 : i32
    %56 = tpu.assume_multiple %55, 16 : i32
    %57 = arith.index_cast %56 : i32 to index
    %c0_32 = arith.constant 0 : index
    %58 = vector.load %arg7[%57, %c0_32] : memref<128x512xf32, #tpu.memory_space<vmem>>, vector<16x512xf32>
    %59 = arith.truncf %53 : vector<16x128xf32> to vector<16x128xbf16>
    %c0_33 = arith.constant 0 : index
    %c0_34 = arith.constant 0 : index
    %60 = vector.load %arg4[%c0_33, %c0_34] : memref<128x512xbf16, #tpu.memory_space<vmem>>, vector<128x512xbf16>
    %cst_35 = arith.constant dense<0.000000e+00> : vector<16x512xf32>
    %61 = tpu.matmul %59, %60, %cst_35 {dimension_numbers = #tpu.dot_dimension_numbers<[1], [0], [0], [1], [0, 0, 1, 1], [], []>} : vector<16x128xbf16>, vector<128x512xbf16>, vector<16x512xf32> -> vector<16x512xf32>
    %62 = arith.addf %58, %61 : vector<16x512xf32>
    %63 = vector.extract_strided_slice %62 {offsets = [0, 0], sizes = [16, 128], strides = [1, 1]} : vector<16x512xf32> to vector<16x128xf32>
    %64 = arith.negf %63 : vector<16x128xf32>
    %65 = math.exp %64 : vector<16x128xf32>
    %cst_36 = arith.constant 1.000000e+00 : f32
    %66 = vector.broadcast %cst_36 : f32 to vector<16x128xf32>
    %67 = arith.addf %66, %65 : vector<16x128xf32>
    %68 = arith.divf %66, %67 : vector<16x128xf32>
    %69 = vector.extract_strided_slice %62 {offsets = [0, 128], sizes = [16, 128], strides = [1, 1]} : vector<16x512xf32> to vector<16x128xf32>
    %70 = arith.negf %69 : vector<16x128xf32>
    %71 = math.exp %70 : vector<16x128xf32>
    %cst_37 = arith.constant 1.000000e+00 : f32
    %72 = vector.broadcast %cst_37 : f32 to vector<16x128xf32>
    %73 = arith.addf %72, %71 : vector<16x128xf32>
    %74 = arith.divf %72, %73 : vector<16x128xf32>
    %75 = vector.extract_strided_slice %62 {offsets = [0, 256], sizes = [16, 128], strides = [1, 1]} : vector<16x512xf32> to vector<16x128xf32>
    %76 = math.tanh %75 : vector<16x128xf32>
    %77 = vector.extract_strided_slice %62 {offsets = [0, 384], sizes = [16, 128], strides = [1, 1]} : vector<16x512xf32> to vector<16x128xf32>
    %78 = arith.negf %77 : vector<16x128xf32>
    %79 = math.exp %78 : vector<16x128xf32>
    %cst_38 = arith.constant 1.000000e+00 : f32
    %80 = vector.broadcast %cst_38 : f32 to vector<16x128xf32>
    %81 = arith.addf %80, %79 : vector<16x128xf32>
    %82 = arith.divf %80, %81 : vector<16x128xf32>
    %83 = arith.mulf %74, %54 : vector<16x128xf32>
    %84 = arith.mulf %68, %76 : vector<16x128xf32>
    %85 = arith.addf %83, %84 : vector<16x128xf32>
    %86 = math.tanh %85 : vector<16x128xf32>
    %87 = arith.mulf %82, %86 : vector<16x128xf32>
    %c0_39 = arith.constant 0 : index
    %c0_40 = arith.constant 0 : index
    %88 = vector.load %arg8[%c0_39, %c0_40] : memref<16x128xf32, #tpu.memory_space<vmem>>, vector<16x128xf32>
    tpu.vector_store %arg8[%c0_39, %c0_40], %87 {strides = array<i32>} : memref<16x128xf32, #tpu.memory_space<vmem>>, vector<16x128xf32>,
    %c0_41 = arith.constant 0 : index
    %c0_42 = arith.constant 0 : index
    %89 = vector.load %arg9[%c0_41, %c0_42] : memref<16x128xf32, #tpu.memory_space<vmem>>, vector<16x128xf32>
    tpu.vector_store %arg9[%c0_41, %c0_42], %85 {strides = array<i32>} : memref<16x128xf32, #tpu.memory_space<vmem>>, vector<16x128xf32>,
    %90 = arith.truncf %87 : vector<16x128xf32> to vector<16x128xbf16>
    %91 = arith.index_cast %c1_i32 : i32 to index
    %c0_43 = arith.constant 0 : index
    %c0_44 = arith.constant 0 : index
    %92 = vector.load %arg6[%91, %c0_43, %c0_44] : memref<8x16x128xbf16, #tpu.memory_space<vmem>>, vector<1x16x128xbf16>
    %93 = vector.shape_cast %92 : vector<1x16x128xbf16> to vector<16x128xbf16>
    %94 = vector.shape_cast %90 : vector<16x128xbf16> to vector<1x16x128xbf16>
    tpu.vector_store %arg6[%91, %c0_43, %c0_44], %94 {strides = array<i32>} : memref<8x16x128xbf16, #tpu.memory_space<vmem>>, vector<1x16x128xbf16>,
    %c2_i32 = arith.constant 2 : i32
    %c0_45 = arith.constant 0 : index
    %c0_46 = arith.constant 0 : index
    %95 = vector.load %arg8[%c0_45, %c0_46] : memref<16x128xf32, #tpu.memory_space<vmem>>, vector<16x128xf32>
    %c0_47 = arith.constant 0 : index
    %c0_48 = arith.constant 0 : index
    %96 = vector.load %arg9[%c0_47, %c0_48] : memref<16x128xf32, #tpu.memory_space<vmem>>, vector<16x128xf32>
    %c16_i32_49 = arith.constant 16 : i32
    %97 = arith.muli %c2_i32, %c16_i32_49 : i32
    %98 = tpu.assume_multiple %97, 16 : i32
    %99 = arith.index_cast %98 : i32 to index
    %c0_50 = arith.constant 0 : index
    %100 = vector.load %arg7[%99, %c0_50] : memref<128x512xf32, #tpu.memory_space<vmem>>, vector<16x512xf32>
    %101 = arith.truncf %95 : vector<16x128xf32> to vector<16x128xbf16>
    %c0_51 = arith.constant 0 : index
    %c0_52 = arith.constant 0 : index
    %102 = vector.load %arg4[%c0_51, %c0_52] : memref<128x512xbf16, #tpu.memory_space<vmem>>, vector<128x512xbf16>
    %cst_53 = arith.constant dense<0.000000e+00> : vector<16x512xf32>
    %103 = tpu.matmul %101, %102, %cst_53 {dimension_numbers = #tpu.dot_dimension_numbers<[1], [0], [0], [1], [0, 0, 1, 1], [], []>} : vector<16x128xbf16>, vector<128x512xbf16>, vector<16x512xf32> -> vector<16x512xf32>
    %104 = arith.addf %100, %103 : vector<16x512xf32>
    %105 = vector.extract_strided_slice %104 {offsets = [0, 0], sizes = [16, 128], strides = [1, 1]} : vector<16x512xf32> to vector<16x128xf32>
    %106 = arith.negf %105 : vector<16x128xf32>
    %107 = math.exp %106 : vector<16x128xf32>
    %cst_54 = arith.constant 1.000000e+00 : f32
    %108 = vector.broadcast %cst_54 : f32 to vector<16x128xf32>
    %109 = arith.addf %108, %107 : vector<16x128xf32>
    %110 = arith.divf %108, %109 : vector<16x128xf32>
    %111 = vector.extract_strided_slice %104 {offsets = [0, 128], sizes = [16, 128], strides = [1, 1]} : vector<16x512xf32> to vector<16x128xf32>
    %112 = arith.negf %111 : vector<16x128xf32>
    %113 = math.exp %112 : vector<16x128xf32>
    %cst_55 = arith.constant 1.000000e+00 : f32
    %114 = vector.broadcast %cst_55 : f32 to vector<16x128xf32>
    %115 = arith.addf %114, %113 : vector<16x128xf32>
    %116 = arith.divf %114, %115 : vector<16x128xf32>
    %117 = vector.extract_strided_slice %104 {offsets = [0, 256], sizes = [16, 128], strides = [1, 1]} : vector<16x512xf32> to vector<16x128xf32>
    %118 = math.tanh %117 : vector<16x128xf32>
    %119 = vector.extract_strided_slice %104 {offsets = [0, 384], sizes = [16, 128], strides = [1, 1]} : vector<16x512xf32> to vector<16x128xf32>
    %120 = arith.negf %119 : vector<16x128xf32>
    %121 = math.exp %120 : vector<16x128xf32>
    %cst_56 = arith.constant 1.000000e+00 : f32
    %122 = vector.broadcast %cst_56 : f32 to vector<16x128xf32>
    %123 = arith.addf %122, %121 : vector<16x128xf32>
    %124 = arith.divf %122, %123 : vector<16x128xf32>
    %125 = arith.mulf %116, %96 : vector<16x128xf32>
    %126 = arith.mulf %110, %118 : vector<16x128xf32>
    %127 = arith.addf %125, %126 : vector<16x128xf32>
    %128 = math.tanh %127 : vector<16x128xf32>
    %129 = arith.mulf %124, %128 : vector<16x128xf32>
    %c0_57 = arith.constant 0 : index
    %c0_58 = arith.constant 0 : index
    %130 = vector.load %arg8[%c0_57, %c0_58] : memref<16x128xf32, #tpu.memory_space<vmem>>, vector<16x128xf32>
    tpu.vector_store %arg8[%c0_57, %c0_58], %129 {strides = array<i32>} : memref<16x128xf32, #tpu.memory_space<vmem>>, vector<16x128xf32>,
    %c0_59 = arith.constant 0 : index
    %c0_60 = arith.constant 0 : index
    %131 = vector.load %arg9[%c0_59, %c0_60] : memref<16x128xf32, #tpu.memory_space<vmem>>, vector<16x128xf32>
    tpu.vector_store %arg9[%c0_59, %c0_60], %127 {strides = array<i32>} : memref<16x128xf32, #tpu.memory_space<vmem>>, vector<16x128xf32>,
    %132 = arith.truncf %129 : vector<16x128xf32> to vector<16x128xbf16>
    %133 = arith.index_cast %c2_i32 : i32 to index
    %c0_61 = arith.constant 0 : index
    %c0_62 = arith.constant 0 : index
    %134 = vector.load %arg6[%133, %c0_61, %c0_62] : memref<8x16x128xbf16, #tpu.memory_space<vmem>>, vector<1x16x128xbf16>
    %135 = vector.shape_cast %134 : vector<1x16x128xbf16> to vector<16x128xbf16>
    %136 = vector.shape_cast %132 : vector<16x128xbf16> to vector<1x16x128xbf16>
    tpu.vector_store %arg6[%133, %c0_61, %c0_62], %136 {strides = array<i32>} : memref<8x16x128xbf16, #tpu.memory_space<vmem>>, vector<1x16x128xbf16>,
    %c3_i32 = arith.constant 3 : i32
    %c0_63 = arith.constant 0 : index
    %c0_64 = arith.constant 0 : index
    %137 = vector.load %arg8[%c0_63, %c0_64] : memref<16x128xf32, #tpu.memory_space<vmem>>, vector<16x128xf32>
    %c0_65 = arith.constant 0 : index
    %c0_66 = arith.constant 0 : index
    %138 = vector.load %arg9[%c0_65, %c0_66] : memref<16x128xf32, #tpu.memory_space<vmem>>, vector<16x128xf32>
    %c16_i32_67 = arith.constant 16 : i32
    %139 = arith.muli %c3_i32, %c16_i32_67 : i32
    %140 = tpu.assume_multiple %139, 16 : i32
    %141 = arith.index_cast %140 : i32 to index
    %c0_68 = arith.constant 0 : index
    %142 = vector.load %arg7[%141, %c0_68] : memref<128x512xf32, #tpu.memory_space<vmem>>, vector<16x512xf32>
    %143 = arith.truncf %137 : vector<16x128xf32> to vector<16x128xbf16>
    %c0_69 = arith.constant 0 : index
    %c0_70 = arith.constant 0 : index
    %144 = vector.load %arg4[%c0_69, %c0_70] : memref<128x512xbf16, #tpu.memory_space<vmem>>, vector<128x512xbf16>
    %cst_71 = arith.constant dense<0.000000e+00> : vector<16x512xf32>
    %145 = tpu.matmul %143, %144, %cst_71 {dimension_numbers = #tpu.dot_dimension_numbers<[1], [0], [0], [1], [0, 0, 1, 1], [], []>} : vector<16x128xbf16>, vector<128x512xbf16>, vector<16x512xf32> -> vector<16x512xf32>
    %146 = arith.addf %142, %145 : vector<16x512xf32>
    %147 = vector.extract_strided_slice %146 {offsets = [0, 0], sizes = [16, 128], strides = [1, 1]} : vector<16x512xf32> to vector<16x128xf32>
    %148 = arith.negf %147 : vector<16x128xf32>
    %149 = math.exp %148 : vector<16x128xf32>
    %cst_72 = arith.constant 1.000000e+00 : f32
    %150 = vector.broadcast %cst_72 : f32 to vector<16x128xf32>
    %151 = arith.addf %150, %149 : vector<16x128xf32>
    %152 = arith.divf %150, %151 : vector<16x128xf32>
    %153 = vector.extract_strided_slice %146 {offsets = [0, 128], sizes = [16, 128], strides = [1, 1]} : vector<16x512xf32> to vector<16x128xf32>
    %154 = arith.negf %153 : vector<16x128xf32>
    %155 = math.exp %154 : vector<16x128xf32>
    %cst_73 = arith.constant 1.000000e+00 : f32
    %156 = vector.broadcast %cst_73 : f32 to vector<16x128xf32>
    %157 = arith.addf %156, %155 : vector<16x128xf32>
    %158 = arith.divf %156, %157 : vector<16x128xf32>
    %159 = vector.extract_strided_slice %146 {offsets = [0, 256], sizes = [16, 128], strides = [1, 1]} : vector<16x512xf32> to vector<16x128xf32>
    %160 = math.tanh %159 : vector<16x128xf32>
    %161 = vector.extract_strided_slice %146 {offsets = [0, 384], sizes = [16, 128], strides = [1, 1]} : vector<16x512xf32> to vector<16x128xf32>
    %162 = arith.negf %161 : vector<16x128xf32>
    %163 = math.exp %162 : vector<16x128xf32>
    %cst_74 = arith.constant 1.000000e+00 : f32
    %164 = vector.broadcast %cst_74 : f32 to vector<16x128xf32>
    %165 = arith.addf %164, %163 : vector<16x128xf32>
    %166 = arith.divf %164, %165 : vector<16x128xf32>
    %167 = arith.mulf %158, %138 : vector<16x128xf32>
    %168 = arith.mulf %152, %160 : vector<16x128xf32>
    %169 = arith.addf %167, %168 : vector<16x128xf32>
    %170 = math.tanh %169 : vector<16x128xf32>
    %171 = arith.mulf %166, %170 : vector<16x128xf32>
    %c0_75 = arith.constant 0 : index
    %c0_76 = arith.constant 0 : index
    %172 = vector.load %arg8[%c0_75, %c0_76] : memref<16x128xf32, #tpu.memory_space<vmem>>, vector<16x128xf32>
    tpu.vector_store %arg8[%c0_75, %c0_76], %171 {strides = array<i32>} : memref<16x128xf32, #tpu.memory_space<vmem>>, vector<16x128xf32>,
    %c0_77 = arith.constant 0 : index
    %c0_78 = arith.constant 0 : index
    %173 = vector.load %arg9[%c0_77, %c0_78] : memref<16x128xf32, #tpu.memory_space<vmem>>, vector<16x128xf32>
    tpu.vector_store %arg9[%c0_77, %c0_78], %169 {strides = array<i32>} : memref<16x128xf32, #tpu.memory_space<vmem>>, vector<16x128xf32>,
    %174 = arith.truncf %171 : vector<16x128xf32> to vector<16x128xbf16>
    %175 = arith.index_cast %c3_i32 : i32 to index
    %c0_79 = arith.constant 0 : index
    %c0_80 = arith.constant 0 : index
    %176 = vector.load %arg6[%175, %c0_79, %c0_80] : memref<8x16x128xbf16, #tpu.memory_space<vmem>>, vector<1x16x128xbf16>
    %177 = vector.shape_cast %176 : vector<1x16x128xbf16> to vector<16x128xbf16>
    %178 = vector.shape_cast %174 : vector<16x128xbf16> to vector<1x16x128xbf16>
    tpu.vector_store %arg6[%175, %c0_79, %c0_80], %178 {strides = array<i32>} : memref<8x16x128xbf16, #tpu.memory_space<vmem>>, vector<1x16x128xbf16>,
    %c4_i32 = arith.constant 4 : i32
    %c0_81 = arith.constant 0 : index
    %c0_82 = arith.constant 0 : index
    %179 = vector.load %arg8[%c0_81, %c0_82] : memref<16x128xf32, #tpu.memory_space<vmem>>, vector<16x128xf32>
    %c0_83 = arith.constant 0 : index
    %c0_84 = arith.constant 0 : index
    %180 = vector.load %arg9[%c0_83, %c0_84] : memref<16x128xf32, #tpu.memory_space<vmem>>, vector<16x128xf32>
    %c16_i32_85 = arith.constant 16 : i32
    %181 = arith.muli %c4_i32, %c16_i32_85 : i32
    %182 = tpu.assume_multiple %181, 16 : i32
    %183 = arith.index_cast %182 : i32 to index
    %c0_86 = arith.constant 0 : index
    %184 = vector.load %arg7[%183, %c0_86] : memref<128x512xf32, #tpu.memory_space<vmem>>, vector<16x512xf32>
    %185 = arith.truncf %179 : vector<16x128xf32> to vector<16x128xbf16>
    %c0_87 = arith.constant 0 : index
    %c0_88 = arith.constant 0 : index
    %186 = vector.load %arg4[%c0_87, %c0_88] : memref<128x512xbf16, #tpu.memory_space<vmem>>, vector<128x512xbf16>
    %cst_89 = arith.constant dense<0.000000e+00> : vector<16x512xf32>
    %187 = tpu.matmul %185, %186, %cst_89 {dimension_numbers = #tpu.dot_dimension_numbers<[1], [0], [0], [1], [0, 0, 1, 1], [], []>} : vector<16x128xbf16>, vector<128x512xbf16>, vector<16x512xf32> -> vector<16x512xf32>
    %188 = arith.addf %184, %187 : vector<16x512xf32>
    %189 = vector.extract_strided_slice %188 {offsets = [0, 0], sizes = [16, 128], strides = [1, 1]} : vector<16x512xf32> to vector<16x128xf32>
    %190 = arith.negf %189 : vector<16x128xf32>
    %191 = math.exp %190 : vector<16x128xf32>
    %cst_90 = arith.constant 1.000000e+00 : f32
    %192 = vector.broadcast %cst_90 : f32 to vector<16x128xf32>
    %193 = arith.addf %192, %191 : vector<16x128xf32>
    %194 = arith.divf %192, %193 : vector<16x128xf32>
    %195 = vector.extract_strided_slice %188 {offsets = [0, 128], sizes = [16, 128], strides = [1, 1]} : vector<16x512xf32> to vector<16x128xf32>
    %196 = arith.negf %195 : vector<16x128xf32>
    %197 = math.exp %196 : vector<16x128xf32>
    %cst_91 = arith.constant 1.000000e+00 : f32
    %198 = vector.broadcast %cst_91 : f32 to vector<16x128xf32>
    %199 = arith.addf %198, %197 : vector<16x128xf32>
    %200 = arith.divf %198, %199 : vector<16x128xf32>
    %201 = vector.extract_strided_slice %188 {offsets = [0, 256], sizes = [16, 128], strides = [1, 1]} : vector<16x512xf32> to vector<16x128xf32>
    %202 = math.tanh %201 : vector<16x128xf32>
    %203 = vector.extract_strided_slice %188 {offsets = [0, 384], sizes = [16, 128], strides = [1, 1]} : vector<16x512xf32> to vector<16x128xf32>
    %204 = arith.negf %203 : vector<16x128xf32>
    %205 = math.exp %204 : vector<16x128xf32>
    %cst_92 = arith.constant 1.000000e+00 : f32
    %206 = vector.broadcast %cst_92 : f32 to vector<16x128xf32>
    %207 = arith.addf %206, %205 : vector<16x128xf32>
    %208 = arith.divf %206, %207 : vector<16x128xf32>
    %209 = arith.mulf %200, %180 : vector<16x128xf32>
    %210 = arith.mulf %194, %202 : vector<16x128xf32>
    %211 = arith.addf %209, %210 : vector<16x128xf32>
    %212 = math.tanh %211 : vector<16x128xf32>
    %213 = arith.mulf %208, %212 : vector<16x128xf32>
    %c0_93 = arith.constant 0 : index
    %c0_94 = arith.constant 0 : index
    %214 = vector.load %arg8[%c0_93, %c0_94] : memref<16x128xf32, #tpu.memory_space<vmem>>, vector<16x128xf32>
    tpu.vector_store %arg8[%c0_93, %c0_94], %213 {strides = array<i32>} : memref<16x128xf32, #tpu.memory_space<vmem>>, vector<16x128xf32>,
    %c0_95 = arith.constant 0 : index
    %c0_96 = arith.constant 0 : index
    %215 = vector.load %arg9[%c0_95, %c0_96] : memref<16x128xf32, #tpu.memory_space<vmem>>, vector<16x128xf32>
    tpu.vector_store %arg9[%c0_95, %c0_96], %211 {strides = array<i32>} : memref<16x128xf32, #tpu.memory_space<vmem>>, vector<16x128xf32>,
    %216 = arith.truncf %213 : vector<16x128xf32> to vector<16x128xbf16>
    %217 = arith.index_cast %c4_i32 : i32 to index
    %c0_97 = arith.constant 0 : index
    %c0_98 = arith.constant 0 : index
    %218 = vector.load %arg6[%217, %c0_97, %c0_98] : memref<8x16x128xbf16, #tpu.memory_space<vmem>>, vector<1x16x128xbf16>
    %219 = vector.shape_cast %218 : vector<1x16x128xbf16> to vector<16x128xbf16>
    %220 = vector.shape_cast %216 : vector<16x128xbf16> to vector<1x16x128xbf16>
    tpu.vector_store %arg6[%217, %c0_97, %c0_98], %220 {strides = array<i32>} : memref<8x16x128xbf16, #tpu.memory_space<vmem>>, vector<1x16x128xbf16>,
    %c5_i32 = arith.constant 5 : i32
    %c0_99 = arith.constant 0 : index
    %c0_100 = arith.constant 0 : index
    %221 = vector.load %arg8[%c0_99, %c0_100] : memref<16x128xf32, #tpu.memory_space<vmem>>, vector<16x128xf32>
    %c0_101 = arith.constant 0 : index
    %c0_102 = arith.constant 0 : index
    %222 = vector.load %arg9[%c0_101, %c0_102] : memref<16x128xf32, #tpu.memory_space<vmem>>, vector<16x128xf32>
    %c16_i32_103 = arith.constant 16 : i32
    %223 = arith.muli %c5_i32, %c16_i32_103 : i32
    %224 = tpu.assume_multiple %223, 16 : i32
    %225 = arith.index_cast %224 : i32 to index
    %c0_104 = arith.constant 0 : index
    %226 = vector.load %arg7[%225, %c0_104] : memref<128x512xf32, #tpu.memory_space<vmem>>, vector<16x512xf32>
    %227 = arith.truncf %221 : vector<16x128xf32> to vector<16x128xbf16>
    %c0_105 = arith.constant 0 : index
    %c0_106 = arith.constant 0 : index
    %228 = vector.load %arg4[%c0_105, %c0_106] : memref<128x512xbf16, #tpu.memory_space<vmem>>, vector<128x512xbf16>
    %cst_107 = arith.constant dense<0.000000e+00> : vector<16x512xf32>
    %229 = tpu.matmul %227, %228, %cst_107 {dimension_numbers = #tpu.dot_dimension_numbers<[1], [0], [0], [1], [0, 0, 1, 1], [], []>} : vector<16x128xbf16>, vector<128x512xbf16>, vector<16x512xf32> -> vector<16x512xf32>
    %230 = arith.addf %226, %229 : vector<16x512xf32>
    %231 = vector.extract_strided_slice %230 {offsets = [0, 0], sizes = [16, 128], strides = [1, 1]} : vector<16x512xf32> to vector<16x128xf32>
    %232 = arith.negf %231 : vector<16x128xf32>
    %233 = math.exp %232 : vector<16x128xf32>
    %cst_108 = arith.constant 1.000000e+00 : f32
    %234 = vector.broadcast %cst_108 : f32 to vector<16x128xf32>
    %235 = arith.addf %234, %233 : vector<16x128xf32>
    %236 = arith.divf %234, %235 : vector<16x128xf32>
    %237 = vector.extract_strided_slice %230 {offsets = [0, 128], sizes = [16, 128], strides = [1, 1]} : vector<16x512xf32> to vector<16x128xf32>
    %238 = arith.negf %237 : vector<16x128xf32>
    %239 = math.exp %238 : vector<16x128xf32>
    %cst_109 = arith.constant 1.000000e+00 : f32
    %240 = vector.broadcast %cst_109 : f32 to vector<16x128xf32>
    %241 = arith.addf %240, %239 : vector<16x128xf32>
    %242 = arith.divf %240, %241 : vector<16x128xf32>
    %243 = vector.extract_strided_slice %230 {offsets = [0, 256], sizes = [16, 128], strides = [1, 1]} : vector<16x512xf32> to vector<16x128xf32>
    %244 = math.tanh %243 : vector<16x128xf32>
    %245 = vector.extract_strided_slice %230 {offsets = [0, 384], sizes = [16, 128], strides = [1, 1]} : vector<16x512xf32> to vector<16x128xf32>
    %246 = arith.negf %245 : vector<16x128xf32>
    %247 = math.exp %246 : vector<16x128xf32>
    %cst_110 = arith.constant 1.000000e+00 : f32
    %248 = vector.broadcast %cst_110 : f32 to vector<16x128xf32>
    %249 = arith.addf %248, %247 : vector<16x128xf32>
    %250 = arith.divf %248, %249 : vector<16x128xf32>
    %251 = arith.mulf %242, %222 : vector<16x128xf32>
    %252 = arith.mulf %236, %244 : vector<16x128xf32>
    %253 = arith.addf %251, %252 : vector<16x128xf32>
    %254 = math.tanh %253 : vector<16x128xf32>
    %255 = arith.mulf %250, %254 : vector<16x128xf32>
    %c0_111 = arith.constant 0 : index
    %c0_112 = arith.constant 0 : index
    %256 = vector.load %arg8[%c0_111, %c0_112] : memref<16x128xf32, #tpu.memory_space<vmem>>, vector<16x128xf32>
    tpu.vector_store %arg8[%c0_111, %c0_112], %255 {strides = array<i32>} : memref<16x128xf32, #tpu.memory_space<vmem>>, vector<16x128xf32>,
    %c0_113 = arith.constant 0 : index
    %c0_114 = arith.constant 0 : index
    %257 = vector.load %arg9[%c0_113, %c0_114] : memref<16x128xf32, #tpu.memory_space<vmem>>, vector<16x128xf32>
    tpu.vector_store %arg9[%c0_113, %c0_114], %253 {strides = array<i32>} : memref<16x128xf32, #tpu.memory_space<vmem>>, vector<16x128xf32>,
    %258 = arith.truncf %255 : vector<16x128xf32> to vector<16x128xbf16>
    %259 = arith.index_cast %c5_i32 : i32 to index
    %c0_115 = arith.constant 0 : index
    %c0_116 = arith.constant 0 : index
    %260 = vector.load %arg6[%259, %c0_115, %c0_116] : memref<8x16x128xbf16, #tpu.memory_space<vmem>>, vector<1x16x128xbf16>
    %261 = vector.shape_cast %260 : vector<1x16x128xbf16> to vector<16x128xbf16>
    %262 = vector.shape_cast %258 : vector<16x128xbf16> to vector<1x16x128xbf16>
    tpu.vector_store %arg6[%259, %c0_115, %c0_116], %262 {strides = array<i32>} : memref<8x16x128xbf16, #tpu.memory_space<vmem>>, vector<1x16x128xbf16>,
    %c6_i32 = arith.constant 6 : i32
    %c0_117 = arith.constant 0 : index
    %c0_118 = arith.constant 0 : index
    %263 = vector.load %arg8[%c0_117, %c0_118] : memref<16x128xf32, #tpu.memory_space<vmem>>, vector<16x128xf32>
    %c0_119 = arith.constant 0 : index
    %c0_120 = arith.constant 0 : index
    %264 = vector.load %arg9[%c0_119, %c0_120] : memref<16x128xf32, #tpu.memory_space<vmem>>, vector<16x128xf32>
    %c16_i32_121 = arith.constant 16 : i32
    %265 = arith.muli %c6_i32, %c16_i32_121 : i32
    %266 = tpu.assume_multiple %265, 16 : i32
    %267 = arith.index_cast %266 : i32 to index
    %c0_122 = arith.constant 0 : index
    %268 = vector.load %arg7[%267, %c0_122] : memref<128x512xf32, #tpu.memory_space<vmem>>, vector<16x512xf32>
    %269 = arith.truncf %263 : vector<16x128xf32> to vector<16x128xbf16>
    %c0_123 = arith.constant 0 : index
    %c0_124 = arith.constant 0 : index
    %270 = vector.load %arg4[%c0_123, %c0_124] : memref<128x512xbf16, #tpu.memory_space<vmem>>, vector<128x512xbf16>
    %cst_125 = arith.constant dense<0.000000e+00> : vector<16x512xf32>
    %271 = tpu.matmul %269, %270, %cst_125 {dimension_numbers = #tpu.dot_dimension_numbers<[1], [0], [0], [1], [0, 0, 1, 1], [], []>} : vector<16x128xbf16>, vector<128x512xbf16>, vector<16x512xf32> -> vector<16x512xf32>
    %272 = arith.addf %268, %271 : vector<16x512xf32>
    %273 = vector.extract_strided_slice %272 {offsets = [0, 0], sizes = [16, 128], strides = [1, 1]} : vector<16x512xf32> to vector<16x128xf32>
    %274 = arith.negf %273 : vector<16x128xf32>
    %275 = math.exp %274 : vector<16x128xf32>
    %cst_126 = arith.constant 1.000000e+00 : f32
    %276 = vector.broadcast %cst_126 : f32 to vector<16x128xf32>
    %277 = arith.addf %276, %275 : vector<16x128xf32>
    %278 = arith.divf %276, %277 : vector<16x128xf32>
    %279 = vector.extract_strided_slice %272 {offsets = [0, 128], sizes = [16, 128], strides = [1, 1]} : vector<16x512xf32> to vector<16x128xf32>
    %280 = arith.negf %279 : vector<16x128xf32>
    %281 = math.exp %280 : vector<16x128xf32>
    %cst_127 = arith.constant 1.000000e+00 : f32
    %282 = vector.broadcast %cst_127 : f32 to vector<16x128xf32>
    %283 = arith.addf %282, %281 : vector<16x128xf32>
    %284 = arith.divf %282, %283 : vector<16x128xf32>
    %285 = vector.extract_strided_slice %272 {offsets = [0, 256], sizes = [16, 128], strides = [1, 1]} : vector<16x512xf32> to vector<16x128xf32>
    %286 = math.tanh %285 : vector<16x128xf32>
    %287 = vector.extract_strided_slice %272 {offsets = [0, 384], sizes = [16, 128], strides = [1, 1]} : vector<16x512xf32> to vector<16x128xf32>
    %288 = arith.negf %287 : vector<16x128xf32>
    %289 = math.exp %288 : vector<16x128xf32>
    %cst_128 = arith.constant 1.000000e+00 : f32
    %290 = vector.broadcast %cst_128 : f32 to vector<16x128xf32>
    %291 = arith.addf %290, %289 : vector<16x128xf32>
    %292 = arith.divf %290, %291 : vector<16x128xf32>
    %293 = arith.mulf %284, %264 : vector<16x128xf32>
    %294 = arith.mulf %278, %286 : vector<16x128xf32>
    %295 = arith.addf %293, %294 : vector<16x128xf32>
    %296 = math.tanh %295 : vector<16x128xf32>
    %297 = arith.mulf %292, %296 : vector<16x128xf32>
    %c0_129 = arith.constant 0 : index
    %c0_130 = arith.constant 0 : index
    %298 = vector.load %arg8[%c0_129, %c0_130] : memref<16x128xf32, #tpu.memory_space<vmem>>, vector<16x128xf32>
    tpu.vector_store %arg8[%c0_129, %c0_130], %297 {strides = array<i32>} : memref<16x128xf32, #tpu.memory_space<vmem>>, vector<16x128xf32>,
    %c0_131 = arith.constant 0 : index
    %c0_132 = arith.constant 0 : index
    %299 = vector.load %arg9[%c0_131, %c0_132] : memref<16x128xf32, #tpu.memory_space<vmem>>, vector<16x128xf32>
    tpu.vector_store %arg9[%c0_131, %c0_132], %295 {strides = array<i32>} : memref<16x128xf32, #tpu.memory_space<vmem>>, vector<16x128xf32>,
    %300 = arith.truncf %297 : vector<16x128xf32> to vector<16x128xbf16>
    %301 = arith.index_cast %c6_i32 : i32 to index
    %c0_133 = arith.constant 0 : index
    %c0_134 = arith.constant 0 : index
    %302 = vector.load %arg6[%301, %c0_133, %c0_134] : memref<8x16x128xbf16, #tpu.memory_space<vmem>>, vector<1x16x128xbf16>
    %303 = vector.shape_cast %302 : vector<1x16x128xbf16> to vector<16x128xbf16>
    %304 = vector.shape_cast %300 : vector<16x128xbf16> to vector<1x16x128xbf16>
    tpu.vector_store %arg6[%301, %c0_133, %c0_134], %304 {strides = array<i32>} : memref<8x16x128xbf16, #tpu.memory_space<vmem>>, vector<1x16x128xbf16>,
    %c7_i32 = arith.constant 7 : i32
    %c0_135 = arith.constant 0 : index
    %c0_136 = arith.constant 0 : index
    %305 = vector.load %arg8[%c0_135, %c0_136] : memref<16x128xf32, #tpu.memory_space<vmem>>, vector<16x128xf32>
    %c0_137 = arith.constant 0 : index
    %c0_138 = arith.constant 0 : index
    %306 = vector.load %arg9[%c0_137, %c0_138] : memref<16x128xf32, #tpu.memory_space<vmem>>, vector<16x128xf32>
    %c16_i32_139 = arith.constant 16 : i32
    %307 = arith.muli %c7_i32, %c16_i32_139 : i32
    %308 = tpu.assume_multiple %307, 16 : i32
    %309 = arith.index_cast %308 : i32 to index
    %c0_140 = arith.constant 0 : index
    %310 = vector.load %arg7[%309, %c0_140] : memref<128x512xf32, #tpu.memory_space<vmem>>, vector<16x512xf32>
    %311 = arith.truncf %305 : vector<16x128xf32> to vector<16x128xbf16>
    %c0_141 = arith.constant 0 : index
    %c0_142 = arith.constant 0 : index
    %312 = vector.load %arg4[%c0_141, %c0_142] : memref<128x512xbf16, #tpu.memory_space<vmem>>, vector<128x512xbf16>
    %cst_143 = arith.constant dense<0.000000e+00> : vector<16x512xf32>
    %313 = tpu.matmul %311, %312, %cst_143 {dimension_numbers = #tpu.dot_dimension_numbers<[1], [0], [0], [1], [0, 0, 1, 1], [], []>} : vector<16x128xbf16>, vector<128x512xbf16>, vector<16x512xf32> -> vector<16x512xf32>
    %314 = arith.addf %310, %313 : vector<16x512xf32>
    %315 = vector.extract_strided_slice %314 {offsets = [0, 0], sizes = [16, 128], strides = [1, 1]} : vector<16x512xf32> to vector<16x128xf32>
    %316 = arith.negf %315 : vector<16x128xf32>
    %317 = math.exp %316 : vector<16x128xf32>
    %cst_144 = arith.constant 1.000000e+00 : f32
    %318 = vector.broadcast %cst_144 : f32 to vector<16x128xf32>
    %319 = arith.addf %318, %317 : vector<16x128xf32>
    %320 = arith.divf %318, %319 : vector<16x128xf32>
    %321 = vector.extract_strided_slice %314 {offsets = [0, 128], sizes = [16, 128], strides = [1, 1]} : vector<16x512xf32> to vector<16x128xf32>
    %322 = arith.negf %321 : vector<16x128xf32>
    %323 = math.exp %322 : vector<16x128xf32>
    %cst_145 = arith.constant 1.000000e+00 : f32
    %324 = vector.broadcast %cst_145 : f32 to vector<16x128xf32>
    %325 = arith.addf %324, %323 : vector<16x128xf32>
    %326 = arith.divf %324, %325 : vector<16x128xf32>
    %327 = vector.extract_strided_slice %314 {offsets = [0, 256], sizes = [16, 128], strides = [1, 1]} : vector<16x512xf32> to vector<16x128xf32>
    %328 = math.tanh %327 : vector<16x128xf32>
    %329 = vector.extract_strided_slice %314 {offsets = [0, 384], sizes = [16, 128], strides = [1, 1]} : vector<16x512xf32> to vector<16x128xf32>
    %330 = arith.negf %329 : vector<16x128xf32>
    %331 = math.exp %330 : vector<16x128xf32>
    %cst_146 = arith.constant 1.000000e+00 : f32
    %332 = vector.broadcast %cst_146 : f32 to vector<16x128xf32>
    %333 = arith.addf %332, %331 : vector<16x128xf32>
    %334 = arith.divf %332, %333 : vector<16x128xf32>
    %335 = arith.mulf %326, %306 : vector<16x128xf32>
    %336 = arith.mulf %320, %328 : vector<16x128xf32>
    %337 = arith.addf %335, %336 : vector<16x128xf32>
    %338 = math.tanh %337 : vector<16x128xf32>
    %339 = arith.mulf %334, %338 : vector<16x128xf32>
    %c0_147 = arith.constant 0 : index
    %c0_148 = arith.constant 0 : index
    %340 = vector.load %arg8[%c0_147, %c0_148] : memref<16x128xf32, #tpu.memory_space<vmem>>, vector<16x128xf32>
    tpu.vector_store %arg8[%c0_147, %c0_148], %339 {strides = array<i32>} : memref<16x128xf32, #tpu.memory_space<vmem>>, vector<16x128xf32>,
    %c0_149 = arith.constant 0 : index
    %c0_150 = arith.constant 0 : index
    %341 = vector.load %arg9[%c0_149, %c0_150] : memref<16x128xf32, #tpu.memory_space<vmem>>, vector<16x128xf32>
    tpu.vector_store %arg9[%c0_149, %c0_150], %337 {strides = array<i32>} : memref<16x128xf32, #tpu.memory_space<vmem>>, vector<16x128xf32>,
    %342 = arith.truncf %339 : vector<16x128xf32> to vector<16x128xbf16>
    %343 = arith.index_cast %c7_i32 : i32 to index
    %c0_151 = arith.constant 0 : index
    %c0_152 = arith.constant 0 : index
    %344 = vector.load %arg6[%343, %c0_151, %c0_152] : memref<8x16x128xbf16, #tpu.memory_space<vmem>>, vector<1x16x128xbf16>
    %345 = vector.shape_cast %344 : vector<1x16x128xbf16> to vector<16x128xbf16>
    %346 = vector.shape_cast %342 : vector<16x128xbf16> to vector<1x16x128xbf16>
    tpu.vector_store %arg6[%343, %c0_151, %c0_152], %346 {strides = array<i32>} : memref<8x16x128xbf16, #tpu.memory_space<vmem>>, vector<1x16x128xbf16>,
    %c8_i32 = arith.constant 8 : i32
    return
  }
  func.func @transform_0(%arg0: i32, %arg1: i32) -> (i32, i32, i32) {
    %c0_i32 = arith.constant 0 : i32
    %c0_i32_0 = arith.constant 0 : i32
    return %arg1, %arg0, %c0_i32 : i32, i32, i32
  }
  func.func @transform_1(%arg0: i32, %arg1: i32) -> (i32, i32) {
    %c0_i32 = arith.constant 0 : i32
    %c0_i32_0 = arith.constant 0 : i32
    %c0_i32_1 = arith.constant 0 : i32
    return %c0_i32, %c0_i32_0 : i32, i32
  }
  func.func @transform_2(%arg0: i32, %arg1: i32) -> (i32, i32) {
    %c0_i32 = arith.constant 0 : i32
    %c0_i32_0 = arith.constant 0 : i32
    %c0_i32_1 = arith.constant 0 : i32
    return %c0_i32, %c0_i32_0 : i32, i32
  }
  func.func @transform_3(%arg0: i32, %arg1: i32) -> (i32, i32) {
    %c0_i32 = arith.constant 0 : i32
    %c0_i32_0 = arith.constant 0 : i32
    %c0_i32_1 = arith.constant 0 : i32
    return %c0_i32, %c0_i32_0 : i32, i32
  }
  func.func @transform_4(%arg0: i32, %arg1: i32) -> (i32, i32, i32) {
    %c0_i32 = arith.constant 0 : i32
    %c0_i32_0 = arith.constant 0 : i32
    return %arg1, %arg0, %c0_i32 : i32, i32, i32
  }
}

module attributes {stable_mosaic.version = 11 : i64} {
  func.func @_lstm_top_kernel(%arg0: i32, %arg1: i32, %arg2: memref<8x16x128xbf16, #tpu.memory_space<vmem>>, %arg3: memref<128x512xbf16, #tpu.memory_space<vmem>>, %arg4: memref<128x512xbf16, #tpu.memory_space<vmem>>, %arg5: memref<1x512xf32, #tpu.memory_space<vmem>>, %arg6: memref<128x128xbf16, #tpu.memory_space<vmem>>, %arg7: memref<1x128xf32, #tpu.memory_space<vmem>>, %arg8: memref<16x128xf32, #tpu.memory_space<vmem>>, %arg9: memref<128x512xf32, #tpu.memory_space<vmem>>, %arg10: memref<16x128xf32, #tpu.memory_space<vmem>>, %arg11: memref<16x128xf32, #tpu.memory_space<vmem>>) attributes {dimension_semantics = [#tpu.dimension_semantics<parallel>, #tpu.dimension_semantics<arbitrary>], iteration_bounds = array<i64: 1, 1>, scalar_prefetch = 0 : i64, scratch_operands = 3 : i64, tpu.core_type = #tpu.core_type<tc>, window_params = [{transform_indices = @transform_0, window_bounds = array<i64: 8, 16, 128>}, {pipeline_mode = #tpu.pipeline_mode<synchronous>, transform_indices = @transform_1, window_bounds = array<i64: 128, 512>}, {pipeline_mode = #tpu.pipeline_mode<synchronous>, transform_indices = @transform_2, window_bounds = array<i64: 128, 512>}, {pipeline_mode = #tpu.pipeline_mode<synchronous>, transform_indices = @transform_3, window_bounds = array<i64: 1, 512>}, {pipeline_mode = #tpu.pipeline_mode<synchronous>, transform_indices = @transform_4, window_bounds = array<i64: 128, 128>}, {pipeline_mode = #tpu.pipeline_mode<synchronous>, transform_indices = @transform_5, window_bounds = array<i64: 1, 128>}, {transform_indices = @transform_6, window_bounds = array<i64: 16, 128>}]} {
    %c0_i32 = arith.constant 0 : i32
    %0 = arith.cmpi eq, %arg1, %c0_i32 : i32
    %1 = arith.extui %0 : i1 to i32
    %c0_i32_0 = arith.constant 0 : i32
    %2 = arith.cmpi ne, %1, %c0_i32_0 : i32
    scf.if %2 {
      %cst_139 = arith.constant 0.000000e+00 : f32
      %310 = vector.broadcast %cst_139 : f32 to vector<16x128xf32>
      %c0_140 = arith.constant 0 : index
      %c0_141 = arith.constant 0 : index
      %311 = vector.load %arg10[%c0_140, %c0_141] : memref<16x128xf32, #tpu.memory_space<vmem>>, vector<16x128xf32>
      tpu.vector_store %arg10[%c0_140, %c0_141], %310 {strides = array<i32>} : memref<16x128xf32, #tpu.memory_space<vmem>>, vector<16x128xf32>,
      %cst_142 = arith.constant 0.000000e+00 : f32
      %312 = vector.broadcast %cst_142 : f32 to vector<16x128xf32>
      %c0_143 = arith.constant 0 : index
      %c0_144 = arith.constant 0 : index
      %313 = vector.load %arg11[%c0_143, %c0_144] : memref<16x128xf32, #tpu.memory_space<vmem>>, vector<16x128xf32>
      tpu.vector_store %arg11[%c0_143, %c0_144], %312 {strides = array<i32>} : memref<16x128xf32, #tpu.memory_space<vmem>>, vector<16x128xf32>,
    } else {
    }
    %c0 = arith.constant 0 : index
    %c0_1 = arith.constant 0 : index
    %c0_2 = arith.constant 0 : index
    %3 = vector.load %arg2[%c0, %c0_1, %c0_2] : memref<8x16x128xbf16, #tpu.memory_space<vmem>>, vector<8x16x128xbf16>
    %4 = vector.shape_cast %3 : vector<8x16x128xbf16> to vector<128x128xbf16>
    %c0_3 = arith.constant 0 : index
    %c0_4 = arith.constant 0 : index
    %5 = vector.load %arg3[%c0_3, %c0_4] : memref<128x512xbf16, #tpu.memory_space<vmem>>, vector<128x512xbf16>
    %cst = arith.constant dense<0.000000e+00> : vector<128x512xf32>
    %6 = tpu.matmul %4, %5, %cst {dimension_numbers = #tpu.dot_dimension_numbers<[1], [0], [0], [1], [0, 0, 1, 1], [], []>} : vector<128x128xbf16>, vector<128x512xbf16>, vector<128x512xf32> -> vector<128x512xf32>
    %c0_5 = arith.constant 0 : index
    %c0_6 = arith.constant 0 : index
    %7 = vector.load %arg5[%c0_5, %c0_6] : memref<1x512xf32, #tpu.memory_space<vmem>>, vector<1x512xf32>
    %8 = vector.broadcast %7 : vector<1x512xf32> to vector<128x512xf32>
    %9 = arith.addf %6, %8 : vector<128x512xf32>
    %c0_7 = arith.constant 0 : index
    %c0_8 = arith.constant 0 : index
    %10 = vector.load %arg9[%c0_7, %c0_8] : memref<128x512xf32, #tpu.memory_space<vmem>>, vector<128x512xf32>
    tpu.vector_store %arg9[%c0_7, %c0_8], %9 {strides = array<i32>} : memref<128x512xf32, #tpu.memory_space<vmem>>, vector<128x512xf32>,
    %c0_i32_9 = arith.constant 0 : i32
    %c0_10 = arith.constant 0 : index
    %c0_11 = arith.constant 0 : index
    %11 = vector.load %arg10[%c0_10, %c0_11] : memref<16x128xf32, #tpu.memory_space<vmem>>, vector<16x128xf32>
    %c0_12 = arith.constant 0 : index
    %c0_13 = arith.constant 0 : index
    %12 = vector.load %arg11[%c0_12, %c0_13] : memref<16x128xf32, #tpu.memory_space<vmem>>, vector<16x128xf32>
    %c16_i32 = arith.constant 16 : i32
    %13 = arith.muli %c0_i32_9, %c16_i32 : i32
    %14 = tpu.assume_multiple %13, 16 : i32
    %15 = arith.index_cast %14 : i32 to index
    %c0_14 = arith.constant 0 : index
    %16 = vector.load %arg9[%15, %c0_14] : memref<128x512xf32, #tpu.memory_space<vmem>>, vector<16x512xf32>
    %17 = arith.truncf %11 : vector<16x128xf32> to vector<16x128xbf16>
    %c0_15 = arith.constant 0 : index
    %c0_16 = arith.constant 0 : index
    %18 = vector.load %arg4[%c0_15, %c0_16] : memref<128x512xbf16, #tpu.memory_space<vmem>>, vector<128x512xbf16>
    %cst_17 = arith.constant dense<0.000000e+00> : vector<16x512xf32>
    %19 = tpu.matmul %17, %18, %cst_17 {dimension_numbers = #tpu.dot_dimension_numbers<[1], [0], [0], [1], [0, 0, 1, 1], [], []>} : vector<16x128xbf16>, vector<128x512xbf16>, vector<16x512xf32> -> vector<16x512xf32>
    %20 = arith.addf %16, %19 : vector<16x512xf32>
    %21 = vector.extract_strided_slice %20 {offsets = [0, 0], sizes = [16, 128], strides = [1, 1]} : vector<16x512xf32> to vector<16x128xf32>
    %22 = arith.negf %21 : vector<16x128xf32>
    %23 = math.exp %22 : vector<16x128xf32>
    %cst_18 = arith.constant 1.000000e+00 : f32
    %24 = vector.broadcast %cst_18 : f32 to vector<16x128xf32>
    %25 = arith.addf %24, %23 : vector<16x128xf32>
    %26 = arith.divf %24, %25 : vector<16x128xf32>
    %27 = vector.extract_strided_slice %20 {offsets = [0, 128], sizes = [16, 128], strides = [1, 1]} : vector<16x512xf32> to vector<16x128xf32>
    %28 = arith.negf %27 : vector<16x128xf32>
    %29 = math.exp %28 : vector<16x128xf32>
    %cst_19 = arith.constant 1.000000e+00 : f32
    %30 = vector.broadcast %cst_19 : f32 to vector<16x128xf32>
    %31 = arith.addf %30, %29 : vector<16x128xf32>
    %32 = arith.divf %30, %31 : vector<16x128xf32>
    %33 = vector.extract_strided_slice %20 {offsets = [0, 256], sizes = [16, 128], strides = [1, 1]} : vector<16x512xf32> to vector<16x128xf32>
    %34 = math.tanh %33 : vector<16x128xf32>
    %35 = vector.extract_strided_slice %20 {offsets = [0, 384], sizes = [16, 128], strides = [1, 1]} : vector<16x512xf32> to vector<16x128xf32>
    %36 = arith.negf %35 : vector<16x128xf32>
    %37 = math.exp %36 : vector<16x128xf32>
    %cst_20 = arith.constant 1.000000e+00 : f32
    %38 = vector.broadcast %cst_20 : f32 to vector<16x128xf32>
    %39 = arith.addf %38, %37 : vector<16x128xf32>
    %40 = arith.divf %38, %39 : vector<16x128xf32>
    %41 = arith.mulf %32, %12 : vector<16x128xf32>
    %42 = arith.mulf %26, %34 : vector<16x128xf32>
    %43 = arith.addf %41, %42 : vector<16x128xf32>
    %44 = math.tanh %43 : vector<16x128xf32>
    %45 = arith.mulf %40, %44 : vector<16x128xf32>
    %c0_21 = arith.constant 0 : index
    %c0_22 = arith.constant 0 : index
    %46 = vector.load %arg10[%c0_21, %c0_22] : memref<16x128xf32, #tpu.memory_space<vmem>>, vector<16x128xf32>
    tpu.vector_store %arg10[%c0_21, %c0_22], %45 {strides = array<i32>} : memref<16x128xf32, #tpu.memory_space<vmem>>, vector<16x128xf32>,
    %c0_23 = arith.constant 0 : index
    %c0_24 = arith.constant 0 : index
    %47 = vector.load %arg11[%c0_23, %c0_24] : memref<16x128xf32, #tpu.memory_space<vmem>>, vector<16x128xf32>
    tpu.vector_store %arg11[%c0_23, %c0_24], %43 {strides = array<i32>} : memref<16x128xf32, #tpu.memory_space<vmem>>, vector<16x128xf32>,
    %c1_i32 = arith.constant 1 : i32
    %c0_25 = arith.constant 0 : index
    %c0_26 = arith.constant 0 : index
    %48 = vector.load %arg10[%c0_25, %c0_26] : memref<16x128xf32, #tpu.memory_space<vmem>>, vector<16x128xf32>
    %c0_27 = arith.constant 0 : index
    %c0_28 = arith.constant 0 : index
    %49 = vector.load %arg11[%c0_27, %c0_28] : memref<16x128xf32, #tpu.memory_space<vmem>>, vector<16x128xf32>
    %c16_i32_29 = arith.constant 16 : i32
    %50 = arith.muli %c1_i32, %c16_i32_29 : i32
    %51 = tpu.assume_multiple %50, 16 : i32
    %52 = arith.index_cast %51 : i32 to index
    %c0_30 = arith.constant 0 : index
    %53 = vector.load %arg9[%52, %c0_30] : memref<128x512xf32, #tpu.memory_space<vmem>>, vector<16x512xf32>
    %54 = arith.truncf %48 : vector<16x128xf32> to vector<16x128xbf16>
    %c0_31 = arith.constant 0 : index
    %c0_32 = arith.constant 0 : index
    %55 = vector.load %arg4[%c0_31, %c0_32] : memref<128x512xbf16, #tpu.memory_space<vmem>>, vector<128x512xbf16>
    %cst_33 = arith.constant dense<0.000000e+00> : vector<16x512xf32>
    %56 = tpu.matmul %54, %55, %cst_33 {dimension_numbers = #tpu.dot_dimension_numbers<[1], [0], [0], [1], [0, 0, 1, 1], [], []>} : vector<16x128xbf16>, vector<128x512xbf16>, vector<16x512xf32> -> vector<16x512xf32>
    %57 = arith.addf %53, %56 : vector<16x512xf32>
    %58 = vector.extract_strided_slice %57 {offsets = [0, 0], sizes = [16, 128], strides = [1, 1]} : vector<16x512xf32> to vector<16x128xf32>
    %59 = arith.negf %58 : vector<16x128xf32>
    %60 = math.exp %59 : vector<16x128xf32>
    %cst_34 = arith.constant 1.000000e+00 : f32
    %61 = vector.broadcast %cst_34 : f32 to vector<16x128xf32>
    %62 = arith.addf %61, %60 : vector<16x128xf32>
    %63 = arith.divf %61, %62 : vector<16x128xf32>
    %64 = vector.extract_strided_slice %57 {offsets = [0, 128], sizes = [16, 128], strides = [1, 1]} : vector<16x512xf32> to vector<16x128xf32>
    %65 = arith.negf %64 : vector<16x128xf32>
    %66 = math.exp %65 : vector<16x128xf32>
    %cst_35 = arith.constant 1.000000e+00 : f32
    %67 = vector.broadcast %cst_35 : f32 to vector<16x128xf32>
    %68 = arith.addf %67, %66 : vector<16x128xf32>
    %69 = arith.divf %67, %68 : vector<16x128xf32>
    %70 = vector.extract_strided_slice %57 {offsets = [0, 256], sizes = [16, 128], strides = [1, 1]} : vector<16x512xf32> to vector<16x128xf32>
    %71 = math.tanh %70 : vector<16x128xf32>
    %72 = vector.extract_strided_slice %57 {offsets = [0, 384], sizes = [16, 128], strides = [1, 1]} : vector<16x512xf32> to vector<16x128xf32>
    %73 = arith.negf %72 : vector<16x128xf32>
    %74 = math.exp %73 : vector<16x128xf32>
    %cst_36 = arith.constant 1.000000e+00 : f32
    %75 = vector.broadcast %cst_36 : f32 to vector<16x128xf32>
    %76 = arith.addf %75, %74 : vector<16x128xf32>
    %77 = arith.divf %75, %76 : vector<16x128xf32>
    %78 = arith.mulf %69, %49 : vector<16x128xf32>
    %79 = arith.mulf %63, %71 : vector<16x128xf32>
    %80 = arith.addf %78, %79 : vector<16x128xf32>
    %81 = math.tanh %80 : vector<16x128xf32>
    %82 = arith.mulf %77, %81 : vector<16x128xf32>
    %c0_37 = arith.constant 0 : index
    %c0_38 = arith.constant 0 : index
    %83 = vector.load %arg10[%c0_37, %c0_38] : memref<16x128xf32, #tpu.memory_space<vmem>>, vector<16x128xf32>
    tpu.vector_store %arg10[%c0_37, %c0_38], %82 {strides = array<i32>} : memref<16x128xf32, #tpu.memory_space<vmem>>, vector<16x128xf32>,
    %c0_39 = arith.constant 0 : index
    %c0_40 = arith.constant 0 : index
    %84 = vector.load %arg11[%c0_39, %c0_40] : memref<16x128xf32, #tpu.memory_space<vmem>>, vector<16x128xf32>
    tpu.vector_store %arg11[%c0_39, %c0_40], %80 {strides = array<i32>} : memref<16x128xf32, #tpu.memory_space<vmem>>, vector<16x128xf32>,
    %c2_i32 = arith.constant 2 : i32
    %c0_41 = arith.constant 0 : index
    %c0_42 = arith.constant 0 : index
    %85 = vector.load %arg10[%c0_41, %c0_42] : memref<16x128xf32, #tpu.memory_space<vmem>>, vector<16x128xf32>
    %c0_43 = arith.constant 0 : index
    %c0_44 = arith.constant 0 : index
    %86 = vector.load %arg11[%c0_43, %c0_44] : memref<16x128xf32, #tpu.memory_space<vmem>>, vector<16x128xf32>
    %c16_i32_45 = arith.constant 16 : i32
    %87 = arith.muli %c2_i32, %c16_i32_45 : i32
    %88 = tpu.assume_multiple %87, 16 : i32
    %89 = arith.index_cast %88 : i32 to index
    %c0_46 = arith.constant 0 : index
    %90 = vector.load %arg9[%89, %c0_46] : memref<128x512xf32, #tpu.memory_space<vmem>>, vector<16x512xf32>
    %91 = arith.truncf %85 : vector<16x128xf32> to vector<16x128xbf16>
    %c0_47 = arith.constant 0 : index
    %c0_48 = arith.constant 0 : index
    %92 = vector.load %arg4[%c0_47, %c0_48] : memref<128x512xbf16, #tpu.memory_space<vmem>>, vector<128x512xbf16>
    %cst_49 = arith.constant dense<0.000000e+00> : vector<16x512xf32>
    %93 = tpu.matmul %91, %92, %cst_49 {dimension_numbers = #tpu.dot_dimension_numbers<[1], [0], [0], [1], [0, 0, 1, 1], [], []>} : vector<16x128xbf16>, vector<128x512xbf16>, vector<16x512xf32> -> vector<16x512xf32>
    %94 = arith.addf %90, %93 : vector<16x512xf32>
    %95 = vector.extract_strided_slice %94 {offsets = [0, 0], sizes = [16, 128], strides = [1, 1]} : vector<16x512xf32> to vector<16x128xf32>
    %96 = arith.negf %95 : vector<16x128xf32>
    %97 = math.exp %96 : vector<16x128xf32>
    %cst_50 = arith.constant 1.000000e+00 : f32
    %98 = vector.broadcast %cst_50 : f32 to vector<16x128xf32>
    %99 = arith.addf %98, %97 : vector<16x128xf32>
    %100 = arith.divf %98, %99 : vector<16x128xf32>
    %101 = vector.extract_strided_slice %94 {offsets = [0, 128], sizes = [16, 128], strides = [1, 1]} : vector<16x512xf32> to vector<16x128xf32>
    %102 = arith.negf %101 : vector<16x128xf32>
    %103 = math.exp %102 : vector<16x128xf32>
    %cst_51 = arith.constant 1.000000e+00 : f32
    %104 = vector.broadcast %cst_51 : f32 to vector<16x128xf32>
    %105 = arith.addf %104, %103 : vector<16x128xf32>
    %106 = arith.divf %104, %105 : vector<16x128xf32>
    %107 = vector.extract_strided_slice %94 {offsets = [0, 256], sizes = [16, 128], strides = [1, 1]} : vector<16x512xf32> to vector<16x128xf32>
    %108 = math.tanh %107 : vector<16x128xf32>
    %109 = vector.extract_strided_slice %94 {offsets = [0, 384], sizes = [16, 128], strides = [1, 1]} : vector<16x512xf32> to vector<16x128xf32>
    %110 = arith.negf %109 : vector<16x128xf32>
    %111 = math.exp %110 : vector<16x128xf32>
    %cst_52 = arith.constant 1.000000e+00 : f32
    %112 = vector.broadcast %cst_52 : f32 to vector<16x128xf32>
    %113 = arith.addf %112, %111 : vector<16x128xf32>
    %114 = arith.divf %112, %113 : vector<16x128xf32>
    %115 = arith.mulf %106, %86 : vector<16x128xf32>
    %116 = arith.mulf %100, %108 : vector<16x128xf32>
    %117 = arith.addf %115, %116 : vector<16x128xf32>
    %118 = math.tanh %117 : vector<16x128xf32>
    %119 = arith.mulf %114, %118 : vector<16x128xf32>
    %c0_53 = arith.constant 0 : index
    %c0_54 = arith.constant 0 : index
    %120 = vector.load %arg10[%c0_53, %c0_54] : memref<16x128xf32, #tpu.memory_space<vmem>>, vector<16x128xf32>
    tpu.vector_store %arg10[%c0_53, %c0_54], %119 {strides = array<i32>} : memref<16x128xf32, #tpu.memory_space<vmem>>, vector<16x128xf32>,
    %c0_55 = arith.constant 0 : index
    %c0_56 = arith.constant 0 : index
    %121 = vector.load %arg11[%c0_55, %c0_56] : memref<16x128xf32, #tpu.memory_space<vmem>>, vector<16x128xf32>
    tpu.vector_store %arg11[%c0_55, %c0_56], %117 {strides = array<i32>} : memref<16x128xf32, #tpu.memory_space<vmem>>, vector<16x128xf32>,
    %c3_i32 = arith.constant 3 : i32
    %c0_57 = arith.constant 0 : index
    %c0_58 = arith.constant 0 : index
    %122 = vector.load %arg10[%c0_57, %c0_58] : memref<16x128xf32, #tpu.memory_space<vmem>>, vector<16x128xf32>
    %c0_59 = arith.constant 0 : index
    %c0_60 = arith.constant 0 : index
    %123 = vector.load %arg11[%c0_59, %c0_60] : memref<16x128xf32, #tpu.memory_space<vmem>>, vector<16x128xf32>
    %c16_i32_61 = arith.constant 16 : i32
    %124 = arith.muli %c3_i32, %c16_i32_61 : i32
    %125 = tpu.assume_multiple %124, 16 : i32
    %126 = arith.index_cast %125 : i32 to index
    %c0_62 = arith.constant 0 : index
    %127 = vector.load %arg9[%126, %c0_62] : memref<128x512xf32, #tpu.memory_space<vmem>>, vector<16x512xf32>
    %128 = arith.truncf %122 : vector<16x128xf32> to vector<16x128xbf16>
    %c0_63 = arith.constant 0 : index
    %c0_64 = arith.constant 0 : index
    %129 = vector.load %arg4[%c0_63, %c0_64] : memref<128x512xbf16, #tpu.memory_space<vmem>>, vector<128x512xbf16>
    %cst_65 = arith.constant dense<0.000000e+00> : vector<16x512xf32>
    %130 = tpu.matmul %128, %129, %cst_65 {dimension_numbers = #tpu.dot_dimension_numbers<[1], [0], [0], [1], [0, 0, 1, 1], [], []>} : vector<16x128xbf16>, vector<128x512xbf16>, vector<16x512xf32> -> vector<16x512xf32>
    %131 = arith.addf %127, %130 : vector<16x512xf32>
    %132 = vector.extract_strided_slice %131 {offsets = [0, 0], sizes = [16, 128], strides = [1, 1]} : vector<16x512xf32> to vector<16x128xf32>
    %133 = arith.negf %132 : vector<16x128xf32>
    %134 = math.exp %133 : vector<16x128xf32>
    %cst_66 = arith.constant 1.000000e+00 : f32
    %135 = vector.broadcast %cst_66 : f32 to vector<16x128xf32>
    %136 = arith.addf %135, %134 : vector<16x128xf32>
    %137 = arith.divf %135, %136 : vector<16x128xf32>
    %138 = vector.extract_strided_slice %131 {offsets = [0, 128], sizes = [16, 128], strides = [1, 1]} : vector<16x512xf32> to vector<16x128xf32>
    %139 = arith.negf %138 : vector<16x128xf32>
    %140 = math.exp %139 : vector<16x128xf32>
    %cst_67 = arith.constant 1.000000e+00 : f32
    %141 = vector.broadcast %cst_67 : f32 to vector<16x128xf32>
    %142 = arith.addf %141, %140 : vector<16x128xf32>
    %143 = arith.divf %141, %142 : vector<16x128xf32>
    %144 = vector.extract_strided_slice %131 {offsets = [0, 256], sizes = [16, 128], strides = [1, 1]} : vector<16x512xf32> to vector<16x128xf32>
    %145 = math.tanh %144 : vector<16x128xf32>
    %146 = vector.extract_strided_slice %131 {offsets = [0, 384], sizes = [16, 128], strides = [1, 1]} : vector<16x512xf32> to vector<16x128xf32>
    %147 = arith.negf %146 : vector<16x128xf32>
    %148 = math.exp %147 : vector<16x128xf32>
    %cst_68 = arith.constant 1.000000e+00 : f32
    %149 = vector.broadcast %cst_68 : f32 to vector<16x128xf32>
    %150 = arith.addf %149, %148 : vector<16x128xf32>
    %151 = arith.divf %149, %150 : vector<16x128xf32>
    %152 = arith.mulf %143, %123 : vector<16x128xf32>
    %153 = arith.mulf %137, %145 : vector<16x128xf32>
    %154 = arith.addf %152, %153 : vector<16x128xf32>
    %155 = math.tanh %154 : vector<16x128xf32>
    %156 = arith.mulf %151, %155 : vector<16x128xf32>
    %c0_69 = arith.constant 0 : index
    %c0_70 = arith.constant 0 : index
    %157 = vector.load %arg10[%c0_69, %c0_70] : memref<16x128xf32, #tpu.memory_space<vmem>>, vector<16x128xf32>
    tpu.vector_store %arg10[%c0_69, %c0_70], %156 {strides = array<i32>} : memref<16x128xf32, #tpu.memory_space<vmem>>, vector<16x128xf32>,
    %c0_71 = arith.constant 0 : index
    %c0_72 = arith.constant 0 : index
    %158 = vector.load %arg11[%c0_71, %c0_72] : memref<16x128xf32, #tpu.memory_space<vmem>>, vector<16x128xf32>
    tpu.vector_store %arg11[%c0_71, %c0_72], %154 {strides = array<i32>} : memref<16x128xf32, #tpu.memory_space<vmem>>, vector<16x128xf32>,
    %c4_i32 = arith.constant 4 : i32
    %c0_73 = arith.constant 0 : index
    %c0_74 = arith.constant 0 : index
    %159 = vector.load %arg10[%c0_73, %c0_74] : memref<16x128xf32, #tpu.memory_space<vmem>>, vector<16x128xf32>
    %c0_75 = arith.constant 0 : index
    %c0_76 = arith.constant 0 : index
    %160 = vector.load %arg11[%c0_75, %c0_76] : memref<16x128xf32, #tpu.memory_space<vmem>>, vector<16x128xf32>
    %c16_i32_77 = arith.constant 16 : i32
    %161 = arith.muli %c4_i32, %c16_i32_77 : i32
    %162 = tpu.assume_multiple %161, 16 : i32
    %163 = arith.index_cast %162 : i32 to index
    %c0_78 = arith.constant 0 : index
    %164 = vector.load %arg9[%163, %c0_78] : memref<128x512xf32, #tpu.memory_space<vmem>>, vector<16x512xf32>
    %165 = arith.truncf %159 : vector<16x128xf32> to vector<16x128xbf16>
    %c0_79 = arith.constant 0 : index
    %c0_80 = arith.constant 0 : index
    %166 = vector.load %arg4[%c0_79, %c0_80] : memref<128x512xbf16, #tpu.memory_space<vmem>>, vector<128x512xbf16>
    %cst_81 = arith.constant dense<0.000000e+00> : vector<16x512xf32>
    %167 = tpu.matmul %165, %166, %cst_81 {dimension_numbers = #tpu.dot_dimension_numbers<[1], [0], [0], [1], [0, 0, 1, 1], [], []>} : vector<16x128xbf16>, vector<128x512xbf16>, vector<16x512xf32> -> vector<16x512xf32>
    %168 = arith.addf %164, %167 : vector<16x512xf32>
    %169 = vector.extract_strided_slice %168 {offsets = [0, 0], sizes = [16, 128], strides = [1, 1]} : vector<16x512xf32> to vector<16x128xf32>
    %170 = arith.negf %169 : vector<16x128xf32>
    %171 = math.exp %170 : vector<16x128xf32>
    %cst_82 = arith.constant 1.000000e+00 : f32
    %172 = vector.broadcast %cst_82 : f32 to vector<16x128xf32>
    %173 = arith.addf %172, %171 : vector<16x128xf32>
    %174 = arith.divf %172, %173 : vector<16x128xf32>
    %175 = vector.extract_strided_slice %168 {offsets = [0, 128], sizes = [16, 128], strides = [1, 1]} : vector<16x512xf32> to vector<16x128xf32>
    %176 = arith.negf %175 : vector<16x128xf32>
    %177 = math.exp %176 : vector<16x128xf32>
    %cst_83 = arith.constant 1.000000e+00 : f32
    %178 = vector.broadcast %cst_83 : f32 to vector<16x128xf32>
    %179 = arith.addf %178, %177 : vector<16x128xf32>
    %180 = arith.divf %178, %179 : vector<16x128xf32>
    %181 = vector.extract_strided_slice %168 {offsets = [0, 256], sizes = [16, 128], strides = [1, 1]} : vector<16x512xf32> to vector<16x128xf32>
    %182 = math.tanh %181 : vector<16x128xf32>
    %183 = vector.extract_strided_slice %168 {offsets = [0, 384], sizes = [16, 128], strides = [1, 1]} : vector<16x512xf32> to vector<16x128xf32>
    %184 = arith.negf %183 : vector<16x128xf32>
    %185 = math.exp %184 : vector<16x128xf32>
    %cst_84 = arith.constant 1.000000e+00 : f32
    %186 = vector.broadcast %cst_84 : f32 to vector<16x128xf32>
    %187 = arith.addf %186, %185 : vector<16x128xf32>
    %188 = arith.divf %186, %187 : vector<16x128xf32>
    %189 = arith.mulf %180, %160 : vector<16x128xf32>
    %190 = arith.mulf %174, %182 : vector<16x128xf32>
    %191 = arith.addf %189, %190 : vector<16x128xf32>
    %192 = math.tanh %191 : vector<16x128xf32>
    %193 = arith.mulf %188, %192 : vector<16x128xf32>
    %c0_85 = arith.constant 0 : index
    %c0_86 = arith.constant 0 : index
    %194 = vector.load %arg10[%c0_85, %c0_86] : memref<16x128xf32, #tpu.memory_space<vmem>>, vector<16x128xf32>
    tpu.vector_store %arg10[%c0_85, %c0_86], %193 {strides = array<i32>} : memref<16x128xf32, #tpu.memory_space<vmem>>, vector<16x128xf32>,
    %c0_87 = arith.constant 0 : index
    %c0_88 = arith.constant 0 : index
    %195 = vector.load %arg11[%c0_87, %c0_88] : memref<16x128xf32, #tpu.memory_space<vmem>>, vector<16x128xf32>
    tpu.vector_store %arg11[%c0_87, %c0_88], %191 {strides = array<i32>} : memref<16x128xf32, #tpu.memory_space<vmem>>, vector<16x128xf32>,
    %c5_i32 = arith.constant 5 : i32
    %c0_89 = arith.constant 0 : index
    %c0_90 = arith.constant 0 : index
    %196 = vector.load %arg10[%c0_89, %c0_90] : memref<16x128xf32, #tpu.memory_space<vmem>>, vector<16x128xf32>
    %c0_91 = arith.constant 0 : index
    %c0_92 = arith.constant 0 : index
    %197 = vector.load %arg11[%c0_91, %c0_92] : memref<16x128xf32, #tpu.memory_space<vmem>>, vector<16x128xf32>
    %c16_i32_93 = arith.constant 16 : i32
    %198 = arith.muli %c5_i32, %c16_i32_93 : i32
    %199 = tpu.assume_multiple %198, 16 : i32
    %200 = arith.index_cast %199 : i32 to index
    %c0_94 = arith.constant 0 : index
    %201 = vector.load %arg9[%200, %c0_94] : memref<128x512xf32, #tpu.memory_space<vmem>>, vector<16x512xf32>
    %202 = arith.truncf %196 : vector<16x128xf32> to vector<16x128xbf16>
    %c0_95 = arith.constant 0 : index
    %c0_96 = arith.constant 0 : index
    %203 = vector.load %arg4[%c0_95, %c0_96] : memref<128x512xbf16, #tpu.memory_space<vmem>>, vector<128x512xbf16>
    %cst_97 = arith.constant dense<0.000000e+00> : vector<16x512xf32>
    %204 = tpu.matmul %202, %203, %cst_97 {dimension_numbers = #tpu.dot_dimension_numbers<[1], [0], [0], [1], [0, 0, 1, 1], [], []>} : vector<16x128xbf16>, vector<128x512xbf16>, vector<16x512xf32> -> vector<16x512xf32>
    %205 = arith.addf %201, %204 : vector<16x512xf32>
    %206 = vector.extract_strided_slice %205 {offsets = [0, 0], sizes = [16, 128], strides = [1, 1]} : vector<16x512xf32> to vector<16x128xf32>
    %207 = arith.negf %206 : vector<16x128xf32>
    %208 = math.exp %207 : vector<16x128xf32>
    %cst_98 = arith.constant 1.000000e+00 : f32
    %209 = vector.broadcast %cst_98 : f32 to vector<16x128xf32>
    %210 = arith.addf %209, %208 : vector<16x128xf32>
    %211 = arith.divf %209, %210 : vector<16x128xf32>
    %212 = vector.extract_strided_slice %205 {offsets = [0, 128], sizes = [16, 128], strides = [1, 1]} : vector<16x512xf32> to vector<16x128xf32>
    %213 = arith.negf %212 : vector<16x128xf32>
    %214 = math.exp %213 : vector<16x128xf32>
    %cst_99 = arith.constant 1.000000e+00 : f32
    %215 = vector.broadcast %cst_99 : f32 to vector<16x128xf32>
    %216 = arith.addf %215, %214 : vector<16x128xf32>
    %217 = arith.divf %215, %216 : vector<16x128xf32>
    %218 = vector.extract_strided_slice %205 {offsets = [0, 256], sizes = [16, 128], strides = [1, 1]} : vector<16x512xf32> to vector<16x128xf32>
    %219 = math.tanh %218 : vector<16x128xf32>
    %220 = vector.extract_strided_slice %205 {offsets = [0, 384], sizes = [16, 128], strides = [1, 1]} : vector<16x512xf32> to vector<16x128xf32>
    %221 = arith.negf %220 : vector<16x128xf32>
    %222 = math.exp %221 : vector<16x128xf32>
    %cst_100 = arith.constant 1.000000e+00 : f32
    %223 = vector.broadcast %cst_100 : f32 to vector<16x128xf32>
    %224 = arith.addf %223, %222 : vector<16x128xf32>
    %225 = arith.divf %223, %224 : vector<16x128xf32>
    %226 = arith.mulf %217, %197 : vector<16x128xf32>
    %227 = arith.mulf %211, %219 : vector<16x128xf32>
    %228 = arith.addf %226, %227 : vector<16x128xf32>
    %229 = math.tanh %228 : vector<16x128xf32>
    %230 = arith.mulf %225, %229 : vector<16x128xf32>
    %c0_101 = arith.constant 0 : index
    %c0_102 = arith.constant 0 : index
    %231 = vector.load %arg10[%c0_101, %c0_102] : memref<16x128xf32, #tpu.memory_space<vmem>>, vector<16x128xf32>
    tpu.vector_store %arg10[%c0_101, %c0_102], %230 {strides = array<i32>} : memref<16x128xf32, #tpu.memory_space<vmem>>, vector<16x128xf32>,
    %c0_103 = arith.constant 0 : index
    %c0_104 = arith.constant 0 : index
    %232 = vector.load %arg11[%c0_103, %c0_104] : memref<16x128xf32, #tpu.memory_space<vmem>>, vector<16x128xf32>
    tpu.vector_store %arg11[%c0_103, %c0_104], %228 {strides = array<i32>} : memref<16x128xf32, #tpu.memory_space<vmem>>, vector<16x128xf32>,
    %c6_i32 = arith.constant 6 : i32
    %c0_105 = arith.constant 0 : index
    %c0_106 = arith.constant 0 : index
    %233 = vector.load %arg10[%c0_105, %c0_106] : memref<16x128xf32, #tpu.memory_space<vmem>>, vector<16x128xf32>
    %c0_107 = arith.constant 0 : index
    %c0_108 = arith.constant 0 : index
    %234 = vector.load %arg11[%c0_107, %c0_108] : memref<16x128xf32, #tpu.memory_space<vmem>>, vector<16x128xf32>
    %c16_i32_109 = arith.constant 16 : i32
    %235 = arith.muli %c6_i32, %c16_i32_109 : i32
    %236 = tpu.assume_multiple %235, 16 : i32
    %237 = arith.index_cast %236 : i32 to index
    %c0_110 = arith.constant 0 : index
    %238 = vector.load %arg9[%237, %c0_110] : memref<128x512xf32, #tpu.memory_space<vmem>>, vector<16x512xf32>
    %239 = arith.truncf %233 : vector<16x128xf32> to vector<16x128xbf16>
    %c0_111 = arith.constant 0 : index
    %c0_112 = arith.constant 0 : index
    %240 = vector.load %arg4[%c0_111, %c0_112] : memref<128x512xbf16, #tpu.memory_space<vmem>>, vector<128x512xbf16>
    %cst_113 = arith.constant dense<0.000000e+00> : vector<16x512xf32>
    %241 = tpu.matmul %239, %240, %cst_113 {dimension_numbers = #tpu.dot_dimension_numbers<[1], [0], [0], [1], [0, 0, 1, 1], [], []>} : vector<16x128xbf16>, vector<128x512xbf16>, vector<16x512xf32> -> vector<16x512xf32>
    %242 = arith.addf %238, %241 : vector<16x512xf32>
    %243 = vector.extract_strided_slice %242 {offsets = [0, 0], sizes = [16, 128], strides = [1, 1]} : vector<16x512xf32> to vector<16x128xf32>
    %244 = arith.negf %243 : vector<16x128xf32>
    %245 = math.exp %244 : vector<16x128xf32>
    %cst_114 = arith.constant 1.000000e+00 : f32
    %246 = vector.broadcast %cst_114 : f32 to vector<16x128xf32>
    %247 = arith.addf %246, %245 : vector<16x128xf32>
    %248 = arith.divf %246, %247 : vector<16x128xf32>
    %249 = vector.extract_strided_slice %242 {offsets = [0, 128], sizes = [16, 128], strides = [1, 1]} : vector<16x512xf32> to vector<16x128xf32>
    %250 = arith.negf %249 : vector<16x128xf32>
    %251 = math.exp %250 : vector<16x128xf32>
    %cst_115 = arith.constant 1.000000e+00 : f32
    %252 = vector.broadcast %cst_115 : f32 to vector<16x128xf32>
    %253 = arith.addf %252, %251 : vector<16x128xf32>
    %254 = arith.divf %252, %253 : vector<16x128xf32>
    %255 = vector.extract_strided_slice %242 {offsets = [0, 256], sizes = [16, 128], strides = [1, 1]} : vector<16x512xf32> to vector<16x128xf32>
    %256 = math.tanh %255 : vector<16x128xf32>
    %257 = vector.extract_strided_slice %242 {offsets = [0, 384], sizes = [16, 128], strides = [1, 1]} : vector<16x512xf32> to vector<16x128xf32>
    %258 = arith.negf %257 : vector<16x128xf32>
    %259 = math.exp %258 : vector<16x128xf32>
    %cst_116 = arith.constant 1.000000e+00 : f32
    %260 = vector.broadcast %cst_116 : f32 to vector<16x128xf32>
    %261 = arith.addf %260, %259 : vector<16x128xf32>
    %262 = arith.divf %260, %261 : vector<16x128xf32>
    %263 = arith.mulf %254, %234 : vector<16x128xf32>
    %264 = arith.mulf %248, %256 : vector<16x128xf32>
    %265 = arith.addf %263, %264 : vector<16x128xf32>
    %266 = math.tanh %265 : vector<16x128xf32>
    %267 = arith.mulf %262, %266 : vector<16x128xf32>
    %c0_117 = arith.constant 0 : index
    %c0_118 = arith.constant 0 : index
    %268 = vector.load %arg10[%c0_117, %c0_118] : memref<16x128xf32, #tpu.memory_space<vmem>>, vector<16x128xf32>
    tpu.vector_store %arg10[%c0_117, %c0_118], %267 {strides = array<i32>} : memref<16x128xf32, #tpu.memory_space<vmem>>, vector<16x128xf32>,
    %c0_119 = arith.constant 0 : index
    %c0_120 = arith.constant 0 : index
    %269 = vector.load %arg11[%c0_119, %c0_120] : memref<16x128xf32, #tpu.memory_space<vmem>>, vector<16x128xf32>
    tpu.vector_store %arg11[%c0_119, %c0_120], %265 {strides = array<i32>} : memref<16x128xf32, #tpu.memory_space<vmem>>, vector<16x128xf32>,
    %c7_i32 = arith.constant 7 : i32
    %c0_121 = arith.constant 0 : index
    %c0_122 = arith.constant 0 : index
    %270 = vector.load %arg10[%c0_121, %c0_122] : memref<16x128xf32, #tpu.memory_space<vmem>>, vector<16x128xf32>
    %c0_123 = arith.constant 0 : index
    %c0_124 = arith.constant 0 : index
    %271 = vector.load %arg11[%c0_123, %c0_124] : memref<16x128xf32, #tpu.memory_space<vmem>>, vector<16x128xf32>
    %c16_i32_125 = arith.constant 16 : i32
    %272 = arith.muli %c7_i32, %c16_i32_125 : i32
    %273 = tpu.assume_multiple %272, 16 : i32
    %274 = arith.index_cast %273 : i32 to index
    %c0_126 = arith.constant 0 : index
    %275 = vector.load %arg9[%274, %c0_126] : memref<128x512xf32, #tpu.memory_space<vmem>>, vector<16x512xf32>
    %276 = arith.truncf %270 : vector<16x128xf32> to vector<16x128xbf16>
    %c0_127 = arith.constant 0 : index
    %c0_128 = arith.constant 0 : index
    %277 = vector.load %arg4[%c0_127, %c0_128] : memref<128x512xbf16, #tpu.memory_space<vmem>>, vector<128x512xbf16>
    %cst_129 = arith.constant dense<0.000000e+00> : vector<16x512xf32>
    %278 = tpu.matmul %276, %277, %cst_129 {dimension_numbers = #tpu.dot_dimension_numbers<[1], [0], [0], [1], [0, 0, 1, 1], [], []>} : vector<16x128xbf16>, vector<128x512xbf16>, vector<16x512xf32> -> vector<16x512xf32>
    %279 = arith.addf %275, %278 : vector<16x512xf32>
    %280 = vector.extract_strided_slice %279 {offsets = [0, 0], sizes = [16, 128], strides = [1, 1]} : vector<16x512xf32> to vector<16x128xf32>
    %281 = arith.negf %280 : vector<16x128xf32>
    %282 = math.exp %281 : vector<16x128xf32>
    %cst_130 = arith.constant 1.000000e+00 : f32
    %283 = vector.broadcast %cst_130 : f32 to vector<16x128xf32>
    %284 = arith.addf %283, %282 : vector<16x128xf32>
    %285 = arith.divf %283, %284 : vector<16x128xf32>
    %286 = vector.extract_strided_slice %279 {offsets = [0, 128], sizes = [16, 128], strides = [1, 1]} : vector<16x512xf32> to vector<16x128xf32>
    %287 = arith.negf %286 : vector<16x128xf32>
    %288 = math.exp %287 : vector<16x128xf32>
    %cst_131 = arith.constant 1.000000e+00 : f32
    %289 = vector.broadcast %cst_131 : f32 to vector<16x128xf32>
    %290 = arith.addf %289, %288 : vector<16x128xf32>
    %291 = arith.divf %289, %290 : vector<16x128xf32>
    %292 = vector.extract_strided_slice %279 {offsets = [0, 256], sizes = [16, 128], strides = [1, 1]} : vector<16x512xf32> to vector<16x128xf32>
    %293 = math.tanh %292 : vector<16x128xf32>
    %294 = vector.extract_strided_slice %279 {offsets = [0, 384], sizes = [16, 128], strides = [1, 1]} : vector<16x512xf32> to vector<16x128xf32>
    %295 = arith.negf %294 : vector<16x128xf32>
    %296 = math.exp %295 : vector<16x128xf32>
    %cst_132 = arith.constant 1.000000e+00 : f32
    %297 = vector.broadcast %cst_132 : f32 to vector<16x128xf32>
    %298 = arith.addf %297, %296 : vector<16x128xf32>
    %299 = arith.divf %297, %298 : vector<16x128xf32>
    %300 = arith.mulf %291, %271 : vector<16x128xf32>
    %301 = arith.mulf %285, %293 : vector<16x128xf32>
    %302 = arith.addf %300, %301 : vector<16x128xf32>
    %303 = math.tanh %302 : vector<16x128xf32>
    %304 = arith.mulf %299, %303 : vector<16x128xf32>
    %c0_133 = arith.constant 0 : index
    %c0_134 = arith.constant 0 : index
    %305 = vector.load %arg10[%c0_133, %c0_134] : memref<16x128xf32, #tpu.memory_space<vmem>>, vector<16x128xf32>
    tpu.vector_store %arg10[%c0_133, %c0_134], %304 {strides = array<i32>} : memref<16x128xf32, #tpu.memory_space<vmem>>, vector<16x128xf32>,
    %c0_135 = arith.constant 0 : index
    %c0_136 = arith.constant 0 : index
    %306 = vector.load %arg11[%c0_135, %c0_136] : memref<16x128xf32, #tpu.memory_space<vmem>>, vector<16x128xf32>
    tpu.vector_store %arg11[%c0_135, %c0_136], %302 {strides = array<i32>} : memref<16x128xf32, #tpu.memory_space<vmem>>, vector<16x128xf32>,
    %c8_i32 = arith.constant 8 : i32
    %c0_i32_137 = arith.constant 0 : i32
    %307 = arith.cmpi eq, %arg1, %c0_i32_137 : i32
    %308 = arith.extui %307 : i1 to i32
    %c0_i32_138 = arith.constant 0 : i32
    %309 = arith.cmpi ne, %308, %c0_i32_138 : i32
    scf.if %309 {
      %c0_139 = arith.constant 0 : index
      %c0_140 = arith.constant 0 : index
      %310 = vector.load %arg10[%c0_139, %c0_140] : memref<16x128xf32, #tpu.memory_space<vmem>>, vector<16x128xf32>
      %311 = arith.truncf %310 : vector<16x128xf32> to vector<16x128xbf16>
      %c0_141 = arith.constant 0 : index
      %c0_142 = arith.constant 0 : index
      %312 = vector.load %arg6[%c0_141, %c0_142] : memref<128x128xbf16, #tpu.memory_space<vmem>>, vector<128x128xbf16>
      %cst_143 = arith.constant dense<0.000000e+00> : vector<16x128xf32>
      %313 = tpu.matmul %311, %312, %cst_143 {dimension_numbers = #tpu.dot_dimension_numbers<[1], [0], [0], [1], [0, 0, 1, 1], [], []>} : vector<16x128xbf16>, vector<128x128xbf16>, vector<16x128xf32> -> vector<16x128xf32>
      %c0_144 = arith.constant 0 : index
      %c0_145 = arith.constant 0 : index
      %314 = vector.load %arg7[%c0_144, %c0_145] : memref<1x128xf32, #tpu.memory_space<vmem>>, vector<1x128xf32>
      %315 = vector.broadcast %314 : vector<1x128xf32> to vector<16x128xf32>
      %316 = arith.addf %313, %315 : vector<16x128xf32>
      %c0_146 = arith.constant 0 : index
      %c0_147 = arith.constant 0 : index
      %317 = vector.load %arg8[%c0_146, %c0_147] : memref<16x128xf32, #tpu.memory_space<vmem>>, vector<16x128xf32>
      tpu.vector_store %arg8[%c0_146, %c0_147], %316 {strides = array<i32>} : memref<16x128xf32, #tpu.memory_space<vmem>>, vector<16x128xf32>,
    } else {
    }
    return
  }
  func.func @transform_0(%arg0: i32, %arg1: i32) -> (i32, i32, i32) {
    %c0_i32 = arith.constant 0 : i32
    %c0_i32_0 = arith.constant 0 : i32
    return %arg1, %arg0, %c0_i32 : i32, i32, i32
  }
  func.func @transform_1(%arg0: i32, %arg1: i32) -> (i32, i32) {
    %c0_i32 = arith.constant 0 : i32
    %c0_i32_0 = arith.constant 0 : i32
    %c0_i32_1 = arith.constant 0 : i32
    return %c0_i32, %c0_i32_0 : i32, i32
  }
  func.func @transform_2(%arg0: i32, %arg1: i32) -> (i32, i32) {
    %c0_i32 = arith.constant 0 : i32
    %c0_i32_0 = arith.constant 0 : i32
    %c0_i32_1 = arith.constant 0 : i32
    return %c0_i32, %c0_i32_0 : i32, i32
  }
  func.func @transform_3(%arg0: i32, %arg1: i32) -> (i32, i32) {
    %c0_i32 = arith.constant 0 : i32
    %c0_i32_0 = arith.constant 0 : i32
    %c0_i32_1 = arith.constant 0 : i32
    return %c0_i32, %c0_i32_0 : i32, i32
  }
  func.func @transform_4(%arg0: i32, %arg1: i32) -> (i32, i32) {
    %c0_i32 = arith.constant 0 : i32
    %c0_i32_0 = arith.constant 0 : i32
    %c0_i32_1 = arith.constant 0 : i32
    return %c0_i32, %c0_i32_0 : i32, i32
  }
  func.func @transform_5(%arg0: i32, %arg1: i32) -> (i32, i32) {
    %c0_i32 = arith.constant 0 : i32
    %c0_i32_0 = arith.constant 0 : i32
    %c0_i32_1 = arith.constant 0 : i32
    return %c0_i32, %c0_i32_0 : i32, i32
  }
  func.func @transform_6(%arg0: i32, %arg1: i32) -> (i32, i32) {
    %c0_i32 = arith.constant 0 : i32
    %c0_i32_0 = arith.constant 0 : i32
    return %arg0, %c0_i32 : i32, i32
  }
}

</mosaic_0001>

<bundles_post_ra>
// kernel: lstm_forward.2
= control target key start
LH: loop header
LB: loop body
LE: loop exit
PB: predicated region body
PF: predicated region fallthrough
CT: control target
= control target key end

     0   :  { %9 = vsyncpa [#allocation6], 0  ;;  %s6638_s0 = inlined_call_operand.vmem [shape: bf16[8,16,16], index: 0, kind: input, shape index: {}]   ;;  %s6639_s1 = inlined_call_operand.vmem [shape: bf16[16,512], index: 1, kind: input, shape index: {}]   ;;  %s6640_s2 = inlined_call_operand.hbm [shape: bf16[128,512], index: 2, kind: input, shape index: {}]   ;;  %s6641_s3 = inlined_call_operand.hbm [shape: f32[1,512], index: 3, kind: input, shape index: {}]   ;;  %s6642_s4 = inlined_call_operand.vmem [shape: bf16[8,16,128], index: 4, kind: output, shape index: {}]  }
   0x1   :  { %s19_s17 = sshll.u32 %s6640_s2, 4  ;;  %s20_s17 = int_to_ptr.hbm [resolvable:$true] %s19_s17 }
   0x2   :  { %10 = vsyncpa [#allocation8], 0  ;;  %s5493_s18 = smov [#allocation5]   ;;  %s33_s22 = sshll.u32 %s6641_s3, 4  ;;  %s34_s22 = int_to_ptr.hbm [resolvable:$true] %s33_s22 }
   0x3   :  { %s21_s19 = sshll.u32 %s5493_s18, 4  ;;  %s5494_s23 = smov 256   ;;  %s22_s19 = int_to_ptr.vmem [resolvable:$true] %s21_s19 }
   0x4   :  { %s5495_s24 = smov 16   ;;  %s5496_s25 = smov [#allocation7]  }
   0x5   :  { %27 = dma.hbm_to_vmem [thread:$0]  %s20_s17, 4096, %s22_s19, [#allocation6], %s5494_s23, %s5494_s23, %s5495_s24  }
   0x6   :  { %s35_s26 = sshll.u32 %s5496_s25, 4  ;;  %s36_s26 = int_to_ptr.vmem [resolvable:$true] %s35_s26 }
   0x7   :  { %38 = dma.hbm_to_vmem [thread:$0]  %s34_s22, 64, %s36_s26, [#allocation8]  }
   0x8   :  { %5489 = dma.done.wait [#allocation6], 4096  }
   0x9   :  { %5490 = vsyncadd [#allocation6], 4294963200 }
   0xa   :  { %5491 = dma.done.wait [#allocation8], 64  }
   0xb   :  { %5492 = vsyncadd [#allocation8], 4294967232  ;;  %v3733_v0 = vld [vmem:[%s6639_s1] sm:$0xf]  ;;  %v4875_v1 = vld [vmem:[%s6639_s1 + $0xc] sm:$0xf0] }
   0xc   :  { %v4873_v2 = vld [vmem:[%s6639_s1 + $0x4] sm:$0xf]  ;;  %v3734_v3 = vor.u32 %v4875_v1, %v3733_v0  ;;  %v3735_v4 = vld [vmem:[%s6639_s1 + $0x10] sm:$0xf0]  ;;  %v3741_v5 = vld [vmem:[%s6639_s1 + $0x8] sm:$0xf] }
   0xd   :  { %v4876_v6 = vld [vmem:[%s6639_s1 + $0x14] sm:$0xf0]  ;;  %v3738_v7 = vor.u32 %v4873_v2, %v3735_v4  ;;  %v4874_v9 = vld [vmem:[%s6639_s1 + $0xc] sm:$0xf]  ;;  %v3743_v10 = vld [vmem:[%s6639_s1 + $0x18] sm:$0xf0] }
   0xe   :  { %v3742_v8 = vor.u32 %v4876_v6, %v3741_v5  ;;  %v4865_v11 = vld [vmem:[%s6638_s0] sm:$0xff]  ;;  %vm146_vm0 = vcmask 130048   ;;  %178 = vmatpush.bf16.msra.mxu0 %v3734_v3  ;;  %v3746_v12 = vor.u32 %v4874_v9, %v3743_v10  ;;  %v4907_v14 = vld [vmem:[#allocation5 + $0xec] sm:$0xf0]  ;;  %v3895_v17 = vld [vmem:[#allocation5 + $0xf0] sm:$0xf0] }
   0xf   :  { %v3893_v13 = vld [vmem:[#allocation5 + $0xe0] sm:$0xf]  ;;  %v4905_v15 = vld [vmem:[#allocation5 + $0xe4] sm:$0xf]  ;;  %227 = vmatpush.bf16.msra.mxu1 %v3738_v7  ;;  %v4906_v18 = vld [vmem:[#allocation5 + $0xec] sm:$0xf] }
  0x10   :  { %276 = vmatpush.bf16.msra.mxu2 %v3742_v8  ;;  %v3894_v16 = vor.u32 %v4907_v14, %v3893_v13  ;;  %v3903_v19 = vld [vmem:[#allocation5 + $0xf8] sm:$0xf0]  ;;  %325 = vmatpush.bf16.msra.mxu3 %v3746_v12  ;;  %v3898_v20 = vor.u32 %v4905_v15, %v3895_v17  ;;  %v3901_v22 = vld [vmem:[#allocation5 + $0xe8] sm:$0xf]  ;;  %v4908_v23 = vld [vmem:[#allocation5 + $0xf4] sm:$0xf0] }
  0x11   :  { %v3906_v21 = vor.u32 %v4906_v18, %v3903_v19  ;;  %3747 = vmatmul.msk.bf16.vlgmr.msra.gmra.mxu0 %vm146_vm0, %v4865_v11  ;;  %v3902_v24 = vor.u32 %v4908_v23, %v3901_v22  ;;  %v3877_v25 = vld [vmem:[#allocation5 + $0xc0] sm:$0xf]  ;;  %v4903_v26 = vld [vmem:[#allocation5 + $0xcc] sm:$0xf0]  ;;  %v4901_v27 = vld [vmem:[#allocation5 + $0xc4] sm:$0xf] }
  0x12   :  { %3755 = vmatmul.msk.bf16.vlgmr.msra.gmra.mxu1 %vm146_vm0, %v4865_v11  ;;  %v3879_v28 = vld [vmem:[#allocation5 + $0xd0] sm:$0xf0]  ;;  %v4902_v29 = vld [vmem:[#allocation5 + $0xcc] sm:$0xf]  ;;  %v3887_v30 = vld [vmem:[#allocation5 + $0xd8] sm:$0xf0]  ;;  %639 = vmatpush.bf16.msrb.mxu0 %v3894_v16  ;;  %v3878_v31 = vor.u32 %v4903_v26, %v3877_v25 }
  0x13   :  { %3763 = vmatmul.msk.bf16.vlgmr.msra.gmra.mxu2 %vm146_vm0, %v4865_v11  ;;  %3771 = vmatmul.msk.bf16.vlgmr.msra.gmra.mxu3 %vm146_vm0, %v4865_v11  ;;  %v3885_v32 = vld [vmem:[#allocation5 + $0xc8] sm:$0xf]  ;;  %v4904_v33 = vld [vmem:[#allocation5 + $0xd4] sm:$0xf0]  ;;  %v3882_v34 = vor.u32 %v4901_v27, %v3879_v28  ;;  %v3890_v35 = vor.u32 %v4902_v29, %v3887_v30  ;;  %v3861_v36 = vld [vmem:[#allocation5 + $0xa0] sm:$0xf] }
  0x14   :  { %653 = vmatpush.bf16.msrb.mxu1 %v3898_v20  ;;  %681 = vmatpush.bf16.msrb.mxu3 %v3906_v21  ;;  %v4899_v37 = vld [vmem:[#allocation5 + $0xac] sm:$0xf0]  ;;  %v4897_v38 = vld [vmem:[#allocation5 + $0xa4] sm:$0xf]  ;;  %v3886_v39 = vor.u32 %v4904_v33, %v3885_v32  ;;  %v3863_v40 = vld [vmem:[#allocation5 + $0xb0] sm:$0xf0] }
  0x15   :  { %667 = vmatpush.bf16.msrb.mxu2 %v3902_v24  ;;  %v4898_v41 = vld [vmem:[#allocation5 + $0xac] sm:$0xf]  ;;  %v3871_v42 = vld [vmem:[#allocation5 + $0xb8] sm:$0xf0]  ;;  %v3869_v43 = vld [vmem:[#allocation5 + $0xa8] sm:$0xf]  ;;  %v3862_v45 = vor.u32 %v4899_v37, %v3861_v36  ;;  %v3866_v46 = vor.u32 %v4897_v38, %v3863_v40 }
  0x16   :  { %v4900_v44 = vld [vmem:[#allocation5 + $0xb4] sm:$0xf0]  ;;  %640 = vmatpush.bf16.msrb.mxu0 %v3878_v31  ;;  %v3874_v47 = vor.u32 %v4898_v41, %v3871_v42  ;;  %v4866_v49 = vld [vmem:[%s6638_s0 + $0x8] sm:$0xff]  ;;  %v3845_v50 = vld [vmem:[#allocation5 + $0x80] sm:$0xf] }
  0x17   :  { %v3870_v48 = vor.u32 %v4900_v44, %v3869_v43  ;;  %v4895_v51 = vld [vmem:[#allocation5 + $0x8c] sm:$0xf0]  ;;  %v4893_v52 = vld [vmem:[#allocation5 + $0x84] sm:$0xf]  ;;  %v3847_v54 = vld [vmem:[#allocation5 + $0x90] sm:$0xf0] }
  0x18   :  { %654 = vmatpush.bf16.msrb.mxu1 %v3882_v34  ;;  %682 = vmatpush.bf16.msrb.mxu3 %v3890_v35  ;;  %v3846_v53 = vor.u32 %v4895_v51, %v3845_v50  ;;  %v4894_v55 = vld [vmem:[#allocation5 + $0x8c] sm:$0xf]  ;;  %v3855_v56 = vld [vmem:[#allocation5 + $0x98] sm:$0xf0]  ;;  %v3850_v57 = vor.u32 %v4893_v52, %v3847_v54  ;;  %v3853_v59 = vld [vmem:[#allocation5 + $0x88] sm:$0xf] }
  0x19   :  { %668 = vmatpush.bf16.msrb.mxu2 %v3886_v39  ;;  %v3858_v58 = vor.u32 %v4894_v55, %v3855_v56  ;;  %v4896_v60 = vld [vmem:[#allocation5 + $0x94] sm:$0xf0]  ;;  %v4867_v62 = vld [vmem:[%s6638_s0 + $0x10] sm:$0xff]  ;;  %v3829_v63 = vld [vmem:[#allocation5 + $0x60] sm:$0xf]  ;;  %v5497_v54 = vmov 0.0|0.0  }
  0x1a   :  { %641 = vmatpush.bf16.msrb.mxu0 %v3862_v45  ;;  %v3854_v61 = vor.u32 %v4896_v60, %v3853_v59  ;;  %v4891_v0 = vld [vmem:[#allocation5 + $0x6c] sm:$0xf0]  ;;  %v4889_v1 = vld [vmem:[#allocation5 + $0x64] sm:$0xf]  ;;  %v3831_v3 = vld [vmem:[#allocation5 + $0x70] sm:$0xf0] }
  0x1b   :  { %v3830_v2 = vor.u32 %v4891_v0, %v3829_v63  ;;  %v4890_v4 = vld [vmem:[#allocation5 + $0x6c] sm:$0xf]  ;;  %v3839_v5 = vld [vmem:[#allocation5 + $0x78] sm:$0xf0]  ;;  %v3834_v6 = vor.u32 %v4889_v1, %v3831_v3  ;;  %v3837_v8 = vld [vmem:[#allocation5 + $0x68] sm:$0xf] }
  0x1c   :  { %655 = vmatpush.bf16.msrb.mxu1 %v3866_v46  ;;  %683 = vmatpush.bf16.msrb.mxu3 %v3874_v47  ;;  %v3842_v7 = vor.u32 %v4890_v4, %v3839_v5  ;;  %v4892_v9 = vld [vmem:[#allocation5 + $0x74] sm:$0xf0]  ;;  %v3813_v12 = vld [vmem:[#allocation5 + $0x40] sm:$0xf]  ;;  %v4887_v13 = vld [vmem:[#allocation5 + $0x4c] sm:$0xf0] }
  0x1d   :  { %669 = vmatpush.bf16.msrb.mxu2 %v3870_v48  ;;  %v3838_v10 = vor.u32 %v4892_v9, %v3837_v8  ;;  %v4868_v11 = vld [vmem:[%s6638_s0 + $0x18] sm:$0xff]  ;;  %v4885_v14 = vld [vmem:[#allocation5 + $0x44] sm:$0xf]  ;;  %v3814_v15 = vor.u32 %v4887_v13, %v3813_v12  ;;  %v3815_v16 = vld [vmem:[#allocation5 + $0x50] sm:$0xf0] }
  0x1e   :  { %642 = vmatpush.bf16.msrb.mxu0 %v3846_v53  ;;  %v4886_v17 = vld [vmem:[#allocation5 + $0x4c] sm:$0xf]  ;;  %v3823_v18 = vld [vmem:[#allocation5 + $0x58] sm:$0xf0]  ;;  %v3818_v19 = vor.u32 %v4885_v14, %v3815_v16  ;;  %v3821_v21 = vld [vmem:[#allocation5 + $0x48] sm:$0xf] }
  0x1f   :  { %v3826_v20 = vor.u32 %v4886_v17, %v3823_v18  ;;  %v4888_v22 = vld [vmem:[#allocation5 + $0x54] sm:$0xf0]  ;;  %v4869_v24 = vld [vmem:[%s6638_s0 + $0x20] sm:$0xff]  ;;  %v4883_v26 = vld [vmem:[#allocation5 + $0x2c] sm:$0xf0] }
  0x20   :  { %656 = vmatpush.bf16.msrb.mxu1 %v3850_v57  ;;  %684 = vmatpush.bf16.msrb.mxu3 %v3858_v58  ;;  %v3822_v23 = vor.u32 %v4888_v22, %v3821_v21  ;;  %v3797_v25 = vld [vmem:[#allocation5 + $0x20] sm:$0xf]  ;;  %v4881_v27 = vld [vmem:[#allocation5 + $0x24] sm:$0xf]  ;;  %v3799_v29 = vld [vmem:[#allocation5 + $0x30] sm:$0xf0] }
  0x21   :  { %3748 = vmatmul.msk.bf16.gmra.mxu0 %vm146_vm0, %v4866_v49  ;;  %670 = vmatpush.bf16.msrb.mxu2 %v3854_v61  ;;  %v3798_v28 = vor.u32 %v4883_v26, %v3797_v25  ;;  %v4882_v30 = vld [vmem:[#allocation5 + $0x2c] sm:$0xf]  ;;  %v3807_v31 = vld [vmem:[#allocation5 + $0x38] sm:$0xf0]  ;;  %v3802_v32 = vor.u32 %v4881_v27, %v3799_v29  ;;  %v3805_v34 = vld [vmem:[#allocation5 + $0x28] sm:$0xf] }
  0x22   :  { %3756 = vmatmul.msk.bf16.gmra.mxu1 %vm146_vm0, %v4866_v49  ;;  %643 = vmatpush.bf16.msrb.mxu0 %v3830_v2  ;;  %v3810_v33 = vor.u32 %v4882_v30, %v3807_v31  ;;  %v4884_v35 = vld [vmem:[#allocation5 + $0x34] sm:$0xf0]  ;;  %v4870_v37 = vld [vmem:[%s6638_s0 + $0x28] sm:$0xff]  ;;  %v3781_v38 = vld [vmem:[#allocation5] sm:$0xf] }
  0x23   :  { %3764 = vmatmul.msk.bf16.gmra.mxu2 %vm146_vm0, %v4866_v49  ;;  %3772 = vmatmul.msk.bf16.gmra.mxu3 %vm146_vm0, %v4866_v49  ;;  %v3806_v36 = vor.u32 %v4884_v35, %v3805_v34  ;;  %v4879_v39 = vld [vmem:[#allocation5 + $0xc] sm:$0xf0]  ;;  %v4877_v40 = vld [vmem:[#allocation5 + $0x4] sm:$0xf]  ;;  %v3783_v42 = vld [vmem:[#allocation5 + $0x10] sm:$0xf0] }
  0x24   :  { %657 = vmatpush.bf16.msrb.mxu1 %v3834_v6  ;;  %685 = vmatpush.bf16.msrb.mxu3 %v3842_v7  ;;  %v3782_v41 = vor.u32 %v4879_v39, %v3781_v38  ;;  %v4878_v43 = vld [vmem:[#allocation5 + $0xc] sm:$0xf]  ;;  %v3791_v44 = vld [vmem:[#allocation5 + $0x18] sm:$0xf0]  ;;  %v3786_v45 = vor.u32 %v4877_v40, %v3783_v42  ;;  %v4871_v47 = vld [vmem:[%s6638_s0 + $0x30] sm:$0xff] }
  0x25   :  { %671 = vmatpush.bf16.msrb.mxu2 %v3838_v10  ;;  %v3794_v46 = vor.u32 %v4878_v43, %v3791_v44  ;;  %v3789_v48 = vld [vmem:[#allocation5 + $0x8] sm:$0xf]  ;;  %v4880_v49 = vld [vmem:[#allocation5 + $0x14] sm:$0xf0] }
  0x26   :  { %644 = vmatpush.bf16.msrb.mxu0 %v3814_v15  ;;  %v3790_v50 = vor.u32 %v4880_v49, %v3789_v48  ;;  %v4872_v51 = vld [vmem:[%s6638_s0 + $0x38] sm:$0xff] }
  0x28   :  { %658 = vmatpush.bf16.msrb.mxu1 %v3818_v19  ;;  %686 = vmatpush.bf16.msrb.mxu3 %v3826_v20 }
  0x29   :  { %672 = vmatpush.bf16.msrb.mxu2 %v3822_v23 }
  0x2a   :  { %645 = vmatpush.bf16.msrb.mxu0 %v3798_v28 }
  0x2c   :  { %659 = vmatpush.bf16.msrb.mxu1 %v3802_v32  ;;  %687 = vmatpush.bf16.msrb.mxu3 %v3810_v33 }
  0x2d   :  { %673 = vmatpush.bf16.msrb.mxu2 %v3806_v36 }
  0x2e   :  { %646 = vmatpush.bf16.msrb.mxu0 %v3782_v41 }
  0x30   :  { %660 = vmatpush.bf16.msrb.mxu1 %v3786_v45  ;;  %688 = vmatpush.bf16.msrb.mxu3 %v3794_v46 }
  0x31   :  { %3749 = vmatmul.msk.bf16.gmra.mxu0 %vm146_vm0, %v4867_v62  ;;  %674 = vmatpush.bf16.msrb.mxu2 %v3790_v50 }
  0x32   :  { %3757 = vmatmul.msk.bf16.gmra.mxu1 %vm146_vm0, %v4867_v62 }
  0x33   :  { %3765 = vmatmul.msk.bf16.gmra.mxu2 %vm146_vm0, %v4867_v62  ;;  %3773 = vmatmul.msk.bf16.gmra.mxu3 %vm146_vm0, %v4867_v62 }
  0x41   :  { %3750 = vmatmul.msk.bf16.gmra.mxu0 %vm146_vm0, %v4868_v11 }
  0x42   :  { %3758 = vmatmul.msk.bf16.gmra.mxu1 %vm146_vm0, %v4868_v11 }
  0x43   :  { %3766 = vmatmul.msk.bf16.gmra.mxu2 %vm146_vm0, %v4868_v11  ;;  %3774 = vmatmul.msk.bf16.gmra.mxu3 %vm146_vm0, %v4868_v11 }
  0x51   :  { %3751 = vmatmul.msk.bf16.gmra.mxu0 %vm146_vm0, %v4869_v24 }
  0x52   :  { %3759 = vmatmul.msk.bf16.gmra.mxu1 %vm146_vm0, %v4869_v24 }
  0x53   :  { %3767 = vmatmul.msk.bf16.gmra.mxu2 %vm146_vm0, %v4869_v24  ;;  %3775 = vmatmul.msk.bf16.gmra.mxu3 %vm146_vm0, %v4869_v24 }
  0x61   :  { %3752 = vmatmul.msk.bf16.gmra.mxu0 %vm146_vm0, %v4870_v37 }
  0x62   :  { %3760 = vmatmul.msk.bf16.gmra.mxu1 %vm146_vm0, %v4870_v37 }
  0x63   :  { %3768 = vmatmul.msk.bf16.gmra.mxu2 %vm146_vm0, %v4870_v37  ;;  %3776 = vmatmul.msk.bf16.gmra.mxu3 %vm146_vm0, %v4870_v37 }
  0x71   :  { %3753 = vmatmul.msk.bf16.gmra.mxu0 %vm146_vm0, %v4871_v47 }
  0x72   :  { %3761 = vmatmul.msk.bf16.gmra.mxu1 %vm146_vm0, %v4871_v47 }
  0x73   :  { %3769 = vmatmul.msk.bf16.gmra.mxu2 %vm146_vm0, %v4871_v47  ;;  %3777 = vmatmul.msk.bf16.gmra.mxu3 %vm146_vm0, %v4871_v47  ;;  %v5725_v47 = vld [vmem:[#allocation7] sm:$0xf] }
  0x74   :  { %v5732_v50 = vperm.slane %v5725_v47, 0 }
  0x81   :  { %3754 = vmatmul.msk.bf16.gmra.mxu0 %vm146_vm0, %v4872_v51 }
  0x82   :  { %3762 = vmatmul.msk.bf16.gmra.mxu1 %vm146_vm0, %v4872_v51 }
  0x83   :  { %3770 = vmatmul.msk.bf16.gmra.mxu2 %vm146_vm0, %v4872_v51  ;;  %3778 = vmatmul.msk.bf16.gmra.mxu3 %vm146_vm0, %v4872_v51 }
  0x8e   :  { %v5609_v52 = vpop.f32.mrf.mxu0 }
  0x8f   :  { %v5611_v53 = vpop.f32.mrf.mxu1 }
  0x91   :  { %647 = vmatmul.bf16.vlgmr.msrb.gmra.mxu0 %v5497_v54 }
  0x92   :  { %661 = vmatmul.bf16.vlgmr.msrb.gmra.mxu1 %v5497_v54 }
  0x93   :  { %675 = vmatmul.bf16.vlgmr.msrb.gmra.mxu2 %v5497_v54  ;;  %689 = vmatmul.bf16.vlgmr.msrb.gmra.mxu3 %v5497_v54  ;;  %v4027_v54 = vld [vmem:[#allocation5 + $0xe0] sm:$0xf] }
  0x96   :  { %v5613_v55 = vpop.f32.mrf.mxu2  ;;  %v5615_v56 = vpop.f32.mrf.mxu3 }
  0x97   :  { %v5617_v57 = vpop.f32.mrf.mxu0  ;;  %v5619_v58 = vpop.f32.mrf.mxu1 }
  0x9e   :  { %v5621_v59 = vpop.f32.mrf.mxu2  ;;  %v5623_v60 = vpop.f32.mrf.mxu3 }
  0x9f   :  { %v5625_v61 = vpop.f32.mrf.mxu0  ;;  %v5627_v62 = vpop.f32.mrf.mxu1 }
  0xa6   :  { %v5629_v63 = vpop.f32.mrf.mxu2  ;;  %v5631_v0 = vpop.f32.mrf.mxu3 }
  0xa7   :  { %v5633_v1 = vpop.f32.mrf.mxu0  ;;  %v5635_v2 = vpop.f32.mrf.mxu1 }
  0xae   :  { %v5637_v3 = vpop.f32.mrf.mxu2  ;;  %v5639_v4 = vpop.f32.mrf.mxu3 }
  0xaf   :  { %v5641_v5 = vpop.f32.mrf.mxu0  ;;  %v5643_v6 = vpop.f32.mrf.mxu1 }
  0xb6   :  { %v5645_v7 = vpop.f32.mrf.mxu2  ;;  %v5647_v8 = vpop.f32.mrf.mxu3 }
  0xb7   :  { %v5649_v9 = vpop.f32.mrf.mxu0  ;;  %v5651_v10 = vpop.f32.mrf.mxu1 }
  0xbe   :  { %v5653_v11 = vpop.f32.mrf.mxu2  ;;  %v5655_v12 = vpop.f32.mrf.mxu3 }
  0xbf   :  { %v5657_v13 = vpop.f32.mrf.mxu0  ;;  %v5659_v14 = vpop.f32.mrf.mxu1 }
  0xc6   :  { %v5661_v15 = vpop.f32.mrf.mxu2  ;;  %v5663_v16 = vpop.f32.mrf.mxu3 }
  0xc7   :  { %v5665_v17 = vpop.f32.mrf.mxu0  ;;  %v5667_v18 = vpop.f32.mrf.mxu1 }
  0xce   :  { %v5669_v19 = vpop.f32.mrf.mxu2  ;;  %v5671_v20 = vpop.f32.mrf.mxu3 }
  0xcf   :  { %v5673_v21 = vpop.f32.mrf.mxu0  ;;  %v5675_v22 = vpop.f32.mrf.mxu1 }
  0xd6   :  { %v5677_v23 = vpop.f32.mrf.mxu2  ;;  %v5679_v24 = vpop.f32.mrf.mxu3 }
  0xd7   :  { %6643 = vst [vmem:[#allocation11_spill] sm:$0xff] %v5677_v23  ;;  %v5681_v25 = vpop.f32.mrf.mxu0  ;;  %v5683_v26 = vpop.f32.mrf.mxu1  ;;  %v3931_v23 = vld [vmem:[#allocation5 + $0x20] sm:$0xf] }
  0xd8   :  { %6644 = vst [vmem:[#allocation12_spill] sm:$0xff] %v5683_v26 }
  0xde   :  { %v5685_v27 = vpop.f32.mrf.mxu2  ;;  %v5687_v28 = vpop.f32.mrf.mxu3 }
  0xdf   :  { %6645 = vst [vmem:[#allocation13_spill] sm:$0xff] %v5685_v27  ;;  %v5689_v29 = vpop.f32.mrf.mxu0  ;;  %v5691_v30 = vpop.f32.mrf.mxu1  ;;  %v4930_v27 = vld [vmem:[#allocation5 + $0xac] sm:$0xf] }
  0xe0   :  { %6646 = vst [vmem:[#allocation14_spill] sm:$0xff] %v5687_v28 }
  0xe1   :  { %6647 = vst [vmem:[#allocation15_spill] sm:$0xff] %v5689_v29  ;;  %v4932_v29 = vld [vmem:[#allocation5 + $0xb4] sm:$0xf0] }
  0xe2   :  { %6648 = vst [vmem:[#allocation16_spill] sm:$0xff] %v5691_v30 }
  0xe6   :  { %v5693_v31 = vpop.f32.mrf.mxu2  ;;  %v5695_v32 = vpop.f32.mrf.mxu3 }
  0xe7   :  { %6649 = vst [vmem:[#allocation17_spill] sm:$0xff] %v5693_v31  ;;  %v5697_v33 = vpop.f32.mrf.mxu0  ;;  %v5699_v34 = vpop.f32.mrf.mxu1  ;;  %v4933_v31 = vld [vmem:[#allocation5 + $0xc4] sm:$0xf] }
  0xe8   :  { %6650 = vst [vmem:[#allocation18_spill] sm:$0xff] %v5695_v32  ;;  %v4931_v32 = vld [vmem:[#allocation5 + $0xac] sm:$0xf0] }
  0xe9   :  { %6651 = vst [vmem:[#allocation19_spill] sm:$0xff] %v5697_v33  ;;  %v4936_v33 = vld [vmem:[#allocation5 + $0xd4] sm:$0xf0] }
  0xea   :  { %6652 = vst [vmem:[#allocation20_spill] sm:$0xff] %v5699_v34  ;;  %v4019_v34 = vld [vmem:[#allocation5 + $0xc8] sm:$0xf] }
  0xee   :  { %v5701_v35 = vpop.f32.mrf.mxu2  ;;  %v5703_v36 = vpop.f32.mrf.mxu3 }
  0xef   :  { %6653 = vst [vmem:[#allocation21_spill] sm:$0xff] %v5701_v35  ;;  %v5705_v37 = vpop.f32.mrf.mxu0  ;;  %v5707_v38 = vpop.f32.mrf.mxu1 }
  0xf0   :  { %6654 = vst [vmem:[#allocation22_spill] sm:$0xff] %v5703_v36  ;;  %v4935_v36 = vld [vmem:[#allocation5 + $0xcc] sm:$0xf0] }
  0xf1   :  { %6655 = vst [vmem:[#allocation23_spill] sm:$0xff] %v5705_v37  ;;  %v4037_v37 = vld [vmem:[#allocation5 + $0xf8] sm:$0xf0] }
  0xf2   :  { %6656 = vst [vmem:[#allocation24_spill] sm:$0xff] %v5707_v38 }
  0xf6   :  { %v5709_v39 = vpop.f32.mrf.mxu2  ;;  %v5711_v40 = vpop.f32.mrf.mxu3 }
  0xf7   :  { %6657 = vst [vmem:[#allocation25_spill] sm:$0xff] %v5709_v39  ;;  %v5713_v41 = vpop.f32.mrf.mxu0  ;;  %v5715_v42 = vpop.f32.mrf.mxu1  ;;  %v4939_v39 = vld [vmem:[#allocation5 + $0xec] sm:$0xf0] }
  0xf8   :  { %6658 = vst [vmem:[#allocation26_spill] sm:$0xff] %v5711_v40  ;;  %v5739_v40 = vperm.slane %v5725_v47, 1 }
  0xf9   :  { %6659 = vst [vmem:[#allocation27_spill] sm:$0xff] %v5713_v41  ;;  %v4035_v41 = vld [vmem:[#allocation5 + $0xe8] sm:$0xf] }
  0xfa   :  { %6660 = vst [vmem:[#allocation28_spill] sm:$0xff] %v5715_v42 }
  0xfe   :  { %v5717_v43 = vpop.f32.mrf.mxu3  ;;  %v5721_v45 = vpop.f32.mrf.mxu2 }
  0xff   :  { %6661 = vst [vmem:[#allocation29_spill] sm:$0xff] %v5717_v43  ;;  %v5719_v44 = vpop.f32.mrf.mxu0  ;;  %v5723_v46 = vpop.f32.mrf.mxu1  ;;  %v4937_v43 = vld [vmem:[#allocation5 + $0xe4] sm:$0xf] }
 0x100   :  { %6662 = vst [vmem:[#allocation30_spill] sm:$0xff] %v5719_v44  ;;  %v4028_v44 = vor.u32 %v4939_v39, %v4027_v54  ;;  %v181_v39 = vadd.f32 %v5609_v52, %v5732_v50 }
 0x101   :  { %6663 = vst [vmem:[#allocation31_spill] sm:$0xff] %v5721_v45  ;;  %v4029_v45 = vld [vmem:[#allocation5 + $0xf0] sm:$0xf0] }
 0x102   :  { %6664 = vst [vmem:[#allocation32_spill] sm:$0xff] %v5723_v46  ;;  %v4940_v46 = vld [vmem:[#allocation5 + $0xf4] sm:$0xf0]  ;;  %1045 = vmatpush.bf16.msra.mxu0 %v4028_v44 }
 0x103   :  { %v4036_v38 = vor.u32 %v4940_v46, %v4035_v41  ;;  %v230_v41 = vadd.f32 %v5611_v53, %v5739_v40  ;;  %v4021_v46 = vld [vmem:[#allocation5 + $0xd8] sm:$0xf0]  ;;  %v4929_v53 = vld [vmem:[#allocation5 + $0xa4] sm:$0xf] }
 0x105   :  { %1073 = vmatpush.bf16.msra.mxu2 %v4036_v38  ;;  %v4934_v38 = vld [vmem:[#allocation5 + $0xcc] sm:$0xf] }
 0x106   :  { %v5727_v48 = vpop.f32.mrf.mxu3  ;;  %v5736_v42 = vpop.f32.mrf.mxu2 }
 0x107   :  { %6665 = vst [vmem:[#allocation33_spill] sm:$0xff] %v5727_v48  ;;  %v5729_v49 = vpop.f32.mrf.mxu0  ;;  %v5734_v51 = vpop.f32.mrf.mxu1  ;;  %v4032_v48 = vor.u32 %v4937_v43, %v4029_v45  ;;  %v4020_v45 = vor.u32 %v4936_v33, %v4019_v34  ;;  %v4003_v33 = vld [vmem:[#allocation5 + $0xa8] sm:$0xf] }
 0x108   :  { %6666 = vst [vmem:[#allocation34_spill] sm:$0xff] %v5729_v49  ;;  %v4938_v49 = vld [vmem:[#allocation5 + $0xec] sm:$0xf] }
 0x109   :  { %6667 = vst [vmem:[#allocation35_spill] sm:$0xff] %v5734_v51  ;;  %v4040_v35 = vor.u32 %v4938_v49, %v4037_v37  ;;  %1059 = vmatpush.bf16.msra.mxu1 %v4032_v48  ;;  %v4011_v51 = vld [vmem:[#allocation5 + $0xc0] sm:$0xf]  ;;  %v5748_v48 = vperm.slane %v5725_v47, 3  ;;  %1074 = vmatpush.bf16.msra.mxu2 %v4020_v45  ;;  %v4925_v45 = vld [vmem:[#allocation5 + $0x84] sm:$0xf] }
 0x10a   :  { %6668 = vst [vmem:[#allocation36_spill] sm:$0xff] %v5736_v42  ;;  %v4012_v54 = vor.u32 %v4935_v36, %v4011_v51  ;;  %v4013_v42 = vld [vmem:[#allocation5 + $0xd0] sm:$0xf0]  ;;  %v3995_v51 = vld [vmem:[#allocation5 + $0xa0] sm:$0xf] }
 0x10b   :  { %1087 = vmatpush.bf16.msra.mxu3 %v4040_v35  ;;  %v4016_v37 = vor.u32 %v4933_v31, %v4013_v42  ;;  %v4024_v35 = vor.u32 %v4934_v38, %v4021_v46  ;;  %v3997_v31 = vld [vmem:[#allocation5 + $0xb0] sm:$0xf0]  ;;  %v183_v38 = vadd.f32 %v5617_v57, %v5732_v50 }
 0x10c   :  { %1046 = vmatpush.bf16.msra.mxu0 %v4012_v54  ;;  %v4000_v42 = vor.u32 %v4929_v53, %v3997_v31  ;;  %v4005_v54 = vld [vmem:[#allocation5 + $0xb8] sm:$0xf0] }
 0x10d   :  { %1060 = vmatpush.bf16.msra.mxu1 %v4016_v37  ;;  %v4927_v37 = vld [vmem:[#allocation5 + $0x8c] sm:$0xf0]  ;;  %v3989_v53 = vld [vmem:[#allocation5 + $0x98] sm:$0xf0] }
 0x10e   :  { %v5745_v43 = vpop.f32.mrf.mxu3  ;;  %v5750_v28 = vpop.f32.mrf.mxu2 }
 0x10f   :  { %6669 = vst [vmem:[#allocation37_spill] sm:$0xff] %v5745_v43  ;;  %v648_v44 = vpop.f32.mrf.mxu0  ;;  %v662_v52 = vpop.f32.mrf.mxu1  ;;  %1088 = vmatpush.bf16.msra.mxu3 %v4024_v35  ;;  %v3996_v43 = vor.u32 %v4931_v32, %v3995_v51  ;;  %v328_v32 = vadd.f32 %v5615_v56, %v5748_v48  ;;  %v4926_v51 = vld [vmem:[#allocation5 + $0x8c] sm:$0xf] }
 0x110   :  { %v695_v49 = vadd.f32 %v648_v44, %v181_v39  ;;  %v696_v36 = vadd.f32 %v662_v52, %v230_v41  ;;  %6670 = vst [vmem:[#allocation38_spill] sm:$0xff] %v5750_v28  ;;  %v4004_v39 = vor.u32 %v4932_v29, %v4003_v33  ;;  %v4008_v41 = vor.u32 %v4930_v27, %v4005_v54  ;;  %v3979_v44 = vld [vmem:[#allocation5 + $0x80] sm:$0xf]  ;;  %v3987_v52 = vld [vmem:[#allocation5 + $0x88] sm:$0xf] }
 0x111   :  { %1047 = vmatpush.bf16.msra.mxu0 %v3996_v43  ;;  %1061 = vmatpush.bf16.msra.mxu1 %v4000_v42  ;;  %v3980_v46 = vor.u32 %v4927_v37, %v3979_v44  ;;  %v232_v29 = vadd.f32 %v5619_v58, %v5739_v40  ;;  %v3992_v57 = vor.u32 %v4926_v51, %v3989_v53  ;;  %v3963_v42 = vld [vmem:[#allocation5 + $0x60] sm:$0xf]  ;;  %v4921_v54 = vld [vmem:[#allocation5 + $0x64] sm:$0xf]  ;;  %v3965_v28 = vld [vmem:[#allocation5 + $0x70] sm:$0xf0] }
 0x112   :  { %v3907_v30 = vmul.f32 -1.442695, %v695_v49  ;;  %v3909_v34 = vmul.f32 -1.442695, %v696_v36  ;;  %1075 = vmatpush.bf16.msra.mxu2 %v4004_v39  ;;  %v3981_v49 = vld [vmem:[#allocation5 + $0x90] sm:$0xf0] }
 0x113   :  { %1089 = vmatpush.bf16.msra.mxu3 %v4008_v41  ;;  %v3984_v27 = vor.u32 %v4925_v45, %v3981_v49  ;;  %v4923_v39 = vld [vmem:[#allocation5 + $0x6c] sm:$0xf0]  ;;  %v5759_v45 = vperm.slane %v5725_v47, 2 }
 0x114   :  { %5185 = vpow2.f32 %v3907_v30  ;;  %v4928_v30 = vld [vmem:[#allocation5 + $0x94] sm:$0xf0]  ;;  %v3964_v58 = vor.u32 %v4923_v39, %v3963_v42  ;;  %v4919_v53 = vld [vmem:[#allocation5 + $0x4c] sm:$0xf0] }
 0x115   :  { %5187 = vpow2.f32 %v3909_v34  ;;  %v3988_v36 = vor.u32 %v4928_v30, %v3987_v52  ;;  %1048 = vmatpush.bf16.msra.mxu0 %v3980_v46  ;;  %1062 = vmatpush.bf16.msra.mxu1 %v3984_v27  ;;  %v3971_v30 = vld [vmem:[#allocation5 + $0x68] sm:$0xf]  ;;  %v3973_v27 = vld [vmem:[#allocation5 + $0x78] sm:$0xf0] }
 0x116   :  { %v690_v43 = vpop.f32.mrf.mxu3  ;;  %v676_v47 = vpop.f32.mrf.mxu2 }
 0x117   :  { %v650_v35 = vpop.f32.mrf.mxu0  ;;  %v698_v31 = vadd.f32 %v690_v43, %v328_v32  ;;  %v664_v33 = vpop.f32.mrf.mxu1  ;;  %1076 = vmatpush.bf16.msra.mxu2 %v3988_v36  ;;  %1090 = vmatpush.bf16.msra.mxu3 %v3992_v57  ;;  %v330_v43 = vadd.f32 %v5623_v60, %v5748_v48  ;;  %v3947_v36 = vld [vmem:[#allocation5 + $0x40] sm:$0xf]  ;;  %v3955_v57 = vld [vmem:[#allocation5 + $0x48] sm:$0xf] }
 0x118   :  { %v699_v56 = vadd.f32 %v650_v35, %v183_v38  ;;  %v700_v34 = vadd.f32 %v664_v33, %v232_v29  ;;  %v3968_v38 = vor.u32 %v4921_v54, %v3965_v28  ;;  %v4924_v29 = vld [vmem:[#allocation5 + $0x74] sm:$0xf0]  ;;  %v4922_v35 = vld [vmem:[#allocation5 + $0x6c] sm:$0xf]  ;;  %v279_v28 = vadd.f32 %v5613_v55, %v5759_v45  ;;  %v3949_v33 = vld [vmem:[#allocation5 + $0x50] sm:$0xf0] }
 0x119   :  { %v3911_v37 = vmul.f32 -1.442695, %v698_v31  ;;  %1049 = vmatpush.bf16.msra.mxu0 %v3964_v58  ;;  %v4917_v31 = vld [vmem:[#allocation5 + $0x44] sm:$0xf]  ;;  %v3972_v42 = vor.u32 %v4924_v29, %v3971_v30  ;;  %v3976_v60 = vor.u32 %v4922_v35, %v3973_v27  ;;  %v3948_v39 = vor.u32 %v4919_v53, %v3947_v36  ;;  %v4920_v54 = vld [vmem:[#allocation5 + $0x54] sm:$0xf0] }
 0x11a   :  { %v5186_v44 = vpop.eup %5185  ;;  %v3908_v32 = vmul.f32 -1.442695, %v699_v56  ;;  %v3910_v52 = vmul.f32 -1.442695, %v700_v34  ;;  %1063 = vmatpush.bf16.msra.mxu1 %v3968_v38  ;;  %v697_v34 = vadd.f32 %v676_v47, %v279_v28  ;;  %v3952_v38 = vor.u32 %v4917_v31, %v3949_v33  ;;  %v4915_v55 = vld [vmem:[#allocation5 + $0x2c] sm:$0xf0] }
 0x11b   :  { %v5188_v41 = vpop.eup %5187  ;;  %v5761_v49 = vadd.f32 1.0, %v5186_v44  ;;  %5189 = vpow2.f32 %v3911_v37  ;;  %v4918_v44 = vld [vmem:[#allocation5 + $0x4c] sm:$0xf]  ;;  %v3957_v37 = vld [vmem:[#allocation5 + $0x58] sm:$0xf0]  ;;  %1077 = vmatpush.bf16.msra.mxu2 %v3972_v42  ;;  %1091 = vmatpush.bf16.msra.mxu3 %v3976_v60  ;;  %v3932_v27 = vor.u32 %v4915_v55, %v3931_v23 }
 0x11c   :  { %v5763_v46 = vadd.f32 1.0, %v5188_v41  ;;  %v4913_v47 = vld [vmem:[#allocation5 + $0x24] sm:$0xf]  ;;  %v3933_v30 = vld [vmem:[#allocation5 + $0x30] sm:$0xf0] }
 0x11d   :  { %5191 = vrcp.f32 %v5761_v49  ;;  %1050 = vmatpush.bf16.msra.mxu0 %v3948_v39  ;;  %v3936_v36 = vor.u32 %v4913_v47, %v3933_v30  ;;  %v3939_v28 = vld [vmem:[#allocation5 + $0x28] sm:$0xf]  ;;  %v4914_v53 = vld [vmem:[#allocation5 + $0x2c] sm:$0xf]  ;;  %v720_v33 = vand.u32 2147483647, %v5761_v49  ;;  %v281_v47 = vadd.f32 %v5621_v59, %v5759_v45 }
 0x11e   :  { %5193 = vrcp.f32 %v5763_v46  ;;  %v692_v51 = vpop.f32.mrf.mxu3  ;;  %1064 = vmatpush.bf16.msra.mxu1 %v3952_v38  ;;  %v758_v55 = vand.u32 2147483647, %v5763_v46  ;;  %vm716_vm3 = vweird.f32 %v5761_v49  ;;  %vm754_vm4 = vweird.f32 %v5763_v46 }
 0x11f   :  { %5195 = vpow2.f32 %v3908_v32  ;;  %v702_v56 = vadd.f32 %v692_v51, %v330_v43  ;;  %v3960_v43 = vor.u32 %v4918_v44, %v3957_v37  ;;  %v4916_v51 = vld [vmem:[#allocation5 + $0x34] sm:$0xf0]  ;;  %vm721_vm6 = vcmp.eq.f32.partialorder %v720_v33, 8.507059e+37 }
 0x120   :  { %5197 = vpow2.f32 %v3910_v52  ;;  %v3956_v52 = vor.u32 %v4920_v54, %v3955_v57  ;;  %v3941_v57 = vld [vmem:[#allocation5 + $0x38] sm:$0xf0]  ;;  %v722_v54 = vand.u32 2147483648, %v5761_v49  ;;  %v3940_v37 = vor.u32 %v4916_v51, %v3939_v28 }
 0x121   :  { %v5190_v58 = vpop.eup %5189  ;;  %v3912_v41 = vmul.f32 -1.442695, %v702_v56  ;;  %1092 = vmatpush.bf16.msra.mxu3 %v3960_v43  ;;  %1051 = vmatpush.bf16.msra.mxu0 %v3932_v27  ;;  %vm759_vm8 = vcmp.eq.f32.partialorder %v758_v55, 8.507059e+37 }
 0x122   :  { %v5773_v26 = vadd.f32 1.0, %v5190_v58  ;;  %1078 = vmatpush.bf16.msra.mxu2 %v3956_v52  ;;  %v3944_v58 = vor.u32 %v4914_v53, %v3941_v57  ;;  %1065 = vmatpush.bf16.msra.mxu1 %v3936_v36  ;;  %v678_v52 = vpop.f32.mrf.mxu2  ;;  %v723_v27 = vor.u32 1.1754944e-38, %v722_v54  ;;  %v4911_v54 = vld [vmem:[#allocation5 + $0xc] sm:$0xf0] }
 0x123   :  { %v5771_v32 = vpop.eup %5191  ;;  %5199 = vpow2.f32 %v3912_v41  ;;  %v760_v41 = vand.u32 2147483648, %v5763_v46 }
 0x124   :  { %v5194_v29 = vpop.eup %5193  ;;  %v712_v35 = vmul.f32 %v5771_v32, %v5761_v49  ;;  %5201 = vtanh.f32 %v697_v34  ;;  %vm717_vm1 = vweird.f32 %v5771_v32  ;;  %v701_v49 = vadd.f32 %v678_v52, %v281_v47  ;;  %v4910_v47 = vld [vmem:[#allocation5 + $0xc] sm:$0xf] }
 0x125   :  { %v5196_v31 = vpop.eup %5195  ;;  %v750_v56 = vmul.f32 %v5194_v29, %v5763_v46  ;;  %5203 = vrcp.f32 %v5773_v26  ;;  %vm755_vm2 = vweird.f32 %v5194_v29  ;;  %vm718_vm5 = vmor %vm716_vm3, %vm717_vm1  ;;  %1093 = vmatpush.bf16.msra.mxu3 %v3944_v58  ;;  %v761_v53 = vor.u32 1.1754944e-38, %v760_v41  ;;  %v4909_v41 = vld [vmem:[#allocation5 + $0x4] sm:$0xf] }
 0x126   :  { %v5198_v42 = vpop.eup %5197  ;;  %v713_v60 = vsub.f32 1.0, %v712_v35  ;;  %v5781_v39 = vadd.f32 1.0, %v5196_v31  ;;  %1079 = vmatpush.bf16.msra.mxu2 %v3940_v37  ;;  %vm756_vm7 = vmor %vm754_vm4, %vm755_vm2  ;;  %vm794_vm3 = vweird.f32 %v5773_v26 }
 0x127   :  { %v751_v23 = vsub.f32 1.0, %v750_v56  ;;  %v5783_v44 = vadd.f32 1.0, %v5198_v42 }
 0x128   :  { %v714_v34 = vmul.f32 %v5771_v32, %v713_v60  ;;  %5205 = vrcp.f32 %v5781_v39  ;;  %v3915_v60 = vld [vmem:[#allocation5] sm:$0xf]  ;;  %vm731_vm11 = vweird.f32 %v5781_v39 }
 0x129   :  { %v752_v38 = vmul.f32 %v5194_v29, %v751_v23  ;;  %5207 = vrcp.f32 %v5783_v44  ;;  %v5200_v43 = vpop.eup %5199  ;;  %vm769_vm12 = vweird.f32 %v5783_v44 }
 0x12a   :  { %v715_v30 = vadd.f32 %v5771_v32, %v714_v34  ;;  %v5202_v35 = vpop.eup %5201  ;;  %v5798_v28 = vadd.f32 1.0, %v5200_v43  ;;  %v3923_v34 = vld [vmem:[#allocation5 + $0x8] sm:$0xf]  ;;  %v3916_v43 = vor.u32 %v4911_v54, %v3915_v60 }
 0x12b   :  { %v753_v36 = vadd.f32 %v5194_v29, %v752_v38  ;;  %v5800_v51 = vpop.eup %5203  ;;  %v4912_v38 = vld [vmem:[#allocation5 + $0x14] sm:$0xf0] }
 0x12c   :  { %v719_v59 = vsel %vm718_vm5, %v5771_v32, %v715_v30  ;;  %5209 = vrcp.f32 %v5798_v28  ;;  %v3917_v32 = vld [vmem:[#allocation5 + $0x10] sm:$0xf0]  ;;  %v790_v55 = vmul.f32 %v5800_v51, %v5773_v26  ;;  %v3925_v30 = vld [vmem:[#allocation5 + $0x18] sm:$0xf0]  ;;  %1052 = vmatpush.bf16.msra.mxu0 %v3916_v43  ;;  %vm795_vm1 = vweird.f32 %v5800_v51 }
 0x12d   :  { %v724_v31 = vsel %vm721_vm6, %v723_v27, %v719_v59  ;;  %v757_v46 = vsel %vm756_vm7, %v5194_v29, %v753_v36  ;;  %5211 = vtanh.f32 %v701_v49  ;;  %v775_v27 = vand.u32 2147483648, %v5783_v44  ;;  %vm796_vm4 = vmor %vm794_vm3, %vm795_vm1 }
 0x12e   :  { %v5206_v56 = vpop.eup %5205  ;;  %v762_v57 = vsel %vm759_vm8, %v761_v53, %v757_v46  ;;  %v821_v42 = vmul.f32 %v5202_v35, %v724_v31  ;;  %v737_v36 = vand.u32 2147483648, %v5781_v39  ;;  %v3920_v53 = vor.u32 %v4909_v41, %v3917_v32 }
 0x12f   :  { %v5208_v23 = vpop.eup %5207  ;;  %v819_v37 = vmul.f32 0.0, %v762_v57  ;;  %v727_v58 = vmul.f32 %v5206_v56, %v5781_v39  ;;  %vm732_vm9 = vweird.f32 %v5206_v56  ;;  %v735_v49 = vand.u32 2147483647, %v5781_v39 }
 0x130   :  { %v765_v33 = vmul.f32 %v5208_v23, %v5783_v44  ;;  %v3924_v31 = vor.u32 %v4912_v38, %v3923_v34  ;;  %vm770_vm10 = vweird.f32 %v5208_v23  ;;  %1066 = vmatpush.bf16.msra.mxu1 %v3920_v53  ;;  %v3928_v60 = vor.u32 %v4910_v47, %v3925_v30  ;;  %vm733_vm13 = vmor %vm731_vm11, %vm732_vm9 }
 0x131   :  { %v5807_v29 = vadd.f32 %v821_v42, %v819_v37  ;;  %v728_v52 = vsub.f32 1.0, %v727_v58  ;;  %v773_v42 = vand.u32 2147483647, %v5783_v44  ;;  %v791_v54 = vsub.f32 1.0, %v790_v55  ;;  %vm771_vm15 = vmor %vm769_vm12, %vm770_vm10 }
 0x132   :  { %v766_v35 = vsub.f32 1.0, %v765_v33  ;;  %v5210_v46 = vpop.eup %5209  ;;  %1080 = vmatpush.bf16.msra.mxu2 %v3924_v31  ;;  %v738_v32 = vor.u32 1.1754944e-38, %v737_v36  ;;  %1094 = vmatpush.bf16.msra.mxu3 %v3928_v60  ;;  %v776_v34 = vor.u32 1.1754944e-38, %v775_v27  ;;  %vm736_vm14 = vcmp.eq.f32.partialorder %v735_v49, 8.507059e+37 }
 0x133   :  { %v729_v59 = vmul.f32 %v5206_v56, %v728_v52  ;;  %v805_v58 = vmul.f32 %v5210_v46, %v5798_v28  ;;  %v5212_v41 = vpop.eup %5211  ;;  %vm774_vm0 = vcmp.eq.f32.partialorder %v773_v42, 8.507059e+37  ;;  %v792_v39 = vmul.f32 %v5800_v51, %v791_v54 }
 0x134   :  { %v767_v57 = vmul.f32 %v5208_v23, %v766_v35  ;;  %5213 = vtanh.f32 %v5807_v29  ;;  %vm810_vm2 = vweird.f32 %v5210_v46  ;;  %v815_v53 = vand.u32 2147483648, %v5798_v28 }
 0x135   :  { %v730_v37 = vadd.f32 %v5206_v56, %v729_v59  ;;  %v806_v55 = vsub.f32 1.0, %v805_v58  ;;  %v798_v59 = vand.u32 2147483647, %v5773_v26  ;;  %vm809_vm5 = vweird.f32 %v5798_v28 }
 0x136   :  { %v768_v33 = vadd.f32 %v5208_v23, %v767_v57  ;;  %v813_v49 = vand.u32 2147483647, %v5798_v28  ;;  %vm811_vm6 = vmor %vm809_vm5, %vm810_vm2  ;;  %v816_v54 = vor.u32 1.1754944e-38, %v815_v53  ;;  %v4971_v28 = vld [vmem:[#allocation5 + $0xec] sm:$0xf0] }
 0x137   :  { %v734_v38 = vsel %vm733_vm13, %v5206_v56, %v730_v37  ;;  %v807_v35 = vmul.f32 %v5210_v46, %v806_v55  ;;  %v793_v56 = vadd.f32 %v5800_v51, %v792_v39  ;;  %vm799_vm7 = vcmp.eq.f32.partialorder %v798_v59, 8.507059e+37  ;;  %v4171_v55 = vld [vmem:[#allocation5 + $0xe8] sm:$0xf] }
 0x138   :  { %v739_v52 = vsel %vm736_vm14, %v738_v32, %v734_v38  ;;  %v772_v43 = vsel %vm771_vm15, %v5208_v23, %v768_v33  ;;  %v800_v23 = vand.u32 2147483648, %v5773_v26  ;;  %vm814_vm8 = vcmp.eq.f32.partialorder %v813_v49, 8.507059e+37  ;;  %v4163_v26 = vld [vmem:[#allocation5 + $0xe0] sm:$0xf]  ;;  %v4165_v38 = vld [vmem:[#allocation5 + $0xf0] sm:$0xf0] }
 0x139   :  { %v777_v47 = vsel %vm774_vm0, %v776_v34, %v772_v43  ;;  %v822_v30 = vmul.f32 %v5212_v41, %v739_v52  ;;  %v808_v27 = vadd.f32 %v5210_v46, %v807_v35  ;;  %v797_v31 = vsel %vm796_vm4, %v5800_v51, %v793_v56  ;;  %v4969_v51 = vld [vmem:[#allocation5 + $0xe4] sm:$0xf]  ;;  %v4972_v52 = vld [vmem:[#allocation5 + $0xf4] sm:$0xf0]  ;;  %v4970_v35 = vld [vmem:[#allocation5 + $0xec] sm:$0xf] }
 0x13a   :  { %v820_v44 = vmul.f32 0.0, %v777_v47  ;;  %v5214_v42 = vpop.eup %5213  ;;  %v801_v60 = vor.u32 1.1754944e-38, %v800_v23  ;;  %v186_v43 = vadd.f32 %v5625_v61, %v5732_v50  ;;  %v235_v39 = vadd.f32 %v5627_v62, %v5739_v40  ;;  %v4147_v49 = vld [vmem:[#allocation5 + $0xc0] sm:$0xf]  ;;  %v4968_v62 = vld [vmem:[#allocation5 + $0xd4] sm:$0xf0] }
 0x13b   :  { %v812_v57 = vsel %vm811_vm6, %v5210_v46, %v808_v27  ;;  %v4164_v46 = vor.u32 %v4971_v28, %v4163_v26  ;;  %v4168_v47 = vor.u32 %v4969_v51, %v4165_v38  ;;  %v4131_v26 = vld [vmem:[#allocation5 + $0xa0] sm:$0xf]  ;;  %v4963_v28 = vld [vmem:[#allocation5 + $0xac] sm:$0xf0]  ;;  %v4961_v51 = vld [vmem:[#allocation5 + $0xa4] sm:$0xf] }
 0x13c   :  { %v5823_v36 = vadd.f32 %v822_v30, %v820_v44  ;;  %v802_v58 = vsel %vm799_vm7, %v801_v60, %v797_v31  ;;  %v817_v41 = vsel %vm814_vm8, %v816_v54, %v812_v57  ;;  %v4172_v30 = vor.u32 %v4972_v52, %v4171_v55  ;;  %v4173_v44 = vld [vmem:[#allocation5 + $0xf8] sm:$0xf0]  ;;  %v4967_v31 = vld [vmem:[#allocation5 + $0xcc] sm:$0xf0]  ;;  %v4965_v57 = vld [vmem:[#allocation5 + $0xc4] sm:$0xf] }
 0x13d   :  { %v827_v32 = vmul.f32 %v5214_v42, %v802_v58  ;;  %1452 = vmatpush.bf16.msrb.mxu0 %v4164_v46  ;;  %v4176_v23 = vor.u32 %v4970_v35, %v4173_v44  ;;  %1466 = vmatpush.bf16.msrb.mxu1 %v4168_v47  ;;  %v4148_v61 = vor.u32 %v4967_v31, %v4147_v49  ;;  %v4149_v42 = vld [vmem:[#allocation5 + $0xd0] sm:$0xf0]  ;;  %v4155_v60 = vld [vmem:[#allocation5 + $0xc8] sm:$0xf] }
 0x13e   :  { %5215 = vtanh.f32 %v5823_v36  ;;  %1480 = vmatpush.bf16.msrb.mxu2 %v4172_v30  ;;  %v4152_v58 = vor.u32 %v4965_v57, %v4149_v42  ;;  %v333_v46 = vadd.f32 %v5631_v0, %v5748_v48  ;;  %v4132_v38 = vor.u32 %v4963_v28, %v4131_v26  ;;  %v4133_v55 = vld [vmem:[#allocation5 + $0xb0] sm:$0xf0]  ;;  %v4139_v52 = vld [vmem:[#allocation5 + $0xa8] sm:$0xf]  ;;  %v4115_v57 = vld [vmem:[#allocation5 + $0x80] sm:$0xf] }
 0x13f   :  { %1494 = vmatpush.bf16.msrb.mxu3 %v4176_v23  ;;  %v237_v47 = vadd.f32 %v5635_v2, %v5739_v40  ;;  %v4136_v35 = vor.u32 %v4961_v51, %v4133_v55  ;;  %v4958_v28 = vld [vmem:[#allocation5 + $0x8c] sm:$0xf]  ;;  %v4125_v51 = vld [vmem:[#allocation5 + $0x98] sm:$0xf0] }
 0x140   :  { %v4128_v55 = vor.u32 %v4958_v28, %v4125_v51 }
 0x141   :  { %1453 = vmatpush.bf16.msrb.mxu0 %v4148_v61  ;;  %1467 = vmatpush.bf16.msrb.mxu1 %v4152_v58  ;;  %v4957_v61 = vld [vmem:[#allocation5 + $0x84] sm:$0xf] }
 0x144   :  { %v5216_v37 = vpop.eup %5215 }
 0x145   :  { %v828_v33 = vmul.f32 %v5216_v37, %v817_v41  ;;  %v4156_v41 = vor.u32 %v4968_v62, %v4155_v60  ;;  %1454 = vmatpush.bf16.msrb.mxu0 %v4132_v38  ;;  %1468 = vmatpush.bf16.msrb.mxu1 %v4136_v35  ;;  %v4117_v60 = vld [vmem:[#allocation5 + $0x90] sm:$0xf0]  ;;  %v4123_v62 = vld [vmem:[#allocation5 + $0x88] sm:$0xf] }
 0x147   :  { %v5136_v34 = vpack.c.bf16 %v828_v33, %v827_v32  ;;  %v4966_v32 = vld [vmem:[#allocation5 + $0xcc] sm:$0xf]  ;;  %v4157_v33 = vld [vmem:[#allocation5 + $0xd8] sm:$0xf0]  ;;  %1481 = vmatpush.bf16.msrb.mxu2 %v4156_v41  ;;  %v4120_v41 = vor.u32 %v4957_v61, %v4117_v60  ;;  %v4083_v61 = vld [vmem:[#allocation5 + $0x40] sm:$0xf] }
 0x149   :  { %5137 = vst [vmem:[%s6642_s4] sm:$0xff] %v5136_v34   ;;  %1053 = vmatmul.bf16.vlgmr.msra.gmra.mxu0 %v5136_v34  ;;  %1067 = vmatmul.bf16.vlgmr.msra.gmra.mxu1 %v5136_v34 }
 0x14a   :  { %1081 = vmatmul.bf16.vlgmr.msra.gmra.mxu2 %v5136_v34  ;;  %1095 = vmatmul.bf16.vlgmr.msra.gmra.mxu3 %v5136_v34  ;;  %v4160_v34 = vor.u32 %v4966_v32, %v4157_v33  ;;  %v4960_v32 = vld [vmem:[#allocation5 + $0x94] sm:$0xf0] }
 0x14b   :  { %v4124_v26 = vor.u32 %v4960_v32, %v4123_v62  ;;  %1469 = vmatpush.bf16.msrb.mxu1 %v4120_v41 }
 0x14c   :  { %1495 = vmatpush.bf16.msrb.mxu3 %v4160_v34 }
 0x1c6   :  { %v1054_v56 = vpop.f32.mrf.mxu0  ;;  %v1068_v27 = vpop.f32.mrf.mxu1 }
 0x1c7   :  { %v1101_v53 = vadd.f32 %v1054_v56, %v186_v43  ;;  %v1102_v59 = vadd.f32 %v1068_v27, %v235_v39  ;;  %v4964_v43 = vld [vmem:[#allocation5 + $0xb4] sm:$0xf0]  ;;  %v188_v39 = vadd.f32 %v5633_v1, %v5732_v50  ;;  %v4962_v56 = vld [vmem:[#allocation5 + $0xac] sm:$0xf]  ;;  %v4141_v27 = vld [vmem:[#allocation5 + $0xb8] sm:$0xf0] }
 0x1c8   :  { %v4140_v44 = vor.u32 %v4964_v43, %v4139_v52  ;;  %v4959_v1 = vld [vmem:[#allocation5 + $0x8c] sm:$0xf0]  ;;  %v4099_v52 = vld [vmem:[#allocation5 + $0x60] sm:$0xf] }
 0x1c9   :  { %v4041_v54 = vmul.f32 -1.442695, %v1101_v53  ;;  %v4043_v37 = vmul.f32 -1.442695, %v1102_v59  ;;  %v4144_v59 = vor.u32 %v4962_v56, %v4141_v27  ;;  %v4116_v2 = vor.u32 %v4959_v1, %v4115_v57  ;;  %v4955_v43 = vld [vmem:[#allocation5 + $0x6c] sm:$0xf0] }
 0x1ca   :  { %1482 = vmatpush.bf16.msrb.mxu2 %v4140_v44  ;;  %v4107_v44 = vld [vmem:[#allocation5 + $0x68] sm:$0xf]  ;;  %v4956_v56 = vld [vmem:[#allocation5 + $0x74] sm:$0xf0]  ;;  %v335_v27 = vadd.f32 %v5639_v4, %v5748_v48 }
 0x1cb   :  { %5217 = vpow2.f32 %v4041_v54  ;;  %1496 = vmatpush.bf16.msrb.mxu3 %v4144_v59  ;;  %1455 = vmatpush.bf16.msrb.mxu0 %v4116_v2  ;;  %v4108_v57 = vor.u32 %v4956_v56, %v4107_v44  ;;  %v4949_v2 = vld [vmem:[#allocation5 + $0x44] sm:$0xf]  ;;  %v4091_v56 = vld [vmem:[#allocation5 + $0x48] sm:$0xf] }
 0x1cc   :  { %5219 = vpow2.f32 %v4043_v37 }
 0x1cd   :  { %v1096_v30 = vpop.f32.mrf.mxu3  ;;  %v1082_v38 = vpop.f32.mrf.mxu2 }
 0x1ce   :  { %v1104_v23 = vadd.f32 %v1096_v30, %v333_v46  ;;  %v1056_v53 = vpop.f32.mrf.mxu0  ;;  %v1070_v0 = vpop.f32.mrf.mxu1  ;;  %1483 = vmatpush.bf16.msrb.mxu2 %v4124_v26  ;;  %v284_v30 = vadd.f32 %v5629_v63, %v5759_v45  ;;  %v286_v26 = vadd.f32 %v5637_v3, %v5759_v45 }
 0x1cf   :  { %v1105_v49 = vadd.f32 %v1056_v53, %v188_v39  ;;  %v1106_v31 = vadd.f32 %v1070_v0, %v237_v47  ;;  %1497 = vmatpush.bf16.msrb.mxu3 %v4128_v55  ;;  %v4953_v39 = vld [vmem:[#allocation5 + $0x64] sm:$0xf]  ;;  %v4101_v47 = vld [vmem:[#allocation5 + $0x70] sm:$0xf0]  ;;  %v4954_v53 = vld [vmem:[#allocation5 + $0x6c] sm:$0xf] }
 0x1d0   :  { %v4045_v42 = vmul.f32 -1.442695, %v1104_v23  ;;  %v4100_v23 = vor.u32 %v4955_v43, %v4099_v52  ;;  %v4109_v0 = vld [vmem:[#allocation5 + $0x78] sm:$0xf0] }
 0x1d1   :  { %v5218_v54 = vpop.eup %5217  ;;  %v4042_v37 = vmul.f32 -1.442695, %v1105_v49  ;;  %v4044_v58 = vmul.f32 -1.442695, %v1106_v31  ;;  %v1103_v49 = vadd.f32 %v1082_v38, %v284_v30  ;;  %v4104_v31 = vor.u32 %v4953_v39, %v4101_v47 }
 0x1d2   :  { %v5220_v33 = vpop.eup %5219  ;;  %v5847_v34 = vadd.f32 1.0, %v5218_v54  ;;  %5221 = vpow2.f32 %v4045_v42  ;;  %v4112_v1 = vor.u32 %v4954_v53, %v4109_v0  ;;  %v4951_v42 = vld [vmem:[#allocation5 + $0x4c] sm:$0xf0]  ;;  %1456 = vmatpush.bf16.msrb.mxu0 %v4100_v23  ;;  %v4085_v54 = vld [vmem:[#allocation5 + $0x50] sm:$0xf0]  ;;  %1484 = vmatpush.bf16.msrb.mxu2 %v4108_v57 }
 0x1d3   :  { %v5849_v46 = vadd.f32 1.0, %v5220_v33  ;;  %5223 = vpow2.f32 %v4042_v37  ;;  %v4084_v62 = vor.u32 %v4951_v42, %v4083_v61  ;;  %1470 = vmatpush.bf16.msrb.mxu1 %v4104_v31  ;;  %v4088_v32 = vor.u32 %v4949_v2, %v4085_v54  ;;  %v4950_v0 = vld [vmem:[#allocation5 + $0x4c] sm:$0xf]  ;;  %v4093_v31 = vld [vmem:[#allocation5 + $0x58] sm:$0xf0] }
 0x1d4   :  { %5225 = vrcp.f32 %v5847_v34  ;;  %v1126_v4 = vand.u32 2147483647, %v5847_v34  ;;  %v1128_v51 = vand.u32 2147483648, %v5847_v34  ;;  %1498 = vmatpush.bf16.msrb.mxu3 %v4112_v1  ;;  %vm1122_vm13 = vweird.f32 %v5847_v34  ;;  %v4067_v57 = vld [vmem:[#allocation5 + $0x20] sm:$0xf] }
 0x1d5   :  { %5227 = vrcp.f32 %v5849_v46  ;;  %v1098_v35 = vpop.f32.mrf.mxu3  ;;  %v1166_v52 = vand.u32 2147483648, %v5849_v46  ;;  %v1164_v43 = vand.u32 2147483647, %v5849_v46  ;;  %v1084_v3 = vpop.f32.mrf.mxu2  ;;  %vm1160_vm12 = vweird.f32 %v5849_v46  ;;  %v4947_v1 = vld [vmem:[#allocation5 + $0x2c] sm:$0xf0] }
 0x1d6   :  { %5229 = vpow2.f32 %v4044_v58  ;;  %v1108_v63 = vadd.f32 %v1098_v35, %v335_v27  ;;  %1457 = vmatpush.bf16.msrb.mxu0 %v4084_v62  ;;  %vm5879_vm10 = vcmp.eq.f32.partialorder %v1126_v4, 8.507059e+37  ;;  %v4952_v27 = vld [vmem:[#allocation5 + $0x54] sm:$0xf0]  ;;  %v1129_v53 = vor.u32 1.1754944e-38, %v1128_v51  ;;  %v4069_v62 = vld [vmem:[#allocation5 + $0x30] sm:$0xf0] }
 0x1d7   :  { %5231 = vtanh.f32 %v1103_v49  ;;  %1471 = vmatpush.bf16.msrb.mxu1 %v4088_v32  ;;  %v1107_v49 = vadd.f32 %v1084_v3, %v286_v26  ;;  %v1167_v61 = vor.u32 1.1754944e-38, %v1166_v52  ;;  %vm5904_vm0 = vcmp.eq.f32.partialorder %v1164_v43, 8.507059e+37  ;;  %v4946_v3 = vld [vmem:[#allocation5 + $0x2c] sm:$0xf]  ;;  %v4077_v43 = vld [vmem:[#allocation5 + $0x38] sm:$0xf0] }
 0x1d8   :  { %v5222_v59 = vpop.eup %5221  ;;  %v4046_v30 = vmul.f32 -1.442695, %v1108_v63  ;;  %v4945_v63 = vld [vmem:[#allocation5 + $0x24] sm:$0xf]  ;;  %v4068_v52 = vor.u32 %v4947_v1, %v4067_v57  ;;  %v4059_v1 = vld [vmem:[#allocation5 + $0x8] sm:$0xf] }
 0x1d9   :  { %v5224_v60 = vpop.eup %5223  ;;  %v5860_v58 = vadd.f32 1.0, %v5222_v59  ;;  %v4072_v44 = vor.u32 %v4945_v63, %v4069_v62 }
 0x1da   :  { %v5857_v37 = vpop.eup %5225  ;;  %v5862_v41 = vadd.f32 1.0, %v5224_v60  ;;  %v4092_v60 = vor.u32 %v4952_v27, %v4091_v56  ;;  %1458 = vmatpush.bf16.msrb.mxu0 %v4068_v52 }
 0x1db   :  { %v5864_v33 = vpop.eup %5227  ;;  %v1118_v28 = vmul.f32 %v5857_v37, %v5847_v34  ;;  %vm1123_vm9 = vweird.f32 %v5857_v37  ;;  %v4942_v34 = vld [vmem:[#allocation5 + $0xc] sm:$0xf]  ;;  %1472 = vmatpush.bf16.msrb.mxu1 %v4072_v44 }
 0x1dc   :  { %v5230_v38 = vpop.eup %5229  ;;  %v1156_v55 = vmul.f32 %v5864_v33, %v5849_v46  ;;  %5233 = vrcp.f32 %v5862_v41  ;;  %vm1161_vm11 = vweird.f32 %v5864_v33  ;;  %vm5893_vm14 = vmor %vm1122_vm13, %vm1123_vm9  ;;  %v1141_v26 = vand.u32 2147483647, %v5862_v41  ;;  %1485 = vmatpush.bf16.msrb.mxu2 %v4092_v60 }
 0x1dd   :  { %v1119_v39 = vsub.f32 1.0, %v1118_v28  ;;  %v5876_v47 = vadd.f32 1.0, %v5230_v38  ;;  %5235 = vrcp.f32 %v5860_v58  ;;  %v5232_v46 = vpop.eup %5231  ;;  %vm5899_vm15 = vmor %vm1160_vm12, %vm1161_vm11  ;;  %v4075_v28 = vld [vmem:[#allocation5 + $0x28] sm:$0xf]  ;;  %vm1137_vm1 = vweird.f32 %v5862_v41 }
 0x1de   :  { %v1157_v35 = vsub.f32 1.0, %v1156_v55  ;;  %v4096_v55 = vor.u32 %v4950_v0, %v4093_v31  ;;  %v4941_v0 = vld [vmem:[#allocation5 + $0x4] sm:$0xf]  ;;  %v1143_v60 = vand.u32 2147483648, %v5862_v41  ;;  %vm1142_vm6 = vcmp.eq.f32.partialorder %v1141_v26, 8.507059e+37 }
 0x1df   :  { %v1120_v23 = vmul.f32 %v5857_v37, %v1119_v39  ;;  %5237 = vrcp.f32 %v5876_v47  ;;  %v4948_v39 = vld [vmem:[#allocation5 + $0x34] sm:$0xf0]  ;;  %vm1175_vm4 = vweird.f32 %v5876_v47  ;;  %v1206_v26 = vand.u32 2147483648, %v5860_v58 }
 0x1e0   :  { %v1158_v59 = vmul.f32 %v5864_v33, %v1157_v35  ;;  %5239 = vpow2.f32 %v4046_v30  ;;  %1499 = vmatpush.bf16.msrb.mxu3 %v4096_v55 }
 0x1e1   :  { %v1121_v42 = vadd.f32 %v5857_v37, %v1120_v23  ;;  %5241 = vtanh.f32 %v1107_v49  ;;  %v4943_v23 = vld [vmem:[#allocation5 + $0xc] sm:$0xf0] }
 0x1e2   :  { %v1159_v54 = vadd.f32 %v5864_v33, %v1158_v59  ;;  %v5910_v51 = vpop.eup %5233 }
 0x1e3   :  { %v1125_v38 = vsel %vm5893_vm14, %v5857_v37, %v1121_v42  ;;  %v5915_v30 = vpop.eup %5235  ;;  %v1133_v27 = vmul.f32 %v5910_v51, %v5862_v41  ;;  %v4051_v37 = vld [vmem:[#allocation5] sm:$0xf]  ;;  %vm1138_vm2 = vweird.f32 %v5910_v51 }
 0x1e4   :  { %v1130_v35 = vsel %vm5879_vm10, %v1129_v53, %v1125_v38  ;;  %v1163_v56 = vsel %vm5899_vm15, %v5864_v33, %v1159_v54  ;;  %v4053_v53 = vld [vmem:[#allocation5 + $0x10] sm:$0xf0]  ;;  %v4944_v33 = vld [vmem:[#allocation5 + $0x14] sm:$0xf0]  ;;  %v4061_v54 = vld [vmem:[#allocation5 + $0x18] sm:$0xf0]  ;;  %v4080_v38 = vor.u32 %v4946_v3, %v4077_v43  ;;  %v4052_v63 = vor.u32 %v4943_v23, %v4051_v37 }
 0x1e5   :  { %v5238_v59 = vpop.eup %5237  ;;  %v1168_v31 = vsel %vm5904_vm0, %v1167_v61, %v1163_v56  ;;  %v1227_v57 = vmul.f32 %v5232_v46, %v1130_v35  ;;  %v1134_v2 = vsub.f32 1.0, %v1133_v27  ;;  %v1196_v61 = vmul.f32 %v5915_v30, %v5860_v58  ;;  %vm1139_vm5 = vmor %vm1137_vm1, %vm1138_vm2 }
 0x1e6   :  { %v1225_v42 = vmul.f32 %v1168_v31, %v5807_v29  ;;  %v1171_v49 = vmul.f32 %v5238_v59, %v5876_v47  ;;  %v5240_v4 = vpop.eup %5239  ;;  %v4076_v46 = vor.u32 %v4948_v39, %v4075_v28  ;;  %1500 = vmatpush.bf16.msrb.mxu3 %v4080_v38  ;;  %v4056_v35 = vor.u32 %v4941_v0, %v4053_v53 }
 0x1e7   :  { %v1135_v29 = vmul.f32 %v5910_v51, %v1134_v2  ;;  %v1194_v52 = vadd.f32 1.0, %v5240_v4  ;;  %v4060_v56 = vor.u32 %v4944_v33, %v4059_v1  ;;  %v4064_v27 = vor.u32 %v4942_v34, %v4061_v54  ;;  %v5242_v31 = vpop.eup %5241  ;;  %1459 = vmatpush.bf16.msrb.mxu0 %v4052_v63 }
 0x1e8   :  { %v5932_v62 = vadd.f32 %v1227_v57, %v1225_v42  ;;  %v1172_v55 = vsub.f32 1.0, %v1171_v49  ;;  %1486 = vmatpush.bf16.msrb.mxu2 %v4076_v46  ;;  %vm1176_vm3 = vweird.f32 %v5238_v59  ;;  %v1179_v39 = vand.u32 2147483647, %v5876_v47  ;;  %1473 = vmatpush.bf16.msrb.mxu1 %v4056_v35 }
 0x1e9   :  { %v1136_v28 = vadd.f32 %v5910_v51, %v1135_v29  ;;  %v1144_v3 = vor.u32 1.1754944e-38, %v1143_v60  ;;  %5243 = vrcp.f32 %v1194_v52  ;;  %v1197_v43 = vsub.f32 1.0, %v1196_v61  ;;  %vm1177_vm7 = vmor %vm1175_vm4, %vm1176_vm3 }
 0x1ea   :  { %v1173_v32 = vmul.f32 %v5238_v59, %v1172_v55  ;;  %v6679_v0 = vand.u32 2147483648, %v5876_v47  ;;  %1501 = vmatpush.bf16.msrb.mxu3 %v4064_v27  ;;  %vm1180_vm8 = vcmp.eq.f32.partialorder %v1179_v39, 8.507059e+37  ;;  %5245 = vtanh.f32 %v5932_v62  ;;  %v4301_v39 = vld [vmem:[#allocation5 + $0xf0] sm:$0xf0] }
 0x1eb   :  { %v1140_v37 = vsel %vm1139_vm5, %v5910_v51, %v1136_v28  ;;  %v1198_v42 = vmul.f32 %v5915_v30, %v1197_v43  ;;  %vm1201_vm9 = vweird.f32 %v5915_v30  ;;  %vm1200_vm10 = vweird.f32 %v5860_v58  ;;  %v5004_v43 = vld [vmem:[#allocation5 + $0xf4] sm:$0xf0] }
 0x1ec   :  { %v1174_v23 = vadd.f32 %v5238_v59, %v1173_v32  ;;  %v1182_v57 = vor.u32 1.1754944e-38, %v6679_v0  ;;  %v1145_v44 = vsel %vm1142_vm6, %v1144_v3, %v1140_v37  ;;  %1487 = vmatpush.bf16.msrb.mxu2 %v4060_v56  ;;  %v1219_v34 = vand.u32 2147483647, %v1194_v52  ;;  %vm1202_vm12 = vmor %vm1200_vm10, %vm1201_vm9  ;;  %v4307_v3 = vld [vmem:[#allocation5 + $0xe8] sm:$0xf] }
 0x1ed   :  { %v1228_v1 = vmul.f32 %v5242_v31, %v1145_v44  ;;  %v1199_v47 = vadd.f32 %v5915_v30, %v1198_v42  ;;  %vm1215_vm13 = vweird.f32 %v1194_v52  ;;  %v1207_v46 = vor.u32 1.1754944e-38, %v1206_v26  ;;  %v5001_v31 = vld [vmem:[#allocation5 + $0xe4] sm:$0xf]  ;;  %v5002_v44 = vld [vmem:[#allocation5 + $0xec] sm:$0xf] }
 0x1ee   :  { %v1178_v53 = vsel %vm1177_vm7, %v5238_v59, %v1174_v23  ;;  %v1221_v59 = vand.u32 2147483648, %v1194_v52  ;;  %vm1220_vm0 = vcmp.eq.f32.partialorder %v1219_v34, 8.507059e+37  ;;  %v191_v37 = vadd.f32 %v5641_v5, %v5732_v50  ;;  %v4285_v26 = vld [vmem:[#allocation5 + $0xd0] sm:$0xf0] }
 0x1ef   :  { %v1183_v33 = vsel %vm1180_vm8, %v1182_v57, %v1178_v53  ;;  %v5244_v51 = vpop.eup %5243  ;;  %v1203_v4 = vsel %vm1202_vm12, %v5915_v30, %v1199_v47  ;;  %v4299_v30 = vld [vmem:[#allocation5 + $0xe0] sm:$0xf]  ;;  %v240_v23 = vadd.f32 %v5643_v6, %v5739_v40  ;;  %v4304_v0 = vor.u32 %v5001_v31, %v4301_v39  ;;  %v4309_v53 = vld [vmem:[#allocation5 + $0xf8] sm:$0xf0]  ;;  %v4999_v47 = vld [vmem:[#allocation5 + $0xcc] sm:$0xf0] }
 0x1f0   :  { %v1226_v2 = vmul.f32 %v1183_v33, %v5823_v36  ;;  %v1211_v41 = vmul.f32 %v5244_v51, %v1194_v52  ;;  %v1204_v36 = vand.u32 2147483647, %v5860_v58  ;;  %vm1216_vm11 = vweird.f32 %v5244_v51  ;;  %v5246_v61 = vpop.eup %5245  ;;  %v5003_v52 = vld [vmem:[#allocation5 + $0xec] sm:$0xf0]  ;;  %v5000_v6 = vld [vmem:[#allocation5 + $0xd4] sm:$0xf0] }
 0x1f1   :  { %vm1217_vm14 = vmor %vm1215_vm13, %vm1216_vm11  ;;  %v1222_v38 = vor.u32 1.1754944e-38, %v1221_v59  ;;  %v4300_v28 = vor.u32 %v5003_v52, %v4299_v30  ;;  %v4308_v57 = vor.u32 %v5004_v43, %v4307_v3  ;;  %v4312_v42 = vor.u32 %v5002_v44, %v4309_v53  ;;  %1873 = vmatpush.bf16.msra.mxu1 %v4304_v0  ;;  %v4291_v59 = vld [vmem:[#allocation5 + $0xc8] sm:$0xf]  ;;  %v4994_v3 = vld [vmem:[#allocation5 + $0xac] sm:$0xf] }
 0x1f2   :  { %v5948_v49 = vadd.f32 %v1228_v1, %v1226_v2  ;;  %v1212_v32 = vsub.f32 1.0, %v1211_v41  ;;  %vm1205_vm15 = vcmp.eq.f32.partialorder %v1204_v36, 8.507059e+37  ;;  %v4283_v41 = vld [vmem:[#allocation5 + $0xc0] sm:$0xf]  ;;  %v193_v30 = vadd.f32 %v5649_v9, %v5732_v50  ;;  %v4277_v43 = vld [vmem:[#allocation5 + $0xb8] sm:$0xf0] }
 0x1f3   :  { %v1208_v29 = vsel %vm1205_vm15, %v1207_v46, %v1203_v4  ;;  %1859 = vmatpush.bf16.msra.mxu0 %v4300_v28  ;;  %1887 = vmatpush.bf16.msra.mxu2 %v4308_v57  ;;  %v4284_v5 = vor.u32 %v4999_v47, %v4283_v41  ;;  %v4998_v4 = vld [vmem:[#allocation5 + $0xcc] sm:$0xf]  ;;  %v242_v52 = vadd.f32 %v5651_v10, %v5739_v40  ;;  %v4251_v53 = vld [vmem:[#allocation5 + $0x80] sm:$0xf]  ;;  %v4991_v9 = vld [vmem:[#allocation5 + $0x8c] sm:$0xf0] }
 0x1f4   :  { %5247 = vtanh.f32 %v5948_v49  ;;  %v1213_v60 = vmul.f32 %v5244_v51, %v1212_v32  ;;  %v1233_v56 = vmul.f32 %v5246_v61, %v1208_v29  ;;  %v4997_v32 = vld [vmem:[#allocation5 + $0xc4] sm:$0xf]  ;;  %1901 = vmatpush.bf16.msra.mxu3 %v4312_v42  ;;  %v4293_v61 = vld [vmem:[#allocation5 + $0xd8] sm:$0xf0]  ;;  %v338_v29 = vadd.f32 %v5647_v8, %v5748_v48  ;;  %v4253_v42 = vld [vmem:[#allocation5 + $0x90] sm:$0xf0] }
 0x1f5   :  { %v4288_v34 = vor.u32 %v4997_v32, %v4285_v26  ;;  %v4296_v46 = vor.u32 %v4998_v4, %v4293_v61  ;;  %v4280_v0 = vor.u32 %v4994_v3, %v4277_v43  ;;  %v4252_v10 = vor.u32 %v4991_v9, %v4251_v53  ;;  %v4235_v61 = vld [vmem:[#allocation5 + $0x60] sm:$0xf] }
 0x1f6   :  { %v1214_v54 = vadd.f32 %v5244_v51, %v1213_v60 }
 0x1f7   :  { %1860 = vmatpush.bf16.msra.mxu0 %v4284_v5  ;;  %1874 = vmatpush.bf16.msra.mxu1 %v4288_v34  ;;  %v4992_v5 = vld [vmem:[#allocation5 + $0x94] sm:$0xf0] }
 0x1f8   :  { %v1218_v55 = vsel %vm1217_vm14, %v5244_v51, %v1214_v54  ;;  %v4292_v54 = vor.u32 %v5000_v6, %v4291_v59  ;;  %1902 = vmatpush.bf16.msra.mxu3 %v4296_v46  ;;  %v4987_v46 = vld [vmem:[#allocation5 + $0x6c] sm:$0xf0] }
 0x1f9   :  { %v1223_v35 = vsel %vm1220_vm0, %v1222_v38, %v1218_v55  ;;  %v4267_v38 = vld [vmem:[#allocation5 + $0xa0] sm:$0xf]  ;;  %v4993_v55 = vld [vmem:[#allocation5 + $0xa4] sm:$0xf] }
 0x1fa   :  { %v5248_v63 = vpop.eup %5247  ;;  %1888 = vmatpush.bf16.msra.mxu2 %v4292_v54 }
 0x1fb   :  { %v1234_v58 = vmul.f32 %v5248_v63, %v1223_v35  ;;  %v4995_v63 = vld [vmem:[#allocation5 + $0xac] sm:$0xf0] }
 0x1fc   :  { %v4268_v35 = vor.u32 %v4995_v63, %v4267_v38  ;;  %1903 = vmatpush.bf16.msra.mxu3 %v4280_v0  ;;  %v4985_v38 = vld [vmem:[#allocation5 + $0x64] sm:$0xf]  ;;  %v4237_v63 = vld [vmem:[#allocation5 + $0x70] sm:$0xf0] }
 0x1fd   :  { %v5141_v27 = vpack.c.bf16 %v1234_v58, %v1233_v56  ;;  %v4269_v56 = vld [vmem:[#allocation5 + $0xb0] sm:$0xf0]  ;;  %v4275_v58 = vld [vmem:[#allocation5 + $0xa8] sm:$0xf] }
 0x1fe   :  { %v4272_v28 = vor.u32 %v4993_v55, %v4269_v56  ;;  %1861 = vmatpush.bf16.msra.mxu0 %v4268_v35  ;;  %v289_v55 = vadd.f32 %v5645_v7, %v5759_v45  ;;  %v4243_v35 = vld [vmem:[#allocation5 + $0x68] sm:$0xf]  ;;  %v4988_v56 = vld [vmem:[#allocation5 + $0x74] sm:$0xf0] }
 0x1ff   :  { %5173 = vst [vmem:[%s6642_s4 + $0x8] sm:$0xff] %v5141_v27   ;;  %1460 = vmatmul.bf16.vlgmr.msrb.gmra.mxu0 %v5141_v27  ;;  %1474 = vmatmul.bf16.vlgmr.msrb.gmra.mxu1 %v5141_v27  ;;  %v4244_v3 = vor.u32 %v4988_v56, %v4243_v35  ;;  %v4229_v35 = vld [vmem:[#allocation5 + $0x58] sm:$0xf0]  ;;  %v4203_v56 = vld [vmem:[#allocation5 + $0x20] sm:$0xf] }
 0x200   :  { %1488 = vmatmul.bf16.vlgmr.msrb.gmra.mxu2 %v5141_v27  ;;  %1502 = vmatmul.bf16.vlgmr.msrb.gmra.mxu3 %v5141_v27  ;;  %v4996_v27 = vld [vmem:[#allocation5 + $0xb4] sm:$0xf0] }
 0x201   :  { %v4276_v39 = vor.u32 %v4996_v27, %v4275_v58  ;;  %1875 = vmatpush.bf16.msra.mxu1 %v4272_v28  ;;  %v340_v58 = vadd.f32 %v5655_v12, %v5748_v48  ;;  %v4236_v27 = vor.u32 %v4987_v46, %v4235_v61  ;;  %v4984_v61 = vld [vmem:[#allocation5 + $0x54] sm:$0xf0] }
 0x202   :  { %1862 = vmatpush.bf16.msra.mxu0 %v4252_v10 }
 0x203   :  { %1889 = vmatpush.bf16.msra.mxu2 %v4276_v39  ;;  %v4240_v39 = vor.u32 %v4985_v38, %v4237_v63  ;;  %v4982_v63 = vld [vmem:[#allocation5 + $0x4c] sm:$0xf] }
 0x206   :  { %1863 = vmatpush.bf16.msra.mxu0 %v4236_v27 }
 0x27c   :  { %v1461_v1 = vpop.f32.mrf.mxu0  ;;  %v1475_v33 = vpop.f32.mrf.mxu1 }
 0x27d   :  { %v1508_v2 = vadd.f32 %v1461_v1, %v191_v37  ;;  %v1509_v51 = vadd.f32 %v1475_v33, %v240_v23  ;;  %v4989_v1 = vld [vmem:[#allocation5 + $0x84] sm:$0xf] }
 0x27e   :  { %v4256_v32 = vor.u32 %v4989_v1, %v4253_v42  ;;  %v291_v42 = vadd.f32 %v5653_v11, %v5759_v45 }
 0x27f   :  { %v4177_v36 = vmul.f32 -1.442695, %v1508_v2  ;;  %v4179_v60 = vmul.f32 -1.442695, %v1509_v51  ;;  %v4259_v2 = vld [vmem:[#allocation5 + $0x88] sm:$0xf] }
 0x280   :  { %v4260_v6 = vor.u32 %v4992_v5, %v4259_v2  ;;  %1876 = vmatpush.bf16.msra.mxu1 %v4256_v32 }
 0x281   :  { %5249 = vpow2.f32 %v4177_v36  ;;  %v4990_v36 = vld [vmem:[#allocation5 + $0x8c] sm:$0xf] }
 0x282   :  { %5251 = vpow2.f32 %v4179_v60  ;;  %v4261_v60 = vld [vmem:[#allocation5 + $0x98] sm:$0xf0]  ;;  %1890 = vmatpush.bf16.msra.mxu2 %v4260_v6 }
 0x283   :  { %v1503_v31 = vpop.f32.mrf.mxu3  ;;  %v1489_v54 = vpop.f32.mrf.mxu2  ;;  %v4264_v4 = vor.u32 %v4990_v36, %v4261_v60 }
 0x284   :  { %v1511_v37 = vadd.f32 %v1503_v31, %v338_v29  ;;  %v1463_v23 = vpop.f32.mrf.mxu0  ;;  %v1477_v8 = vpop.f32.mrf.mxu1  ;;  %v1510_v28 = vadd.f32 %v1489_v54, %v289_v55  ;;  %1877 = vmatpush.bf16.msra.mxu1 %v4240_v39  ;;  %v4205_v39 = vld [vmem:[#allocation5 + $0x30] sm:$0xf0] }
 0x285   :  { %v1512_v57 = vadd.f32 %v1463_v23, %v193_v30  ;;  %v1513_v44 = vadd.f32 %v1477_v8, %v242_v52  ;;  %1904 = vmatpush.bf16.msra.mxu3 %v4264_v4  ;;  %v4986_v30 = vld [vmem:[#allocation5 + $0x6c] sm:$0xf]  ;;  %v4245_v52 = vld [vmem:[#allocation5 + $0x78] sm:$0xf0]  ;;  %v4983_v23 = vld [vmem:[#allocation5 + $0x4c] sm:$0xf0] }
 0x286   :  { %v4181_v33 = vmul.f32 -1.442695, %v1511_v37  ;;  %v4248_v43 = vor.u32 %v4986_v30, %v4245_v52  ;;  %v4219_v37 = vld [vmem:[#allocation5 + $0x40] sm:$0xf]  ;;  %v4981_v8 = vld [vmem:[#allocation5 + $0x44] sm:$0xf]  ;;  %1891 = vmatpush.bf16.msra.mxu2 %v4244_v3 }
 0x287   :  { %v5250_v51 = vpop.eup %5249  ;;  %v4178_v41 = vmul.f32 -1.442695, %v1512_v57  ;;  %v4180_v47 = vmul.f32 -1.442695, %v1513_v44  ;;  %v4220_v57 = vor.u32 %v4983_v23, %v4219_v37  ;;  %v4221_v44 = vld [vmem:[#allocation5 + $0x50] sm:$0xf0] }
 0x288   :  { %v5252_v26 = vpop.eup %5251  ;;  %v5971_v59 = vadd.f32 1.0, %v5250_v51  ;;  %5253 = vpow2.f32 %v4181_v33  ;;  %v4224_v33 = vor.u32 %v4981_v8, %v4221_v44  ;;  %v4227_v4 = vld [vmem:[#allocation5 + $0x48] sm:$0xf]  ;;  %v4189_v54 = vld [vmem:[#allocation5 + $0x10] sm:$0xf0] }
 0x289   :  { %v5973_v34 = vadd.f32 1.0, %v5252_v26  ;;  %5255 = vpow2.f32 %v4178_v41  ;;  %1905 = vmatpush.bf16.msra.mxu3 %v4248_v43  ;;  %1864 = vmatpush.bf16.msra.mxu0 %v4220_v57  ;;  %v4211_v8 = vld [vmem:[#allocation5 + $0x28] sm:$0xf]  ;;  %v4232_v57 = vor.u32 %v4982_v63, %v4229_v35 }
 0x28a   :  { %5257 = vrcp.f32 %v5971_v59  ;;  %v1533_v12 = vand.u32 2147483647, %v5971_v59  ;;  %v1535_v51 = vand.u32 2147483648, %v5971_v59  ;;  %1878 = vmatpush.bf16.msra.mxu1 %v4224_v33  ;;  %vm1529_vm5 = vweird.f32 %v5971_v59  ;;  %v4978_v33 = vld [vmem:[#allocation5 + $0x2c] sm:$0xf] }
 0x28b   :  { %5259 = vrcp.f32 %v5973_v34  ;;  %v1505_v29 = vpop.f32.mrf.mxu3  ;;  %v1573_v32 = vand.u32 2147483648, %v5973_v34  ;;  %v1571_v5 = vand.u32 2147483647, %v5973_v34  ;;  %v1491_v11 = vpop.f32.mrf.mxu2  ;;  %vm1567_vm4 = vweird.f32 %v5973_v34 }
 0x28c   :  { %5261 = vpow2.f32 %v4180_v47  ;;  %v1515_v7 = vadd.f32 %v1505_v29, %v340_v58  ;;  %vm6003_vm2 = vcmp.eq.f32.partialorder %v1533_v12, 8.507059e+37  ;;  %v1536_v38 = vor.u32 1.1754944e-38, %v1535_v51  ;;  %v4979_v58 = vld [vmem:[#allocation5 + $0x2c] sm:$0xf0]  ;;  %v4980_v12 = vld [vmem:[#allocation5 + $0x34] sm:$0xf0] }
 0x28d   :  { %5263 = vtanh.f32 %v1510_v28  ;;  %v1514_v29 = vadd.f32 %v1491_v11, %v291_v42  ;;  %v1574_v27 = vor.u32 1.1754944e-38, %v1573_v32  ;;  %v4977_v28 = vld [vmem:[#allocation5 + $0x24] sm:$0xf]  ;;  %vm6028_vm8 = vcmp.eq.f32.partialorder %v1571_v5, 8.507059e+37  ;;  %v4213_v42 = vld [vmem:[#allocation5 + $0x38] sm:$0xf0]  ;;  %1906 = vmatpush.bf16.msra.mxu3 %v4232_v57 }
 0x28e   :  { %v5254_v31 = vpop.eup %5253  ;;  %v4182_v36 = vmul.f32 -1.442695, %v1515_v7  ;;  %v4204_v44 = vor.u32 %v4979_v58, %v4203_v56  ;;  %v4975_v32 = vld [vmem:[#allocation5 + $0xc] sm:$0xf0]  ;;  %v4973_v5 = vld [vmem:[#allocation5 + $0x4] sm:$0xf]  ;;  %v4212_v58 = vor.u32 %v4980_v12, %v4211_v8 }
 0x28f   :  { %v5256_v0 = vpop.eup %5255  ;;  %v5984_v9 = vadd.f32 1.0, %v5254_v31  ;;  %v4228_v31 = vor.u32 %v4984_v61, %v4227_v4  ;;  %v4195_v4 = vld [vmem:[#allocation5 + $0x8] sm:$0xf] }
 0x290   :  { %v5981_v53 = vpop.eup %5257  ;;  %v5986_v1 = vadd.f32 1.0, %v5256_v0  ;;  %1865 = vmatpush.bf16.msra.mxu0 %v4204_v44 }
 0x291   :  { %v5988_v10 = vpop.eup %5259  ;;  %v1525_v2 = vmul.f32 %v5981_v53, %v5971_v59  ;;  %vm1530_vm1 = vweird.f32 %v5981_v53  ;;  %1892 = vmatpush.bf16.msra.mxu2 %v4228_v31 }
 0x292   :  { %v5262_v41 = vpop.eup %5261  ;;  %v1563_v47 = vmul.f32 %v5988_v10, %v5973_v34  ;;  %5265 = vrcp.f32 %v5986_v1  ;;  %vm1568_vm3 = vweird.f32 %v5988_v10  ;;  %vm6017_vm6 = vmor %vm1529_vm5, %vm1530_vm1  ;;  %v1548_v23 = vand.u32 2147483647, %v5986_v1 }
 0x293   :  { %v1526_v26 = vsub.f32 1.0, %v1525_v2  ;;  %v6000_v6 = vadd.f32 1.0, %v5262_v41  ;;  %5267 = vrcp.f32 %v5984_v9  ;;  %v5264_v34 = vpop.eup %5263  ;;  %vm6023_vm7 = vmor %vm1567_vm4, %vm1568_vm3  ;;  %vm1544_vm9 = vweird.f32 %v5986_v1 }
 0x294   :  { %v1564_v60 = vsub.f32 1.0, %v1563_v47  ;;  %v1550_v63 = vand.u32 2147483648, %v5986_v1  ;;  %vm1549_vm14 = vcmp.eq.f32.partialorder %v1548_v23, 8.507059e+37  ;;  %v1613_v23 = vand.u32 2147483648, %v5984_v9 }
 0x295   :  { %v1527_v46 = vmul.f32 %v5981_v53, %v1526_v26  ;;  %5269 = vrcp.f32 %v6000_v6  ;;  %v1588_v37 = vand.u32 2147483648, %v6000_v6  ;;  %1893 = vmatpush.bf16.msra.mxu2 %v4212_v58  ;;  %vm1582_vm12 = vweird.f32 %v6000_v6  ;;  %v5035_v58 = vld [vmem:[#allocation5 + $0xec] sm:$0xf0] }
 0x296   :  { %v1565_v55 = vmul.f32 %v5988_v10, %v1564_v60  ;;  %5271 = vpow2.f32 %v4182_v36  ;;  %v4208_v60 = vor.u32 %v4977_v28, %v4205_v39  ;;  %v4192_v39 = vor.u32 %v4973_v5, %v4189_v54 }
 0x297   :  { %v1528_v30 = vadd.f32 %v5981_v53, %v1527_v46  ;;  %5273 = vtanh.f32 %v1514_v29  ;;  %v4197_v29 = vld [vmem:[#allocation5 + $0x18] sm:$0xf0]  ;;  %v1551_v57 = vor.u32 1.1754944e-38, %v1550_v63 }
 0x298   :  { %v1566_v3 = vadd.f32 %v5988_v10, %v1565_v55  ;;  %v6034_v0 = vpop.eup %5265  ;;  %v4974_v55 = vld [vmem:[#allocation5 + $0xc] sm:$0xf]  ;;  %1879 = vmatpush.bf16.msra.mxu1 %v4208_v60 }
 0x299   :  { %v1532_v7 = vsel %vm6017_vm6, %v5981_v53, %v1528_v30  ;;  %v6039_v2 = vpop.eup %5267  ;;  %v1540_v47 = vmul.f32 %v6034_v0, %v5986_v1  ;;  %v4187_v53 = vld [vmem:[#allocation5] sm:$0xf]  ;;  %vm1545_vm10 = vweird.f32 %v6034_v0  ;;  %v4200_v59 = vor.u32 %v4974_v55, %v4197_v29 }
 0x29a   :  { %v1537_v51 = vsel %vm6003_vm2, %v1536_v38, %v1532_v7  ;;  %v1570_v41 = vsel %vm6023_vm7, %v5988_v10, %v1566_v3  ;;  %v4976_v10 = vld [vmem:[#allocation5 + $0x14] sm:$0xf0]  ;;  %v1603_v56 = vmul.f32 %v6039_v2, %v5984_v9  ;;  %v4188_v30 = vor.u32 %v4975_v32, %v4187_v53  ;;  %vm1546_vm13 = vmor %vm1544_vm9, %vm1545_vm10 }
 0x29b   :  { %v5270_v26 = vpop.eup %5269  ;;  %v1575_v11 = vsel %vm6028_vm8, %v1574_v27, %v1570_v41  ;;  %v1634_v36 = vmul.f32 %v5264_v34, %v1537_v51  ;;  %v1541_v46 = vsub.f32 1.0, %v1540_v47  ;;  %v4216_v27 = vor.u32 %v4978_v33, %v4213_v42 }
 0x29c   :  { %v1632_v61 = vmul.f32 %v1575_v11, %v5932_v62  ;;  %v1578_v38 = vmul.f32 %v5270_v26, %v6000_v6  ;;  %v5272_v35 = vpop.eup %5271  ;;  %v4196_v34 = vor.u32 %v4976_v10, %v4195_v4  ;;  %vm1583_vm11 = vweird.f32 %v5270_v26  ;;  %1866 = vmatpush.bf16.msra.mxu0 %v4188_v30  ;;  %1880 = vmatpush.bf16.msra.mxu1 %v4192_v39 }
 0x29d   :  { %v1542_v62 = vmul.f32 %v6034_v0, %v1541_v46  ;;  %v1601_v28 = vadd.f32 1.0, %v5272_v35  ;;  %1907 = vmatpush.bf16.msra.mxu3 %v4216_v27  ;;  %v5274_v3 = vpop.eup %5273  ;;  %v1586_v7 = vand.u32 2147483647, %v6000_v6  ;;  %v1604_v44 = vsub.f32 1.0, %v1603_v56  ;;  %vm1584_vm15 = vmor %vm1582_vm12, %vm1583_vm11  ;;  %v5033_v27 = vld [vmem:[#allocation5 + $0xe4] sm:$0xf] }
 0x29e   :  { %v6056_v52 = vadd.f32 %v1634_v36, %v1632_v61  ;;  %v1579_v31 = vsub.f32 1.0, %v1578_v38  ;;  %v1589_v42 = vor.u32 1.1754944e-38, %v1588_v37  ;;  %1894 = vmatpush.bf16.msra.mxu2 %v4196_v34  ;;  %vm1608_vm1 = vweird.f32 %v6039_v2 }
 0x29f   :  { %v1543_v8 = vadd.f32 %v6034_v0, %v1542_v62  ;;  %5275 = vrcp.f32 %v1601_v28  ;;  %vm1587_vm0 = vcmp.eq.f32.partialorder %v1586_v7, 8.507059e+37  ;;  %v1605_v32 = vmul.f32 %v6039_v2, %v1604_v44  ;;  %v4443_v62 = vld [vmem:[#allocation5 + $0xe8] sm:$0xf] }
 0x2a0   :  { %v1580_v43 = vmul.f32 %v5270_v26, %v1579_v31  ;;  %5277 = vtanh.f32 %v6056_v52  ;;  %vm1607_vm2 = vweird.f32 %v5984_v9  ;;  %v1626_v60 = vand.u32 2147483647, %v1601_v28  ;;  %v4437_v31 = vld [vmem:[#allocation5 + $0xf0] sm:$0xf0] }
 0x2a1   :  { %v1547_v12 = vsel %vm1546_vm13, %v6034_v0, %v1543_v8  ;;  %1908 = vmatpush.bf16.msra.mxu3 %v4200_v59  ;;  %v1606_v6 = vadd.f32 %v6039_v2, %v1605_v32  ;;  %vm1609_vm4 = vmor %vm1607_vm2, %vm1608_vm1  ;;  %vm1622_vm5 = vweird.f32 %v1601_v28  ;;  %v1614_v61 = vor.u32 1.1754944e-38, %v1613_v23  ;;  %v4445_v8 = vld [vmem:[#allocation5 + $0xf8] sm:$0xf0] }
 0x2a2   :  { %v1581_v33 = vadd.f32 %v5270_v26, %v1580_v43  ;;  %v1552_v51 = vsel %vm1549_vm14, %v1551_v57, %v1547_v12  ;;  %vm1627_vm8 = vcmp.eq.f32.partialorder %v1626_v60, 8.507059e+37  ;;  %v196_v39 = vadd.f32 %v5657_v13, %v5732_v50  ;;  %v5034_v43 = vld [vmem:[#allocation5 + $0xec] sm:$0xf] }
 0x2a3   :  { %v1635_v47 = vmul.f32 %v5274_v3, %v1552_v51  ;;  %v1610_v4 = vsel %vm1609_vm4, %v6039_v2, %v1606_v6  ;;  %v4435_v2 = vld [vmem:[#allocation5 + $0xe0] sm:$0xf]  ;;  %v245_v34 = vadd.f32 %v5659_v14, %v5739_v40  ;;  %v4440_v59 = vor.u32 %v5033_v27, %v4437_v31  ;;  %v5031_v51 = vld [vmem:[#allocation5 + $0xcc] sm:$0xf0]  ;;  %v5032_v14 = vld [vmem:[#allocation5 + $0xd4] sm:$0xf0] }
 0x2a4   :  { %v1585_v41 = vsel %vm1584_vm15, %v5270_v26, %v1581_v33  ;;  %v1628_v26 = vand.u32 2147483648, %v1601_v28  ;;  %v4436_v30 = vor.u32 %v5035_v58, %v4435_v2  ;;  %v4448_v44 = vor.u32 %v5034_v43, %v4445_v8  ;;  %v5030_v6 = vld [vmem:[#allocation5 + $0xcc] sm:$0xf]  ;;  %v4387_v31 = vld [vmem:[#allocation5 + $0x80] sm:$0xf] }
 0x2a5   :  { %v1590_v53 = vsel %vm1587_vm0, %v1589_v42, %v1585_v41  ;;  %v5276_v0 = vpop.eup %5275  ;;  %2280 = vmatpush.bf16.msrb.mxu1 %v4440_v59  ;;  %v4419_v42 = vld [vmem:[#allocation5 + $0xc0] sm:$0xf]  ;;  %v5029_v41 = vld [vmem:[#allocation5 + $0xc4] sm:$0xf]  ;;  %v343_v60 = vadd.f32 %v5663_v16, %v5748_v48 }
 0x2a6   :  { %v1633_v5 = vmul.f32 %v1590_v53, %v5948_v49  ;;  %v1618_v1 = vmul.f32 %v5276_v0, %v1601_v28  ;;  %v1611_v49 = vand.u32 2147483647, %v5984_v9  ;;  %vm1623_vm3 = vweird.f32 %v5276_v0  ;;  %v5278_v10 = vpop.eup %5277  ;;  %v5036_v28 = vld [vmem:[#allocation5 + $0xf4] sm:$0xf0]  ;;  %2266 = vmatpush.bf16.msrb.mxu0 %v4436_v30  ;;  %2308 = vmatpush.bf16.msrb.mxu3 %v4448_v44  ;;  %v4427_v53 = vld [vmem:[#allocation5 + $0xc8] sm:$0xf] }
 0x2a7   :  { %vm1624_vm6 = vmor %vm1622_vm5, %vm1623_vm3  ;;  %v1629_v46 = vor.u32 1.1754944e-38, %v1628_v26  ;;  %v4444_v3 = vor.u32 %v5036_v28, %v4443_v62  ;;  %v4420_v13 = vor.u32 %v5031_v51, %v4419_v42  ;;  %v4403_v26 = vld [vmem:[#allocation5 + $0xa0] sm:$0xf]  ;;  %v5021_v62 = vld [vmem:[#allocation5 + $0x84] sm:$0xf] }
 0x2a8   :  { %v6072_v11 = vadd.f32 %v1635_v47, %v1633_v5  ;;  %v1619_v37 = vsub.f32 1.0, %v1618_v1  ;;  %vm1612_vm7 = vcmp.eq.f32.partialorder %v1611_v49, 8.507059e+37  ;;  %v4421_v47 = vld [vmem:[#allocation5 + $0xd0] sm:$0xf0]  ;;  %v4428_v1 = vor.u32 %v5032_v14, %v4427_v53  ;;  %v5027_v49 = vld [vmem:[#allocation5 + $0xac] sm:$0xf0] }
 0x2a9   :  { %v1615_v55 = vsel %vm1612_vm7, %v1614_v61, %v1610_v4  ;;  %2294 = vmatpush.bf16.msrb.mxu2 %v4444_v3  ;;  %v4405_v4 = vld [vmem:[#allocation5 + $0xb0] sm:$0xf0]  ;;  %v5028_v61 = vld [vmem:[#allocation5 + $0xb4] sm:$0xf0]  ;;  %v4397_v42 = vld [vmem:[#allocation5 + $0x98] sm:$0xf0] }
 0x2aa   :  { %5279 = vtanh.f32 %v6072_v11  ;;  %v1620_v36 = vmul.f32 %v5276_v0, %v1619_v37  ;;  %v1640_v35 = vmul.f32 %v5278_v10, %v1615_v55  ;;  %2267 = vmatpush.bf16.msrb.mxu0 %v4420_v13  ;;  %v4429_v37 = vld [vmem:[#allocation5 + $0xd8] sm:$0xf0]  ;;  %v4411_v10 = vld [vmem:[#allocation5 + $0xa8] sm:$0xf]  ;;  %v5019_v53 = vld [vmem:[#allocation5 + $0x6c] sm:$0xf0] }
 0x2ab   :  { %v4432_v23 = vor.u32 %v5030_v6, %v4429_v37  ;;  %v5017_v14 = vld [vmem:[#allocation5 + $0x64] sm:$0xf]  ;;  %v5020_v6 = vld [vmem:[#allocation5 + $0x74] sm:$0xf0]  ;;  %v345_v37 = vadd.f32 %v5671_v20, %v5748_v48 }
 0x2ac   :  { %v1621_v54 = vadd.f32 %v5276_v0, %v1620_v36  ;;  %v5025_v36 = vld [vmem:[#allocation5 + $0xa4] sm:$0xf] }
 0x2ad   :  { %2295 = vmatpush.bf16.msrb.mxu2 %v4428_v1  ;;  %2309 = vmatpush.bf16.msrb.mxu3 %v4432_v23  ;;  %v4408_v55 = vor.u32 %v5025_v36, %v4405_v4  ;;  %v4379_v1 = vld [vmem:[#allocation5 + $0x68] sm:$0xf] }
 0x2ae   :  { %v1625_v63 = vsel %vm1624_vm6, %v5276_v0, %v1621_v54  ;;  %v4424_v0 = vor.u32 %v5029_v41, %v4421_v47  ;;  %v4404_v54 = vor.u32 %v5027_v49, %v4403_v26  ;;  %v4371_v47 = vld [vmem:[#allocation5 + $0x60] sm:$0xf]  ;;  %v5018_v26 = vld [vmem:[#allocation5 + $0x6c] sm:$0xf]  ;;  %v4381_v49 = vld [vmem:[#allocation5 + $0x78] sm:$0xf0]  ;;  %v4380_v4 = vor.u32 %v5020_v6, %v4379_v1 }
 0x2af   :  { %v1630_v29 = vsel %vm1627_vm8, %v1629_v46, %v1625_v63  ;;  %v198_v46 = vadd.f32 %v5665_v17, %v5732_v50  ;;  %v5023_v17 = vld [vmem:[#allocation5 + $0x8c] sm:$0xf0]  ;;  %v4372_v23 = vor.u32 %v5019_v53, %v4371_v47  ;;  %v4341_v1 = vld [vmem:[#allocation5 + $0x30] sm:$0xf0] }
 0x2b0   :  { %v5280_v38 = vpop.eup %5279  ;;  %2281 = vmatpush.bf16.msrb.mxu1 %v4424_v0  ;;  %2268 = vmatpush.bf16.msrb.mxu0 %v4404_v54  ;;  %v5011_v47 = vld [vmem:[#allocation5 + $0x2c] sm:$0xf0] }
 0x2b1   :  { %v1641_v9 = vmul.f32 %v5280_v38, %v1630_v29  ;;  %v247_v38 = vadd.f32 %v5667_v18, %v5739_v40  ;;  %v4412_v29 = vor.u32 %v5028_v61, %v4411_v10  ;;  %v4388_v18 = vor.u32 %v5023_v17, %v4387_v31  ;;  %v4355_v61 = vld [vmem:[#allocation5 + $0x40] sm:$0xf] }
 0x2b2   :  { %v4384_v10 = vor.u32 %v5018_v26, %v4381_v49  ;;  %v4347_v49 = vld [vmem:[#allocation5 + $0x28] sm:$0xf] }
 0x2b3   :  { %v5146_v56 = vpack.c.bf16 %v1641_v9, %v1640_v35  ;;  %v5026_v35 = vld [vmem:[#allocation5 + $0xac] sm:$0xf]  ;;  %v4413_v9 = vld [vmem:[#allocation5 + $0xb8] sm:$0xf0]  ;;  %2296 = vmatpush.bf16.msrb.mxu2 %v4412_v29  ;;  %v4357_v29 = vld [vmem:[#allocation5 + $0x50] sm:$0xf0] }
 0x2b4   :  { %v4416_v58 = vor.u32 %v5026_v35, %v4413_v9  ;;  %2282 = vmatpush.bf16.msrb.mxu1 %v4408_v55  ;;  %2269 = vmatpush.bf16.msrb.mxu0 %v4388_v18 }
 0x2b5   :  { %5174 = vst [vmem:[%s6642_s4 + $0x10] sm:$0xff] %v5146_v56   ;;  %1867 = vmatmul.bf16.vlgmr.msra.gmra.mxu0 %v5146_v56  ;;  %1881 = vmatmul.bf16.vlgmr.msra.gmra.mxu1 %v5146_v56 }
 0x2b6   :  { %1895 = vmatmul.bf16.vlgmr.msra.gmra.mxu2 %v5146_v56  ;;  %1909 = vmatmul.bf16.vlgmr.msra.gmra.mxu3 %v5146_v56 }
 0x2b7   :  { %2310 = vmatpush.bf16.msrb.mxu3 %v4416_v58  ;;  %v296_v58 = vadd.f32 %v5669_v19, %v5759_v45 }
 0x2b8   :  { %2270 = vmatpush.bf16.msrb.mxu0 %v4372_v23 }
 0x332   :  { %v1868_v7 = vpop.f32.mrf.mxu0  ;;  %v1882_v57 = vpop.f32.mrf.mxu1 }
 0x333   :  { %v1915_v12 = vadd.f32 %v1868_v7, %v196_v39  ;;  %v1916_v33 = vadd.f32 %v1882_v57, %v245_v34  ;;  %v4389_v39 = vld [vmem:[#allocation5 + $0x90] sm:$0xf0]  ;;  %v4395_v34 = vld [vmem:[#allocation5 + $0x88] sm:$0xf]  ;;  %v5024_v7 = vld [vmem:[#allocation5 + $0x94] sm:$0xf0] }
 0x334   :  { %v4392_v8 = vor.u32 %v5021_v62, %v4389_v39 }
 0x335   :  { %v4313_v32 = vmul.f32 -1.442695, %v1915_v12  ;;  %v4315_v5 = vmul.f32 -1.442695, %v1916_v33  ;;  %v4396_v12 = vor.u32 %v5024_v7, %v4395_v34  ;;  %v5022_v33 = vld [vmem:[#allocation5 + $0x8c] sm:$0xf] }
 0x336   :  { %2283 = vmatpush.bf16.msrb.mxu1 %v4392_v8  ;;  %v4400_v13 = vor.u32 %v5022_v33, %v4397_v42  ;;  %v5016_v8 = vld [vmem:[#allocation5 + $0x54] sm:$0xf0] }
 0x337   :  { %5281 = vpow2.f32 %v4313_v32  ;;  %2297 = vmatpush.bf16.msrb.mxu2 %v4396_v12  ;;  %v4373_v32 = vld [vmem:[#allocation5 + $0x70] sm:$0xf0]  ;;  %v5014_v12 = vld [vmem:[#allocation5 + $0x4c] sm:$0xf] }
 0x338   :  { %5283 = vpow2.f32 %v4315_v5  ;;  %2311 = vmatpush.bf16.msrb.mxu3 %v4400_v13  ;;  %v294_v5 = vadd.f32 %v5661_v15, %v5759_v45  ;;  %v4376_v54 = vor.u32 %v5017_v14, %v4373_v32  ;;  %v4339_v13 = vld [vmem:[#allocation5 + $0x20] sm:$0xf] }
 0x339   :  { %v1910_v63 = vpop.f32.mrf.mxu3  ;;  %v1896_v41 = vpop.f32.mrf.mxu2 }
 0x33a   :  { %v1918_v56 = vadd.f32 %v1910_v63, %v343_v60  ;;  %v1870_v2 = vpop.f32.mrf.mxu0  ;;  %v1884_v16 = vpop.f32.mrf.mxu1  ;;  %v1917_v60 = vadd.f32 %v1896_v41, %v294_v5  ;;  %2284 = vmatpush.bf16.msrb.mxu1 %v4376_v54  ;;  %v4365_v41 = vld [vmem:[#allocation5 + $0x58] sm:$0xf0] }
 0x33b   :  { %v1919_v27 = vadd.f32 %v1870_v2, %v198_v46  ;;  %v1920_v30 = vadd.f32 %v1884_v16, %v247_v38  ;;  %v5015_v46 = vld [vmem:[#allocation5 + $0x4c] sm:$0xf0]  ;;  %v5013_v38 = vld [vmem:[#allocation5 + $0x44] sm:$0xf]  ;;  %2298 = vmatpush.bf16.msrb.mxu2 %v4380_v4  ;;  %v4368_v54 = vor.u32 %v5014_v12, %v4365_v41  ;;  %v4340_v4 = vor.u32 %v5011_v47, %v4339_v13 }
 0x33c   :  { %v4317_v28 = vmul.f32 -1.442695, %v1918_v56  ;;  %v4356_v55 = vor.u32 %v5015_v46, %v4355_v61  ;;  %v4360_v2 = vor.u32 %v5013_v38, %v4357_v29  ;;  %2312 = vmatpush.bf16.msrb.mxu3 %v4384_v10  ;;  %v5012_v10 = vld [vmem:[#allocation5 + $0x34] sm:$0xf0]  ;;  %v5010_v61 = vld [vmem:[#allocation5 + $0x2c] sm:$0xf] }
 0x33d   :  { %v5282_v59 = vpop.eup %5281  ;;  %v4314_v3 = vmul.f32 -1.442695, %v1919_v27  ;;  %v4316_v43 = vmul.f32 -1.442695, %v1920_v30  ;;  %v4349_v46 = vld [vmem:[#allocation5 + $0x38] sm:$0xf0] }
 0x33e   :  { %v5284_v57 = vpop.eup %5283  ;;  %v6095_v44 = vadd.f32 1.0, %v5282_v59  ;;  %5285 = vpow2.f32 %v4317_v28  ;;  %2271 = vmatpush.bf16.msrb.mxu0 %v4356_v55  ;;  %2285 = vmatpush.bf16.msrb.mxu1 %v4360_v2  ;;  %v4323_v29 = vld [vmem:[#allocation5] sm:$0xf] }
 0x33f   :  { %v6097_v51 = vadd.f32 1.0, %v5284_v57  ;;  %5287 = vpow2.f32 %v4314_v3 }
 0x340   :  { %5289 = vrcp.f32 %v6095_v44  ;;  %v1940_v20 = vand.u32 2147483647, %v6095_v44  ;;  %v1942_v30 = vand.u32 2147483648, %v6095_v44  ;;  %vm1936_vm13 = vweird.f32 %v6095_v44  ;;  %2313 = vmatpush.bf16.msrb.mxu3 %v4368_v54 }
 0x341   :  { %5291 = vrcp.f32 %v6097_v51  ;;  %v1912_v0 = vpop.f32.mrf.mxu3  ;;  %v1980_v62 = vand.u32 2147483648, %v6097_v51  ;;  %v1978_v28 = vand.u32 2147483647, %v6097_v51  ;;  %v1898_v19 = vpop.f32.mrf.mxu2  ;;  %vm1974_vm12 = vweird.f32 %v6097_v51 }
 0x342   :  { %5293 = vpow2.f32 %v4316_v43  ;;  %v1922_v15 = vadd.f32 %v1912_v0, %v345_v37  ;;  %vm6127_vm10 = vcmp.eq.f32.partialorder %v1940_v20, 8.507059e+37  ;;  %v4363_v43 = vld [vmem:[#allocation5 + $0x48] sm:$0xf]  ;;  %v1943_v57 = vor.u32 1.1754944e-38, %v1942_v30  ;;  %v5009_v0 = vld [vmem:[#allocation5 + $0x24] sm:$0xf]  ;;  %2272 = vmatpush.bf16.msrb.mxu0 %v4340_v4 }
 0x343   :  { %5295 = vtanh.f32 %v1917_v60  ;;  %v1921_v42 = vadd.f32 %v1898_v19, %v296_v58  ;;  %v1981_v53 = vor.u32 1.1754944e-38, %v1980_v62  ;;  %v4364_v5 = vor.u32 %v5016_v8, %v4363_v43  ;;  %v5005_v20 = vld [vmem:[#allocation5 + $0x4] sm:$0xf] }
 0x344   :  { %v5286_v36 = vpop.eup %5285  ;;  %v4318_v34 = vmul.f32 -1.442695, %v1922_v15  ;;  %vm6152_vm0 = vcmp.eq.f32.partialorder %v1978_v28, 8.507059e+37  ;;  %v4344_v30 = vor.u32 %v5009_v0, %v4341_v1  ;;  %v4348_v8 = vor.u32 %v5012_v10, %v4347_v49 }
 0x345   :  { %v5288_v63 = vpop.eup %5287  ;;  %v6108_v9 = vadd.f32 1.0, %v5286_v36  ;;  %2299 = vmatpush.bf16.msrb.mxu2 %v4364_v5 }
 0x346   :  { %v6105_v35 = vpop.eup %5289  ;;  %v6110_v56 = vadd.f32 1.0, %v5288_v63  ;;  %2286 = vmatpush.bf16.msrb.mxu1 %v4344_v30 }
 0x347   :  { %v6112_v16 = vpop.eup %5291  ;;  %v1932_v27 = vmul.f32 %v6105_v35, %v6095_v44  ;;  %vm1937_vm9 = vweird.f32 %v6105_v35 }
 0x348   :  { %v5294_v31 = vpop.eup %5293  ;;  %v1970_v17 = vmul.f32 %v6112_v16, %v6097_v51  ;;  %5297 = vrcp.f32 %v6110_v56  ;;  %vm1975_vm11 = vweird.f32 %v6112_v16  ;;  %vm6141_vm14 = vmor %vm1936_vm13, %vm1937_vm9  ;;  %v1955_v26 = vand.u32 2147483647, %v6110_v56 }
 0x349   :  { %v1933_v18 = vsub.f32 1.0, %v1932_v27  ;;  %v6124_v39 = vadd.f32 1.0, %v5294_v31  ;;  %5299 = vrcp.f32 %v6108_v9  ;;  %v5296_v51 = vpop.eup %5295  ;;  %vm6147_vm15 = vmor %vm1974_vm12, %vm1975_vm11  ;;  %vm1951_vm1 = vweird.f32 %v6110_v56  ;;  %v4325_v31 = vld [vmem:[#allocation5 + $0x10] sm:$0xf0]  ;;  %2300 = vmatpush.bf16.msrb.mxu2 %v4348_v8 }
 0x34a   :  { %v1971_v59 = vsub.f32 1.0, %v1970_v17  ;;  %v4331_v17 = vld [vmem:[#allocation5 + $0x8] sm:$0xf]  ;;  %v1957_v19 = vand.u32 2147483648, %v6110_v56  ;;  %v4328_v41 = vor.u32 %v5005_v20, %v4325_v31  ;;  %vm1956_vm6 = vcmp.eq.f32.partialorder %v1955_v26, 8.507059e+37 }
 0x34b   :  { %v1934_v7 = vmul.f32 %v6105_v35, %v1933_v18  ;;  %5301 = vrcp.f32 %v6124_v39  ;;  %v1995_v23 = vand.u32 2147483648, %v6124_v39  ;;  %v1993_v5 = vand.u32 2147483647, %v6124_v39 }
 0x34c   :  { %v1972_v33 = vmul.f32 %v6112_v16, %v1971_v59  ;;  %5303 = vpow2.f32 %v4318_v34  ;;  %v5006_v34 = vld [vmem:[#allocation5 + $0xc] sm:$0xf]  ;;  %v4333_v59 = vld [vmem:[#allocation5 + $0x18] sm:$0xf0]  ;;  %vm1989_vm4 = vweird.f32 %v6124_v39  ;;  %v1958_v0 = vor.u32 1.1754944e-38, %v1957_v19  ;;  %2287 = vmatpush.bf16.msrb.mxu1 %v4328_v41 }
 0x34d   :  { %v1935_v14 = vadd.f32 %v6105_v35, %v1934_v7  ;;  %5305 = vtanh.f32 %v1921_v42  ;;  %v4352_v7 = vor.u32 %v5010_v61, %v4349_v46  ;;  %v4336_v47 = vor.u32 %v5006_v34, %v4333_v59  ;;  %v4573_v19 = vld [vmem:[#allocation5 + $0xf0] sm:$0xf0]  ;;  %v4579_v34 = vld [vmem:[#allocation5 + $0xe8] sm:$0xf]  ;;  %v5068_v59 = vld [vmem:[#allocation5 + $0xf4] sm:$0xf0] }
 0x34e   :  { %v1973_v6 = vadd.f32 %v6112_v16, %v1972_v33  ;;  %v6158_v36 = vpop.eup %5297  ;;  %vm1994_vm8 = vcmp.eq.f32.partialorder %v1993_v5, 8.507059e+37  ;;  %v2020_v26 = vand.u32 2147483648, %v6108_v9  ;;  %v4557_v5 = vld [vmem:[#allocation5 + $0xd0] sm:$0xf0] }
 0x34f   :  { %v1939_v60 = vsel %vm6141_vm14, %v6105_v35, %v1935_v14  ;;  %v6163_v38 = vpop.eup %5299  ;;  %v1947_v55 = vmul.f32 %v6158_v36, %v6110_v56  ;;  %v5007_v35 = vld [vmem:[#allocation5 + $0xc] sm:$0xf0]  ;;  %vm1952_vm2 = vweird.f32 %v6158_v36  ;;  %2314 = vmatpush.bf16.msrb.mxu3 %v4352_v7  ;;  %v4580_v7 = vor.u32 %v5068_v59, %v4579_v34 }
 0x350   :  { %v1944_v63 = vsel %vm6127_vm10, %v1943_v57, %v1939_v60  ;;  %v1977_v15 = vsel %vm6147_vm15, %v6112_v16, %v1973_v6  ;;  %v5008_v16 = vld [vmem:[#allocation5 + $0x14] sm:$0xf0]  ;;  %v2010_v43 = vmul.f32 %v6163_v38, %v6108_v9  ;;  %v4324_v57 = vor.u32 %v5007_v35, %v4323_v29  ;;  %vm1953_vm5 = vmor %vm1951_vm1, %vm1952_vm2 }
 0x351   :  { %v5302_v2 = vpop.eup %5301  ;;  %v1982_v58 = vsel %vm6152_vm0, %v1981_v53, %v1977_v15  ;;  %v2041_v27 = vmul.f32 %v5296_v51, %v1944_v63  ;;  %v1948_v28 = vsub.f32 1.0, %v1947_v55  ;;  %v4332_v13 = vor.u32 %v5008_v16, %v4331_v17 }
 0x352   :  { %v2039_v62 = vmul.f32 %v1982_v58, %v6056_v52  ;;  %v1985_v18 = vmul.f32 %v5302_v2, %v6124_v39  ;;  %v5304_v3 = vpop.eup %5303  ;;  %vm1990_vm3 = vweird.f32 %v5302_v2  ;;  %2273 = vmatpush.bf16.msrb.mxu0 %v4324_v57  ;;  %v2011_v1 = vsub.f32 1.0, %v2010_v43  ;;  %v5066_v57 = vld [vmem:[#allocation5 + $0xec] sm:$0xf] }
 0x353   :  { %v1949_v52 = vmul.f32 %v6158_v36, %v1948_v28  ;;  %v2008_v42 = vadd.f32 1.0, %v5304_v3  ;;  %v5306_v53 = vpop.eup %5305  ;;  %vm1991_vm7 = vmor %vm1989_vm4, %vm1990_vm3  ;;  %v1996_v6 = vor.u32 1.1754944e-38, %v1995_v23  ;;  %2301 = vmatpush.bf16.msrb.mxu2 %v4332_v13  ;;  %2315 = vmatpush.bf16.msrb.mxu3 %v4336_v47  ;;  %vm2015_vm9 = vweird.f32 %v6163_v38  ;;  %v5065_v28 = vld [vmem:[#allocation5 + $0xe4] sm:$0xf] }
 0x354   :  { %v6180_v12 = vadd.f32 %v2041_v27, %v2039_v62  ;;  %v1986_v33 = vsub.f32 1.0, %v1985_v18  ;;  %v2012_v4 = vmul.f32 %v6163_v38, %v2011_v1  ;;  %vm2014_vm10 = vweird.f32 %v6108_v9  ;;  %v5067_v62 = vld [vmem:[#allocation5 + $0xec] sm:$0xf0] }
 0x355   :  { %v1950_v32 = vadd.f32 %v6158_v36, %v1949_v52  ;;  %5307 = vrcp.f32 %v2008_v42  ;;  %v2035_v46 = vand.u32 2147483648, %v2008_v42  ;;  %v2033_v15 = vand.u32 2147483647, %v2008_v42  ;;  %vm2016_vm12 = vmor %vm2014_vm10, %vm2015_vm9 }
 0x356   :  { %v1987_v14 = vmul.f32 %v5302_v2, %v1986_v33  ;;  %5309 = vtanh.f32 %v6180_v12  ;;  %v2013_v39 = vadd.f32 %v6163_v38, %v2012_v4  ;;  %vm2029_vm13 = vweird.f32 %v2008_v42  ;;  %v4581_v33 = vld [vmem:[#allocation5 + $0xf8] sm:$0xf0]  ;;  %v5059_v4 = vld [vmem:[#allocation5 + $0xac] sm:$0xf0] }
 0x357   :  { %v1954_v51 = vsel %vm1953_vm5, %v6158_v36, %v1950_v32  ;;  %v2021_v20 = vor.u32 1.1754944e-38, %v2020_v26  ;;  %vm2034_vm0 = vcmp.eq.f32.partialorder %v2033_v15, 8.507059e+37  ;;  %v201_v3 = vadd.f32 %v5673_v21, %v5732_v50  ;;  %2701 = vmatpush.bf16.msra.mxu2 %v4580_v7  ;;  %v5061_v32 = vld [vmem:[#allocation5 + $0xc4] sm:$0xf]  ;;  %v5060_v26 = vld [vmem:[#allocation5 + $0xb4] sm:$0xf0] }
 0x358   :  { %v1988_v44 = vadd.f32 %v5302_v2, %v1987_v14  ;;  %v1959_v37 = vsel %vm1956_vm6, %v1958_v0, %v1954_v51  ;;  %v2017_v29 = vsel %vm2016_vm12, %v6163_v38, %v2013_v39  ;;  %v4571_v38 = vld [vmem:[#allocation5 + $0xe0] sm:$0xf]  ;;  %v250_v43 = vadd.f32 %v5675_v22, %v5739_v40  ;;  %v5063_v14 = vld [vmem:[#allocation5 + $0xcc] sm:$0xf0]  ;;  %v4563_v0 = vld [vmem:[#allocation5 + $0xc8] sm:$0xf] }
 0x359   :  { %v2042_v60 = vmul.f32 %v5306_v53, %v1959_v37  ;;  %v4572_v18 = vor.u32 %v5067_v62, %v4571_v38  ;;  %v4576_v8 = vor.u32 %v5065_v28, %v4573_v19  ;;  %v4584_v41 = vor.u32 %v5066_v57, %v4581_v33  ;;  %v4555_v53 = vld [vmem:[#allocation5 + $0xc0] sm:$0xf]  ;;  %v5064_v22 = vld [vmem:[#allocation5 + $0xd4] sm:$0xf0]  ;;  %v5062_v37 = vld [vmem:[#allocation5 + $0xcc] sm:$0xf] }
 0x35a   :  { %v1992_v49 = vsel %vm1991_vm7, %v5302_v2, %v1988_v44  ;;  %v2036_v2 = vor.u32 1.1754944e-38, %v2035_v46  ;;  %v4556_v21 = vor.u32 %v5063_v14, %v4555_v53  ;;  %v4560_v44 = vor.u32 %v5061_v32, %v4557_v5  ;;  %v4541_v39 = vld [vmem:[#allocation5 + $0xb0] sm:$0xf0]  ;;  %v4531_v28 = vld [vmem:[#allocation5 + $0x88] sm:$0xf] }
 0x35b   :  { %v1997_v54 = vsel %vm1994_vm8, %v1996_v6, %v1992_v49  ;;  %v5308_v36 = vpop.eup %5307  ;;  %2673 = vmatpush.bf16.msra.mxu0 %v4572_v18  ;;  %2687 = vmatpush.bf16.msra.mxu1 %v4576_v8  ;;  %v4564_v6 = vor.u32 %v5064_v22, %v4563_v0  ;;  %v4565_v49 = vld [vmem:[#allocation5 + $0xd8] sm:$0xf0]  ;;  %v203_v46 = vadd.f32 %v5681_v25, %v5732_v50  ;;  %v5055_v25 = vld [vmem:[#allocation5 + $0x8c] sm:$0xf0]  ;;  %v4525_v62 = vld [vmem:[#allocation5 + $0x90] sm:$0xf0] }
 0x35c   :  { %v2040_v10 = vmul.f32 %v1997_v54, %v6072_v11  ;;  %v2025_v56 = vmul.f32 %v5308_v36, %v2008_v42  ;;  %v2018_v11 = vand.u32 2147483647, %v6108_v9  ;;  %vm2030_vm11 = vweird.f32 %v5308_v36  ;;  %v5310_v35 = vpop.eup %5309  ;;  %2715 = vmatpush.bf16.msra.mxu3 %v4584_v41  ;;  %v4539_v54 = vld [vmem:[#allocation5 + $0xa0] sm:$0xf]  ;;  %v5054_v57 = vld [vmem:[#allocation5 + $0x8c] sm:$0xf] }
 0x35d   :  { %vm2031_vm14 = vmor %vm2029_vm13, %vm2030_vm11  ;;  %2702 = vmatpush.bf16.msra.mxu2 %v4564_v6  ;;  %v4533_v33 = vld [vmem:[#allocation5 + $0x98] sm:$0xf0]  ;;  %v5049_v53 = vld [vmem:[#allocation5 + $0x64] sm:$0xf] }
 0x35e   :  { %v6196_v61 = vadd.f32 %v2042_v60, %v2040_v10  ;;  %v2026_v23 = vsub.f32 1.0, %v2025_v56  ;;  %vm2019_vm15 = vcmp.eq.f32.partialorder %v2018_v11, 8.507059e+37  ;;  %v4568_v60 = vor.u32 %v5062_v37, %v4565_v49  ;;  %v5057_v10 = vld [vmem:[#allocation5 + $0xa4] sm:$0xf]  ;;  %v6696_v11 = vld [vmem:[#allocation12_spill] sm:$0xff] }
 0x35f   :  { %v2022_v30 = vsel %vm2019_vm15, %v2021_v20, %v2017_v29  ;;  %2674 = vmatpush.bf16.msra.mxu0 %v4556_v21  ;;  %2688 = vmatpush.bf16.msra.mxu1 %v4560_v44  ;;  %v4540_v56 = vor.u32 %v5059_v4, %v4539_v54  ;;  %v4549_v20 = vld [vmem:[#allocation5 + $0xb8] sm:$0xf0]  ;;  %v4536_v41 = vor.u32 %v5054_v57, %v4533_v33  ;;  %v4509_v14 = vld [vmem:[#allocation5 + $0x70] sm:$0xf0]  ;;  %v6697_v32 = vld [vmem:[#allocation11_spill] sm:$0xff] }
 0x360   :  { %5311 = vtanh.f32 %v6196_v61  ;;  %v2027_v63 = vmul.f32 %v5308_v36, %v2026_v23  ;;  %v2047_v17 = vmul.f32 %v5310_v35, %v2022_v30  ;;  %v4547_v23 = vld [vmem:[#allocation5 + $0xa8] sm:$0xf]  ;;  %2716 = vmatpush.bf16.msra.mxu3 %v4568_v60  ;;  %v5058_v35 = vld [vmem:[#allocation5 + $0xac] sm:$0xf]  ;;  %v299_v21 = vadd.f32 %v6697_v32, %v5759_v45  ;;  %v5052_v22 = vld [vmem:[#allocation5 + $0x74] sm:$0xf0] }
 0x361   :  { %v4548_v29 = vor.u32 %v5060_v26, %v4547_v23  ;;  %v4515_v0 = vld [vmem:[#allocation5 + $0x68] sm:$0xf]  ;;  %v5050_v6 = vld [vmem:[#allocation5 + $0x6c] sm:$0xf]  ;;  %v4517_v37 = vld [vmem:[#allocation5 + $0x78] sm:$0xf0]  ;;  %v4512_v54 = vor.u32 %v5049_v53, %v4509_v14 }
 0x362   :  { %v2028_v55 = vadd.f32 %v5308_v36, %v2027_v63  ;;  %v252_v63 = vadd.f32 %v6696_v11, %v5739_v40  ;;  %v4516_v4 = vor.u32 %v5052_v22, %v4515_v0  ;;  %v4493_v11 = vld [vmem:[#allocation5 + $0x50] sm:$0xf0]  ;;  %v4501_v33 = vld [vmem:[#allocation5 + $0x58] sm:$0xf0]  ;;  %v5041_v32 = vld [vmem:[#allocation5 + $0x24] sm:$0xf] }
 0x363   :  { %2675 = vmatpush.bf16.msra.mxu0 %v4540_v56  ;;  %2703 = vmatpush.bf16.msra.mxu2 %v4548_v29  ;;  %v5047_v56 = vld [vmem:[#allocation5 + $0x4c] sm:$0xf0] }
 0x364   :  { %v2032_v27 = vsel %vm2031_vm14, %v5308_v36, %v2028_v55  ;;  %v348_v36 = vadd.f32 %v5679_v24, %v5748_v48  ;;  %v4544_v55 = vor.u32 %v5057_v10, %v4541_v39  ;;  %v4520_v10 = vor.u32 %v5050_v6, %v4517_v37  ;;  %v5045_v39 = vld [vmem:[#allocation5 + $0x44] sm:$0xf] }
 0x365   :  { %v2037_v31 = vsel %vm2034_vm0, %v2036_v2, %v2032_v27  ;;  %v4552_v27 = vor.u32 %v5058_v35, %v4549_v20  ;;  %v4496_v35 = vor.u32 %v5045_v39, %v4493_v11 }
 0x366   :  { %v5312_v58 = vpop.eup %5311  ;;  %2689 = vmatpush.bf16.msra.mxu1 %v4544_v55 }
 0x367   :  { %v2048_v9 = vmul.f32 %v5312_v58, %v2037_v31  ;;  %2717 = vmatpush.bf16.msra.mxu3 %v4552_v27 }
 0x369   :  { %v5151_v16 = vpack.c.bf16 %v2048_v9, %v2047_v17  ;;  %v4523_v17 = vld [vmem:[#allocation5 + $0x80] sm:$0xf]  ;;  %v5053_v9 = vld [vmem:[#allocation5 + $0x84] sm:$0xf] }
 0x36a   :  { %v4524_v38 = vor.u32 %v5055_v25, %v4523_v17  ;;  %v4528_v59 = vor.u32 %v5053_v9, %v4525_v62 }
 0x36b   :  { %5175 = vst [vmem:[%s6642_s4 + $0x18] sm:$0xff] %v5151_v16   ;;  %2274 = vmatmul.bf16.vlgmr.msrb.gmra.mxu0 %v5151_v16  ;;  %2288 = vmatmul.bf16.vlgmr.msrb.gmra.mxu1 %v5151_v16 }
 0x36c   :  { %2302 = vmatmul.bf16.vlgmr.msrb.gmra.mxu2 %v5151_v16  ;;  %2316 = vmatmul.bf16.vlgmr.msrb.gmra.mxu3 %v5151_v16 }
 0x36d   :  { %2676 = vmatpush.bf16.msra.mxu0 %v4524_v38  ;;  %2690 = vmatpush.bf16.msra.mxu1 %v4528_v59 }
 0x36e   :  { %2718 = vmatpush.bf16.msra.mxu3 %v4536_v41  ;;  %v5043_v41 = vld [vmem:[#allocation5 + $0x2c] sm:$0xf0] }
 0x371   :  { %2691 = vmatpush.bf16.msra.mxu1 %v4512_v54  ;;  %v5042_v54 = vld [vmem:[#allocation5 + $0x2c] sm:$0xf] }
 0x372   :  { %2719 = vmatpush.bf16.msra.mxu3 %v4520_v10 }
 0x375   :  { %2692 = vmatpush.bf16.msra.mxu1 %v4496_v35 }
 0x3e8   :  { %v2275_v52 = vpop.f32.mrf.mxu0  ;;  %v2289_v42 = vpop.f32.mrf.mxu1 }
 0x3e9   :  { %v2322_v13 = vadd.f32 %v2275_v52, %v201_v3  ;;  %v2323_v47 = vadd.f32 %v2289_v42, %v250_v43  ;;  %v5056_v3 = vld [vmem:[#allocation5 + $0x94] sm:$0xf0] }
 0x3ea   :  { %v4532_v7 = vor.u32 %v5056_v3, %v4531_v28 }
 0x3eb   :  { %v4449_v1 = vmul.f32 -1.442695, %v2322_v13  ;;  %v4451_v51 = vmul.f32 -1.442695, %v2323_v47  ;;  %v4507_v13 = vld [vmem:[#allocation5 + $0x60] sm:$0xf] }
 0x3ec   :  { %2704 = vmatpush.bf16.msra.mxu2 %v4532_v7  ;;  %v5051_v47 = vld [vmem:[#allocation5 + $0x6c] sm:$0xf0] }
 0x3ed   :  { %5313 = vpow2.f32 %v4449_v1  ;;  %v6698_v1 = vld [vmem:[#allocation14_spill] sm:$0xff]  ;;  %v4508_v44 = vor.u32 %v5051_v47, %v4507_v13 }
 0x3ee   :  { %5315 = vpow2.f32 %v4451_v51  ;;  %v350_v51 = vadd.f32 %v6698_v1, %v5748_v48 }
 0x3ef   :  { %v2317_v15 = vpop.f32.mrf.mxu3  ;;  %v2303_v42 = vpop.f32.mrf.mxu2  ;;  %2677 = vmatpush.bf16.msra.mxu0 %v4508_v44 }
 0x3f0   :  { %v2325_v2 = vadd.f32 %v2317_v15, %v348_v36  ;;  %v2277_v58 = vpop.f32.mrf.mxu0  ;;  %v2291_v24 = vpop.f32.mrf.mxu1  ;;  %v2324_v60 = vadd.f32 %v2303_v42, %v299_v21  ;;  %v4491_v36 = vld [vmem:[#allocation5 + $0x40] sm:$0xf]  ;;  %2705 = vmatpush.bf16.msra.mxu2 %v4516_v4  ;;  %v4477_v21 = vld [vmem:[#allocation5 + $0x30] sm:$0xf0]  ;;  %v4485_v4 = vld [vmem:[#allocation5 + $0x38] sm:$0xf0] }
 0x3f1   :  { %v2326_v30 = vadd.f32 %v2277_v58, %v203_v46  ;;  %v2327_v31 = vadd.f32 %v2291_v24, %v252_v63  ;;  %v4492_v46 = vor.u32 %v5047_v56, %v4491_v36  ;;  %v4475_v42 = vld [vmem:[#allocation5 + $0x20] sm:$0xf]  ;;  %v4480_v35 = vor.u32 %v5041_v32, %v4477_v21 }
 0x3f2   :  { %v4453_v16 = vmul.f32 -1.442695, %v2325_v2  ;;  %v6699_v2 = vld [vmem:[#allocation13_spill] sm:$0xff] }
 0x3f3   :  { %v5314_v18 = vpop.eup %5313  ;;  %v4450_v19 = vmul.f32 -1.442695, %v2326_v30  ;;  %v4452_v34 = vmul.f32 -1.442695, %v2327_v31  ;;  %v301_v58 = vadd.f32 %v6699_v2, %v5759_v45  ;;  %2678 = vmatpush.bf16.msra.mxu0 %v4492_v46  ;;  %v5037_v46 = vld [vmem:[#allocation5 + $0x4] sm:$0xf]  ;;  %2693 = vmatpush.bf16.msra.mxu1 %v4480_v35 }
 0x3f4   :  { %v5316_v43 = vpop.eup %5315  ;;  %v6219_v8 = vadd.f32 1.0, %v5314_v18  ;;  %5317 = vpow2.f32 %v4453_v16  ;;  %v4461_v2 = vld [vmem:[#allocation5 + $0x10] sm:$0xf0]  ;;  %v5099_v35 = vld [vmem:[#allocation5 + $0xec] sm:$0xf0] }
 0x3f5   :  { %v6221_v52 = vadd.f32 1.0, %v5316_v43  ;;  %5319 = vpow2.f32 %v4450_v19  ;;  %v4499_v19 = vld [vmem:[#allocation5 + $0x48] sm:$0xf]  ;;  %v5046_v43 = vld [vmem:[#allocation5 + $0x4c] sm:$0xf] }
 0x3f6   :  { %5321 = vrcp.f32 %v6219_v8  ;;  %v2347_v15 = vand.u32 2147483647, %v6219_v8  ;;  %v2349_v27 = vand.u32 2147483648, %v6219_v8  ;;  %vm2343_vm5 = vweird.f32 %v6219_v8 }
 0x3f7   :  { %5323 = vrcp.f32 %v6221_v52  ;;  %v2319_v5 = vpop.f32.mrf.mxu3  ;;  %v2387_v17 = vand.u32 2147483648, %v6221_v52  ;;  %v2385_v25 = vand.u32 2147483647, %v6221_v52  ;;  %v2305_v38 = vpop.f32.mrf.mxu2  ;;  %vm2381_vm4 = vweird.f32 %v6221_v52 }
 0x3f8   :  { %5325 = vpow2.f32 %v4452_v34  ;;  %v2329_v26 = vadd.f32 %v2319_v5, %v350_v51  ;;  %vm6251_vm2 = vcmp.eq.f32.partialorder %v2347_v15, 8.507059e+37  ;;  %v5048_v34 = vld [vmem:[#allocation5 + $0x54] sm:$0xf0]  ;;  %v2350_v3 = vor.u32 1.1754944e-38, %v2349_v27  ;;  %v4483_v51 = vld [vmem:[#allocation5 + $0x28] sm:$0xf] }
 0x3f9   :  { %5327 = vtanh.f32 %v2324_v60  ;;  %v2328_v57 = vadd.f32 %v2305_v38, %v301_v58  ;;  %v2388_v13 = vor.u32 1.1754944e-38, %v2387_v17  ;;  %v4500_v14 = vor.u32 %v5048_v34, %v4499_v19  ;;  %v5044_v60 = vld [vmem:[#allocation5 + $0x34] sm:$0xf0]  ;;  %v4467_v58 = vld [vmem:[#allocation5 + $0x8] sm:$0xf] }
 0x3fa   :  { %v5318_v49 = vpop.eup %5317  ;;  %v4454_v62 = vmul.f32 -1.442695, %v2329_v26  ;;  %vm6276_vm8 = vcmp.eq.f32.partialorder %v2385_v25, 8.507059e+37  ;;  %v4504_v37 = vor.u32 %v5046_v43, %v4501_v33  ;;  %v5039_v26 = vld [vmem:[#allocation5 + $0xc] sm:$0xf0] }
 0x3fb   :  { %v5320_v23 = vpop.eup %5319  ;;  %v6232_v55 = vadd.f32 1.0, %v5318_v49  ;;  %2706 = vmatpush.bf16.msra.mxu2 %v4500_v14  ;;  %v4476_v49 = vor.u32 %v5043_v41, %v4475_v42  ;;  %v5038_v17 = vld [vmem:[#allocation5 + $0xc] sm:$0xf]  ;;  %v4469_v25 = vld [vmem:[#allocation5 + $0x18] sm:$0xf0] }
 0x3fc   :  { %v6229_v63 = vpop.eup %5321  ;;  %v6234_v29 = vadd.f32 1.0, %v5320_v23  ;;  %v4459_v23 = vld [vmem:[#allocation5] sm:$0xf]  ;;  %2720 = vmatpush.bf16.msra.mxu3 %v4504_v37 }
 0x3fd   :  { %v6236_v20 = vpop.eup %5323  ;;  %v2339_v24 = vmul.f32 %v6229_v63, %v6219_v8  ;;  %vm2344_vm1 = vweird.f32 %v6229_v63  ;;  %2679 = vmatpush.bf16.msra.mxu0 %v4476_v49  ;;  %v4460_v18 = vor.u32 %v5039_v26, %v4459_v23 }
 0x3fe   :  { %v5326_v30 = vpop.eup %5325  ;;  %v2377_v31 = vmul.f32 %v6236_v20, %v6221_v52  ;;  %5329 = vrcp.f32 %v6234_v29  ;;  %vm2382_vm3 = vweird.f32 %v6236_v20  ;;  %vm6265_vm6 = vmor %vm2343_vm5, %vm2344_vm1  ;;  %v2362_v1 = vand.u32 2147483647, %v6234_v29 }
 0x3ff   :  { %v2340_v9 = vsub.f32 1.0, %v2339_v24  ;;  %v6248_v16 = vadd.f32 1.0, %v5326_v30  ;;  %5331 = vrcp.f32 %v6232_v55  ;;  %v5328_v52 = vpop.eup %5327  ;;  %vm6271_vm7 = vmor %vm2381_vm4, %vm2382_vm3  ;;  %vm2358_vm9 = vweird.f32 %v6234_v29 }
 0x400   :  { %v2378_v28 = vsub.f32 1.0, %v2377_v31  ;;  %v2364_v31 = vand.u32 2147483648, %v6234_v29  ;;  %vm2363_vm14 = vcmp.eq.f32.partialorder %v2362_v1, 8.507059e+37  ;;  %v2427_v1 = vand.u32 2147483648, %v6232_v55 }
 0x401   :  { %v2341_v59 = vmul.f32 %v6229_v63, %v2340_v9  ;;  %5333 = vrcp.f32 %v6248_v16  ;;  %v2402_v22 = vand.u32 2147483648, %v6248_v16  ;;  %v2400_v41 = vand.u32 2147483647, %v6248_v16  ;;  %2680 = vmatpush.bf16.msra.mxu0 %v4460_v18 }
 0x402   :  { %v2379_v7 = vmul.f32 %v6236_v20, %v2378_v28  ;;  %5335 = vpow2.f32 %v4454_v62  ;;  %v4484_v62 = vor.u32 %v5044_v60, %v4483_v51  ;;  %v4488_v28 = vor.u32 %v5042_v54, %v4485_v4 }
 0x403   :  { %v2342_v47 = vadd.f32 %v6229_v63, %v2341_v59  ;;  %5337 = vtanh.f32 %v2328_v57  ;;  %vm2396_vm12 = vweird.f32 %v6248_v16  ;;  %v2403_v32 = vor.u32 1.1754944e-38, %v2402_v22 }
 0x404   :  { %v2380_v5 = vadd.f32 %v6236_v20, %v2379_v7  ;;  %v6282_v44 = vpop.eup %5329  ;;  %2707 = vmatpush.bf16.msra.mxu2 %v4484_v62  ;;  %2721 = vmatpush.bf16.msra.mxu3 %v4488_v28  ;;  %v4472_v7 = vor.u32 %v5038_v17, %v4469_v25  ;;  %vm2401_vm0 = vcmp.eq.f32.partialorder %v2400_v41, 8.507059e+37  ;;  %v6709_v17 = vld [vmem:[#allocation16_spill] sm:$0xff]  ;;  %v4717_v28 = vld [vmem:[#allocation5 + $0xf8] sm:$0xf0]  ;;  %v4699_v41 = vld [vmem:[#allocation5 + $0xc8] sm:$0xf] }
 0x405   :  { %v2346_v6 = vsel %vm6265_vm6, %v6229_v63, %v2342_v47  ;;  %v6287_v10 = vpop.eup %5331  ;;  %v2354_v39 = vmul.f32 %v6282_v44, %v6234_v29  ;;  %vm2359_vm10 = vweird.f32 %v6282_v44  ;;  %v255_v25 = vadd.f32 %v6709_v17, %v5739_v40  ;;  %v5098_v62 = vld [vmem:[#allocation5 + $0xec] sm:$0xf] }
 0x406   :  { %v2351_v36 = vsel %vm6251_vm2, %v2350_v3, %v2346_v6  ;;  %v2384_v56 = vsel %vm6271_vm7, %v6236_v20, %v2380_v5  ;;  %v5040_v20 = vld [vmem:[#allocation5 + $0x14] sm:$0xf0]  ;;  %v2417_v38 = vmul.f32 %v6287_v10, %v6232_v55  ;;  %v4464_v3 = vor.u32 %v5037_v46, %v4461_v2  ;;  %vm2360_vm13 = vmor %vm2358_vm9, %vm2359_vm10  ;;  %v5097_v2 = vld [vmem:[#allocation5 + $0xe4] sm:$0xf] }
 0x407   :  { %v5334_v11 = vpop.eup %5333  ;;  %v2389_v63 = vsel %vm6276_vm8, %v2388_v13, %v2384_v56  ;;  %v2448_v15 = vmul.f32 %v5328_v52, %v2351_v36  ;;  %v2355_v27 = vsub.f32 1.0, %v2354_v39  ;;  %v4468_v43 = vor.u32 %v5040_v20, %v4467_v58  ;;  %v4709_v20 = vld [vmem:[#allocation5 + $0xf0] sm:$0xf0] }
 0x408   :  { %v2446_v24 = vmul.f32 %v2389_v63, %v6180_v12  ;;  %v2392_v30 = vmul.f32 %v5334_v11, %v6248_v16  ;;  %v5336_v9 = vpop.eup %5335  ;;  %vm2397_vm11 = vweird.f32 %v5334_v11  ;;  %v2365_v13 = vor.u32 1.1754944e-38, %v2364_v31  ;;  %2694 = vmatpush.bf16.msra.mxu1 %v4464_v3  ;;  %2722 = vmatpush.bf16.msra.mxu3 %v4472_v7  ;;  %v5095_v7 = vld [vmem:[#allocation5 + $0xcc] sm:$0xf0] }
 0x409   :  { %v2356_v12 = vmul.f32 %v6282_v44, %v2355_v27  ;;  %v2415_v59 = vadd.f32 1.0, %v5336_v9  ;;  %v5338_v57 = vpop.eup %5337  ;;  %v2418_v47 = vsub.f32 1.0, %v2417_v38  ;;  %vm2398_vm15 = vmor %vm2396_vm12, %vm2397_vm11  ;;  %2708 = vmatpush.bf16.msra.mxu2 %v4468_v43  ;;  %vm2422_vm1 = vweird.f32 %v6287_v10  ;;  %v5100_v27 = vld [vmem:[#allocation5 + $0xf4] sm:$0xf0]  ;;  %v4691_v43 = vld [vmem:[#allocation5 + $0xc0] sm:$0xf] }
 0x40a   :  { %v6304_v19 = vadd.f32 %v2448_v15, %v2446_v24  ;;  %v2393_v34 = vsub.f32 1.0, %v2392_v30  ;;  %vm2421_vm2 = vweird.f32 %v6232_v55  ;;  %v2428_v56 = vor.u32 1.1754944e-38, %v2427_v1  ;;  %v4715_v24 = vld [vmem:[#allocation5 + $0xe8] sm:$0xf] }
 0x40b   :  { %v2357_v42 = vadd.f32 %v6282_v44, %v2356_v12  ;;  %5339 = vrcp.f32 %v2415_v59  ;;  %v2419_v0 = vmul.f32 %v6287_v10, %v2418_v47  ;;  %v2442_v37 = vand.u32 2147483648, %v2415_v59  ;;  %vm2423_vm4 = vmor %vm2421_vm2, %vm2422_vm1  ;;  %v6708_v30 = vld [vmem:[#allocation15_spill] sm:$0xff] }
 0x40c   :  { %v2394_v33 = vmul.f32 %v5334_v11, %v2393_v34  ;;  %5341 = vtanh.f32 %v6304_v19  ;;  %v2440_v60 = vand.u32 2147483647, %v2415_v59  ;;  %vm2436_vm5 = vweird.f32 %v2415_v59  ;;  %v4683_v1 = vld [vmem:[#allocation5 + $0xa8] sm:$0xf] }
 0x40d   :  { %v2361_v53 = vsel %vm2360_vm13, %v6282_v44, %v2357_v42  ;;  %v2420_v16 = vadd.f32 %v6287_v10, %v2419_v0  ;;  %v2443_v39 = vor.u32 1.1754944e-38, %v2442_v37  ;;  %v206_v31 = vadd.f32 %v6708_v30, %v5732_v50  ;;  %v4693_v42 = vld [vmem:[#allocation5 + $0xd0] sm:$0xf0]  ;;  %v5091_v0 = vld [vmem:[#allocation5 + $0xac] sm:$0xf0] }
 0x40e   :  { %v2395_v14 = vadd.f32 %v5334_v11, %v2394_v33  ;;  %v2366_v21 = vsel %vm2363_vm14, %v2365_v13, %v2361_v53  ;;  %vm2441_vm8 = vcmp.eq.f32.partialorder %v2440_v60, 8.507059e+37  ;;  %v4712_v9 = vor.u32 %v5097_v2, %v4709_v20  ;;  %v5096_v13 = vld [vmem:[#allocation5 + $0xd4] sm:$0xf0]  ;;  %v6712_v60 = vld [vmem:[#allocation20_spill] sm:$0xff]  ;;  %v5085_v2 = vld [vmem:[#allocation5 + $0x84] sm:$0xf] }
 0x40f   :  { %v2449_v8 = vmul.f32 %v5338_v57, %v2366_v21  ;;  %v2424_v4 = vsel %vm2423_vm4, %v6287_v10, %v2420_v16  ;;  %v4707_v10 = vld [vmem:[#allocation5 + $0xe0] sm:$0xf]  ;;  %v4716_v38 = vor.u32 %v5100_v27, %v4715_v24  ;;  %v4720_v12 = vor.u32 %v5098_v62, %v4717_v28  ;;  %v5093_v57 = vld [vmem:[#allocation5 + $0xc4] sm:$0xf]  ;;  %v5094_v21 = vld [vmem:[#allocation5 + $0xcc] sm:$0xf] }
 0x410   :  { %v2399_v52 = vsel %vm2398_vm15, %v5334_v11, %v2395_v14  ;;  %v4708_v58 = vor.u32 %v5099_v35, %v4707_v10  ;;  %3094 = vmatpush.bf16.msrb.mxu1 %v4712_v9  ;;  %v4692_v33 = vor.u32 %v5095_v7, %v4691_v43  ;;  %v4696_v14 = vor.u32 %v5093_v57, %v4693_v42  ;;  %v5092_v37 = vld [vmem:[#allocation5 + $0xb4] sm:$0xf0]  ;;  %v4659_v10 = vld [vmem:[#allocation5 + $0x80] sm:$0xf]  ;;  %v5087_v35 = vld [vmem:[#allocation5 + $0x8c] sm:$0xf0] }
 0x411   :  { %v2404_v5 = vsel %vm2401_vm0, %v2403_v32, %v2399_v52  ;;  %v5340_v44 = vpop.eup %5339  ;;  %3108 = vmatpush.bf16.msrb.mxu2 %v4716_v38  ;;  %3122 = vmatpush.bf16.msrb.mxu3 %v4720_v12  ;;  %v4700_v32 = vor.u32 %v5096_v13, %v4699_v41  ;;  %v4701_v52 = vld [vmem:[#allocation5 + $0xd8] sm:$0xf0]  ;;  %v4660_v20 = vor.u32 %v5087_v35, %v4659_v10  ;;  %v4661_v24 = vld [vmem:[#allocation5 + $0x90] sm:$0xf0]  ;;  %v4667_v27 = vld [vmem:[#allocation5 + $0x88] sm:$0xf] }
 0x412   :  { %v2447_v51 = vmul.f32 %v2404_v5, %v6196_v61  ;;  %v2432_v29 = vmul.f32 %v5340_v44, %v2415_v59  ;;  %v2425_v61 = vand.u32 2147483647, %v6232_v55  ;;  %vm2437_vm3 = vweird.f32 %v5340_v44  ;;  %v5342_v36 = vpop.eup %5341  ;;  %3080 = vmatpush.bf16.msrb.mxu0 %v4708_v58  ;;  %v4675_v5 = vld [vmem:[#allocation5 + $0xa0] sm:$0xf]  ;;  %v5088_v9 = vld [vmem:[#allocation5 + $0x94] sm:$0xf0] }
 0x413   :  { %vm2438_vm6 = vmor %vm2436_vm5, %vm2437_vm3  ;;  %v4676_v16 = vor.u32 %v5091_v0, %v4675_v5  ;;  %v4668_v28 = vor.u32 %v5088_v9, %v4667_v27  ;;  %v4643_v43 = vld [vmem:[#allocation5 + $0x60] sm:$0xf]  ;;  %v5083_v7 = vld [vmem:[#allocation5 + $0x6c] sm:$0xf0] }
 0x414   :  { %v6320_v6 = vadd.f32 %v2449_v8, %v2447_v51  ;;  %v2433_v22 = vsub.f32 1.0, %v2432_v29  ;;  %vm2426_vm7 = vcmp.eq.f32.partialorder %v2425_v61, 8.507059e+37  ;;  %3095 = vmatpush.bf16.msrb.mxu1 %v4696_v14  ;;  %v4704_v8 = vor.u32 %v5094_v21, %v4701_v52  ;;  %v5089_v51 = vld [vmem:[#allocation5 + $0xa4] sm:$0xf]  ;;  %v6713_v42 = vld [vmem:[#allocation17_spill] sm:$0xff]  ;;  %v6714_v14 = vld [vmem:[#allocation22_spill] sm:$0xff] }
 0x415   :  { %v2429_v46 = vsel %vm2426_vm7, %v2428_v56, %v2424_v4  ;;  %3109 = vmatpush.bf16.msrb.mxu2 %v4700_v32  ;;  %v6711_v61 = vld [vmem:[#allocation19_spill] sm:$0xff]  ;;  %v4684_v56 = vor.u32 %v5092_v37, %v4683_v1  ;;  %v304_v41 = vadd.f32 %v6713_v42, %v5759_v45  ;;  %v355_v32 = vadd.f32 %v6714_v14, %v5748_v48  ;;  %v5082_v52 = vld [vmem:[#allocation5 + $0x6c] sm:$0xf] }
 0x416   :  { %5343 = vtanh.f32 %v6320_v6  ;;  %v2434_v49 = vmul.f32 %v5340_v44, %v2433_v22  ;;  %v2454_v63 = vmul.f32 %v5342_v36, %v2429_v46  ;;  %3081 = vmatpush.bf16.msrb.mxu0 %v4692_v33  ;;  %v4677_v22 = vld [vmem:[#allocation5 + $0xb0] sm:$0xf0]  ;;  %3123 = vmatpush.bf16.msrb.mxu3 %v4704_v8  ;;  %v5081_v57 = vld [vmem:[#allocation5 + $0x64] sm:$0xf]  ;;  %v4644_v21 = vor.u32 %v5083_v7, %v4643_v43  ;;  %v4653_v8 = vld [vmem:[#allocation5 + $0x78] sm:$0xf0] }
 0x417   :  { %v4680_v36 = vor.u32 %v5089_v51, %v4677_v22  ;;  %v4645_v33 = vld [vmem:[#allocation5 + $0x70] sm:$0xf0]  ;;  %v5079_v22 = vld [vmem:[#allocation5 + $0x4c] sm:$0xf0]  ;;  %v5077_v1 = vld [vmem:[#allocation5 + $0x44] sm:$0xf] }
 0x418   :  { %v2435_v54 = vadd.f32 %v5340_v44, %v2434_v49  ;;  %v208_v49 = vadd.f32 %v6711_v61, %v5732_v50  ;;  %v4648_v51 = vor.u32 %v5081_v57, %v4645_v33  ;;  %v5073_v42 = vld [vmem:[#allocation5 + $0x24] sm:$0xf] }
 0x419   :  { %3096 = vmatpush.bf16.msrb.mxu1 %v4680_v36  ;;  %3110 = vmatpush.bf16.msrb.mxu2 %v4684_v56 }
 0x41a   :  { %v2439_v26 = vsel %vm2438_vm6, %v5340_v44, %v2435_v54  ;;  %v6710_v44 = vld [vmem:[#allocation18_spill] sm:$0xff]  ;;  %v257_v54 = vadd.f32 %v6712_v60, %v5739_v40  ;;  %3082 = vmatpush.bf16.msrb.mxu0 %v4676_v16  ;;  %v4629_v60 = vld [vmem:[#allocation5 + $0x50] sm:$0xf0] }
 0x41b   :  { %v2444_v11 = vsel %vm2441_vm8, %v2443_v39, %v2439_v26  ;;  %v353_v29 = vadd.f32 %v6710_v44, %v5748_v48  ;;  %v5090_v39 = vld [vmem:[#allocation5 + $0xac] sm:$0xf]  ;;  %v4627_v16 = vld [vmem:[#allocation5 + $0x40] sm:$0xf] }
 0x41c   :  { %v5344_v23 = vpop.eup %5343 }
 0x41d   :  { %v2455_v55 = vmul.f32 %v5344_v23, %v2444_v11  ;;  %v4685_v23 = vld [vmem:[#allocation5 + $0xb8] sm:$0xf0]  ;;  %3111 = vmatpush.bf16.msrb.mxu2 %v4668_v28 }
 0x41e   :  { %3083 = vmatpush.bf16.msrb.mxu0 %v4660_v20 }
 0x41f   :  { %v5156_v15 = vpack.c.bf16 %v2455_v55, %v2454_v63  ;;  %v4688_v63 = vor.u32 %v5090_v39, %v4685_v23  ;;  %v4632_v39 = vor.u32 %v5077_v1, %v4629_v60 }
 0x421   :  { %5176 = vst [vmem:[%s6642_s4 + $0x20] sm:$0xff] %v5156_v15   ;;  %2681 = vmatmul.bf16.vlgmr.msra.gmra.mxu0 %v5156_v15  ;;  %2695 = vmatmul.bf16.vlgmr.msra.gmra.mxu1 %v5156_v15 }
 0x422   :  { %2709 = vmatmul.bf16.vlgmr.msra.gmra.mxu2 %v5156_v15  ;;  %2723 = vmatmul.bf16.vlgmr.msra.gmra.mxu3 %v5156_v15 }
 0x423   :  { %3124 = vmatpush.bf16.msrb.mxu3 %v4688_v63  ;;  %3084 = vmatpush.bf16.msrb.mxu0 %v4644_v21 }
 0x49e   :  { %v2682_v18 = vpop.f32.mrf.mxu0  ;;  %v2696_v34 = vpop.f32.mrf.mxu1 }
 0x49f   :  { %v2729_v59 = vadd.f32 %v2682_v18, %v206_v31  ;;  %v2730_v3 = vadd.f32 %v2696_v34, %v255_v25  ;;  %v4664_v25 = vor.u32 %v5085_v2, %v4661_v24  ;;  %v5086_v18 = vld [vmem:[#allocation5 + $0x8c] sm:$0xf]  ;;  %v4669_v34 = vld [vmem:[#allocation5 + $0x98] sm:$0xf0] }
 0x4a1   :  { %v4585_v47 = vmul.f32 -1.442695, %v2729_v59  ;;  %v4587_v53 = vmul.f32 -1.442695, %v2730_v3  ;;  %3097 = vmatpush.bf16.msrb.mxu1 %v4664_v25  ;;  %v4672_v3 = vor.u32 %v5086_v18, %v4669_v34  ;;  %v4637_v34 = vld [vmem:[#allocation5 + $0x58] sm:$0xf0] }
 0x4a3   :  { %5345 = vpow2.f32 %v4585_v47  ;;  %3125 = vmatpush.bf16.msrb.mxu3 %v4672_v3  ;;  %v4651_v47 = vld [vmem:[#allocation5 + $0x68] sm:$0xf]  ;;  %v5075_v3 = vld [vmem:[#allocation5 + $0x2c] sm:$0xf0] }
 0x4a4   :  { %5347 = vpow2.f32 %v4587_v53  ;;  %v5084_v53 = vld [vmem:[#allocation5 + $0x74] sm:$0xf0] }
 0x4a5   :  { %v2724_v4 = vpop.f32.mrf.mxu3  ;;  %v2710_v59 = vpop.f32.mrf.mxu2  ;;  %v4652_v44 = vor.u32 %v5084_v53, %v4651_v47  ;;  %3098 = vmatpush.bf16.msrb.mxu1 %v4648_v51  ;;  %v5074_v51 = vld [vmem:[#allocation5 + $0x2c] sm:$0xf] }
 0x4a6   :  { %v2732_v26 = vadd.f32 %v2724_v4, %v353_v29  ;;  %v2684_v46 = vpop.f32.mrf.mxu0  ;;  %v2698_v11 = vpop.f32.mrf.mxu1  ;;  %v2731_v0 = vadd.f32 %v2710_v59, %v304_v41  ;;  %v4656_v29 = vor.u32 %v5082_v52, %v4653_v8  ;;  %v4611_v59 = vld [vmem:[#allocation5 + $0x20] sm:$0xf]  ;;  %v4613_v41 = vld [vmem:[#allocation5 + $0x30] sm:$0xf0] }
 0x4a7   :  { %v2733_v55 = vadd.f32 %v2684_v46, %v208_v49  ;;  %v2734_v15 = vadd.f32 %v2698_v11, %v257_v54  ;;  %v4628_v49 = vor.u32 %v5079_v22, %v4627_v16  ;;  %3112 = vmatpush.bf16.msrb.mxu2 %v4652_v44  ;;  %v4621_v44 = vld [vmem:[#allocation5 + $0x38] sm:$0xf0] }
 0x4a8   :  { %v4589_v58 = vmul.f32 -1.442695, %v2732_v26  ;;  %v6715_v26 = vld [vmem:[#allocation21_spill] sm:$0xff]  ;;  %3126 = vmatpush.bf16.msrb.mxu3 %v4656_v29 }
 0x4a9   :  { %v5346_v30 = vpop.eup %5345  ;;  %v4586_v31 = vmul.f32 -1.442695, %v2733_v55  ;;  %v4588_v17 = vmul.f32 -1.442695, %v2734_v15  ;;  %v306_v46 = vadd.f32 %v6715_v26, %v5759_v45  ;;  %3085 = vmatpush.bf16.msrb.mxu0 %v4628_v49  ;;  %3099 = vmatpush.bf16.msrb.mxu1 %v4632_v39  ;;  %v5069_v49 = vld [vmem:[#allocation5 + $0x4] sm:$0xf]  ;;  %v4616_v39 = vor.u32 %v5073_v42, %v4613_v41 }
 0x4aa   :  { %v5348_v38 = vpop.eup %5347  ;;  %v6343_v62 = vadd.f32 1.0, %v5346_v30  ;;  %5349 = vpow2.f32 %v4589_v58  ;;  %v4597_v26 = vld [vmem:[#allocation5 + $0x10] sm:$0xf0] }
 0x4ab   :  { %v6345_v12 = vadd.f32 1.0, %v5348_v38  ;;  %5351 = vpow2.f32 %v4586_v31  ;;  %v4635_v31 = vld [vmem:[#allocation5 + $0x48] sm:$0xf]  ;;  %v5078_v38 = vld [vmem:[#allocation5 + $0x4c] sm:$0xf] }
 0x4ac   :  { %5353 = vrcp.f32 %v6343_v62  ;;  %v2754_v4 = vand.u32 2147483647, %v6343_v62  ;;  %v2756_v63 = vand.u32 2147483648, %v6343_v62  ;;  %vm2750_vm13 = vweird.f32 %v6343_v62 }
 0x4ad   :  { %5355 = vrcp.f32 %v6345_v12  ;;  %v2726_v13 = vpop.f32.mrf.mxu3  ;;  %v2794_v10 = vand.u32 2147483648, %v6345_v12  ;;  %v2792_v35 = vand.u32 2147483647, %v6345_v12  ;;  %v2712_v20 = vpop.f32.mrf.mxu2  ;;  %vm2788_vm12 = vweird.f32 %v6345_v12  ;;  %3100 = vmatpush.bf16.msrb.mxu1 %v4616_v39  ;;  %v5131_v39 = vld [vmem:[#allocation5 + $0xec] sm:$0xf0] }
 0x4ae   :  { %5357 = vpow2.f32 %v4588_v17  ;;  %v2736_v61 = vadd.f32 %v2726_v13, %v355_v32  ;;  %vm6375_vm10 = vcmp.eq.f32.partialorder %v2754_v4, 8.507059e+37  ;;  %v5080_v17 = vld [vmem:[#allocation5 + $0x54] sm:$0xf0]  ;;  %v2757_v9 = vor.u32 1.1754944e-38, %v2756_v63  ;;  %v4619_v32 = vld [vmem:[#allocation5 + $0x28] sm:$0xf] }
 0x4af   :  { %5359 = vtanh.f32 %v2731_v0  ;;  %v2735_v18 = vadd.f32 %v2712_v20, %v306_v46  ;;  %v2795_v43 = vor.u32 1.1754944e-38, %v2794_v10  ;;  %v4636_v33 = vor.u32 %v5080_v17, %v4635_v31  ;;  %v5076_v0 = vld [vmem:[#allocation5 + $0x34] sm:$0xf0]  ;;  %v4603_v46 = vld [vmem:[#allocation5 + $0x8] sm:$0xf] }
 0x4b0   :  { %v5350_v5 = vpop.eup %5349  ;;  %v4590_v24 = vmul.f32 -1.442695, %v2736_v61  ;;  %vm6400_vm0 = vcmp.eq.f32.partialorder %v2792_v35, 8.507059e+37  ;;  %v4640_v8 = vor.u32 %v5078_v38, %v4637_v34  ;;  %v5071_v61 = vld [vmem:[#allocation5 + $0xc] sm:$0xf0] }
 0x4b1   :  { %v5352_v37 = vpop.eup %5351  ;;  %v6356_v36 = vadd.f32 1.0, %v5350_v5  ;;  %3113 = vmatpush.bf16.msrb.mxu2 %v4636_v33  ;;  %v4612_v5 = vor.u32 %v5075_v3, %v4611_v59  ;;  %v5070_v10 = vld [vmem:[#allocation5 + $0xc] sm:$0xf]  ;;  %v4605_v35 = vld [vmem:[#allocation5 + $0x18] sm:$0xf0] }
 0x4b2   :  { %v6353_v54 = vpop.eup %5353  ;;  %v6358_v56 = vadd.f32 1.0, %v5352_v37  ;;  %v4595_v37 = vld [vmem:[#allocation5] sm:$0xf]  ;;  %3127 = vmatpush.bf16.msrb.mxu3 %v4640_v8 }
 0x4b3   :  { %v6360_v23 = vpop.eup %5355  ;;  %v2746_v11 = vmul.f32 %v6353_v54, %v6343_v62  ;;  %vm2751_vm9 = vweird.f32 %v6353_v54  ;;  %3086 = vmatpush.bf16.msrb.mxu0 %v4612_v5  ;;  %v4596_v30 = vor.u32 %v5071_v61, %v4595_v37 }
 0x4b4   :  { %v5358_v55 = vpop.eup %5357  ;;  %v2784_v15 = vmul.f32 %v6360_v23, %v6345_v12  ;;  %5361 = vrcp.f32 %v6358_v56  ;;  %vm2789_vm11 = vweird.f32 %v6360_v23  ;;  %vm6389_vm14 = vmor %vm2750_vm13, %vm2751_vm9  ;;  %v2769_v14 = vand.u32 2147483647, %v6358_v56 }
 0x4b5   :  { %v2747_v2 = vsub.f32 1.0, %v2746_v11  ;;  %v6372_v58 = vadd.f32 1.0, %v5358_v55  ;;  %5363 = vrcp.f32 %v6356_v36  ;;  %v5360_v12 = vpop.eup %5359  ;;  %vm6395_vm15 = vmor %vm2788_vm12, %vm2789_vm11  ;;  %vm2765_vm1 = vweird.f32 %v6358_v56 }
 0x4b6   :  { %v2785_v27 = vsub.f32 1.0, %v2784_v15  ;;  %v2771_v15 = vand.u32 2147483648, %v6358_v56  ;;  %vm2770_vm6 = vcmp.eq.f32.partialorder %v2769_v14, 8.507059e+37  ;;  %v2834_v14 = vand.u32 2147483648, %v6356_v36 }
 0x4b7   :  { %v2748_v25 = vmul.f32 %v6353_v54, %v2747_v2  ;;  %5365 = vrcp.f32 %v6372_v58  ;;  %v2809_v53 = vand.u32 2147483648, %v6372_v58  ;;  %v2807_v3 = vand.u32 2147483647, %v6372_v58  ;;  %3087 = vmatpush.bf16.msrb.mxu0 %v4596_v30 }
 0x4b8   :  { %v2786_v28 = vmul.f32 %v6360_v23, %v2785_v27  ;;  %5367 = vpow2.f32 %v4590_v24  ;;  %v4620_v24 = vor.u32 %v5076_v0, %v4619_v32  ;;  %v4624_v27 = vor.u32 %v5074_v51, %v4621_v44 }
 0x4b9   :  { %v2749_v7 = vadd.f32 %v6353_v54, %v2748_v25  ;;  %5369 = vtanh.f32 %v2735_v18  ;;  %vm2803_vm4 = vweird.f32 %v6372_v58  ;;  %v2810_v42 = vor.u32 1.1754944e-38, %v2809_v53 }
 0x4ba   :  { %v2787_v13 = vadd.f32 %v6360_v23, %v2786_v28  ;;  %v6406_v21 = vpop.eup %5361  ;;  %3114 = vmatpush.bf16.msrb.mxu2 %v4620_v24  ;;  %3128 = vmatpush.bf16.msrb.mxu3 %v4624_v27  ;;  %v4608_v28 = vor.u32 %v5070_v10, %v4605_v35  ;;  %vm2808_vm8 = vcmp.eq.f32.partialorder %v2807_v3, 8.507059e+37  ;;  %v6725_v10 = vld [vmem:[#allocation24_spill] sm:$0xff]  ;;  %v4853_v27 = vld [vmem:[#allocation5 + $0xf8] sm:$0xf0]  ;;  %v4835_v3 = vld [vmem:[#allocation5 + $0xc8] sm:$0xf] }
 0x4bb   :  { %v2753_v52 = vsel %vm6389_vm14, %v6353_v54, %v2749_v7  ;;  %v6411_v29 = vpop.eup %5363  ;;  %v2761_v1 = vmul.f32 %v6406_v21, %v6358_v56  ;;  %vm2766_vm2 = vweird.f32 %v6406_v21  ;;  %v260_v35 = vadd.f32 %v6725_v10, %v5739_v40  ;;  %v5130_v24 = vld [vmem:[#allocation5 + $0xec] sm:$0xf] }
 0x4bc   :  { %v2758_v16 = vsel %vm6375_vm10, %v2757_v9, %v2753_v52  ;;  %v2791_v22 = vsel %vm6395_vm15, %v6360_v23, %v2787_v13  ;;  %v5072_v23 = vld [vmem:[#allocation5 + $0x14] sm:$0xf0]  ;;  %v2824_v20 = vmul.f32 %v6411_v29, %v6356_v36  ;;  %v4600_v9 = vor.u32 %v5069_v49, %v4597_v26  ;;  %vm2767_vm5 = vmor %vm2765_vm1, %vm2766_vm2  ;;  %v5129_v26 = vld [vmem:[#allocation5 + $0xe4] sm:$0xf] }
 0x4bd   :  { %v5366_v60 = vpop.eup %5365  ;;  %v2796_v54 = vsel %vm6400_vm0, %v2795_v43, %v2791_v22  ;;  %v2855_v4 = vmul.f32 %v5360_v12, %v2758_v16  ;;  %v2762_v63 = vsub.f32 1.0, %v2761_v1  ;;  %v4604_v38 = vor.u32 %v5072_v23, %v4603_v46  ;;  %v4845_v23 = vld [vmem:[#allocation5 + $0xf0] sm:$0xf0] }
 0x4be   :  { %v2853_v11 = vmul.f32 %v2796_v54, %v6304_v19  ;;  %v2799_v55 = vmul.f32 %v5366_v60, %v6372_v58  ;;  %v5368_v2 = vpop.eup %5367  ;;  %vm2804_vm3 = vweird.f32 %v5366_v60  ;;  %v2772_v43 = vor.u32 1.1754944e-38, %v2771_v15  ;;  %3101 = vmatpush.bf16.msrb.mxu1 %v4600_v9  ;;  %3129 = vmatpush.bf16.msrb.mxu3 %v4608_v28  ;;  %v5127_v28 = vld [vmem:[#allocation5 + $0xcc] sm:$0xf0] }
 0x4bf   :  { %v2763_v19 = vmul.f32 %v6406_v21, %v2762_v63  ;;  %v2822_v25 = vadd.f32 1.0, %v5368_v2  ;;  %v5370_v18 = vpop.eup %5369  ;;  %v2825_v7 = vsub.f32 1.0, %v2824_v20  ;;  %vm2805_vm7 = vmor %vm2803_vm4, %vm2804_vm3  ;;  %3115 = vmatpush.bf16.msrb.mxu2 %v4604_v38  ;;  %vm2829_vm9 = vweird.f32 %v6411_v29  ;;  %v5132_v63 = vld [vmem:[#allocation5 + $0xf4] sm:$0xf0]  ;;  %v4827_v38 = vld [vmem:[#allocation5 + $0xc0] sm:$0xf] }
 0x4c0   :  { %v6428_v31 = vadd.f32 %v2855_v4, %v2853_v11  ;;  %v2800_v17 = vsub.f32 1.0, %v2799_v55  ;;  %vm2828_vm10 = vweird.f32 %v6356_v36  ;;  %v2835_v22 = vor.u32 1.1754944e-38, %v2834_v14  ;;  %v4851_v11 = vld [vmem:[#allocation5 + $0xe8] sm:$0xf] }
 0x4c1   :  { %v2764_v59 = vadd.f32 %v6406_v21, %v2763_v19  ;;  %5371 = vrcp.f32 %v2822_v25  ;;  %v2826_v47 = vmul.f32 %v6411_v29, %v2825_v7  ;;  %v2849_v8 = vand.u32 2147483648, %v2822_v25  ;;  %vm2830_vm12 = vmor %vm2828_vm10, %vm2829_vm9  ;;  %v6724_v55 = vld [vmem:[#allocation23_spill] sm:$0xff] }
 0x4c2   :  { %v2801_v34 = vmul.f32 %v5366_v60, %v2800_v17  ;;  %5373 = vtanh.f32 %v6428_v31  ;;  %v2847_v0 = vand.u32 2147483647, %v2822_v25  ;;  %vm2843_vm13 = vweird.f32 %v2822_v25  ;;  %v4819_v14 = vld [vmem:[#allocation5 + $0xa8] sm:$0xf] }
 0x4c3   :  { %v2768_v57 = vsel %vm2767_vm5, %v6406_v21, %v2764_v59  ;;  %v2827_v58 = vadd.f32 %v6411_v29, %v2826_v47  ;;  %v2850_v1 = vor.u32 1.1754944e-38, %v2849_v8  ;;  %v211_v15 = vadd.f32 %v6724_v55, %v5732_v50  ;;  %v4829_v59 = vld [vmem:[#allocation5 + $0xd0] sm:$0xf0]  ;;  %v5123_v47 = vld [vmem:[#allocation5 + $0xac] sm:$0xf0] }
 0x4c4   :  { %v2802_v33 = vadd.f32 %v5366_v60, %v2801_v34  ;;  %v2773_v41 = vsel %vm2770_vm6, %v2772_v43, %v2768_v57  ;;  %vm2848_vm0 = vcmp.eq.f32.partialorder %v2847_v0, 8.507059e+37  ;;  %v4848_v2 = vor.u32 %v5129_v26, %v4845_v23  ;;  %v5128_v43 = vld [vmem:[#allocation5 + $0xd4] sm:$0xf0]  ;;  %v6728_v0 = vld [vmem:[#allocation28_spill] sm:$0xff]  ;;  %v5117_v26 = vld [vmem:[#allocation5 + $0x84] sm:$0xf] }
 0x4c5   :  { %v2856_v62 = vmul.f32 %v5370_v18, %v2773_v41  ;;  %v2831_v44 = vsel %vm2830_vm12, %v6411_v29, %v2827_v58  ;;  %v4843_v29 = vld [vmem:[#allocation5 + $0xe0] sm:$0xf]  ;;  %v4852_v20 = vor.u32 %v5132_v63, %v4851_v11  ;;  %v4856_v19 = vor.u32 %v5130_v24, %v4853_v27  ;;  %v5125_v18 = vld [vmem:[#allocation5 + $0xc4] sm:$0xf]  ;;  %v5126_v41 = vld [vmem:[#allocation5 + $0xcc] sm:$0xf] }
 0x4c6   :  { %v2806_v12 = vsel %vm2805_vm7, %v5366_v60, %v2802_v33  ;;  %v4844_v46 = vor.u32 %v5131_v39, %v4843_v29  ;;  %3501 = vmatpush.bf16.msra.mxu1 %v4848_v2  ;;  %v4828_v34 = vor.u32 %v5127_v28, %v4827_v38  ;;  %v4832_v33 = vor.u32 %v5125_v18, %v4829_v59  ;;  %v5124_v8 = vld [vmem:[#allocation5 + $0xb4] sm:$0xf0]  ;;  %v4795_v29 = vld [vmem:[#allocation5 + $0x80] sm:$0xf]  ;;  %v5119_v39 = vld [vmem:[#allocation5 + $0x8c] sm:$0xf0] }
 0x4c7   :  { %v2811_v13 = vsel %vm2808_vm8, %v2810_v42, %v2806_v12  ;;  %v5372_v21 = vpop.eup %5371  ;;  %3515 = vmatpush.bf16.msra.mxu2 %v4852_v20  ;;  %3529 = vmatpush.bf16.msra.mxu3 %v4856_v19  ;;  %v4836_v42 = vor.u32 %v5128_v43, %v4835_v3  ;;  %v4837_v12 = vld [vmem:[#allocation5 + $0xd8] sm:$0xf0]  ;;  %v4796_v23 = vor.u32 %v5119_v39, %v4795_v29  ;;  %v4797_v11 = vld [vmem:[#allocation5 + $0x90] sm:$0xf0]  ;;  %v4803_v63 = vld [vmem:[#allocation5 + $0x88] sm:$0xf] }
 0x4c8   :  { %v2854_v32 = vmul.f32 %v2811_v13, %v6320_v6  ;;  %v2839_v56 = vmul.f32 %v5372_v21, %v2822_v25  ;;  %v2832_v6 = vand.u32 2147483647, %v6356_v36  ;;  %vm2844_vm11 = vweird.f32 %v5372_v21  ;;  %v5374_v16 = vpop.eup %5373  ;;  %3487 = vmatpush.bf16.msra.mxu0 %v4844_v46  ;;  %v4811_v13 = vld [vmem:[#allocation5 + $0xa0] sm:$0xf]  ;;  %v5120_v2 = vld [vmem:[#allocation5 + $0x94] sm:$0xf0] }
 0x4c9   :  { %vm2845_vm14 = vmor %vm2843_vm13, %vm2844_vm11  ;;  %v4812_v58 = vor.u32 %v5123_v47, %v4811_v13  ;;  %v4804_v27 = vor.u32 %v5120_v2, %v4803_v63  ;;  %v4779_v38 = vld [vmem:[#allocation5 + $0x60] sm:$0xf]  ;;  %v5115_v28 = vld [vmem:[#allocation5 + $0x6c] sm:$0xf0] }
 0x4ca   :  { %v6444_v52 = vadd.f32 %v2856_v62, %v2854_v32  ;;  %v2840_v53 = vsub.f32 1.0, %v2839_v56  ;;  %vm2833_vm15 = vcmp.eq.f32.partialorder %v2832_v6, 8.507059e+37  ;;  %3502 = vmatpush.bf16.msra.mxu1 %v4832_v33  ;;  %v4840_v62 = vor.u32 %v5126_v41, %v4837_v12  ;;  %v5121_v32 = vld [vmem:[#allocation5 + $0xa4] sm:$0xf]  ;;  %v6729_v59 = vld [vmem:[#allocation25_spill] sm:$0xff] }
 0x4cb   :  { %v2836_v49 = vsel %vm2833_vm15, %v2835_v22, %v2831_v44  ;;  %3516 = vmatpush.bf16.msra.mxu2 %v4836_v42  ;;  %v6727_v6 = vld [vmem:[#allocation27_spill] sm:$0xff]  ;;  %v4820_v22 = vor.u32 %v5124_v8, %v4819_v14  ;;  %v309_v3 = vadd.f32 %v6729_v59, %v5759_v45  ;;  %v6730_v33 = vld [vmem:[#allocation29_spill] sm:$0xff]  ;;  %v4780_v41 = vor.u32 %v5115_v28, %v4779_v38  ;;  %v5114_v12 = vld [vmem:[#allocation5 + $0x6c] sm:$0xf] }
 0x4cc   :  { %5375 = vtanh.f32 %v6444_v52  ;;  %v2841_v5 = vmul.f32 %v5372_v21, %v2840_v53  ;;  %v2861_v54 = vmul.f32 %v5374_v16, %v2836_v49  ;;  %3488 = vmatpush.bf16.msra.mxu0 %v4828_v34  ;;  %v4813_v53 = vld [vmem:[#allocation5 + $0xb0] sm:$0xf0]  ;;  %3530 = vmatpush.bf16.msra.mxu3 %v4840_v62  ;;  %v5113_v18 = vld [vmem:[#allocation5 + $0x64] sm:$0xf]  ;;  %v360_v42 = vadd.f32 %v6730_v33, %v5748_v48  ;;  %v4789_v62 = vld [vmem:[#allocation5 + $0x78] sm:$0xf0] }
 0x4cd   :  { %v4816_v16 = vor.u32 %v5121_v32, %v4813_v53  ;;  %v4781_v34 = vld [vmem:[#allocation5 + $0x70] sm:$0xf0]  ;;  %v5111_v53 = vld [vmem:[#allocation5 + $0x4c] sm:$0xf0]  ;;  %v5109_v14 = vld [vmem:[#allocation5 + $0x44] sm:$0xf] }
 0x4ce   :  { %v2842_v51 = vadd.f32 %v5372_v21, %v2841_v5  ;;  %v213_v5 = vadd.f32 %v6727_v6, %v5732_v50  ;;  %v4784_v32 = vor.u32 %v5113_v18, %v4781_v34  ;;  %v5105_v59 = vld [vmem:[#allocation5 + $0x24] sm:$0xf] }
 0x4cf   :  { %3503 = vmatpush.bf16.msra.mxu1 %v4816_v16  ;;  %3517 = vmatpush.bf16.msra.mxu2 %v4820_v22 }
 0x4d0   :  { %v2846_v61 = vsel %vm2845_vm14, %v5372_v21, %v2842_v51  ;;  %v6726_v21 = vld [vmem:[#allocation26_spill] sm:$0xff]  ;;  %v262_v51 = vadd.f32 %v6728_v0, %v5739_v40  ;;  %3489 = vmatpush.bf16.msra.mxu0 %v4812_v58  ;;  %v4765_v0 = vld [vmem:[#allocation5 + $0x50] sm:$0xf0] }
 0x4d1   :  { %v2851_v60 = vsel %vm2848_vm0, %v2850_v1, %v2846_v61  ;;  %v358_v56 = vadd.f32 %v6726_v21, %v5748_v48  ;;  %v5122_v1 = vld [vmem:[#allocation5 + $0xac] sm:$0xf]  ;;  %v4763_v58 = vld [vmem:[#allocation5 + $0x40] sm:$0xf] }
 0x4d2   :  { %v5376_v37 = vpop.eup %5375 }
 0x4d3   :  { %v2862_v36 = vmul.f32 %v5376_v37, %v2851_v60  ;;  %v4821_v37 = vld [vmem:[#allocation5 + $0xb8] sm:$0xf0]  ;;  %3518 = vmatpush.bf16.msra.mxu2 %v4804_v27 }
 0x4d4   :  { %3490 = vmatpush.bf16.msra.mxu0 %v4796_v23 }
 0x4d5   :  { %v5161_v4 = vpack.c.bf16 %v2862_v36, %v2861_v54  ;;  %v4824_v54 = vor.u32 %v5122_v1, %v4821_v37  ;;  %v4768_v1 = vor.u32 %v5109_v14, %v4765_v0 }
 0x4d7   :  { %5177 = vst [vmem:[%s6642_s4 + $0x28] sm:$0xff] %v5161_v4   ;;  %3088 = vmatmul.bf16.vlgmr.msrb.gmra.mxu0 %v5161_v4  ;;  %3102 = vmatmul.bf16.vlgmr.msrb.gmra.mxu1 %v5161_v4 }
 0x4d8   :  { %3116 = vmatmul.bf16.vlgmr.msrb.gmra.mxu2 %v5161_v4  ;;  %3130 = vmatmul.bf16.vlgmr.msrb.gmra.mxu3 %v5161_v4 }
 0x4d9   :  { %3531 = vmatpush.bf16.msra.mxu3 %v4824_v54  ;;  %3491 = vmatpush.bf16.msra.mxu0 %v4780_v41 }
 0x554   :  { %v3089_v30 = vpop.f32.mrf.mxu0  ;;  %v3103_v17 = vpop.f32.mrf.mxu1 }
 0x555   :  { %v3136_v25 = vadd.f32 %v3089_v30, %v211_v15  ;;  %v3137_v9 = vadd.f32 %v3103_v17, %v260_v35  ;;  %v4800_v35 = vor.u32 %v5117_v26, %v4797_v11  ;;  %v5118_v30 = vld [vmem:[#allocation5 + $0x8c] sm:$0xf]  ;;  %v4805_v17 = vld [vmem:[#allocation5 + $0x98] sm:$0xf0] }
 0x557   :  { %v4721_v7 = vmul.f32 -1.442695, %v3136_v25  ;;  %v4723_v57 = vmul.f32 -1.442695, %v3137_v9  ;;  %3504 = vmatpush.bf16.msra.mxu1 %v4800_v35  ;;  %v4808_v9 = vor.u32 %v5118_v30, %v4805_v17  ;;  %v4773_v17 = vld [vmem:[#allocation5 + $0x58] sm:$0xf0] }
 0x559   :  { %5377 = vpow2.f32 %v4721_v7  ;;  %3532 = vmatpush.bf16.msra.mxu3 %v4808_v9  ;;  %v4787_v7 = vld [vmem:[#allocation5 + $0x68] sm:$0xf]  ;;  %v5107_v9 = vld [vmem:[#allocation5 + $0x2c] sm:$0xf0] }
 0x55a   :  { %5379 = vpow2.f32 %v4723_v57  ;;  %v5116_v57 = vld [vmem:[#allocation5 + $0x74] sm:$0xf0] }
 0x55b   :  { %v3131_v44 = vpop.f32.mrf.mxu3  ;;  %v3117_v25 = vpop.f32.mrf.mxu2  ;;  %v4788_v21 = vor.u32 %v5116_v57, %v4787_v7  ;;  %3505 = vmatpush.bf16.msra.mxu1 %v4784_v32  ;;  %v5106_v32 = vld [vmem:[#allocation5 + $0x2c] sm:$0xf] }
 0x55c   :  { %v3139_v61 = vadd.f32 %v3131_v44, %v358_v56  ;;  %v3091_v49 = vpop.f32.mrf.mxu0  ;;  %v3105_v60 = vpop.f32.mrf.mxu1  ;;  %v3138_v47 = vadd.f32 %v3117_v25, %v309_v3  ;;  %v4792_v56 = vor.u32 %v5114_v12, %v4789_v62  ;;  %v4747_v25 = vld [vmem:[#allocation5 + $0x20] sm:$0xf]  ;;  %v4749_v3 = vld [vmem:[#allocation5 + $0x30] sm:$0xf0] }
 0x55d   :  { %v3140_v36 = vadd.f32 %v3091_v49, %v213_v5  ;;  %v3141_v4 = vadd.f32 %v3105_v60, %v262_v51  ;;  %v4764_v5 = vor.u32 %v5111_v53, %v4763_v58  ;;  %3519 = vmatpush.bf16.msra.mxu2 %v4788_v21  ;;  %v4757_v21 = vld [vmem:[#allocation5 + $0x38] sm:$0xf0] }
 0x55e   :  { %v4725_v46 = vmul.f32 -1.442695, %v3139_v61  ;;  %v6731_v61 = vld [vmem:[#allocation31_spill] sm:$0xff]  ;;  %3533 = vmatpush.bf16.msra.mxu3 %v4792_v56 }
 0x55f   :  { %v5378_v55 = vpop.eup %5377  ;;  %v4722_v15 = vmul.f32 -1.442695, %v3140_v36  ;;  %v4724_v10 = vmul.f32 -1.442695, %v3141_v4  ;;  %v311_v49 = vadd.f32 %v6731_v61, %v5759_v45  ;;  %3492 = vmatpush.bf16.msra.mxu0 %v4764_v5  ;;  %3506 = vmatpush.bf16.msra.mxu1 %v4768_v1  ;;  %v5101_v5 = vld [vmem:[#allocation5 + $0x4] sm:$0xf]  ;;  %v4752_v1 = vor.u32 %v5105_v59, %v4749_v3 }
 0x560   :  { %v5380_v20 = vpop.eup %5379  ;;  %v6467_v24 = vadd.f32 1.0, %v5378_v55  ;;  %5381 = vpow2.f32 %v4725_v46  ;;  %v4733_v61 = vld [vmem:[#allocation5 + $0x10] sm:$0xf0] }
 0x561   :  { %v6469_v19 = vadd.f32 1.0, %v5380_v20  ;;  %5383 = vpow2.f32 %v4722_v15  ;;  %v4771_v15 = vld [vmem:[#allocation5 + $0x48] sm:$0xf]  ;;  %v5110_v20 = vld [vmem:[#allocation5 + $0x4c] sm:$0xf] }
 0x562   :  { %5385 = vrcp.f32 %v6467_v24  ;;  %v3161_v44 = vand.u32 2147483647, %v6467_v24  ;;  %v3163_v54 = vand.u32 2147483648, %v6467_v24  ;;  %vm3157_vm5 = vweird.f32 %v6467_v24 }
 0x563   :  { %5387 = vrcp.f32 %v6469_v19  ;;  %v3133_v43 = vpop.f32.mrf.mxu3  ;;  %v3201_v29 = vand.u32 2147483648, %v6469_v19  ;;  %v3199_v39 = vand.u32 2147483647, %v6469_v19  ;;  %v3119_v23 = vpop.f32.mrf.mxu2  ;;  %vm3195_vm4 = vweird.f32 %v6469_v19  ;;  %3507 = vmatpush.bf16.msra.mxu1 %v4752_v1 }
 0x564   :  { %5389 = vpow2.f32 %v4724_v10  ;;  %v3143_v6 = vadd.f32 %v3133_v43, %v360_v42  ;;  %vm6499_vm2 = vcmp.eq.f32.partialorder %v3161_v44, 8.507059e+37  ;;  %v5112_v10 = vld [vmem:[#allocation5 + $0x54] sm:$0xf0]  ;;  %v3164_v2 = vor.u32 1.1754944e-38, %v3163_v54  ;;  %v4755_v42 = vld [vmem:[#allocation5 + $0x28] sm:$0xf] }
 0x565   :  { %5391 = vtanh.f32 %v3138_v47  ;;  %v3142_v30 = vadd.f32 %v3119_v23, %v311_v49  ;;  %v3202_v38 = vor.u32 1.1754944e-38, %v3201_v29  ;;  %v4772_v34 = vor.u32 %v5112_v10, %v4771_v15  ;;  %v5108_v47 = vld [vmem:[#allocation5 + $0x34] sm:$0xf0]  ;;  %v4739_v49 = vld [vmem:[#allocation5 + $0x8] sm:$0xf] }
 0x566   :  { %v5382_v13 = vpop.eup %5381  ;;  %v4726_v11 = vmul.f32 -1.442695, %v3143_v6  ;;  %vm6524_vm8 = vcmp.eq.f32.partialorder %v3199_v39, 8.507059e+37  ;;  %v4776_v62 = vor.u32 %v5110_v20, %v4773_v17  ;;  %v5103_v6 = vld [vmem:[#allocation5 + $0xc] sm:$0xf0] }
 0x567   :  { %v5384_v8 = vpop.eup %5383  ;;  %v6480_v16 = vadd.f32 1.0, %v5382_v13  ;;  %3520 = vmatpush.bf16.msra.mxu2 %v4772_v34  ;;  %v4748_v13 = vor.u32 %v5107_v9, %v4747_v25  ;;  %v5102_v29 = vld [vmem:[#allocation5 + $0xc] sm:$0xf]  ;;  %v4741_v39 = vld [vmem:[#allocation5 + $0x18] sm:$0xf0] }
 0x568   :  { %v6477_v51 = vpop.eup %5385  ;;  %v6482_v22 = vadd.f32 1.0, %v5384_v8  ;;  %v4731_v8 = vld [vmem:[#allocation5] sm:$0xf]  ;;  %3534 = vmatpush.bf16.msra.mxu3 %v4776_v62 }
 0x569   :  { %v6484_v37 = vpop.eup %5387  ;;  %v3153_v60 = vmul.f32 %v6477_v51, %v6467_v24  ;;  %vm3158_vm1 = vweird.f32 %v6477_v51  ;;  %3493 = vmatpush.bf16.msra.mxu0 %v4748_v13  ;;  %v4732_v55 = vor.u32 %v5103_v6, %v4731_v8 }
 0x56a   :  { %v5390_v36 = vpop.eup %5389  ;;  %v3191_v4 = vmul.f32 %v6484_v37, %v6469_v19  ;;  %5393 = vrcp.f32 %v6482_v22  ;;  %vm3196_vm3 = vweird.f32 %v6484_v37  ;;  %vm6513_vm6 = vmor %vm3157_vm5, %vm3158_vm1  ;;  %v3176_v33 = vand.u32 2147483647, %v6482_v22 }
 0x56b   :  { %v3154_v26 = vsub.f32 1.0, %v3153_v60  ;;  %v6496_v46 = vadd.f32 1.0, %v5390_v36  ;;  %5395 = vrcp.f32 %v6480_v16  ;;  %v5392_v19 = vpop.eup %5391  ;;  %vm6519_vm7 = vmor %vm3195_vm4, %vm3196_vm3  ;;  %vm3172_vm9 = vweird.f32 %v6482_v22 }
 0x56c   :  { %v3192_v63 = vsub.f32 1.0, %v3191_v4  ;;  %v3178_v4 = vand.u32 2147483648, %v6482_v22  ;;  %vm3177_vm14 = vcmp.eq.f32.partialorder %v3176_v33, 8.507059e+37  ;;  %v3241_v33 = vand.u32 2147483648, %v6480_v16 }
 0x56d   :  { %v3155_v35 = vmul.f32 %v6477_v51, %v3154_v26  ;;  %5397 = vrcp.f32 %v6496_v46  ;;  %v3216_v57 = vand.u32 2147483648, %v6496_v46  ;;  %v3214_v9 = vand.u32 2147483647, %v6496_v46  ;;  %3494 = vmatpush.bf16.msra.mxu0 %v4732_v55 }
 0x56e   :  { %v3193_v27 = vmul.f32 %v6484_v37, %v3192_v63  ;;  %5399 = vpow2.f32 %v4726_v11  ;;  %v4756_v11 = vor.u32 %v5108_v47, %v4755_v42  ;;  %v4760_v63 = vor.u32 %v5106_v32, %v4757_v21 }
 0x56f   :  { %v3156_v28 = vadd.f32 %v6477_v51, %v3155_v35  ;;  %5401 = vtanh.f32 %v3142_v30  ;;  %vm3210_vm12 = vweird.f32 %v6496_v46  ;;  %v3217_v59 = vor.u32 1.1754944e-38, %v3216_v57 }
 0x570   :  { %v3194_v43 = vadd.f32 %v6484_v37, %v3193_v27  ;;  %v6530_v41 = vpop.eup %5393  ;;  %3521 = vmatpush.bf16.msra.mxu2 %v4756_v11  ;;  %3535 = vmatpush.bf16.msra.mxu3 %v4760_v63  ;;  %v4744_v27 = vor.u32 %v5102_v29, %v4741_v39  ;;  %vm3215_vm0 = vcmp.eq.f32.partialorder %v3214_v9, 8.507059e+37  ;;  %v6742_v39 = vld [vmem:[#allocation33_spill] sm:$0xff]  ;;  %v6744_v63 = vld [vmem:[#allocation35_spill] sm:$0xff] }
 0x571   :  { %v3160_v12 = vsel %vm6513_vm6, %v6477_v51, %v3156_v28  ;;  %v6535_v56 = vpop.eup %5395  ;;  %v3168_v14 = vmul.f32 %v6530_v41, %v6482_v22  ;;  %vm3173_vm10 = vweird.f32 %v6530_v41  ;;  %v267_v55 = vadd.f32 %v6744_v63, %v5739_v40 }
 0x572   :  { %v3165_v58 = vsel %vm6499_vm2, %v3164_v2, %v3160_v12  ;;  %v3198_v53 = vsel %vm6519_vm7, %v6484_v37, %v3194_v43  ;;  %v5104_v37 = vld [vmem:[#allocation5 + $0x14] sm:$0xf0]  ;;  %v3231_v23 = vmul.f32 %v6535_v56, %v6480_v16  ;;  %v4736_v2 = vor.u32 %v5101_v5, %v4733_v61  ;;  %vm3174_vm13 = vmor %vm3172_vm9, %vm3173_vm10  ;;  %v6741_v61 = vld [vmem:[#allocation32_spill] sm:$0xff] }
 0x573   :  { %v5398_v0 = vpop.eup %5397  ;;  %v3203_v51 = vsel %vm6524_vm8, %v3202_v38, %v3198_v53  ;;  %v3262_v44 = vmul.f32 %v5392_v19, %v3165_v58  ;;  %v3169_v54 = vsub.f32 1.0, %v3168_v14  ;;  %v4740_v20 = vor.u32 %v5104_v37, %v4739_v49 }
 0x574   :  { %v3260_v60 = vmul.f32 %v3203_v51, %v6428_v31  ;;  %v3206_v36 = vmul.f32 %v5398_v0, %v6496_v46  ;;  %v5400_v26 = vpop.eup %5399  ;;  %vm3211_vm11 = vweird.f32 %v5398_v0  ;;  %v3179_v38 = vor.u32 1.1754944e-38, %v3178_v4  ;;  %3508 = vmatpush.bf16.msra.mxu1 %v4736_v2  ;;  %3536 = vmatpush.bf16.msra.mxu3 %v4744_v27 }
 0x575   :  { %v3170_v31 = vmul.f32 %v6530_v41, %v3169_v54  ;;  %v3229_v35 = vadd.f32 1.0, %v5400_v26  ;;  %v5402_v30 = vpop.eup %5401  ;;  %v3232_v28 = vsub.f32 1.0, %v3231_v23  ;;  %vm3212_vm15 = vmor %vm3210_vm12, %vm3211_vm11  ;;  %3522 = vmatpush.bf16.msra.mxu2 %v4740_v20  ;;  %vm3236_vm1 = vweird.f32 %v6535_v56  ;;  %v6743_v23 = vld [vmem:[#allocation34_spill] sm:$0xff] }
 0x576   :  { %v6552_v15 = vadd.f32 %v3262_v44, %v3260_v60  ;;  %v3207_v10 = vsub.f32 1.0, %v3206_v36  ;;  %vm3235_vm2 = vweird.f32 %v6480_v16  ;;  %v3242_v53 = vor.u32 1.1754944e-38, %v3241_v33 }
 0x577   :  { %v3171_v25 = vadd.f32 %v6530_v41, %v3170_v31  ;;  %5403 = vrcp.f32 %v3229_v35  ;;  %v3233_v7 = vmul.f32 %v6535_v56, %v3232_v28  ;;  %v3256_v62 = vand.u32 2147483648, %v3229_v35  ;;  %vm3237_vm4 = vmor %vm3235_vm2, %vm3236_vm1 }
 0x578   :  { %v3208_v17 = vmul.f32 %v5398_v0, %v3207_v10  ;;  %5405 = vtanh.f32 %v6552_v15  ;;  %v3254_v47 = vand.u32 2147483647, %v3229_v35  ;;  %vm3250_vm5 = vweird.f32 %v3229_v35 }
 0x579   :  { %v3175_v18 = vsel %vm3174_vm13, %v6530_v41, %v3171_v25  ;;  %v3234_v46 = vadd.f32 %v6535_v56, %v3233_v7  ;;  %v3257_v14 = vor.u32 1.1754944e-38, %v3256_v62  ;;  %v265_v49 = vadd.f32 %v6741_v61, %v5739_v40  ;;  %v6745_v40 = vld [vmem:[#allocation36_spill] sm:$0xff] }
 0x57a   :  { %v3209_v34 = vadd.f32 %v5398_v0, %v3208_v17  ;;  %v3180_v3 = vsel %vm3177_vm14, %v3179_v38, %v3175_v18  ;;  %vm3255_vm8 = vcmp.eq.f32.partialorder %v3254_v47, 8.507059e+37  ;;  %v363_v26 = vadd.f32 %v6742_v39, %v5748_v48 }
 0x57b   :  { %v3263_v24 = vmul.f32 %v5402_v30, %v3180_v3  ;;  %v3238_v21 = vsel %vm3237_vm4, %v6535_v56, %v3234_v46  ;;  %v6740_v56 = vld [vmem:[#allocation30_spill] sm:$0xff]  ;;  %v218_v11 = vadd.f32 %v6743_v23, %v5732_v50  ;;  %v6746_v3 = vld [vmem:[#allocation37_spill] sm:$0xff] }
 0x57c   :  { %v3213_v19 = vsel %vm3212_vm15, %v5398_v0, %v3209_v34  ;;  %v216_v1 = vadd.f32 %v6740_v56, %v5732_v50  ;;  %v314_v34 = vadd.f32 %v6745_v40, %v5759_v45 }
 0x57d   :  { %v3218_v43 = vsel %vm3215_vm0, %v3217_v59, %v3213_v19  ;;  %v5404_v41 = vpop.eup %5403  ;;  %v365_v19 = vadd.f32 %v6746_v3, %v5748_v48 }
 0x57e   :  { %v3261_v42 = vmul.f32 %v3218_v43, %v6444_v52  ;;  %v3246_v22 = vmul.f32 %v5404_v41, %v3229_v35  ;;  %v3239_v52 = vand.u32 2147483647, %v6480_v16  ;;  %vm3251_vm3 = vweird.f32 %v5404_v41  ;;  %v5406_v58 = vpop.eup %5405 }
 0x57f   :  { %vm3252_vm6 = vmor %vm3250_vm5, %vm3251_vm3 }
 0x580   :  { %v6568_v12 = vadd.f32 %v3263_v24, %v3261_v42  ;;  %v3247_v57 = vsub.f32 1.0, %v3246_v22  ;;  %vm3240_vm7 = vcmp.eq.f32.partialorder %v3239_v52, 8.507059e+37  ;;  %v6747_v52 = vld [vmem:[#allocation38_spill] sm:$0xff] }
 0x581   :  { %v3243_v5 = vsel %vm3240_vm7, %v3242_v53, %v3238_v21 }
 0x582   :  { %5407 = vtanh.f32 %v6568_v12  ;;  %v3248_v13 = vmul.f32 %v5404_v41, %v3247_v57  ;;  %v3268_v51 = vmul.f32 %v5406_v58, %v3243_v5 }
 0x584   :  { %v3249_v32 = vadd.f32 %v5404_v41, %v3248_v13  ;;  %v316_v13 = vadd.f32 %v6747_v52, %v5759_v45 }
 0x586   :  { %v3253_v6 = vsel %vm3252_vm6, %v5404_v41, %v3249_v32 }
 0x587   :  { %v3258_v0 = vsel %vm3255_vm8, %v3257_v14, %v3253_v6 }
 0x588   :  { %v5408_v8 = vpop.eup %5407 }
 0x589   :  { %v3269_v16 = vmul.f32 %v5408_v8, %v3258_v0 }
 0x58b   :  { %v5166_v44 = vpack.c.bf16 %v3269_v16, %v3268_v51 }
 0x58d   :  { %5178 = vst [vmem:[%s6642_s4 + $0x30] sm:$0xff] %v5166_v44   ;;  %3495 = vmatmul.bf16.vlgmr.msra.gmra.mxu0 %v5166_v44  ;;  %3509 = vmatmul.bf16.vlgmr.msra.gmra.mxu1 %v5166_v44 }
 0x58e   :  { %3523 = vmatmul.bf16.vlgmr.msra.gmra.mxu2 %v5166_v44  ;;  %3537 = vmatmul.bf16.vlgmr.msra.gmra.mxu3 %v5166_v44 }
 0x60a   :  { %v3496_v37 = vpop.f32.mrf.mxu0  ;;  %v3510_v60 = vpop.f32.mrf.mxu1 }
 0x60b   :  { %v3543_v54 = vadd.f32 %v3496_v37, %v216_v1  ;;  %v3544_v36 = vadd.f32 %v3510_v60, %v265_v49 }
 0x60d   :  { %v4857_v4 = vmul.f32 -1.442695, %v3543_v54  ;;  %v4859_v29 = vmul.f32 -1.442695, %v3544_v36 }
 0x60f   :  { %5409 = vpow2.f32 %v4857_v4 }
 0x610   :  { %5411 = vpow2.f32 %v4859_v29 }
 0x611   :  { %v3538_v10 = vpop.f32.mrf.mxu3  ;;  %v3524_v50 = vpop.f32.mrf.mxu2 }
 0x612   :  { %v3546_v31 = vadd.f32 %v3538_v10, %v363_v26  ;;  %v3498_v35 = vpop.f32.mrf.mxu0  ;;  %v3512_v2 = vpop.f32.mrf.mxu1  ;;  %v3545_v43 = vadd.f32 %v3524_v50, %v314_v34 }
 0x613   :  { %v3547_v20 = vadd.f32 %v3498_v35, %v218_v11  ;;  %v3548_v27 = vadd.f32 %v3512_v2, %v267_v55 }
 0x614   :  { %v4861_v30 = vmul.f32 -1.442695, %v3546_v31 }
 0x615   :  { %v5410_v17 = vpop.eup %5409  ;;  %v4858_v25 = vmul.f32 -1.442695, %v3547_v20  ;;  %v4860_v28 = vmul.f32 -1.442695, %v3548_v27 }
 0x616   :  { %v5412_v9 = vpop.eup %5411  ;;  %v3557_v38 = vadd.f32 1.0, %v5410_v17  ;;  %5413 = vpow2.f32 %v4861_v30 }
 0x617   :  { %v3595_v18 = vadd.f32 1.0, %v5412_v9  ;;  %5415 = vpow2.f32 %v4858_v25 }
 0x618   :  { %5417 = vrcp.f32 %v3557_v38  ;;  %v3568_v14 = vand.u32 2147483647, %v3557_v38  ;;  %v3570_v8 = vand.u32 2147483648, %v3557_v38  ;;  %vm3564_vm11 = vweird.f32 %v3557_v38 }
 0x619   :  { %5419 = vrcp.f32 %v3595_v18  ;;  %v3540_v59 = vpop.f32.mrf.mxu3  ;;  %v3608_v53 = vand.u32 2147483648, %v3595_v18  ;;  %v3526_v6 = vpop.f32.mrf.mxu2  ;;  %v3606_v0 = vand.u32 2147483647, %v3595_v18  ;;  %vm3602_vm12 = vweird.f32 %v3595_v18 }
 0x61a   :  { %5421 = vpow2.f32 %v4860_v28  ;;  %v3550_v41 = vadd.f32 %v3540_v59, %v365_v19  ;;  %v3549_v44 = vadd.f32 %v3526_v6, %v316_v13  ;;  %v3571_v1 = vor.u32 1.1754944e-38, %v3570_v8 }
 0x61b   :  { %v3609_v60 = vor.u32 1.1754944e-38, %v3608_v53  ;;  %vm3569_vm15 = vcmp.eq.f32.partialorder %v3568_v14, 8.507059e+37  ;;  %vm3607_vm0 = vcmp.eq.f32.partialorder %v3606_v0, 8.507059e+37 }
 0x61c   :  { %v5414_v24 = vpop.eup %5413  ;;  %v4862_v21 = vmul.f32 -1.442695, %v3550_v41 }
 0x61d   :  { %v5416_v7 = vpop.eup %5415  ;;  %v6595_v42 = vadd.f32 1.0, %v5414_v24 }
 0x61e   :  { %v5418_v22 = vpop.eup %5417  ;;  %v6597_v46 = vadd.f32 1.0, %v5416_v7 }
 0x61f   :  { %v5420_v57 = vpop.eup %5419  ;;  %v3560_v33 = vmul.f32 %v5418_v22, %v3557_v38  ;;  %5423 = vrcp.f32 %v6595_v42  ;;  %vm3565_vm9 = vweird.f32 %v5418_v22  ;;  %v3648_v63 = vand.u32 2147483648, %v6595_v42 }
 0x620   :  { %v5422_v62 = vpop.eup %5421  ;;  %v3598_v47 = vmul.f32 %v5420_v57, %v3595_v18  ;;  %5425 = vtanh.f32 %v3545_v43  ;;  %vm3603_vm10 = vweird.f32 %v5420_v57  ;;  %vm3566_vm13 = vmor %vm3564_vm11, %vm3565_vm9  ;;  %vm3579_vm1 = vweird.f32 %v6597_v46 }
 0x621   :  { %v3561_v48 = vsub.f32 1.0, %v3560_v33  ;;  %5427 = vrcp.f32 %v6597_v46  ;;  %v6603_v32 = vadd.f32 1.0, %v5422_v62  ;;  %vm3604_vm14 = vmor %vm3602_vm12, %vm3603_vm10  ;;  %v3583_v27 = vand.u32 2147483647, %v6597_v46 }
 0x622   :  { %v3599_v58 = vsub.f32 1.0, %v3598_v47  ;;  %v3585_v30 = vand.u32 2147483648, %v6597_v46  ;;  %vm3642_vm5 = vweird.f32 %v6595_v42  ;;  %v3646_v34 = vand.u32 2147483647, %v6595_v42 }
 0x623   :  { %v3562_v5 = vmul.f32 %v5418_v22, %v3561_v48  ;;  %5429 = vrcp.f32 %v6603_v32  ;;  %v3623_v20 = vand.u32 2147483648, %v6603_v32  ;;  %v3621_v38 = vand.u32 2147483647, %v6603_v32 }
 0x624   :  { %v3600_v51 = vmul.f32 %v5420_v57, %v3599_v58  ;;  %5431 = vpow2.f32 %v4862_v21  ;;  %v3586_v59 = vor.u32 1.1754944e-38, %v3585_v30  ;;  %vm3617_vm8 = vweird.f32 %v6603_v32 }
 0x625   :  { %v6606_v45 = vpop.eup %5423  ;;  %v3563_v16 = vadd.f32 %v5418_v22, %v3562_v5  ;;  %5433 = vtanh.f32 %v3549_v44  ;;  %vm3584_vm9 = vcmp.eq.f32.partialorder %v3583_v27, 8.507059e+37  ;;  %v3624_v7 = vor.u32 1.1754944e-38, %v3623_v20 }
 0x626   :  { %v5426_v56 = vpop.eup %5425  ;;  %v3601_v61 = vadd.f32 %v5420_v57, %v3600_v51  ;;  %v3638_v49 = vmul.f32 %v6606_v45, %v6595_v42  ;;  %vm3643_vm3 = vweird.f32 %v6606_v45  ;;  %v3649_v41 = vor.u32 1.1754944e-38, %v3648_v63 }
 0x627   :  { %v5428_v37 = vpop.eup %5427  ;;  %v3567_v54 = vsel %vm3566_vm13, %v5418_v22, %v3563_v16  ;;  %vm6626_vm7 = vmor %vm3642_vm5, %vm3643_vm3  ;;  %vm3622_vm11 = vcmp.eq.f32.partialorder %v3621_v38, 8.507059e+37  ;;  %vm3647_vm12 = vcmp.eq.f32.partialorder %v3646_v34, 8.507059e+37 }
 0x628   :  { %v3572_v36 = vsel %vm3569_vm15, %v3571_v1, %v3567_v54  ;;  %v3605_v4 = vsel %vm3604_vm14, %v5420_v57, %v3601_v61  ;;  %v3639_v29 = vsub.f32 1.0, %v3638_v49  ;;  %v3575_v39 = vmul.f32 %v5428_v37, %v6597_v46 }
 0x629   :  { %v5430_v26 = vpop.eup %5429  ;;  %v3610_v23 = vsel %vm3607_vm0, %v3609_v60, %v3605_v4  ;;  %v3669_v11 = vmul.f32 %v5426_v56, %v3572_v36  ;;  %vm3580_vm2 = vweird.f32 %v5428_v37 }
 0x62a   :  { %v3667_v55 = vmul.f32 %v3610_v23, %v6552_v15  ;;  %v3640_v10 = vmul.f32 %v6606_v45, %v3639_v29  ;;  %v3576_v31 = vsub.f32 1.0, %v3575_v39  ;;  %v3613_v35 = vmul.f32 %v5430_v26, %v6603_v32  ;;  %v5432_v2 = vpop.eup %5431  ;;  %vm3581_vm6 = vmor %vm3579_vm1, %vm3580_vm2 }
 0x62b   :  { %v3636_v28 = vadd.f32 1.0, %v5432_v2  ;;  %vm3618_vm4 = vweird.f32 %v5430_v26  ;;  %v5434_v40 = vpop.eup %5433 }
 0x62c   :  { %v3671_v17 = vadd.f32 %v3669_v11, %v3667_v55  ;;  %v3614_v25 = vsub.f32 1.0, %v3613_v35  ;;  %v3577_v9 = vmul.f32 %v5428_v37, %v3576_v31  ;;  %v3641_v15 = vadd.f32 %v6606_v45, %v3640_v10  ;;  %vm3619_vm10 = vmor %vm3617_vm8, %vm3618_vm4 }
 0x62d   :  { %v3663_v58 = vand.u32 2147483648, %v3636_v28  ;;  %v3661_v14 = vand.u32 2147483647, %v3636_v28  ;;  %vm3657_vm14 = vweird.f32 %v3636_v28 }
 0x62e   :  { %5435 = vtanh.f32 %v3671_v17  ;;  %v3615_v18 = vmul.f32 %v5430_v26, %v3614_v25  ;;  %v3578_v50 = vadd.f32 %v5428_v37, %v3577_v9  ;;  %v3645_v43 = vsel %vm6626_vm7, %v6606_v45, %v3641_v15 }
 0x62f   :  { %5437 = vrcp.f32 %v3636_v28  ;;  %v3650_v62 = vsel %vm3647_vm12, %v3649_v41, %v3645_v43  ;;  %v3664_v6 = vor.u32 1.1754944e-38, %v3663_v58  ;;  %vm3662_vm0 = vcmp.eq.f32.partialorder %v3661_v14, 8.507059e+37 }
 0x630   :  { %v3582_v19 = vsel %vm3581_vm6, %v5428_v37, %v3578_v50  ;;  %v3616_v24 = vadd.f32 %v5430_v26, %v3615_v18 }
 0x631   :  { %v3587_v42 = vsel %vm3584_vm9, %v3586_v59, %v3582_v19 }
 0x632   :  { %v3620_v22 = vsel %vm3619_vm10, %v5430_v26, %v3616_v24  ;;  %v3670_v46 = vmul.f32 %v5434_v40, %v3587_v42 }
 0x633   :  { %v3625_v57 = vsel %vm3622_vm11, %v3624_v7, %v3620_v22 }
 0x634   :  { %v5436_v33 = vpop.eup %5435  ;;  %v3668_v52 = vmul.f32 %v3625_v57, %v6568_v12 }
 0x635   :  { %v5438_v13 = vpop.eup %5437  ;;  %v3675_v47 = vmul.f32 %v5436_v33, %v3650_v62 }
 0x636   :  { %v3672_v48 = vadd.f32 %v3670_v46, %v3668_v52  ;;  %v3653_v32 = vmul.f32 %v5438_v13, %v3636_v28  ;;  %vm3658_vm13 = vweird.f32 %v5438_v13 }
 0x637   :  { %vm3659_vm15 = vmor %vm3657_vm14, %vm3658_vm13 }
 0x638   :  { %5439 = vtanh.f32 %v3672_v48  ;;  %v3654_v21 = vsub.f32 1.0, %v3653_v32 }
 0x63a   :  { %v3655_v53 = vmul.f32 %v5438_v13, %v3654_v21 }
 0x63c   :  { %v3656_v8 = vadd.f32 %v5438_v13, %v3655_v53 }
 0x63e   :  { %v5440_v5 = vpop.eup %5439  ;;  %v3660_v0 = vsel %vm3659_vm15, %v5438_v13, %v3656_v8 }
 0x63f   :  { %v3665_v51 = vsel %vm3662_vm0, %v3664_v6, %v3660_v0 }
 0x640   :  { %v3676_v45 = vmul.f32 %v5440_v5, %v3665_v51 }
 0x642   :  { %v5171_v12 = vpack.c.bf16 %v3676_v45, %v3675_v47 }
 0x644   :  { %5179 = vst [vmem:[%s6642_s4 + $0x38] sm:$0xff] %v5171_v12  }
 0x645   :  { %3690 = vsyncpa [#allocation6], 1 }
 0x646   :  { %3691 = vsyncpa [#allocation8], 1 }

// kernel: lstm_forward.3
= control target key start
LH: loop header
LB: loop body
LE: loop exit
PB: predicated region body
PF: predicated region fallthrough
CT: control target
= control target key end

     0   :  { %11 = vsyncpa [#allocation6], 0  ;;  %s6986_s0 = inlined_call_operand.vmem [shape: bf16[8,16,128], index: 0, kind: input, shape index: {}]   ;;  %s6987_s1 = inlined_call_operand.hbm [shape: bf16[128,512], index: 1, kind: input, shape index: {}]   ;;  %s6988_s2 = inlined_call_operand.hbm [shape: bf16[128,512], index: 2, kind: input, shape index: {}]   ;;  %s6989_s3 = inlined_call_operand.vmem [shape: f32[1,512], index: 3, kind: input, shape index: {}]   ;;  %s6990_s4 = inlined_call_operand.vmem [shape: bf16[128,128], index: 4, kind: input, shape index: {}]   ;;  %s6991_s5 = inlined_call_operand.vmem [shape: f32[1,128], index: 5, kind: input, shape index: {}]   ;;  %s6992_s6 = inlined_call_operand.vmem [shape: f32[16,128], index: 6, kind: output, shape index: {}]  }
   0x1   :  { %s19_s23 = sshll.u32 %s6987_s1, 4  ;;  %s20_s23 = int_to_ptr.hbm [resolvable:$true] %s19_s23 }
   0x2   :  { %12 = vsyncpa [#allocation8], 0  ;;  %s5790_s24 = smov [#allocation5]   ;;  %s32_s28 = sshll.u32 %s6988_s2, 4  ;;  %s33_s28 = int_to_ptr.hbm [resolvable:$true] %s32_s28 }
   0x3   :  { %s21_s25 = sshll.u32 %s5790_s24, 4  ;;  %s5791_s29 = smov 256   ;;  %s22_s25 = int_to_ptr.vmem [resolvable:$true] %s21_s25 }
   0x4   :  { %s5792_s30 = smov 16   ;;  %s5793_s7 = smov [#allocation7]  }
   0x5   :  { %27 = dma.hbm_to_vmem [thread:$0]  %s20_s23, 4096, %s22_s25, [#allocation6], %s5791_s29, %s5791_s29, %s5792_s30  }
   0x6   :  { %s34_s8 = sshll.u32 %s5793_s7, 4  ;;  %s35_s8 = int_to_ptr.vmem [resolvable:$true] %s34_s8 }
   0x7   :  { %40 = dma.hbm_to_vmem [thread:$0]  %s33_s28, 4096, %s35_s8, [#allocation8], %s5791_s29, %s5791_s29, %s5792_s30  }
   0x8   :  { %5786 = dma.done.wait [#allocation6], 4096  }
   0x9   :  { %5787 = vsyncadd [#allocation6], 4294963200 }
   0xa   :  { %5788 = dma.done.wait [#allocation8], 4096  }
   0xb   :  { %5789 = vsyncadd [#allocation8], 4294963200  ;;  %v4054_v0 = vld [vmem:[#allocation5 + $0xe0] sm:$0xf]  ;;  %v5210_v1 = vld [vmem:[#allocation5 + $0xec] sm:$0xf0] }
   0xc   :  { %v5208_v2 = vld [vmem:[#allocation5 + $0xe4] sm:$0xf]  ;;  %v4055_v3 = vor.u32 %v5210_v1, %v4054_v0  ;;  %v4056_v4 = vld [vmem:[#allocation5 + $0xf0] sm:$0xf0]  ;;  %v4062_v5 = vld [vmem:[#allocation5 + $0xe8] sm:$0xf] }
   0xd   :  { %v5211_v6 = vld [vmem:[#allocation5 + $0xf4] sm:$0xf0]  ;;  %v4059_v7 = vor.u32 %v5208_v2, %v4056_v4  ;;  %v5209_v9 = vld [vmem:[#allocation5 + $0xec] sm:$0xf]  ;;  %v4064_v10 = vld [vmem:[#allocation5 + $0xf8] sm:$0xf0] }
   0xe   :  { %v4063_v8 = vor.u32 %v5211_v6, %v4062_v5  ;;  %v4038_v11 = vld [vmem:[#allocation5 + $0xc0] sm:$0xf]  ;;  %329 = vmatpush.bf16.msra.mxu0 %v4055_v3  ;;  %v4067_v12 = vor.u32 %v5209_v9, %v4064_v10  ;;  %v5206_v13 = vld [vmem:[#allocation5 + $0xcc] sm:$0xf0]  ;;  %v5204_v14 = vld [vmem:[#allocation5 + $0xc4] sm:$0xf] }
   0xf   :  { %v4040_v15 = vld [vmem:[#allocation5 + $0xd0] sm:$0xf0]  ;;  %378 = vmatpush.bf16.msra.mxu1 %v4059_v7  ;;  %v4039_v16 = vor.u32 %v5206_v13, %v4038_v11  ;;  %v4046_v18 = vld [vmem:[#allocation5 + $0xc8] sm:$0xf]  ;;  %v5207_v19 = vld [vmem:[#allocation5 + $0xd4] sm:$0xf0] }
  0x10   :  { %427 = vmatpush.bf16.msra.mxu2 %v4063_v8  ;;  %v4043_v17 = vor.u32 %v5204_v14, %v4040_v15  ;;  %v5205_v20 = vld [vmem:[#allocation5 + $0xcc] sm:$0xf]  ;;  %476 = vmatpush.bf16.msra.mxu3 %v4067_v12  ;;  %v4047_v21 = vor.u32 %v5207_v19, %v4046_v18  ;;  %v4048_v22 = vld [vmem:[#allocation5 + $0xd8] sm:$0xf0]  ;;  %v4022_v23 = vld [vmem:[#allocation5 + $0xa0] sm:$0xf] }
  0x11   :  { %v5202_v24 = vld [vmem:[#allocation5 + $0xac] sm:$0xf0]  ;;  %v4051_v25 = vor.u32 %v5205_v20, %v4048_v22  ;;  %v5200_v26 = vld [vmem:[#allocation5 + $0xa4] sm:$0xf]  ;;  %v4024_v27 = vld [vmem:[#allocation5 + $0xb0] sm:$0xf0] }
  0x12   :  { %v4030_v28 = vld [vmem:[#allocation5 + $0xa8] sm:$0xf]  ;;  %330 = vmatpush.bf16.msra.mxu0 %v4039_v16  ;;  %v4023_v29 = vor.u32 %v5202_v24, %v4022_v23  ;;  %v5203_v30 = vld [vmem:[#allocation5 + $0xb4] sm:$0xf0]  ;;  %v5201_v31 = vld [vmem:[#allocation5 + $0xac] sm:$0xf]  ;;  %v4027_v33 = vor.u32 %v5200_v26, %v4024_v27 }
  0x13   :  { %v4032_v32 = vld [vmem:[#allocation5 + $0xb8] sm:$0xf0]  ;;  %379 = vmatpush.bf16.msra.mxu1 %v4043_v17  ;;  %v4031_v34 = vor.u32 %v5203_v30, %v4030_v28  ;;  %v4006_v35 = vld [vmem:[#allocation5 + $0x80] sm:$0xf]  ;;  %v5198_v36 = vld [vmem:[#allocation5 + $0x8c] sm:$0xf0] }
  0x14   :  { %428 = vmatpush.bf16.msra.mxu2 %v4047_v21  ;;  %v5196_v37 = vld [vmem:[#allocation5 + $0x84] sm:$0xf]  ;;  %477 = vmatpush.bf16.msra.mxu3 %v4051_v25  ;;  %v4035_v38 = vor.u32 %v5201_v31, %v4032_v32  ;;  %v4008_v39 = vld [vmem:[#allocation5 + $0x90] sm:$0xf0]  ;;  %v4014_v40 = vld [vmem:[#allocation5 + $0x88] sm:$0xf]  ;;  %v4007_v44 = vor.u32 %v5198_v36, %v4006_v35 }
  0x15   :  { %v5199_v41 = vld [vmem:[#allocation5 + $0x94] sm:$0xf0]  ;;  %v5197_v42 = vld [vmem:[#allocation5 + $0x8c] sm:$0xf]  ;;  %v4016_v43 = vld [vmem:[#allocation5 + $0x98] sm:$0xf0]  ;;  %v4011_v45 = vor.u32 %v5196_v37, %v4008_v39 }
  0x16   :  { %331 = vmatpush.bf16.msra.mxu0 %v4023_v29  ;;  %v4015_v46 = vor.u32 %v5199_v41, %v4014_v40  ;;  %v3990_v47 = vld [vmem:[#allocation5 + $0x60] sm:$0xf]  ;;  %v5194_v48 = vld [vmem:[#allocation5 + $0x6c] sm:$0xf0]  ;;  %v5192_v49 = vld [vmem:[#allocation5 + $0x64] sm:$0xf]  ;;  %v4019_v50 = vor.u32 %v5197_v42, %v4016_v43 }
  0x17   :  { %380 = vmatpush.bf16.msra.mxu1 %v4027_v33  ;;  %v3992_v51 = vld [vmem:[#allocation5 + $0x70] sm:$0xf0]  ;;  %v3998_v52 = vld [vmem:[#allocation5 + $0x68] sm:$0xf]  ;;  %v5195_v53 = vld [vmem:[#allocation5 + $0x74] sm:$0xf0]  ;;  %v3991_v56 = vor.u32 %v5194_v48, %v3990_v47 }
  0x18   :  { %429 = vmatpush.bf16.msra.mxu2 %v4031_v34  ;;  %478 = vmatpush.bf16.msra.mxu3 %v4035_v38  ;;  %v5193_v54 = vld [vmem:[#allocation5 + $0x6c] sm:$0xf]  ;;  %v4000_v55 = vld [vmem:[#allocation5 + $0x78] sm:$0xf0]  ;;  %v3995_v57 = vor.u32 %v5192_v49, %v3992_v51  ;;  %v3999_v58 = vor.u32 %v5195_v53, %v3998_v52  ;;  %v3974_v59 = vld [vmem:[#allocation5 + $0x40] sm:$0xf] }
  0x19   :  { %v5190_v60 = vld [vmem:[#allocation5 + $0x4c] sm:$0xf0]  ;;  %v5188_v61 = vld [vmem:[#allocation5 + $0x44] sm:$0xf]  ;;  %v4003_v62 = vor.u32 %v5193_v54, %v4000_v55  ;;  %v3976_v63 = vld [vmem:[#allocation5 + $0x50] sm:$0xf0] }
  0x1a   :  { %332 = vmatpush.bf16.msra.mxu0 %v4007_v44  ;;  %v3982_v0 = vld [vmem:[#allocation5 + $0x48] sm:$0xf]  ;;  %v5191_v1 = vld [vmem:[#allocation5 + $0x54] sm:$0xf0]  ;;  %v5189_v2 = vld [vmem:[#allocation5 + $0x4c] sm:$0xf]  ;;  %v3975_v4 = vor.u32 %v5190_v60, %v3974_v59  ;;  %v3979_v5 = vor.u32 %v5188_v61, %v3976_v63 }
  0x1b   :  { %381 = vmatpush.bf16.msra.mxu1 %v4011_v45  ;;  %v3984_v3 = vld [vmem:[#allocation5 + $0x58] sm:$0xf0]  ;;  %v3983_v6 = vor.u32 %v5191_v1, %v3982_v0  ;;  %v3958_v7 = vld [vmem:[#allocation5 + $0x20] sm:$0xf]  ;;  %v5186_v8 = vld [vmem:[#allocation5 + $0x2c] sm:$0xf0] }
  0x1c   :  { %430 = vmatpush.bf16.msra.mxu2 %v4015_v46  ;;  %479 = vmatpush.bf16.msra.mxu3 %v4019_v50  ;;  %v5184_v9 = vld [vmem:[#allocation5 + $0x24] sm:$0xf]  ;;  %v3987_v10 = vor.u32 %v5189_v2, %v3984_v3  ;;  %v3960_v11 = vld [vmem:[#allocation5 + $0x30] sm:$0xf0]  ;;  %v3966_v12 = vld [vmem:[#allocation5 + $0x28] sm:$0xf]  ;;  %v3959_v16 = vor.u32 %v5186_v8, %v3958_v7 }
  0x1d   :  { %v5187_v13 = vld [vmem:[#allocation5 + $0x34] sm:$0xf0]  ;;  %v5185_v14 = vld [vmem:[#allocation5 + $0x2c] sm:$0xf]  ;;  %v3968_v15 = vld [vmem:[#allocation5 + $0x38] sm:$0xf0]  ;;  %v3963_v18 = vor.u32 %v5184_v9, %v3960_v11 }
  0x1e   :  { %333 = vmatpush.bf16.msra.mxu0 %v3991_v56  ;;  %v3942_v17 = vld [vmem:[#allocation5] sm:$0xf]  ;;  %v3967_v19 = vor.u32 %v5187_v13, %v3966_v12  ;;  %v5182_v20 = vld [vmem:[#allocation5 + $0xc] sm:$0xf0]  ;;  %v5180_v21 = vld [vmem:[#allocation5 + $0x4] sm:$0xf]  ;;  %v3971_v23 = vor.u32 %v5185_v14, %v3968_v15 }
  0x1f   :  { %382 = vmatpush.bf16.msra.mxu1 %v3995_v57  ;;  %v3944_v22 = vld [vmem:[#allocation5 + $0x10] sm:$0xf0]  ;;  %v3950_v24 = vld [vmem:[#allocation5 + $0x8] sm:$0xf]  ;;  %v5183_v25 = vld [vmem:[#allocation5 + $0x14] sm:$0xf0]  ;;  %v3943_v30 = vor.u32 %v5182_v20, %v3942_v17 }
  0x20   :  { %431 = vmatpush.bf16.msra.mxu2 %v3999_v58  ;;  %480 = vmatpush.bf16.msra.mxu3 %v4003_v62  ;;  %v5181_v26 = vld [vmem:[#allocation5 + $0xc] sm:$0xf]  ;;  %v3952_v27 = vld [vmem:[#allocation5 + $0x18] sm:$0xf0]  ;;  %v4182_v28 = vld [vmem:[#allocation7 + $0xe0] sm:$0xf]  ;;  %v3947_v33 = vor.u32 %v5180_v21, %v3944_v22  ;;  %v3951_v34 = vor.u32 %v5183_v25, %v3950_v24 }
  0x21   :  { %v5242_v29 = vld [vmem:[#allocation7 + $0xec] sm:$0xf0]  ;;  %v5240_v31 = vld [vmem:[#allocation7 + $0xe4] sm:$0xf]  ;;  %v4184_v32 = vld [vmem:[#allocation7 + $0xf0] sm:$0xf0]  ;;  %v3955_v36 = vor.u32 %v5181_v26, %v3952_v27 }
  0x22   :  { %334 = vmatpush.bf16.msra.mxu0 %v3975_v4  ;;  %v5172_v35 = vld [vmem:[%s6986_s0] sm:$0xff]  ;;  %v4183_v37 = vor.u32 %v5242_v29, %v4182_v28  ;;  %v5241_v38 = vld [vmem:[#allocation7 + $0xec] sm:$0xf]  ;;  %v4190_v39 = vld [vmem:[#allocation7 + $0xe8] sm:$0xf]  ;;  %v4187_v41 = vor.u32 %v5240_v31, %v4184_v32 }
  0x23   :  { %383 = vmatpush.bf16.msra.mxu1 %v3979_v5  ;;  %v5243_v40 = vld [vmem:[#allocation7 + $0xf4] sm:$0xf0]  ;;  %v4192_v42 = vld [vmem:[#allocation7 + $0xf8] sm:$0xf0]  ;;  %v4166_v43 = vld [vmem:[#allocation7 + $0xc0] sm:$0xf] }
  0x24   :  { %432 = vmatpush.bf16.msra.mxu2 %v3983_v6  ;;  %481 = vmatpush.bf16.msra.mxu3 %v3987_v10  ;;  %v5238_v44 = vld [vmem:[#allocation7 + $0xcc] sm:$0xf0]  ;;  %v5236_v45 = vld [vmem:[#allocation7 + $0xc4] sm:$0xf]  ;;  %v4168_v46 = vld [vmem:[#allocation7 + $0xd0] sm:$0xf0]  ;;  %v4191_v47 = vor.u32 %v5243_v40, %v4190_v39  ;;  %v4195_v48 = vor.u32 %v5241_v38, %v4192_v42 }
  0x25   :  { %v4167_v49 = vor.u32 %v5238_v44, %v4166_v43  ;;  %v4174_v50 = vld [vmem:[#allocation7 + $0xc8] sm:$0xf]  ;;  %v5239_v51 = vld [vmem:[#allocation7 + $0xd4] sm:$0xf0]  ;;  %v4171_v52 = vor.u32 %v5236_v45, %v4168_v46  ;;  %v5237_v53 = vld [vmem:[#allocation7 + $0xcc] sm:$0xf] }
  0x26   :  { %335 = vmatpush.bf16.msra.mxu0 %v3959_v16  ;;  %v4176_v54 = vld [vmem:[#allocation7 + $0xd8] sm:$0xf0]  ;;  %v4175_v55 = vor.u32 %v5239_v51, %v4174_v50  ;;  %v4150_v56 = vld [vmem:[#allocation7 + $0xa0] sm:$0xf]  ;;  %v5234_v57 = vld [vmem:[#allocation7 + $0xac] sm:$0xf0] }
  0x27   :  { %384 = vmatpush.bf16.msra.mxu1 %v3963_v18  ;;  %v5232_v58 = vld [vmem:[#allocation7 + $0xa4] sm:$0xf]  ;;  %v4179_v59 = vor.u32 %v5237_v53, %v4176_v54  ;;  %v4151_v60 = vor.u32 %v5234_v57, %v4150_v56  ;;  %v4152_v61 = vld [vmem:[#allocation7 + $0xb0] sm:$0xf0]  ;;  %v5233_v62 = vld [vmem:[#allocation7 + $0xac] sm:$0xf] }
  0x28   :  { %433 = vmatpush.bf16.msra.mxu2 %v3967_v19  ;;  %482 = vmatpush.bf16.msra.mxu3 %v3971_v23  ;;  %v4155_v63 = vor.u32 %v5232_v58, %v4152_v61  ;;  %v4160_v0 = vld [vmem:[#allocation7 + $0xb8] sm:$0xf0]  ;;  %v4158_v1 = vld [vmem:[#allocation7 + $0xa8] sm:$0xf]  ;;  %v5235_v2 = vld [vmem:[#allocation7 + $0xb4] sm:$0xf0] }
  0x29   :  { %v4159_v3 = vor.u32 %v5235_v2, %v4158_v1  ;;  %v4163_v4 = vor.u32 %v5233_v62, %v4160_v0  ;;  %v5173_v5 = vld [vmem:[%s6986_s0 + $0x8] sm:$0xff]  ;;  %v4134_v6 = vld [vmem:[#allocation7 + $0x80] sm:$0xf]  ;;  %v5230_v7 = vld [vmem:[#allocation7 + $0x8c] sm:$0xf0] }
  0x2a   :  { %336 = vmatpush.bf16.msra.mxu0 %v3943_v30  ;;  %v5228_v8 = vld [vmem:[#allocation7 + $0x84] sm:$0xf]  ;;  %v4135_v9 = vor.u32 %v5230_v7, %v4134_v6  ;;  %v4136_v10 = vld [vmem:[#allocation7 + $0x90] sm:$0xf0]  ;;  %v5229_v11 = vld [vmem:[#allocation7 + $0x8c] sm:$0xf] }
  0x2b   :  { %385 = vmatpush.bf16.msra.mxu1 %v3947_v33  ;;  %v4144_v12 = vld [vmem:[#allocation7 + $0x98] sm:$0xf0]  ;;  %v4139_v13 = vor.u32 %v5228_v8, %v4136_v10  ;;  %v4142_v15 = vld [vmem:[#allocation7 + $0x88] sm:$0xf]  ;;  %v5231_v16 = vld [vmem:[#allocation7 + $0x94] sm:$0xf0] }
  0x2c   :  { %434 = vmatpush.bf16.msra.mxu2 %v3951_v34  ;;  %483 = vmatpush.bf16.msra.mxu3 %v3955_v36  ;;  %v4147_v14 = vor.u32 %v5229_v11, %v4144_v12  ;;  %v4143_v17 = vor.u32 %v5231_v16, %v4142_v15  ;;  %v5174_v18 = vld [vmem:[%s6986_s0 + $0x10] sm:$0xff]  ;;  %v4118_v19 = vld [vmem:[#allocation7 + $0x60] sm:$0xf]  ;;  %v5224_v21 = vld [vmem:[#allocation7 + $0x64] sm:$0xf]  ;;  %v5794_v10 = vmov 0.0|0.0  }
  0x2d   :  { %337 = vmatmul.bf16.vlgmr.msra.gmra.mxu0 %v5172_v35  ;;  %v5226_v20 = vld [vmem:[#allocation7 + $0x6c] sm:$0xf0]  ;;  %v4120_v23 = vld [vmem:[#allocation7 + $0x70] sm:$0xf0]  ;;  %v5225_v24 = vld [vmem:[#allocation7 + $0x6c] sm:$0xf] }
  0x2e   :  { %797 = vmatpush.bf16.msrb.mxu0 %v4183_v37  ;;  %386 = vmatmul.bf16.vlgmr.msra.gmra.mxu1 %v5172_v35  ;;  %v4119_v22 = vor.u32 %v5226_v20, %v4118_v19  ;;  %v4128_v25 = vld [vmem:[#allocation7 + $0x78] sm:$0xf0]  ;;  %v4123_v26 = vor.u32 %v5224_v21, %v4120_v23  ;;  %v4126_v28 = vld [vmem:[#allocation7 + $0x68] sm:$0xf]  ;;  %v5227_v29 = vld [vmem:[#allocation7 + $0x74] sm:$0xf0] }
  0x2f   :  { %811 = vmatpush.bf16.msrb.mxu1 %v4187_v41  ;;  %435 = vmatmul.bf16.vlgmr.msra.gmra.mxu2 %v5172_v35  ;;  %v4131_v27 = vor.u32 %v5225_v24, %v4128_v25  ;;  %v4127_v30 = vor.u32 %v5227_v29, %v4126_v28  ;;  %v5175_v31 = vld [vmem:[%s6986_s0 + $0x18] sm:$0xff]  ;;  %v4102_v32 = vld [vmem:[#allocation7 + $0x40] sm:$0xf]  ;;  %v5222_v33 = vld [vmem:[#allocation7 + $0x4c] sm:$0xf0] }
  0x30   :  { %484 = vmatmul.bf16.vlgmr.msra.gmra.mxu3 %v5172_v35  ;;  %825 = vmatpush.bf16.msrb.mxu2 %v4191_v47  ;;  %v5220_v34 = vld [vmem:[#allocation7 + $0x44] sm:$0xf]  ;;  %v4103_v35 = vor.u32 %v5222_v33, %v4102_v32  ;;  %v4104_v36 = vld [vmem:[#allocation7 + $0x50] sm:$0xf0]  ;;  %v5221_v37 = vld [vmem:[#allocation7 + $0x4c] sm:$0xf] }
  0x31   :  { %839 = vmatpush.bf16.msrb.mxu3 %v4195_v48  ;;  %v4112_v38 = vld [vmem:[#allocation7 + $0x58] sm:$0xf0]  ;;  %v4107_v39 = vor.u32 %v5220_v34, %v4104_v36  ;;  %v4110_v41 = vld [vmem:[#allocation7 + $0x48] sm:$0xf]  ;;  %v5223_v42 = vld [vmem:[#allocation7 + $0x54] sm:$0xf0] }
  0x32   :  { %798 = vmatpush.bf16.msrb.mxu0 %v4167_v49  ;;  %v4115_v40 = vor.u32 %v5221_v37, %v4112_v38  ;;  %v4111_v43 = vor.u32 %v5223_v42, %v4110_v41  ;;  %v5176_v44 = vld [vmem:[%s6986_s0 + $0x20] sm:$0xff]  ;;  %v5218_v46 = vld [vmem:[#allocation7 + $0x2c] sm:$0xf0]  ;;  %v4088_v49 = vld [vmem:[#allocation7 + $0x30] sm:$0xf0] }
  0x33   :  { %812 = vmatpush.bf16.msrb.mxu1 %v4171_v52  ;;  %v4086_v45 = vld [vmem:[#allocation7 + $0x20] sm:$0xf]  ;;  %v5216_v47 = vld [vmem:[#allocation7 + $0x24] sm:$0xf]  ;;  %v5217_v50 = vld [vmem:[#allocation7 + $0x2c] sm:$0xf] }
  0x34   :  { %826 = vmatpush.bf16.msrb.mxu2 %v4175_v55  ;;  %v4087_v48 = vor.u32 %v5218_v46, %v4086_v45  ;;  %v4096_v51 = vld [vmem:[#allocation7 + $0x38] sm:$0xf0]  ;;  %v4091_v52 = vor.u32 %v5216_v47, %v4088_v49  ;;  %v4094_v54 = vld [vmem:[#allocation7 + $0x28] sm:$0xf]  ;;  %v5219_v55 = vld [vmem:[#allocation7 + $0x34] sm:$0xf0] }
  0x35   :  { %840 = vmatpush.bf16.msrb.mxu3 %v4179_v59  ;;  %v4099_v53 = vor.u32 %v5217_v50, %v4096_v51  ;;  %v4095_v56 = vor.u32 %v5219_v55, %v4094_v54  ;;  %v5177_v57 = vld [vmem:[%s6986_s0 + $0x28] sm:$0xff]  ;;  %v4070_v58 = vld [vmem:[#allocation7] sm:$0xf]  ;;  %v5214_v59 = vld [vmem:[#allocation7 + $0xc] sm:$0xf0] }
  0x36   :  { %799 = vmatpush.bf16.msrb.mxu0 %v4151_v60  ;;  %v5212_v60 = vld [vmem:[#allocation7 + $0x4] sm:$0xf]  ;;  %v4071_v61 = vor.u32 %v5214_v59, %v4070_v58  ;;  %v4072_v62 = vld [vmem:[#allocation7 + $0x10] sm:$0xf0]  ;;  %v4080_v0 = vld [vmem:[#allocation7 + $0x18] sm:$0xf0] }
  0x37   :  { %813 = vmatpush.bf16.msrb.mxu1 %v4155_v63  ;;  %v5213_v63 = vld [vmem:[#allocation7 + $0xc] sm:$0xf]  ;;  %v4075_v1 = vor.u32 %v5212_v60, %v4072_v62  ;;  %v5179_v7 = vld [vmem:[%s6986_s0 + $0x38] sm:$0xff] }
  0x38   :  { %827 = vmatpush.bf16.msrb.mxu2 %v4159_v3  ;;  %v4083_v2 = vor.u32 %v5213_v63, %v4080_v0  ;;  %v5178_v3 = vld [vmem:[%s6986_s0 + $0x30] sm:$0xff] }
  0x39   :  { %841 = vmatpush.bf16.msrb.mxu3 %v4163_v4  ;;  %v4078_v4 = vld [vmem:[#allocation7 + $0x8] sm:$0xf] }
  0x3a   :  { %800 = vmatpush.bf16.msrb.mxu0 %v4135_v9 }
  0x3b   :  { %814 = vmatpush.bf16.msrb.mxu1 %v4139_v13 }
  0x3c   :  { %828 = vmatpush.bf16.msrb.mxu2 %v4143_v17 }
  0x3d   :  { %342 = vmatmul.bf16.gmra.mxu0 %v5173_v5  ;;  %842 = vmatpush.bf16.msrb.mxu3 %v4147_v14 }
  0x3e   :  { %391 = vmatmul.bf16.gmra.mxu1 %v5173_v5  ;;  %801 = vmatpush.bf16.msrb.mxu0 %v4119_v22 }
  0x3f   :  { %440 = vmatmul.bf16.gmra.mxu2 %v5173_v5  ;;  %815 = vmatpush.bf16.msrb.mxu1 %v4123_v26 }
  0x40   :  { %489 = vmatmul.bf16.gmra.mxu3 %v5173_v5  ;;  %829 = vmatpush.bf16.msrb.mxu2 %v4127_v30  ;;  %v5215_v5 = vld [vmem:[#allocation7 + $0x14] sm:$0xf0] }
  0x41   :  { %843 = vmatpush.bf16.msrb.mxu3 %v4131_v27  ;;  %v4079_v6 = vor.u32 %v5215_v5, %v4078_v4 }
  0x42   :  { %802 = vmatpush.bf16.msrb.mxu0 %v4103_v35 }
  0x43   :  { %816 = vmatpush.bf16.msrb.mxu1 %v4107_v39 }
  0x44   :  { %830 = vmatpush.bf16.msrb.mxu2 %v4111_v43 }
  0x45   :  { %844 = vmatpush.bf16.msrb.mxu3 %v4115_v40 }
  0x46   :  { %803 = vmatpush.bf16.msrb.mxu0 %v4087_v48 }
  0x47   :  { %817 = vmatpush.bf16.msrb.mxu1 %v4091_v52 }
  0x48   :  { %831 = vmatpush.bf16.msrb.mxu2 %v4095_v56 }
  0x49   :  { %845 = vmatpush.bf16.msrb.mxu3 %v4099_v53 }
  0x4a   :  { %804 = vmatpush.bf16.msrb.mxu0 %v4071_v61 }
  0x4b   :  { %818 = vmatpush.bf16.msrb.mxu1 %v4075_v1 }
  0x4c   :  { %832 = vmatpush.bf16.msrb.mxu2 %v4079_v6 }
  0x4d   :  { %347 = vmatmul.bf16.gmra.mxu0 %v5174_v18  ;;  %846 = vmatpush.bf16.msrb.mxu3 %v4083_v2 }
  0x4e   :  { %396 = vmatmul.bf16.gmra.mxu1 %v5174_v18 }
  0x4f   :  { %445 = vmatmul.bf16.gmra.mxu2 %v5174_v18 }
  0x50   :  { %494 = vmatmul.bf16.gmra.mxu3 %v5174_v18 }
  0x5d   :  { %352 = vmatmul.bf16.gmra.mxu0 %v5175_v31 }
  0x5e   :  { %401 = vmatmul.bf16.gmra.mxu1 %v5175_v31 }
  0x5f   :  { %450 = vmatmul.bf16.gmra.mxu2 %v5175_v31 }
  0x60   :  { %499 = vmatmul.bf16.gmra.mxu3 %v5175_v31 }
  0x6d   :  { %357 = vmatmul.bf16.gmra.mxu0 %v5176_v44 }
  0x6e   :  { %406 = vmatmul.bf16.gmra.mxu1 %v5176_v44 }
  0x6f   :  { %455 = vmatmul.bf16.gmra.mxu2 %v5176_v44 }
  0x70   :  { %504 = vmatmul.bf16.gmra.mxu3 %v5176_v44 }
  0x7d   :  { %362 = vmatmul.bf16.gmra.mxu0 %v5177_v57 }
  0x7e   :  { %411 = vmatmul.bf16.gmra.mxu1 %v5177_v57 }
  0x7f   :  { %460 = vmatmul.bf16.gmra.mxu2 %v5177_v57 }
  0x80   :  { %509 = vmatmul.bf16.gmra.mxu3 %v5177_v57 }
  0x8d   :  { %367 = vmatmul.bf16.gmra.mxu0 %v5178_v3 }
  0x8e   :  { %416 = vmatmul.bf16.gmra.mxu1 %v5178_v3 }
  0x8f   :  { %465 = vmatmul.bf16.gmra.mxu2 %v5178_v3 }
  0x90   :  { %514 = vmatmul.bf16.gmra.mxu3 %v5178_v3  ;;  %v5979_v3 = vld [vmem:[%s6989_s3] sm:$0xf] }
  0x9d   :  { %372 = vmatmul.bf16.gmra.mxu0 %v5179_v7 }
  0x9e   :  { %421 = vmatmul.bf16.gmra.mxu1 %v5179_v7 }
  0x9f   :  { %470 = vmatmul.bf16.gmra.mxu2 %v5179_v7 }
  0xa0   :  { %519 = vmatmul.bf16.gmra.mxu3 %v5179_v7  ;;  %v4316_v7 = vld [vmem:[#allocation7 + $0xe0] sm:$0xf] }
  0xaa   :  { %v5860_v8 = vpop.f32.mrf.mxu0 }
  0xab   :  { %v5862_v9 = vpop.f32.mrf.mxu1 }
  0xad   :  { %805 = vmatmul.bf16.vlgmr.msrb.gmra.mxu0 %v5794_v10 }
  0xae   :  { %819 = vmatmul.bf16.vlgmr.msrb.gmra.mxu1 %v5794_v10 }
  0xaf   :  { %833 = vmatmul.bf16.vlgmr.msrb.gmra.mxu2 %v5794_v10 }
  0xb0   :  { %847 = vmatmul.bf16.vlgmr.msrb.gmra.mxu3 %v5794_v10  ;;  %v5274_v10 = vld [vmem:[#allocation7 + $0xec] sm:$0xf0] }
  0xb2   :  { %v5864_v11 = vpop.f32.mrf.mxu2  ;;  %v5868_v13 = vpop.f32.mrf.mxu0 }
  0xb3   :  { %v5866_v12 = vpop.f32.mrf.mxu3  ;;  %v5870_v14 = vpop.f32.mrf.mxu1 }
  0xba   :  { %v5872_v15 = vpop.f32.mrf.mxu2  ;;  %v5876_v17 = vpop.f32.mrf.mxu0 }
  0xbb   :  { %v5874_v16 = vpop.f32.mrf.mxu3  ;;  %v5878_v18 = vpop.f32.mrf.mxu1 }
  0xc2   :  { %v5880_v19 = vpop.f32.mrf.mxu2  ;;  %v5884_v21 = vpop.f32.mrf.mxu0 }
  0xc3   :  { %v5882_v20 = vpop.f32.mrf.mxu3  ;;  %v5886_v22 = vpop.f32.mrf.mxu1 }
  0xca   :  { %v5888_v23 = vpop.f32.mrf.mxu2  ;;  %v5892_v25 = vpop.f32.mrf.mxu0 }
  0xcb   :  { %v5890_v24 = vpop.f32.mrf.mxu3  ;;  %v5894_v26 = vpop.f32.mrf.mxu1 }
  0xd2   :  { %v5896_v27 = vpop.f32.mrf.mxu2  ;;  %v5900_v29 = vpop.f32.mrf.mxu0 }
  0xd3   :  { %v5898_v28 = vpop.f32.mrf.mxu3  ;;  %v5902_v30 = vpop.f32.mrf.mxu1 }
  0xda   :  { %v5904_v31 = vpop.f32.mrf.mxu2  ;;  %v5908_v33 = vpop.f32.mrf.mxu0 }
  0xdb   :  { %v5906_v32 = vpop.f32.mrf.mxu3  ;;  %v5910_v34 = vpop.f32.mrf.mxu1 }
  0xe2   :  { %v5912_v35 = vpop.f32.mrf.mxu2  ;;  %v5916_v37 = vpop.f32.mrf.mxu0 }
  0xe3   :  { %v5914_v36 = vpop.f32.mrf.mxu3  ;;  %v5918_v38 = vpop.f32.mrf.mxu1 }
  0xea   :  { %v5920_v39 = vpop.f32.mrf.mxu2  ;;  %v5924_v41 = vpop.f32.mrf.mxu0 }
  0xeb   :  { %v5922_v40 = vpop.f32.mrf.mxu3  ;;  %v5926_v42 = vpop.f32.mrf.mxu1 }
  0xf2   :  { %v5928_v43 = vpop.f32.mrf.mxu2  ;;  %v5932_v45 = vpop.f32.mrf.mxu0 }
  0xf3   :  { %6993 = vst [vmem:[#allocation11_spill] sm:$0xff] %v5928_v43  ;;  %v5930_v44 = vpop.f32.mrf.mxu3  ;;  %v5934_v46 = vpop.f32.mrf.mxu1 }
  0xf4   :  { %6994 = vst [vmem:[#allocation12_spill] sm:$0xff] %v5934_v46 }
  0xfa   :  { %v5936_v47 = vpop.f32.mrf.mxu2  ;;  %v5940_v49 = vpop.f32.mrf.mxu0 }
  0xfb   :  { %6995 = vst [vmem:[#allocation13_spill] sm:$0xff] %v5936_v47  ;;  %v5938_v48 = vpop.f32.mrf.mxu3  ;;  %v5942_v50 = vpop.f32.mrf.mxu1 }
  0xfc   :  { %6996 = vst [vmem:[#allocation14_spill] sm:$0xff] %v5938_v48  ;;  %v4294_v48 = vld [vmem:[#allocation7 + $0xb8] sm:$0xf0] }
  0xfd   :  { %6997 = vst [vmem:[#allocation15_spill] sm:$0xff] %v5940_v49 }
  0xfe   :  { %6998 = vst [vmem:[#allocation16_spill] sm:$0xff] %v5942_v50 }
 0x102   :  { %v5944_v51 = vpop.f32.mrf.mxu2  ;;  %v5948_v53 = vpop.f32.mrf.mxu0 }
 0x103   :  { %6999 = vst [vmem:[#allocation17_spill] sm:$0xff] %v5944_v51  ;;  %v5946_v52 = vpop.f32.mrf.mxu3  ;;  %v5950_v54 = vpop.f32.mrf.mxu1  ;;  %v4302_v51 = vld [vmem:[#allocation7 + $0xd0] sm:$0xf0] }
 0x104   :  { %7000 = vst [vmem:[#allocation18_spill] sm:$0xff] %v5946_v52  ;;  %v5267_v52 = vld [vmem:[#allocation7 + $0xb4] sm:$0xf0] }
 0x105   :  { %7001 = vst [vmem:[#allocation19_spill] sm:$0xff] %v5948_v53  ;;  %v5271_v53 = vld [vmem:[#allocation7 + $0xd4] sm:$0xf0] }
 0x106   :  { %7002 = vst [vmem:[#allocation20_spill] sm:$0xff] %v5950_v54  ;;  %v4308_v54 = vld [vmem:[#allocation7 + $0xc8] sm:$0xf] }
 0x10a   :  { %v5952_v55 = vpop.f32.mrf.mxu2  ;;  %v5956_v57 = vpop.f32.mrf.mxu0 }
 0x10b   :  { %7003 = vst [vmem:[#allocation21_spill] sm:$0xff] %v5952_v55  ;;  %v5954_v56 = vpop.f32.mrf.mxu3  ;;  %v5958_v58 = vpop.f32.mrf.mxu1  ;;  %v5268_v55 = vld [vmem:[#allocation7 + $0xc4] sm:$0xf] }
 0x10c   :  { %7004 = vst [vmem:[#allocation22_spill] sm:$0xff] %v5954_v56 }
 0x10d   :  { %7005 = vst [vmem:[#allocation23_spill] sm:$0xff] %v5956_v57  ;;  %v5273_v57 = vld [vmem:[#allocation7 + $0xec] sm:$0xf] }
 0x10e   :  { %7006 = vst [vmem:[#allocation24_spill] sm:$0xff] %v5958_v58 }
 0x112   :  { %v5960_v59 = vpop.f32.mrf.mxu2  ;;  %v5964_v61 = vpop.f32.mrf.mxu0 }
 0x113   :  { %7007 = vst [vmem:[#allocation25_spill] sm:$0xff] %v5960_v59  ;;  %v5962_v60 = vpop.f32.mrf.mxu3  ;;  %v5966_v62 = vpop.f32.mrf.mxu1  ;;  %v4317_v59 = vor.u32 %v5274_v10, %v4316_v7  ;;  %v4300_v7 = vld [vmem:[#allocation7 + $0xc0] sm:$0xf]  ;;  %v5270_v10 = vld [vmem:[#allocation7 + $0xcc] sm:$0xf0] }
 0x114   :  { %7008 = vst [vmem:[#allocation26_spill] sm:$0xff] %v5962_v60  ;;  %v4301_v56 = vor.u32 %v5270_v10, %v4300_v7  ;;  %v4286_v10 = vld [vmem:[#allocation7 + $0xb0] sm:$0xf0] }
 0x115   :  { %7009 = vst [vmem:[#allocation27_spill] sm:$0xff] %v5964_v61  ;;  %1199 = vmatpush.bf16.msra.mxu0 %v4317_v59 }
 0x116   :  { %7010 = vst [vmem:[#allocation28_spill] sm:$0xff] %v5966_v62  ;;  %v4324_v62 = vld [vmem:[#allocation7 + $0xe8] sm:$0xf] }
 0x119   :  { %1200 = vmatpush.bf16.msra.mxu0 %v4301_v56 }
 0x11a   :  { %v5970_v0 = vpop.f32.mrf.mxu0  ;;  %v5972_v1 = vpop.f32.mrf.mxu2 }
 0x11b   :  { %v5968_v63 = vpop.f32.mrf.mxu3  ;;  %7012 = vst [vmem:[#allocation30_spill] sm:$0xff] %v5970_v0  ;;  %v5974_v2 = vpop.f32.mrf.mxu1  ;;  %v4318_v0 = vld [vmem:[#allocation7 + $0xf0] sm:$0xf0] }
 0x11c   :  { %7011 = vst [vmem:[#allocation29_spill] sm:$0xff] %v5968_v63  ;;  %v5272_v63 = vld [vmem:[#allocation7 + $0xe4] sm:$0xf] }
 0x11d   :  { %7013 = vst [vmem:[#allocation31_spill] sm:$0xff] %v5972_v1  ;;  %v5275_v1 = vld [vmem:[#allocation7 + $0xf4] sm:$0xf0]  ;;  %v4321_v60 = vor.u32 %v5272_v63, %v4318_v0  ;;  %v4305_v63 = vor.u32 %v5268_v55, %v4302_v51  ;;  %v4309_v0 = vor.u32 %v5271_v53, %v4308_v54  ;;  %v5266_v51 = vld [vmem:[#allocation7 + $0xac] sm:$0xf0] }
 0x11e   :  { %7014 = vst [vmem:[#allocation32_spill] sm:$0xff] %v5974_v2  ;;  %v5988_v2 = vperm.slane %v5979_v3, 0  ;;  %v4325_v58 = vor.u32 %v5275_v1, %v4324_v62  ;;  %v5269_v1 = vld [vmem:[#allocation7 + $0xcc] sm:$0xf]  ;;  %v5264_v53 = vld [vmem:[#allocation7 + $0xa4] sm:$0xf] }
 0x11f   :  { %1213 = vmatpush.bf16.msra.mxu1 %v4321_v60  ;;  %v4289_v49 = vor.u32 %v5264_v53, %v4286_v10 }
 0x120   :  { %1227 = vmatpush.bf16.msra.mxu2 %v4325_v58  ;;  %v339_v62 = vadd.f32 %v5860_v8, %v5988_v2  ;;  %v6000_v58 = vperm.slane %v5979_v3, 3  ;;  %v4284_v8 = vld [vmem:[#allocation7 + $0xa0] sm:$0xf] }
 0x121   :  { %v4285_v55 = vor.u32 %v5266_v51, %v4284_v8 }
 0x122   :  { %v5983_v5 = vpop.f32.mrf.mxu0  ;;  %v5990_v61 = vpop.f32.mrf.mxu2 }
 0x123   :  { %v5981_v4 = vpop.f32.mrf.mxu3  ;;  %7016 = vst [vmem:[#allocation34_spill] sm:$0xff] %v5983_v5  ;;  %v5985_v6 = vpop.f32.mrf.mxu1  ;;  %v5993_v5 = vperm.slane %v5979_v3, 1  ;;  %1214 = vmatpush.bf16.msra.mxu1 %v4305_v63  ;;  %1201 = vmatpush.bf16.msra.mxu0 %v4285_v55  ;;  %v4268_v63 = vld [vmem:[#allocation7 + $0x80] sm:$0xf] }
 0x124   :  { %7015 = vst [vmem:[#allocation33_spill] sm:$0xff] %v5981_v4  ;;  %v4326_v4 = vld [vmem:[#allocation7 + $0xf8] sm:$0xf0]  ;;  %1228 = vmatpush.bf16.msra.mxu2 %v4309_v0  ;;  %v5262_v0 = vld [vmem:[#allocation7 + $0x8c] sm:$0xf0] }
 0x125   :  { %7017 = vst [vmem:[#allocation35_spill] sm:$0xff] %v5985_v6  ;;  %v4329_v6 = vor.u32 %v5273_v57, %v4326_v4  ;;  %v388_v57 = vadd.f32 %v5862_v9, %v5993_v5  ;;  %v4292_v9 = vld [vmem:[#allocation7 + $0xa8] sm:$0xf] }
 0x126   :  { %7018 = vst [vmem:[#allocation36_spill] sm:$0xff] %v5990_v61  ;;  %v4310_v61 = vld [vmem:[#allocation7 + $0xd8] sm:$0xf0]  ;;  %v4293_v47 = vor.u32 %v5267_v52, %v4292_v9  ;;  %v486_v52 = vadd.f32 %v5866_v12, %v6000_v58  ;;  %v4252_v12 = vld [vmem:[#allocation7 + $0x60] sm:$0xf] }
 0x127   :  { %1241 = vmatpush.bf16.msra.mxu3 %v4329_v6  ;;  %v4313_v4 = vor.u32 %v5269_v1, %v4310_v61  ;;  %1215 = vmatpush.bf16.msra.mxu1 %v4289_v49  ;;  %v5260_v1 = vld [vmem:[#allocation7 + $0x84] sm:$0xf]  ;;  %v4278_v49 = vld [vmem:[#allocation7 + $0x98] sm:$0xf0]  ;;  %v5258_v9 = vld [vmem:[#allocation7 + $0x6c] sm:$0xf0] }
 0x128   :  { %1229 = vmatpush.bf16.msra.mxu2 %v4293_v47  ;;  %v390_v47 = vadd.f32 %v5870_v14, %v5993_v5 }
 0x12a   :  { %v806_v60 = vpop.f32.mrf.mxu0 }
 0x12b   :  { %v6002_v59 = vpop.f32.mrf.mxu3  ;;  %v853_v6 = vadd.f32 %v806_v60, %v339_v62  ;;  %v820_v7 = vpop.f32.mrf.mxu1  ;;  %1242 = vmatpush.bf16.msra.mxu3 %v4313_v4  ;;  %v4270_v60 = vld [vmem:[#allocation7 + $0x90] sm:$0xf0]  ;;  %v4276_v4 = vld [vmem:[#allocation7 + $0x88] sm:$0xf] }
 0x12c   :  { %7019 = vst [vmem:[#allocation37_spill] sm:$0xff] %v6002_v59  ;;  %v854_v54 = vadd.f32 %v820_v7, %v388_v57  ;;  %v5265_v59 = vld [vmem:[#allocation7 + $0xac] sm:$0xf]  ;;  %v6004_v62 = vpop.f32.mrf.mxu2  ;;  %v4269_v57 = vor.u32 %v5262_v0, %v4268_v63  ;;  %v4254_v63 = vld [vmem:[#allocation7 + $0x70] sm:$0xf0] }
 0x12d   :  { %v4196_v50 = vmul.f32 -1.442695, %v853_v6  ;;  %v4297_v61 = vor.u32 %v5265_v59, %v4294_v48  ;;  %7020 = vst [vmem:[#allocation38_spill] sm:$0xff] %v6004_v62  ;;  %v5263_v6 = vld [vmem:[#allocation7 + $0x94] sm:$0xf0]  ;;  %v341_v48 = vadd.f32 %v5868_v13, %v5988_v2  ;;  %v4273_v59 = vor.u32 %v5260_v1, %v4270_v60 }
 0x12e   :  { %v4198_v56 = vmul.f32 -1.442695, %v854_v54  ;;  %v4277_v7 = vor.u32 %v5263_v6, %v4276_v4  ;;  %1202 = vmatpush.bf16.msra.mxu0 %v4269_v57  ;;  %v4260_v0 = vld [vmem:[#allocation7 + $0x68] sm:$0xf]  ;;  %v5259_v1 = vld [vmem:[#allocation7 + $0x74] sm:$0xf0] }
 0x12f   :  { %5482 = vpow2.f32 %v4196_v50  ;;  %1243 = vmatpush.bf16.msra.mxu3 %v4297_v61  ;;  %v5261_v50 = vld [vmem:[#allocation7 + $0x8c] sm:$0xf]  ;;  %1216 = vmatpush.bf16.msra.mxu1 %v4273_v59  ;;  %v4253_v61 = vor.u32 %v5258_v9, %v4252_v12  ;;  %v4261_v6 = vor.u32 %v5259_v1, %v4260_v0  ;;  %v4228_v62 = vld [vmem:[#allocation7 + $0x28] sm:$0xf] }
 0x130   :  { %5484 = vpow2.f32 %v4198_v56  ;;  %v4281_v53 = vor.u32 %v5261_v50, %v4278_v49  ;;  %1230 = vmatpush.bf16.msra.mxu2 %v4277_v7  ;;  %v5256_v56 = vld [vmem:[#allocation7 + $0x64] sm:$0xf]  ;;  %v5257_v57 = vld [vmem:[#allocation7 + $0x6c] sm:$0xf]  ;;  %v4262_v7 = vld [vmem:[#allocation7 + $0x78] sm:$0xf0] }
 0x131   :  { %v4257_v4 = vor.u32 %v5256_v56, %v4254_v63  ;;  %v4244_v56 = vld [vmem:[#allocation7 + $0x48] sm:$0xf]  ;;  %v5253_v0 = vld [vmem:[#allocation7 + $0x4c] sm:$0xf] }
 0x132   :  { %v808_v51 = vpop.f32.mrf.mxu0  ;;  %1203 = vmatpush.bf16.msra.mxu0 %v4253_v61 }
 0x133   :  { %v848_v8 = vpop.f32.mrf.mxu3  ;;  %v857_v55 = vadd.f32 %v808_v51, %v341_v48  ;;  %v822_v10 = vpop.f32.mrf.mxu1  ;;  %1244 = vmatpush.bf16.msra.mxu3 %v4281_v53  ;;  %1217 = vmatpush.bf16.msra.mxu1 %v4257_v4  ;;  %v4236_v51 = vld [vmem:[#allocation7 + $0x40] sm:$0xf]  ;;  %v488_v53 = vadd.f32 %v5874_v16, %v6000_v58  ;;  %v4246_v16 = vld [vmem:[#allocation7 + $0x58] sm:$0xf0] }
 0x134   :  { %v856_v54 = vadd.f32 %v848_v8, %v486_v52  ;;  %v858_v13 = vadd.f32 %v822_v10, %v390_v47  ;;  %v6013_v52 = vperm.slane %v5979_v3, 2  ;;  %1231 = vmatpush.bf16.msra.mxu2 %v4261_v6  ;;  %v4265_v8 = vor.u32 %v5257_v57, %v4262_v7  ;;  %v834_v3 = vpop.f32.mrf.mxu2  ;;  %v4238_v10 = vld [vmem:[#allocation7 + $0x50] sm:$0xf0]  ;;  %v4220_v6 = vld [vmem:[#allocation7 + $0x20] sm:$0xf] }
 0x135   :  { %v5483_v60 = vpop.eup %5482  ;;  %v4197_v59 = vmul.f32 -1.442695, %v857_v55  ;;  %v5252_v55 = vld [vmem:[#allocation7 + $0x44] sm:$0xf]  ;;  %v5250_v57 = vld [vmem:[#allocation7 + $0x2c] sm:$0xf0] }
 0x136   :  { %v4200_v14 = vmul.f32 -1.442695, %v856_v54  ;;  %v5485_v50 = vpop.eup %5484  ;;  %v6015_v48 = vadd.f32 1.0, %v5483_v60  ;;  %v4199_v47 = vmul.f32 -1.442695, %v858_v13  ;;  %v437_v12 = vadd.f32 %v5864_v11, %v6013_v52 }
 0x137   :  { %v6017_v49 = vadd.f32 1.0, %v5485_v50  ;;  %1245 = vmatpush.bf16.msra.mxu3 %v4265_v8  ;;  %v5254_v54 = vld [vmem:[#allocation7 + $0x4c] sm:$0xf0]  ;;  %v5255_v13 = vld [vmem:[#allocation7 + $0x54] sm:$0xf0]  ;;  %v4249_v11 = vor.u32 %v5253_v0, %v4246_v16 }
 0x138   :  { %5486 = vpow2.f32 %v4200_v14  ;;  %v878_v61 = vand.u32 2147483647, %v6015_v48  ;;  %v855_v1 = vadd.f32 %v834_v3, %v437_v12  ;;  %v4237_v60 = vor.u32 %v5254_v54, %v4236_v51  ;;  %v5248_v50 = vld [vmem:[#allocation7 + $0x24] sm:$0xf]  ;;  %v5251_v3 = vld [vmem:[#allocation7 + $0x34] sm:$0xf0] }
 0x139   :  { %5488 = vrcp.f32 %v6015_v48  ;;  %v4241_v14 = vor.u32 %v5252_v55, %v4238_v10  ;;  %v4245_v4 = vor.u32 %v5255_v13, %v4244_v56  ;;  %v5249_v51 = vld [vmem:[#allocation7 + $0x2c] sm:$0xf]  ;;  %v4229_v10 = vor.u32 %v5251_v3, %v4228_v62  ;;  %v4230_v12 = vld [vmem:[#allocation7 + $0x38] sm:$0xf0]  ;;  %v5246_v56 = vld [vmem:[#allocation7 + $0xc] sm:$0xf0] }
 0x13a   :  { %5490 = vrcp.f32 %v6017_v49  ;;  %1204 = vmatpush.bf16.msra.mxu0 %v4237_v60  ;;  %v918_v0 = vand.u32 2147483648, %v6017_v49  ;;  %v880_v16 = vand.u32 2147483648, %v6015_v48  ;;  %v5244_v60 = vld [vmem:[#allocation7 + $0x4] sm:$0xf]  ;;  %v4233_v62 = vor.u32 %v5249_v51, %v4230_v12  ;;  %v4214_v51 = vld [vmem:[#allocation7 + $0x18] sm:$0xf0] }
 0x13b   :  { %5492 = vpow2.f32 %v4197_v59  ;;  %v850_v9 = vpop.f32.mrf.mxu3  ;;  %v4222_v59 = vld [vmem:[#allocation7 + $0x30] sm:$0xf0]  ;;  %1218 = vmatpush.bf16.msra.mxu1 %v4241_v14  ;;  %1232 = vmatpush.bf16.msra.mxu2 %v4245_v4  ;;  %vm912_vm2 = vweird.f32 %v6017_v49  ;;  %vm874_vm3 = vweird.f32 %v6015_v48  ;;  %vm879_vm5 = vcmp.eq.f32.partialorder %v878_v61, 8.507059e+37 }
 0x13c   :  { %5494 = vpow2.f32 %v4199_v47  ;;  %v860_v63 = vadd.f32 %v850_v9, %v488_v53  ;;  %v4221_v47 = vor.u32 %v5250_v57, %v4220_v6  ;;  %v4225_v53 = vor.u32 %v5248_v50, %v4222_v59  ;;  %1246 = vmatpush.bf16.msra.mxu3 %v4249_v11  ;;  %v4204_v9 = vld [vmem:[#allocation7] sm:$0xf]  ;;  %v4206_v14 = vld [vmem:[#allocation7 + $0x10] sm:$0xf0]  ;;  %v4212_v50 = vld [vmem:[#allocation7 + $0x8] sm:$0xf] }
 0x13d   :  { %v4205_v59 = vor.u32 %v5246_v56, %v4204_v9  ;;  %v4209_v3 = vor.u32 %v5244_v60, %v4206_v14  ;;  %v836_v14 = vpop.f32.mrf.mxu2 }
 0x13e   :  { %v5487_v7 = vpop.eup %5486  ;;  %v4201_v8 = vmul.f32 -1.442695, %v860_v63  ;;  %1205 = vmatpush.bf16.msra.mxu0 %v4221_v47  ;;  %v916_v47 = vand.u32 2147483647, %v6017_v49 }
 0x13f   :  { %v6026_v43 = vpop.eup %5488  ;;  %v6028_v46 = vadd.f32 1.0, %v5487_v7  ;;  %v5247_v7 = vld [vmem:[#allocation7 + $0x14] sm:$0xf0]  ;;  %1219 = vmatpush.bf16.msra.mxu1 %v4225_v53  ;;  %1233 = vmatpush.bf16.msra.mxu2 %v4229_v10 }
 0x140   :  { %v6030_v54 = vpop.eup %5490  ;;  %v870_v55 = vmul.f32 %v6026_v43, %v6015_v48  ;;  %5496 = vpow2.f32 %v4201_v8  ;;  %vm875_vm0 = vweird.f32 %v6026_v43  ;;  %1247 = vmatpush.bf16.msra.mxu3 %v4233_v62  ;;  %vm917_vm7 = vcmp.eq.f32.partialorder %v916_v47, 8.507059e+37 }
 0x141   :  { %v5493_v13 = vpop.eup %5492  ;;  %v908_v63 = vmul.f32 %v6030_v54, %v6017_v49  ;;  %5498 = vtanh.f32 %v855_v1  ;;  %vm913_vm1 = vweird.f32 %v6030_v54  ;;  %vm6055_vm4 = vmor %vm874_vm3, %vm875_vm0 }
 0x142   :  { %v5495_v6 = vpop.eup %5494  ;;  %v871_v57 = vsub.f32 1.0, %v870_v55  ;;  %5500 = vrcp.f32 %v6028_v46  ;;  %v6039_v4 = vadd.f32 1.0, %v5493_v13  ;;  %v4213_v55 = vor.u32 %v5247_v7, %v4212_v50  ;;  %v5245_v13 = vld [vmem:[#allocation7 + $0xc] sm:$0xf]  ;;  %1206 = vmatpush.bf16.msra.mxu0 %v4205_v59  ;;  %vm914_vm6 = vmor %vm912_vm2, %vm913_vm1 }
 0x143   :  { %v909_v8 = vsub.f32 1.0, %v908_v63  ;;  %v6041_v11 = vadd.f32 1.0, %v5495_v6  ;;  %v881_v63 = vor.u32 1.1754944e-38, %v880_v16  ;;  %1220 = vmatpush.bf16.msra.mxu1 %v4209_v3  ;;  %v439_v50 = vadd.f32 %v5872_v15, %v6013_v52 }
 0x144   :  { %v872_v1 = vmul.f32 %v6026_v43, %v871_v57  ;;  %5502 = vrcp.f32 %v6039_v4  ;;  %v4217_v57 = vor.u32 %v5245_v13, %v4214_v51  ;;  %v919_v7 = vor.u32 1.1754944e-38, %v918_v0  ;;  %1234 = vmatpush.bf16.msra.mxu2 %v4213_v55 }
 0x145   :  { %v910_v12 = vmul.f32 %v6030_v54, %v909_v8  ;;  %5504 = vrcp.f32 %v6041_v11  ;;  %vm889_vm10 = vweird.f32 %v6039_v4  ;;  %vm927_vm11 = vweird.f32 %v6041_v11 }
 0x146   :  { %v5497_v53 = vpop.eup %5496  ;;  %v873_v9 = vadd.f32 %v6026_v43, %v872_v1  ;;  %1248 = vmatpush.bf16.msra.mxu3 %v4217_v57  ;;  %vm952_vm2 = vweird.f32 %v6028_v46 }
 0x147   :  { %v5499_v10 = vpop.eup %5498  ;;  %v911_v60 = vadd.f32 %v6030_v54, %v910_v12  ;;  %v6060_v6 = vadd.f32 1.0, %v5497_v53  ;;  %v895_v12 = vand.u32 2147483648, %v6039_v4  ;;  %v933_v53 = vand.u32 2147483648, %v6041_v11 }
 0x148   :  { %v6062_v62 = vpop.eup %5500  ;;  %v877_v8 = vsel %vm6055_vm4, %v6026_v43, %v873_v9  ;;  %v859_v43 = vadd.f32 %v836_v14, %v439_v50 }
 0x149   :  { %v882_v16 = vsel %vm879_vm5, %v881_v63, %v877_v8  ;;  %v915_v59 = vsel %vm914_vm6, %v6030_v54, %v911_v60  ;;  %5506 = vrcp.f32 %v6060_v6  ;;  %v948_v55 = vmul.f32 %v6062_v62, %v6028_v46 }
 0x14a   :  { %v5503_v15 = vpop.eup %5502  ;;  %v920_v0 = vsel %vm917_vm7, %v919_v7, %v915_v59  ;;  %v979_v3 = vmul.f32 %v5499_v10, %v882_v16  ;;  %5508 = vtanh.f32 %v859_v43  ;;  %v893_v10 = vand.u32 2147483647, %v6039_v4 }
 0x14b   :  { %v5505_v1 = vpop.eup %5504  ;;  %v977_v48 = vmul.f32 0.0, %v920_v0  ;;  %v885_v61 = vmul.f32 %v5503_v15, %v6039_v4  ;;  %vm890_vm8 = vweird.f32 %v5503_v15  ;;  %v931_v63 = vand.u32 2147483647, %v6041_v11 }
 0x14c   :  { %v923_v13 = vmul.f32 %v5505_v1, %v6041_v11  ;;  %vm928_vm9 = vweird.f32 %v5505_v1  ;;  %v949_v14 = vsub.f32 1.0, %v948_v55  ;;  %vm891_vm12 = vmor %vm889_vm10, %vm890_vm8  ;;  %v896_v50 = vor.u32 1.1754944e-38, %v895_v12 }
 0x14d   :  { %v6079_v49 = vadd.f32 %v979_v3, %v977_v48  ;;  %v886_v54 = vsub.f32 1.0, %v885_v61  ;;  %v934_v16 = vor.u32 1.1754944e-38, %v933_v53  ;;  %vm894_vm13 = vcmp.eq.f32.partialorder %v893_v10, 8.507059e+37  ;;  %vm929_vm14 = vmor %vm927_vm11, %vm928_vm9 }
 0x14e   :  { %v924_v51 = vsub.f32 1.0, %v923_v13  ;;  %vm932_vm15 = vcmp.eq.f32.partialorder %v931_v63, 8.507059e+37  ;;  %v950_v48 = vmul.f32 %v6062_v62, %v949_v14  ;;  %vm953_vm0 = vweird.f32 %v6062_v62 }
 0x14f   :  { %v5507_v47 = vpop.eup %5506  ;;  %v887_v9 = vmul.f32 %v5503_v15, %v886_v54  ;;  %5510 = vtanh.f32 %v6079_v49  ;;  %vm967_vm3 = vweird.f32 %v6060_v6  ;;  %vm954_vm4 = vmor %vm952_vm2, %vm953_vm0  ;;  %v956_v12 = vand.u32 2147483647, %v6028_v46 }
 0x150   :  { %v925_v56 = vmul.f32 %v5505_v1, %v924_v51  ;;  %v963_v60 = vmul.f32 %v5507_v47, %v6060_v6  ;;  %v5509_v0 = vpop.eup %5508  ;;  %vm968_vm1 = vweird.f32 %v5507_v47  ;;  %v973_v51 = vand.u32 2147483648, %v6060_v6 }
 0x151   :  { %v888_v57 = vadd.f32 %v5503_v15, %v887_v9  ;;  %v971_v53 = vand.u32 2147483647, %v6060_v6  ;;  %vm969_vm5 = vmor %vm967_vm3, %vm968_vm1  ;;  %vm957_vm6 = vcmp.eq.f32.partialorder %v956_v12, 8.507059e+37  ;;  %v5306_v6 = vld [vmem:[#allocation7 + $0xec] sm:$0xf0] }
 0x152   :  { %v926_v7 = vadd.f32 %v5505_v1, %v925_v56  ;;  %v964_v8 = vsub.f32 1.0, %v963_v60  ;;  %v974_v60 = vor.u32 1.1754944e-38, %v973_v51 }
 0x153   :  { %v892_v59 = vsel %vm891_vm12, %v5503_v15, %v888_v57  ;;  %v951_v15 = vadd.f32 %v6062_v62, %v950_v48  ;;  %vm972_vm7 = vcmp.eq.f32.partialorder %v971_v53, 8.507059e+37  ;;  %v393_v48 = vadd.f32 %v5878_v18, %v5993_v5  ;;  %v4434_v53 = vld [vmem:[#allocation7 + $0xc0] sm:$0xf]  ;;  %v5303_v18 = vld [vmem:[#allocation7 + $0xd4] sm:$0xf0] }
 0x154   :  { %v897_v3 = vsel %vm894_vm13, %v896_v50, %v892_v59  ;;  %v930_v43 = vsel %vm929_vm14, %v5505_v1, %v926_v7  ;;  %v965_v55 = vmul.f32 %v5507_v47, %v964_v8  ;;  %v958_v1 = vand.u32 2147483648, %v6028_v46  ;;  %v4450_v46 = vld [vmem:[#allocation7 + $0xe0] sm:$0xf]  ;;  %v5304_v59 = vld [vmem:[#allocation7 + $0xe4] sm:$0xf] }
 0x155   :  { %v935_v61 = vsel %vm932_vm15, %v934_v16, %v930_v43  ;;  %v980_v13 = vmul.f32 %v5509_v0, %v897_v3  ;;  %v955_v9 = vsel %vm954_vm4, %v6062_v62, %v951_v15  ;;  %v5511_v56 = vpop.eup %5510  ;;  %v4451_v62 = vor.u32 %v5306_v6, %v4450_v46  ;;  %v4458_v0 = vld [vmem:[#allocation7 + $0xe8] sm:$0xf]  ;;  %v5307_v3 = vld [vmem:[#allocation7 + $0xf4] sm:$0xf0]  ;;  %v4418_v46 = vld [vmem:[#allocation7 + $0xa0] sm:$0xf] }
 0x156   :  { %v978_v4 = vmul.f32 0.0, %v935_v61  ;;  %v966_v54 = vadd.f32 %v5507_v47, %v965_v55  ;;  %v959_v63 = vor.u32 1.1754944e-38, %v958_v1  ;;  %v344_v43 = vadd.f32 %v5876_v17, %v5988_v2  ;;  %v5305_v55 = vld [vmem:[#allocation7 + $0xec] sm:$0xf]  ;;  %v5298_v6 = vld [vmem:[#allocation7 + $0xac] sm:$0xf0] }
 0x157   :  { %1601 = vmatpush.bf16.msrb.mxu0 %v4451_v62  ;;  %v491_v62 = vadd.f32 %v5882_v20, %v6000_v58 }
 0x158   :  { %v6092_v11 = vadd.f32 %v980_v13, %v978_v4  ;;  %v970_v10 = vsel %vm969_vm5, %v5507_v47, %v966_v54  ;;  %v960_v57 = vsel %vm957_vm6, %v959_v63, %v955_v9  ;;  %v4452_v47 = vld [vmem:[#allocation7 + $0xf0] sm:$0xf0]  ;;  %v4459_v13 = vor.u32 %v5307_v3, %v4458_v0  ;;  %v4460_v4 = vld [vmem:[#allocation7 + $0xf8] sm:$0xf0]  ;;  %v5302_v9 = vld [vmem:[#allocation7 + $0xcc] sm:$0xf0] }
 0x159   :  { %v975_v50 = vsel %vm972_vm7, %v974_v60, %v970_v10  ;;  %v985_v7 = vmul.f32 %v5511_v56, %v960_v57  ;;  %v4455_v61 = vor.u32 %v5304_v59, %v4452_v47  ;;  %v4463_v1 = vor.u32 %v5305_v55, %v4460_v4  ;;  %v5300_v10 = vld [vmem:[#allocation7 + $0xc4] sm:$0xf]  ;;  %v4436_v56 = vld [vmem:[#allocation7 + $0xd0] sm:$0xf0]  ;;  %v4442_v63 = vld [vmem:[#allocation7 + $0xc8] sm:$0xf] }
 0x15a   :  { %5512 = vtanh.f32 %v6092_v11  ;;  %1629 = vmatpush.bf16.msrb.mxu2 %v4459_v13  ;;  %v4435_v17 = vor.u32 %v5302_v9, %v4434_v53  ;;  %v4439_v57 = vor.u32 %v5300_v10, %v4436_v56  ;;  %v5296_v59 = vld [vmem:[#allocation7 + $0xa4] sm:$0xf]  ;;  %v4419_v47 = vor.u32 %v5298_v6, %v4418_v46  ;;  %v4420_v0 = vld [vmem:[#allocation7 + $0xb0] sm:$0xf0]  ;;  %v4426_v3 = vld [vmem:[#allocation7 + $0xa8] sm:$0xf] }
 0x15b   :  { %1615 = vmatpush.bf16.msrb.mxu1 %v4455_v61  ;;  %1643 = vmatpush.bf16.msrb.mxu3 %v4463_v1  ;;  %v395_v61 = vadd.f32 %v5886_v22, %v5993_v5  ;;  %v4423_v55 = vor.u32 %v5296_v59, %v4420_v0  ;;  %v4402_v10 = vld [vmem:[#allocation7 + $0x80] sm:$0xf]  ;;  %v5293_v6 = vld [vmem:[#allocation7 + $0x8c] sm:$0xf]  ;;  %v4412_v59 = vld [vmem:[#allocation7 + $0x98] sm:$0xf0] }
 0x15c   :  { %1602 = vmatpush.bf16.msrb.mxu0 %v4435_v17  ;;  %v5292_v17 = vld [vmem:[#allocation7 + $0x84] sm:$0xf]  ;;  %v4415_v0 = vor.u32 %v5293_v6, %v4412_v59  ;;  %v4378_v6 = vld [vmem:[#allocation7 + $0x48] sm:$0xf] }
 0x15f   :  { %1616 = vmatpush.bf16.msrb.mxu1 %v4439_v57 }
 0x160   :  { %v5513_v14 = vpop.eup %5512  ;;  %1603 = vmatpush.bf16.msrb.mxu0 %v4419_v47 }
 0x161   :  { %v986_v8 = vmul.f32 %v5513_v14, %v975_v50  ;;  %v4443_v50 = vor.u32 %v5303_v18, %v4442_v63  ;;  %v4404_v63 = vld [vmem:[#allocation7 + $0x90] sm:$0xf0]  ;;  %v4410_v18 = vld [vmem:[#allocation7 + $0x88] sm:$0xf] }
 0x163   :  { %v1006_v16 = vpack.c.bf16 %v986_v8, %v985_v7  ;;  %v5301_v7 = vld [vmem:[#allocation7 + $0xcc] sm:$0xf]  ;;  %v4444_v8 = vld [vmem:[#allocation7 + $0xd8] sm:$0xf0]  ;;  %1630 = vmatpush.bf16.msrb.mxu2 %v4443_v50  ;;  %1617 = vmatpush.bf16.msrb.mxu1 %v4423_v55  ;;  %v4407_v50 = vor.u32 %v5292_v17, %v4404_v63  ;;  %v5288_v55 = vld [vmem:[#allocation7 + $0x64] sm:$0xf] }
 0x164   :  { %v4370_v17 = vld [vmem:[#allocation7 + $0x40] sm:$0xf] }
 0x165   :  { %1207 = vmatmul.bf16.vlgmr.msra.gmra.mxu0 %v1006_v16  ;;  %1221 = vmatmul.bf16.vlgmr.msra.gmra.mxu1 %v1006_v16 }
 0x166   :  { %1235 = vmatmul.bf16.vlgmr.msra.gmra.mxu2 %v1006_v16  ;;  %1249 = vmatmul.bf16.vlgmr.msra.gmra.mxu3 %v1006_v16  ;;  %v4447_v16 = vor.u32 %v5301_v7, %v4444_v8  ;;  %v5295_v7 = vld [vmem:[#allocation7 + $0x94] sm:$0xf0] }
 0x167   :  { %v4411_v46 = vor.u32 %v5295_v7, %v4410_v18  ;;  %1618 = vmatpush.bf16.msrb.mxu1 %v4407_v50 }
 0x168   :  { %1644 = vmatpush.bf16.msrb.mxu3 %v4447_v16 }
 0x1e2   :  { %v1208_v15 = vpop.f32.mrf.mxu0  ;;  %v1222_v54 = vpop.f32.mrf.mxu1 }
 0x1e3   :  { %v1255_v51 = vadd.f32 %v1208_v15, %v344_v43  ;;  %v1256_v12 = vadd.f32 %v1222_v54, %v393_v48  ;;  %v5299_v43 = vld [vmem:[#allocation7 + $0xb4] sm:$0xf0]  ;;  %v346_v48 = vadd.f32 %v5884_v21, %v5988_v2  ;;  %v5297_v15 = vld [vmem:[#allocation7 + $0xac] sm:$0xf]  ;;  %v4428_v54 = vld [vmem:[#allocation7 + $0xb8] sm:$0xf0] }
 0x1e4   :  { %v4427_v4 = vor.u32 %v5299_v43, %v4426_v3  ;;  %v5294_v21 = vld [vmem:[#allocation7 + $0x8c] sm:$0xf0]  ;;  %v4386_v3 = vld [vmem:[#allocation7 + $0x60] sm:$0xf] }
 0x1e5   :  { %v4330_v60 = vmul.f32 -1.442695, %v1255_v51  ;;  %v4332_v14 = vmul.f32 -1.442695, %v1256_v12  ;;  %v4431_v12 = vor.u32 %v5297_v15, %v4428_v54  ;;  %v4403_v22 = vor.u32 %v5294_v21, %v4402_v10  ;;  %v5290_v43 = vld [vmem:[#allocation7 + $0x6c] sm:$0xf0] }
 0x1e6   :  { %1631 = vmatpush.bf16.msrb.mxu2 %v4427_v4  ;;  %v4388_v4 = vld [vmem:[#allocation7 + $0x70] sm:$0xf0]  ;;  %v4394_v15 = vld [vmem:[#allocation7 + $0x68] sm:$0xf]  ;;  %v5291_v54 = vld [vmem:[#allocation7 + $0x74] sm:$0xf0] }
 0x1e7   :  { %5514 = vpow2.f32 %v4330_v60  ;;  %1645 = vmatpush.bf16.msrb.mxu3 %v4431_v12  ;;  %1604 = vmatpush.bf16.msrb.mxu0 %v4403_v22  ;;  %v5289_v12 = vld [vmem:[#allocation7 + $0x6c] sm:$0xf]  ;;  %v4391_v10 = vor.u32 %v5288_v55, %v4388_v4 }
 0x1e8   :  { %5516 = vpow2.f32 %v4332_v14 }
 0x1e9   :  { %v1250_v13 = vpop.f32.mrf.mxu3  ;;  %v1236_v47 = vpop.f32.mrf.mxu2  ;;  %1619 = vmatpush.bf16.msrb.mxu1 %v4391_v10  ;;  %v4356_v10 = vld [vmem:[#allocation7 + $0x30] sm:$0xf0] }
 0x1ea   :  { %v1258_v1 = vadd.f32 %v1250_v13, %v491_v62  ;;  %v1210_v51 = vpop.f32.mrf.mxu0  ;;  %v1224_v20 = vpop.f32.mrf.mxu1  ;;  %1632 = vmatpush.bf16.msrb.mxu2 %v4411_v46 }
 0x1eb   :  { %v1259_v53 = vadd.f32 %v1210_v51, %v346_v48  ;;  %v1260_v9 = vadd.f32 %v1224_v20, %v395_v61  ;;  %v442_v48 = vadd.f32 %v5880_v19, %v6013_v52  ;;  %v493_v61 = vadd.f32 %v5890_v24, %v6000_v58  ;;  %1646 = vmatpush.bf16.msrb.mxu3 %v4415_v0  ;;  %v5286_v24 = vld [vmem:[#allocation7 + $0x4c] sm:$0xf0] }
 0x1ec   :  { %v4334_v56 = vmul.f32 -1.442695, %v1258_v1  ;;  %v4387_v20 = vor.u32 %v5290_v43, %v4386_v3  ;;  %v4395_v19 = vor.u32 %v5291_v54, %v4394_v15  ;;  %v5287_v3 = vld [vmem:[#allocation7 + $0x54] sm:$0xf0]  ;;  %v5285_v43 = vld [vmem:[#allocation7 + $0x4c] sm:$0xf] }
 0x1ed   :  { %v5515_v60 = vpop.eup %5514  ;;  %v4331_v14 = vmul.f32 -1.442695, %v1259_v53  ;;  %v4333_v57 = vmul.f32 -1.442695, %v1260_v9  ;;  %v1257_v1 = vadd.f32 %v1236_v47, %v442_v48  ;;  %v4396_v53 = vld [vmem:[#allocation7 + $0x78] sm:$0xf0]  ;;  %v444_v47 = vadd.f32 %v5888_v23, %v6013_v52 }
 0x1ee   :  { %v5517_v8 = vpop.eup %5516  ;;  %v6114_v16 = vadd.f32 1.0, %v5515_v60  ;;  %5518 = vpow2.f32 %v4334_v56  ;;  %v4399_v21 = vor.u32 %v5289_v12, %v4396_v53  ;;  %v5284_v56 = vld [vmem:[#allocation7 + $0x44] sm:$0xf]  ;;  %1605 = vmatpush.bf16.msrb.mxu0 %v4387_v20  ;;  %v4371_v60 = vor.u32 %v5286_v24, %v4370_v17  ;;  %1633 = vmatpush.bf16.msrb.mxu2 %v4395_v19  ;;  %v4380_v48 = vld [vmem:[#allocation7 + $0x58] sm:$0xf0] }
 0x1ef   :  { %v6116_v62 = vadd.f32 1.0, %v5517_v8  ;;  %5520 = vpow2.f32 %v4331_v14  ;;  %v4372_v14 = vld [vmem:[#allocation7 + $0x50] sm:$0xf0]  ;;  %v4379_v12 = vor.u32 %v5287_v3, %v4378_v6  ;;  %v4383_v53 = vor.u32 %v5285_v43, %v4380_v48  ;;  %v5283_v17 = vld [vmem:[#allocation7 + $0x34] sm:$0xf0] }
 0x1f0   :  { %5522 = vrcp.f32 %v6114_v16  ;;  %v1280_v63 = vand.u32 2147483647, %v6114_v16  ;;  %v1282_v50 = vand.u32 2147483648, %v6114_v16  ;;  %v4375_v46 = vor.u32 %v5284_v56, %v4372_v14  ;;  %1647 = vmatpush.bf16.msrb.mxu3 %v4399_v21  ;;  %v4362_v21 = vld [vmem:[#allocation7 + $0x28] sm:$0xf] }
 0x1f1   :  { %5524 = vrcp.f32 %v6116_v62  ;;  %v1252_v13 = vpop.f32.mrf.mxu3  ;;  %v1320_v55 = vand.u32 2147483648, %v6116_v62  ;;  %v1318_v4 = vand.u32 2147483647, %v6116_v62  ;;  %vm1276_vm8 = vweird.f32 %v6114_v16  ;;  %v1238_v54 = vpop.f32.mrf.mxu2  ;;  %v4364_v14 = vld [vmem:[#allocation7 + $0x38] sm:$0xf0] }
 0x1f2   :  { %5526 = vpow2.f32 %v4333_v57  ;;  %v1262_v51 = vadd.f32 %v1252_v13, %v493_v61  ;;  %1606 = vmatpush.bf16.msrb.mxu0 %v4371_v60  ;;  %1620 = vmatpush.bf16.msrb.mxu1 %v4375_v46  ;;  %vm1314_vm9 = vweird.f32 %v6116_v62  ;;  %vm6153_vm12 = vcmp.eq.f32.partialorder %v1280_v63, 8.507059e+37  ;;  %v5281_v60 = vld [vmem:[#allocation7 + $0x2c] sm:$0xf]  ;;  %v4338_v43 = vld [vmem:[#allocation7] sm:$0xf] }
 0x1f3   :  { %5528 = vtanh.f32 %v1257_v1  ;;  %v4354_v1 = vld [vmem:[#allocation7 + $0x20] sm:$0xf]  ;;  %1634 = vmatpush.bf16.msrb.mxu2 %v4379_v12  ;;  %v1283_v6 = vor.u32 1.1754944e-38, %v1282_v50  ;;  %v5278_v48 = vld [vmem:[#allocation7 + $0xc] sm:$0xf0]  ;;  %vm6165_vm14 = vcmp.eq.f32.partialorder %v1318_v4, 8.507059e+37 }
 0x1f4   :  { %v5519_v9 = vpop.eup %5518  ;;  %v4335_v8 = vmul.f32 -1.442695, %v1262_v51  ;;  %v5282_v51 = vld [vmem:[#allocation7 + $0x2c] sm:$0xf0]  ;;  %1648 = vmatpush.bf16.msrb.mxu3 %v4383_v53  ;;  %v4340_v53 = vld [vmem:[#allocation7 + $0x10] sm:$0xf0] }
 0x1f5   :  { %v5521_v22 = vpop.eup %5520  ;;  %v6125_v18 = vadd.f32 1.0, %v5519_v9  ;;  %v5280_v9 = vld [vmem:[#allocation7 + $0x24] sm:$0xf]  ;;  %v5277_v56 = vld [vmem:[#allocation7 + $0xc] sm:$0xf] }
 0x1f6   :  { %v6127_v57 = vpop.eup %5522  ;;  %v6130_v7 = vadd.f32 1.0, %v5521_v22  ;;  %v1261_v22 = vadd.f32 %v1238_v54, %v444_v47  ;;  %v4359_v3 = vor.u32 %v5280_v9, %v4356_v10  ;;  %v4346_v9 = vld [vmem:[#allocation7 + $0x8] sm:$0xf]  ;;  %v5279_v10 = vld [vmem:[#allocation7 + $0x14] sm:$0xf0] }
 0x1f7   :  { %v6132_v59 = vpop.eup %5524  ;;  %v1272_v0 = vmul.f32 %v6127_v57, %v6114_v16  ;;  %vm1277_vm10 = vweird.f32 %v6127_v57 }
 0x1f8   :  { %v5527_v61 = vpop.eup %5526  ;;  %v1310_v13 = vmul.f32 %v6132_v59, %v6116_v62  ;;  %5530 = vrcp.f32 %v6130_v7  ;;  %vm1315_vm11 = vweird.f32 %v6132_v59  ;;  %vm1278_vm13 = vmor %vm1276_vm8, %vm1277_vm10  ;;  %v1295_v4 = vand.u32 2147483647, %v6130_v7  ;;  %1621 = vmatpush.bf16.msrb.mxu1 %v4359_v3 }
 0x1f9   :  { %v1273_v15 = vsub.f32 1.0, %v1272_v0  ;;  %5532 = vrcp.f32 %v6125_v18  ;;  %v6145_v23 = vadd.f32 1.0, %v5527_v61  ;;  %v4355_v0 = vor.u32 %v5282_v51, %v4354_v1  ;;  %vm6175_vm15 = vmor %vm1314_vm9, %vm1315_vm11  ;;  %v5276_v51 = vld [vmem:[#allocation7 + $0x4] sm:$0xf] }
 0x1fa   :  { %v1311_v20 = vsub.f32 1.0, %v1310_v13  ;;  %5534 = vpow2.f32 %v4335_v8  ;;  %v5529_v8 = vpop.eup %5528  ;;  %v1321_v13 = vor.u32 1.1754944e-38, %v1320_v55  ;;  %v4367_v1 = vor.u32 %v5281_v60, %v4364_v14  ;;  %v4348_v14 = vld [vmem:[#allocation7 + $0x18] sm:$0xf0] }
 0x1fb   :  { %v1274_v19 = vmul.f32 %v6127_v57, %v1273_v15  ;;  %5536 = vrcp.f32 %v6145_v23  ;;  %v4363_v15 = vor.u32 %v5283_v17, %v4362_v21  ;;  %1607 = vmatpush.bf16.msrb.mxu0 %v4355_v0  ;;  %vm1291_vm1 = vweird.f32 %v6130_v7 }
 0x1fc   :  { %v1312_v24 = vmul.f32 %v6132_v59, %v1311_v20  ;;  %5538 = vtanh.f32 %v1261_v22  ;;  %1649 = vmatpush.bf16.msrb.mxu3 %v4367_v1  ;;  %vm1296_vm4 = vcmp.eq.f32.partialorder %v1295_v4, 8.507059e+37  ;;  %vm1329_vm5 = vweird.f32 %v6145_v23 }
 0x1fd   :  { %v1275_v46 = vadd.f32 %v6127_v57, %v1274_v19  ;;  %1635 = vmatpush.bf16.msrb.mxu2 %v4363_v15  ;;  %vm1354_vm9 = vweird.f32 %v6125_v18 }
 0x1fe   :  { %v6158_v61 = vpop.eup %5530  ;;  %v1313_v63 = vadd.f32 %v6132_v59, %v1312_v24 }
 0x1ff   :  { %v6169_v50 = vpop.eup %5532  ;;  %v1279_v16 = vsel %vm1278_vm13, %v6127_v57, %v1275_v46  ;;  %v1287_v54 = vmul.f32 %v6158_v61, %v6130_v7  ;;  %v4339_v57 = vor.u32 %v5278_v48, %v4338_v43  ;;  %vm1292_vm0 = vweird.f32 %v6158_v61 }
 0x200   :  { %v5535_v20 = vpop.eup %5534  ;;  %v1284_v12 = vsel %vm6153_vm12, %v1283_v6, %v1279_v16  ;;  %v1317_v62 = vsel %vm6175_vm15, %v6132_v59, %v1313_v63  ;;  %v1350_v59 = vmul.f32 %v6169_v50, %v6125_v18  ;;  %v1297_v6 = vand.u32 2147483648, %v6130_v7  ;;  %vm1293_vm3 = vmor %vm1291_vm1, %vm1292_vm0 }
 0x201   :  { %v5537_v19 = vpop.eup %5536  ;;  %v1322_v21 = vsel %vm6165_vm14, %v1321_v13, %v1317_v62  ;;  %v1381_v17 = vmul.f32 %v5529_v8, %v1284_v12  ;;  %v1288_v24 = vsub.f32 1.0, %v1287_v54  ;;  %v6190_v60 = vadd.f32 1.0, %v5535_v20  ;;  %1608 = vmatpush.bf16.msrb.mxu0 %v4339_v57 }
 0x202   :  { %v1379_v46 = vmul.f32 %v1322_v21, %v6079_v49  ;;  %v1325_v22 = vmul.f32 %v5537_v19, %v6145_v23  ;;  %v4343_v8 = vor.u32 %v5276_v51, %v4340_v53  ;;  %v4347_v48 = vor.u32 %v5279_v10, %v4346_v9  ;;  %v5539_v47 = vpop.eup %5538 }
 0x203   :  { %v1289_v0 = vmul.f32 %v6158_v61, %v1288_v24  ;;  %5540 = vrcp.f32 %v6190_v60  ;;  %v4351_v49 = vor.u32 %v5277_v56, %v4348_v14  ;;  %v1335_v13 = vand.u32 2147483648, %v6145_v23 }
 0x204   :  { %v6200_v3 = vadd.f32 %v1381_v17, %v1379_v46  ;;  %v1326_v43 = vsub.f32 1.0, %v1325_v22  ;;  %1622 = vmatpush.bf16.msrb.mxu1 %v4343_v8  ;;  %vm1330_vm2 = vweird.f32 %v5537_v19  ;;  %v1298_v55 = vor.u32 1.1754944e-38, %v1297_v6  ;;  %1636 = vmatpush.bf16.msrb.mxu2 %v4347_v48 }
 0x205   :  { %v1290_v63 = vadd.f32 %v6158_v61, %v1289_v0  ;;  %v1333_v16 = vand.u32 2147483647, %v6145_v23  ;;  %1650 = vmatpush.bf16.msrb.mxu3 %v4351_v49  ;;  %v1351_v54 = vsub.f32 1.0, %v1350_v59  ;;  %vm1331_vm6 = vmor %vm1329_vm5, %vm1330_vm2  ;;  %v1336_v12 = vor.u32 1.1754944e-38, %v1335_v13 }
 0x206   :  { %v1327_v15 = vmul.f32 %v5537_v19, %v1326_v43  ;;  %5542 = vtanh.f32 %v6200_v3  ;;  %vm1355_vm8 = vweird.f32 %v6169_v50  ;;  %vm1369_vm11 = vweird.f32 %v6190_v60 }
 0x207   :  { %v1294_v1 = vsel %vm1293_vm3, %v6158_v61, %v1290_v63  ;;  %vm1334_vm7 = vcmp.eq.f32.partialorder %v1333_v16, 8.507059e+37  ;;  %v1352_v9 = vmul.f32 %v6169_v50, %v1351_v54  ;;  %vm1356_vm12 = vmor %vm1354_vm9, %vm1355_vm8  ;;  %v1358_v56 = vand.u32 2147483647, %v6125_v18  ;;  %v4584_v16 = vld [vmem:[#allocation7 + $0xe0] sm:$0xf] }
 0x208   :  { %v1299_v51 = vsel %vm1296_vm4, %v1298_v55, %v1294_v1  ;;  %v1328_v7 = vadd.f32 %v5537_v19, %v1327_v15  ;;  %v1373_v14 = vand.u32 2147483647, %v6190_v60  ;;  %v5338_v54 = vld [vmem:[#allocation7 + $0xec] sm:$0xf0]  ;;  %v5336_v1 = vld [vmem:[#allocation7 + $0xe4] sm:$0xf] }
 0x209   :  { %v5541_v20 = vpop.eup %5540  ;;  %v1382_v57 = vmul.f32 %v5539_v47, %v1299_v51  ;;  %v1353_v4 = vadd.f32 %v6169_v50, %v1352_v9  ;;  %vm1359_vm14 = vcmp.eq.f32.partialorder %v1358_v56, 8.507059e+37  ;;  %v4585_v51 = vor.u32 %v5338_v54, %v4584_v16  ;;  %v5335_v56 = vld [vmem:[#allocation7 + $0xd4] sm:$0xf0] }
 0x20a   :  { %v1332_v62 = vsel %vm1331_vm6, %v5537_v19, %v1328_v7  ;;  %v1365_v53 = vmul.f32 %v5541_v20, %v6190_v60  ;;  %vm1370_vm10 = vweird.f32 %v5541_v20  ;;  %v1360_v19 = vand.u32 2147483648, %v6125_v18  ;;  %v4586_v7 = vld [vmem:[#allocation7 + $0xf0] sm:$0xf0] }
 0x20b   :  { %v1337_v10 = vsel %vm1334_vm7, %v1336_v12, %v1332_v62  ;;  %vm1371_vm13 = vmor %vm1369_vm11, %vm1370_vm10  ;;  %v1357_v46 = vsel %vm1356_vm12, %v6169_v50, %v1353_v4  ;;  %vm1374_vm15 = vcmp.eq.f32.partialorder %v1373_v14, 8.507059e+37  ;;  %v349_v18 = vadd.f32 %v5892_v25, %v5988_v2  ;;  %v5339_v12 = vld [vmem:[#allocation7 + $0xf4] sm:$0xf0]  ;;  %2003 = vmatpush.bf16.msra.mxu0 %v4585_v51  ;;  %v4594_v25 = vld [vmem:[#allocation7 + $0xf8] sm:$0xf0] }
 0x20c   :  { %v1380_v21 = vmul.f32 %v1337_v10, %v6092_v11  ;;  %v1366_v17 = vsub.f32 1.0, %v1365_v53  ;;  %v1375_v11 = vand.u32 2147483648, %v6190_v60  ;;  %v5543_v22 = vpop.eup %5542  ;;  %v1361_v6 = vor.u32 1.1754944e-38, %v1360_v19  ;;  %v5337_v10 = vld [vmem:[#allocation7 + $0xec] sm:$0xf] }
 0x20d   :  { %v398_v50 = vadd.f32 %v5894_v26, %v5993_v5  ;;  %v4589_v53 = vor.u32 %v5336_v1, %v4586_v7  ;;  %v4597_v26 = vor.u32 %v5337_v10, %v4594_v25  ;;  %v496_v4 = vadd.f32 %v5898_v28, %v6000_v58  ;;  %v5331_v51 = vld [vmem:[#allocation7 + $0xb4] sm:$0xf0]  ;;  %v4536_v25 = vld [vmem:[#allocation7 + $0x80] sm:$0xf] }
 0x20e   :  { %v6214_v61 = vadd.f32 %v1382_v57, %v1380_v21  ;;  %v1367_v23 = vmul.f32 %v5541_v20, %v1366_v17  ;;  %v1376_v0 = vor.u32 1.1754944e-38, %v1375_v11  ;;  %v1362_v43 = vsel %vm1359_vm14, %v1361_v6, %v1357_v46  ;;  %v4568_v21 = vld [vmem:[#allocation7 + $0xc0] sm:$0xf]  ;;  %v5334_v17 = vld [vmem:[#allocation7 + $0xcc] sm:$0xf0] }
 0x20f   :  { %v1387_v49 = vmul.f32 %v5543_v22, %v1362_v43  ;;  %2017 = vmatpush.bf16.msra.mxu1 %v4589_v53  ;;  %v4569_v19 = vor.u32 %v5334_v17, %v4568_v21  ;;  %v4576_v11 = vld [vmem:[#allocation7 + $0xc8] sm:$0xf]  ;;  %v351_v14 = vadd.f32 %v5900_v29, %v5988_v2  ;;  %v400_v46 = vadd.f32 %v5902_v30, %v5993_v5  ;;  %v5330_v29 = vld [vmem:[#allocation7 + $0xac] sm:$0xf0] }
 0x210   :  { %5544 = vtanh.f32 %v6214_v61  ;;  %v1368_v24 = vadd.f32 %v5541_v20, %v1367_v23  ;;  %v5332_v23 = vld [vmem:[#allocation7 + $0xc4] sm:$0xf]  ;;  %2045 = vmatpush.bf16.msra.mxu3 %v4597_v26  ;;  %v4577_v6 = vor.u32 %v5335_v56, %v4576_v11  ;;  %v5326_v26 = vld [vmem:[#allocation7 + $0x8c] sm:$0xf0]  ;;  %v447_v21 = vadd.f32 %v5896_v27, %v6013_v52  ;;  %v5327_v11 = vld [vmem:[#allocation7 + $0x94] sm:$0xf0] }
 0x211   :  { %2004 = vmatpush.bf16.msra.mxu0 %v4569_v19  ;;  %v498_v17 = vadd.f32 %v5906_v32, %v6000_v58  ;;  %v4538_v19 = vld [vmem:[#allocation7 + $0x90] sm:$0xf0]  ;;  %v449_v32 = vadd.f32 %v5904_v31, %v6013_v52 }
 0x212   :  { %v1372_v59 = vsel %vm1371_vm13, %v5541_v20, %v1368_v24  ;;  %v4592_v20 = vld [vmem:[#allocation7 + $0xe8] sm:$0xf]  ;;  %v4570_v24 = vld [vmem:[#allocation7 + $0xd0] sm:$0xf0] }
 0x213   :  { %v1377_v48 = vsel %vm1374_vm15, %v1376_v0, %v1372_v59  ;;  %v4593_v9 = vor.u32 %v5339_v12, %v4592_v20  ;;  %v4573_v22 = vor.u32 %v5332_v23, %v4570_v24  ;;  %v5333_v0 = vld [vmem:[#allocation7 + $0xcc] sm:$0xf]  ;;  %v4544_v24 = vld [vmem:[#allocation7 + $0x88] sm:$0xf] }
 0x215   :  { %2031 = vmatpush.bf16.msra.mxu2 %v4593_v9  ;;  %2018 = vmatpush.bf16.msra.mxu1 %v4573_v22  ;;  %v5325_v22 = vld [vmem:[#allocation7 + $0x8c] sm:$0xf] }
 0x216   :  { %v5545_v8 = vpop.eup %5544 }
 0x217   :  { %v1388_v13 = vmul.f32 %v5545_v8, %v1377_v48  ;;  %v4578_v8 = vld [vmem:[#allocation7 + $0xd8] sm:$0xf0] }
 0x219   :  { %v1408_v63 = vpack.c.bf16 %v1388_v13, %v1387_v49  ;;  %v4581_v49 = vor.u32 %v5333_v0, %v4578_v8  ;;  %2032 = vmatpush.bf16.msra.mxu2 %v4577_v6  ;;  %v4546_v6 = vld [vmem:[#allocation7 + $0x98] sm:$0xf0]  ;;  %v4545_v8 = vor.u32 %v5327_v11, %v4544_v24  ;;  %v5316_v11 = vld [vmem:[#allocation7 + $0x44] sm:$0xf] }
 0x21b   :  { %1609 = vmatmul.bf16.vlgmr.msrb.gmra.mxu0 %v1408_v63  ;;  %1623 = vmatmul.bf16.vlgmr.msrb.gmra.mxu1 %v1408_v63 }
 0x21c   :  { %1637 = vmatmul.bf16.vlgmr.msrb.gmra.mxu2 %v1408_v63  ;;  %1651 = vmatmul.bf16.vlgmr.msrb.gmra.mxu3 %v1408_v63 }
 0x21d   :  { %2046 = vmatpush.bf16.msra.mxu3 %v4581_v49  ;;  %v5320_v49 = vld [vmem:[#allocation7 + $0x64] sm:$0xf] }
 0x298   :  { %v1610_v60 = vpop.f32.mrf.mxu0  ;;  %v1624_v47 = vpop.f32.mrf.mxu1 }
 0x299   :  { %v1657_v15 = vadd.f32 %v1610_v60, %v349_v18  ;;  %v1658_v55 = vadd.f32 %v1624_v47, %v398_v50  ;;  %v4552_v18 = vld [vmem:[#allocation7 + $0xa0] sm:$0xf]  ;;  %v5328_v50 = vld [vmem:[#allocation7 + $0xa4] sm:$0xf]  ;;  %v4554_v47 = vld [vmem:[#allocation7 + $0xb0] sm:$0xf0] }
 0x29a   :  { %v4553_v30 = vor.u32 %v5330_v29, %v4552_v18  ;;  %v4557_v1 = vor.u32 %v5328_v50, %v4554_v47 }
 0x29b   :  { %v4464_v62 = vmul.f32 -1.442695, %v1657_v15  ;;  %v4466_v57 = vmul.f32 -1.442695, %v1658_v55  ;;  %v4560_v15 = vld [vmem:[#allocation7 + $0xa8] sm:$0xf] }
 0x29c   :  { %2005 = vmatpush.bf16.msra.mxu0 %v4553_v30  ;;  %v4561_v12 = vor.u32 %v5331_v51, %v4560_v15  ;;  %2019 = vmatpush.bf16.msra.mxu1 %v4557_v1  ;;  %v5323_v51 = vld [vmem:[#allocation7 + $0x74] sm:$0xf0] }
 0x29d   :  { %5546 = vpow2.f32 %v4464_v62  ;;  %v5329_v62 = vld [vmem:[#allocation7 + $0xac] sm:$0xf] }
 0x29e   :  { %5548 = vpow2.f32 %v4466_v57  ;;  %v4562_v57 = vld [vmem:[#allocation7 + $0xb8] sm:$0xf0]  ;;  %2033 = vmatpush.bf16.msra.mxu2 %v4561_v12 }
 0x29f   :  { %v1652_v59 = vpop.f32.mrf.mxu3  ;;  %v1638_v9 = vpop.f32.mrf.mxu2  ;;  %v4565_v10 = vor.u32 %v5329_v62, %v4562_v57  ;;  %v4530_v12 = vld [vmem:[#allocation7 + $0x78] sm:$0xf0] }
 0x2a0   :  { %v1660_v43 = vadd.f32 %v1652_v59, %v496_v4  ;;  %v1612_v48 = vpop.f32.mrf.mxu0  ;;  %v1626_v28 = vpop.f32.mrf.mxu1  ;;  %v5324_v4 = vld [vmem:[#allocation7 + $0x84] sm:$0xf]  ;;  %v1659_v56 = vadd.f32 %v1638_v9, %v447_v21  ;;  %v4537_v59 = vor.u32 %v5326_v26, %v4536_v25  ;;  %v4472_v9 = vld [vmem:[#allocation7] sm:$0xf] }
 0x2a1   :  { %v1661_v13 = vadd.f32 %v1612_v48, %v351_v14  ;;  %v1662_v63 = vadd.f32 %v1626_v28, %v400_v46  ;;  %2047 = vmatpush.bf16.msra.mxu3 %v4565_v10  ;;  %v4541_v0 = vor.u32 %v5324_v4, %v4538_v19  ;;  %v4520_v48 = vld [vmem:[#allocation7 + $0x60] sm:$0xf]  ;;  %v5322_v28 = vld [vmem:[#allocation7 + $0x6c] sm:$0xf0] }
 0x2a2   :  { %v4468_v60 = vmul.f32 -1.442695, %v1660_v43  ;;  %v4549_v43 = vor.u32 %v5325_v22, %v4546_v6  ;;  %2006 = vmatpush.bf16.msra.mxu0 %v4537_v59  ;;  %v4521_v50 = vor.u32 %v5322_v28, %v4520_v48  ;;  %2034 = vmatpush.bf16.msra.mxu2 %v4545_v8  ;;  %v4504_v10 = vld [vmem:[#allocation7 + $0x40] sm:$0xf]  ;;  %v4512_v59 = vld [vmem:[#allocation7 + $0x48] sm:$0xf] }
 0x2a3   :  { %v5547_v55 = vpop.eup %5546  ;;  %v4465_v16 = vmul.f32 -1.442695, %v1661_v13  ;;  %v4467_v54 = vmul.f32 -1.442695, %v1662_v63  ;;  %2020 = vmatpush.bf16.msra.mxu1 %v4541_v0  ;;  %v5319_v22 = vld [vmem:[#allocation7 + $0x54] sm:$0xf0] }
 0x2a4   :  { %v5549_v7 = vpop.eup %5548  ;;  %v6236_v20 = vadd.f32 1.0, %v5547_v55  ;;  %5550 = vpow2.f32 %v4468_v60  ;;  %v4522_v60 = vld [vmem:[#allocation7 + $0x70] sm:$0xf0]  ;;  %v4514_v48 = vld [vmem:[#allocation7 + $0x58] sm:$0xf0] }
 0x2a5   :  { %v6238_v53 = vadd.f32 1.0, %v5549_v7  ;;  %5552 = vpow2.f32 %v4465_v16  ;;  %v4525_v55 = vor.u32 %v5320_v49, %v4522_v60  ;;  %v4528_v16 = vld [vmem:[#allocation7 + $0x68] sm:$0xf]  ;;  %2048 = vmatpush.bf16.msra.mxu3 %v4549_v43  ;;  %v5321_v7 = vld [vmem:[#allocation7 + $0x6c] sm:$0xf] }
 0x2a6   :  { %5554 = vrcp.f32 %v6236_v20  ;;  %v1682_v14 = vand.u32 2147483647, %v6236_v20  ;;  %v1684_v63 = vand.u32 2147483648, %v6236_v20  ;;  %vm1678_vm1 = vweird.f32 %v6236_v20  ;;  %2007 = vmatpush.bf16.msra.mxu0 %v4521_v50  ;;  %v5317_v43 = vld [vmem:[#allocation7 + $0x4c] sm:$0xf] }
 0x2a7   :  { %5556 = vrcp.f32 %v6238_v53  ;;  %v1654_v23 = vpop.f32.mrf.mxu3  ;;  %v1720_v18 = vand.u32 2147483647, %v6238_v53  ;;  %v1722_v31 = vand.u32 2147483648, %v6238_v53  ;;  %vm1716_vm0 = vweird.f32 %v6238_v53  ;;  %v1640_v21 = vpop.f32.mrf.mxu2  ;;  %2021 = vmatpush.bf16.msra.mxu1 %v4525_v55  ;;  %v5314_v60 = vld [vmem:[#allocation7 + $0x2c] sm:$0xf0] }
 0x2a8   :  { %5558 = vpow2.f32 %v4467_v54  ;;  %v1664_v46 = vadd.f32 %v1654_v23, %v498_v17  ;;  %vm6267_vm3 = vcmp.eq.f32.partialorder %v1682_v14, 8.507059e+37  ;;  %v5318_v23 = vld [vmem:[#allocation7 + $0x4c] sm:$0xf0]  ;;  %v4529_v19 = vor.u32 %v5323_v51, %v4528_v16  ;;  %v4480_v0 = vld [vmem:[#allocation7 + $0x8] sm:$0xf] }
 0x2a9   :  { %5560 = vtanh.f32 %v1659_v56  ;;  %v4533_v24 = vor.u32 %v5321_v7, %v4530_v12  ;;  %v4506_v56 = vld [vmem:[#allocation7 + $0x50] sm:$0xf0]  ;;  %vm6280_vm5 = vcmp.eq.f32.partialorder %v1720_v18, 8.507059e+37  ;;  %v1663_v8 = vadd.f32 %v1640_v21, %v449_v32  ;;  %v4488_v32 = vld [vmem:[#allocation7 + $0x20] sm:$0xf] }
 0x2aa   :  { %v5551_v27 = vpop.eup %5550  ;;  %v4469_v15 = vmul.f32 -1.442695, %v1664_v46  ;;  %v1685_v46 = vor.u32 1.1754944e-38, %v1684_v63  ;;  %2035 = vmatpush.bf16.msra.mxu2 %v4529_v19  ;;  %v4505_v18 = vor.u32 %v5318_v23, %v4504_v10  ;;  %v4509_v50 = vor.u32 %v5316_v11, %v4506_v56  ;;  %v4496_v10 = vld [vmem:[#allocation7 + $0x28] sm:$0xf] }
 0x2ab   :  { %v5553_v13 = vpop.eup %5552  ;;  %v6251_v29 = vadd.f32 1.0, %v5551_v27  ;;  %v1723_v27 = vor.u32 1.1754944e-38, %v1722_v31  ;;  %2049 = vmatpush.bf16.msra.mxu3 %v4533_v24  ;;  %v4517_v12 = vor.u32 %v5317_v43, %v4514_v48  ;;  %v5315_v23 = vld [vmem:[#allocation7 + $0x34] sm:$0xf0]  ;;  %v4498_v19 = vld [vmem:[#allocation7 + $0x38] sm:$0xf0] }
 0x2ac   :  { %v6253_v30 = vpop.eup %5554  ;;  %v6256_v47 = vadd.f32 1.0, %v5553_v13  ;;  %2008 = vmatpush.bf16.msra.mxu0 %v4505_v18  ;;  %2022 = vmatpush.bf16.msra.mxu1 %v4509_v50  ;;  %v4474_v43 = vld [vmem:[#allocation7 + $0x10] sm:$0xf0]  ;;  %v4497_v50 = vor.u32 %v5315_v23, %v4496_v10 }
 0x2ad   :  { %v6258_v54 = vpop.eup %5556  ;;  %v1674_v1 = vmul.f32 %v6253_v30, %v6236_v20  ;;  %vm1679_vm2 = vweird.f32 %v6253_v30 }
 0x2ae   :  { %v5559_v62 = vpop.eup %5558  ;;  %v1712_v57 = vmul.f32 %v6258_v54, %v6238_v53  ;;  %5562 = vrcp.f32 %v6256_v47  ;;  %v1699_v17 = vand.u32 2147483648, %v6256_v47  ;;  %vm1717_vm4 = vweird.f32 %v6258_v54  ;;  %vm6289_vm6 = vmor %vm1678_vm1, %vm1679_vm2 }
 0x2af   :  { %v1675_v25 = vsub.f32 1.0, %v1674_v1  ;;  %5564 = vrcp.f32 %v6251_v29  ;;  %v6273_v26 = vadd.f32 1.0, %v5559_v62  ;;  %v5561_v28 = vpop.eup %5560  ;;  %v1697_v63 = vand.u32 2147483647, %v6256_v47  ;;  %vm6300_vm7 = vmor %vm1716_vm0, %vm1717_vm4  ;;  %v5312_v62 = vld [vmem:[#allocation7 + $0x24] sm:$0xf]  ;;  %2050 = vmatpush.bf16.msra.mxu3 %v4517_v12 }
 0x2b0   :  { %v1713_v4 = vsub.f32 1.0, %v1712_v57  ;;  %5566 = vpow2.f32 %v4469_v15  ;;  %v6306_v16 = vor.u32 1.1754944e-38, %v1699_v17  ;;  %v4513_v1 = vor.u32 %v5319_v22, %v4512_v59  ;;  %v4490_v57 = vld [vmem:[#allocation7 + $0x30] sm:$0xf0] }
 0x2b1   :  { %v1676_v14 = vmul.f32 %v6253_v30, %v1675_v25  ;;  %5568 = vrcp.f32 %v6273_v26  ;;  %v1737_v55 = vand.u32 2147483648, %v6273_v26  ;;  %vm1693_vm8 = vweird.f32 %v6256_v47 }
 0x2b2   :  { %v1714_v6 = vmul.f32 %v6258_v54, %v1713_v4  ;;  %5570 = vtanh.f32 %v1663_v8  ;;  %2036 = vmatpush.bf16.msra.mxu2 %v4513_v1  ;;  %v5313_v4 = vld [vmem:[#allocation7 + $0x2c] sm:$0xf]  ;;  %v5308_v8 = vld [vmem:[#allocation7 + $0x4] sm:$0xf]  ;;  %v4493_v48 = vor.u32 %v5312_v62, %v4490_v57  ;;  %v1735_v15 = vand.u32 2147483647, %v6273_v26 }
 0x2b3   :  { %v1677_v49 = vadd.f32 %v6253_v30, %v1676_v14  ;;  %v4477_v1 = vor.u32 %v5308_v8, %v4474_v43  ;;  %vm1698_vm12 = vcmp.eq.f32.partialorder %v1697_v63, 8.507059e+37  ;;  %vm1731_vm13 = vweird.f32 %v6273_v26 }
 0x2b4   :  { %v6294_v31 = vpop.eup %5562  ;;  %v1715_v20 = vadd.f32 %v6258_v54, %v1714_v6  ;;  %2023 = vmatpush.bf16.msra.mxu1 %v4493_v48  ;;  %vm1736_vm15 = vcmp.eq.f32.partialorder %v1735_v15, 8.507059e+37  ;;  %vm1756_vm1 = vweird.f32 %v6251_v29  ;;  %v5368_v15 = vld [vmem:[#allocation7 + $0xe4] sm:$0xf] }
 0x2b5   :  { %v6308_v51 = vpop.eup %5564  ;;  %v1681_v7 = vsel %vm6289_vm6, %v6253_v30, %v1677_v49  ;;  %v1689_v53 = vmul.f32 %v6294_v31, %v6256_v47  ;;  %v4489_v30 = vor.u32 %v5314_v60, %v4488_v32  ;;  %vm1694_vm9 = vweird.f32 %v6294_v31  ;;  %v4482_v49 = vld [vmem:[#allocation7 + $0x18] sm:$0xf0] }
 0x2b6   :  { %v5567_v25 = vpop.eup %5566  ;;  %v1686_v21 = vsel %vm6267_vm3, %v1685_v46, %v1681_v7  ;;  %v1719_v17 = vsel %vm6300_vm7, %v6258_v54, %v1715_v20  ;;  %v5310_v46 = vld [vmem:[#allocation7 + $0xc] sm:$0xf0]  ;;  %v1752_v54 = vmul.f32 %v6308_v51, %v6251_v29  ;;  %v4501_v32 = vor.u32 %v5313_v4, %v4498_v19  ;;  %vm1695_vm11 = vmor %vm1693_vm8, %vm1694_vm9  ;;  %2037 = vmatpush.bf16.msra.mxu2 %v4497_v50 }
 0x2b7   :  { %v5569_v24 = vpop.eup %5568  ;;  %v1724_v11 = vsel %vm6280_vm5, %v1723_v27, %v1719_v17  ;;  %v1783_v56 = vmul.f32 %v5561_v28, %v1686_v21  ;;  %v1690_v14 = vsub.f32 1.0, %v1689_v53  ;;  %v6322_v59 = vadd.f32 1.0, %v5567_v25  ;;  %2009 = vmatpush.bf16.msra.mxu0 %v4489_v30  ;;  %v5311_v28 = vld [vmem:[#allocation7 + $0x14] sm:$0xf0] }
 0x2b8   :  { %v1781_v22 = vmul.f32 %v1724_v11, %v6200_v3  ;;  %v1727_v6 = vmul.f32 %v5569_v24, %v6273_v26  ;;  %v5309_v3 = vld [vmem:[#allocation7 + $0xc] sm:$0xf]  ;;  %v4473_v20 = vor.u32 %v5310_v46, %v4472_v9  ;;  %v5571_v7 = vpop.eup %5570  ;;  %vm1732_vm10 = vweird.f32 %v5569_v24  ;;  %2051 = vmatpush.bf16.msra.mxu3 %v4501_v32  ;;  %2024 = vmatpush.bf16.msra.mxu1 %v4477_v1  ;;  %v4718_v32 = vld [vmem:[#allocation7 + $0xe0] sm:$0xf] }
 0x2b9   :  { %v1691_v27 = vmul.f32 %v6294_v31, %v1690_v14  ;;  %5572 = vrcp.f32 %v6322_v59  ;;  %v4481_v12 = vor.u32 %v5311_v28, %v4480_v0  ;;  %v4485_v62 = vor.u32 %v5309_v3, %v4482_v49  ;;  %vm1733_vm14 = vmor %vm1731_vm13, %vm1732_vm10 }
 0x2ba   :  { %v6332_v13 = vadd.f32 %v1783_v56, %v1781_v22  ;;  %v1728_v18 = vsub.f32 1.0, %v1727_v6  ;;  %v1753_v57 = vsub.f32 1.0, %v1752_v54  ;;  %v1738_v30 = vor.u32 1.1754944e-38, %v1737_v55 }
 0x2bb   :  { %v1692_v60 = vadd.f32 %v6294_v31, %v1691_v27  ;;  %2010 = vmatpush.bf16.msra.mxu0 %v4473_v20  ;;  %2038 = vmatpush.bf16.msra.mxu2 %v4481_v12  ;;  %vm1757_vm0 = vweird.f32 %v6308_v51  ;;  %vm1771_vm3 = vweird.f32 %v6322_v59  ;;  %v1760_v14 = vand.u32 2147483647, %v6251_v29 }
 0x2bc   :  { %v1729_v53 = vmul.f32 %v5569_v24, %v1728_v18  ;;  %2052 = vmatpush.bf16.msra.mxu3 %v4485_v62  ;;  %v1754_v47 = vmul.f32 %v6308_v51, %v1753_v57  ;;  %5574 = vtanh.f32 %v6332_v13  ;;  %vm1758_vm4 = vmor %vm1756_vm1, %vm1757_vm0  ;;  %v1775_v9 = vand.u32 2147483647, %v6322_v59  ;;  %v4726_v62 = vld [vmem:[#allocation7 + $0xe8] sm:$0xf]  ;;  %v5371_v57 = vld [vmem:[#allocation7 + $0xf4] sm:$0xf0] }
 0x2bd   :  { %v1696_v10 = vsel %vm1695_vm11, %v6294_v31, %v1692_v60  ;;  %vm1761_vm6 = vcmp.eq.f32.partialorder %v1760_v14, 8.507059e+37  ;;  %v5370_v60 = vld [vmem:[#allocation7 + $0xec] sm:$0xf0]  ;;  %v5365_v14 = vld [vmem:[#allocation7 + $0xcc] sm:$0xf] }
 0x2be   :  { %v1701_v25 = vsel %vm1698_vm12, %v6306_v16, %v1696_v10  ;;  %v1730_v21 = vadd.f32 %v5569_v24, %v1729_v53  ;;  %v1755_v55 = vadd.f32 %v6308_v51, %v1754_v47  ;;  %vm1776_vm7 = vcmp.eq.f32.partialorder %v1775_v9, 8.507059e+37  ;;  %v4720_v53 = vld [vmem:[#allocation7 + $0xf0] sm:$0xf0]  ;;  %v5369_v10 = vld [vmem:[#allocation7 + $0xec] sm:$0xf] }
 0x2bf   :  { %v5573_v17 = vpop.eup %5572  ;;  %v1784_v4 = vmul.f32 %v5571_v7, %v1701_v25  ;;  %v4719_v7 = vor.u32 %v5370_v60, %v4718_v32  ;;  %v4723_v12 = vor.u32 %v5368_v15, %v4720_v53  ;;  %v4728_v25 = vld [vmem:[#allocation7 + $0xf8] sm:$0xf0]  ;;  %v5361_v32 = vld [vmem:[#allocation7 + $0xac] sm:$0xf]  ;;  %v4670_v15 = vld [vmem:[#allocation7 + $0x80] sm:$0xf] }
 0x2c0   :  { %v1734_v23 = vsel %vm1733_vm14, %v5569_v24, %v1730_v21  ;;  %v1767_v31 = vmul.f32 %v5573_v17, %v6322_v59  ;;  %vm1772_vm2 = vweird.f32 %v5573_v17  ;;  %v1762_v24 = vand.u32 2147483648, %v6251_v29  ;;  %v4712_v9 = vld [vmem:[#allocation7 + $0xd8] sm:$0xf0]  ;;  %v5356_v53 = vld [vmem:[#allocation7 + $0x84] sm:$0xf] }
 0x2c1   :  { %v1739_v63 = vsel %vm1736_vm15, %v1738_v30, %v1734_v23  ;;  %vm1773_vm5 = vmor %vm1771_vm3, %vm1772_vm2  ;;  %v1759_v46 = vsel %vm1758_vm4, %v6308_v51, %v1755_v55  ;;  %v354_v29 = vadd.f32 %v5908_v33, %v5988_v2  ;;  %v403_v51 = vadd.f32 %v5910_v34, %v5993_v5  ;;  %2405 = vmatpush.bf16.msrb.mxu0 %v4719_v7  ;;  %v5366_v30 = vld [vmem:[#allocation7 + $0xcc] sm:$0xf0]  ;;  %v5364_v23 = vld [vmem:[#allocation7 + $0xc4] sm:$0xf] }
 0x2c2   :  { %v1782_v19 = vmul.f32 %v1739_v63, %v6214_v61  ;;  %v1768_v16 = vsub.f32 1.0, %v1767_v31  ;;  %v1777_v61 = vand.u32 2147483648, %v6322_v59  ;;  %v5575_v54 = vpop.eup %5574  ;;  %v1763_v6 = vor.u32 1.1754944e-38, %v1762_v24  ;;  %2419 = vmatpush.bf16.msrb.mxu1 %v4723_v12  ;;  %v4696_v60 = vld [vmem:[#allocation7 + $0xb8] sm:$0xf0] }
 0x2c3   :  { %v4727_v33 = vor.u32 %v5371_v57, %v4726_v62  ;;  %v501_v34 = vadd.f32 %v5914_v36, %v6000_v58  ;;  %v4731_v21 = vor.u32 %v5369_v10, %v4728_v25  ;;  %v405_v31 = vadd.f32 %v5918_v38, %v5993_v5  ;;  %v4686_v38 = vld [vmem:[#allocation7 + $0xa0] sm:$0xf]  ;;  %v5358_v7 = vld [vmem:[#allocation7 + $0x8c] sm:$0xf0]  ;;  %v4672_v57 = vld [vmem:[#allocation7 + $0x90] sm:$0xf0] }
 0x2c4   :  { %v6351_v11 = vadd.f32 %v1784_v4, %v1782_v19  ;;  %v1769_v26 = vmul.f32 %v5573_v17, %v1768_v16  ;;  %v1778_v8 = vor.u32 1.1754944e-38, %v1777_v61  ;;  %v1764_v0 = vsel %vm1761_vm6, %v1763_v6, %v1759_v46  ;;  %v4704_v19 = vld [vmem:[#allocation7 + $0xd0] sm:$0xf0]  ;;  %v4710_v16 = vld [vmem:[#allocation7 + $0xc8] sm:$0xf] }
 0x2c5   :  { %v1789_v48 = vmul.f32 %v5575_v54, %v1764_v0  ;;  %v356_v4 = vadd.f32 %v5916_v37, %v5988_v2  ;;  %2433 = vmatpush.bf16.msrb.mxu2 %v4727_v33  ;;  %2447 = vmatpush.bf16.msrb.mxu3 %v4731_v21  ;;  %v4715_v37 = vor.u32 %v5365_v14, %v4712_v9  ;;  %v5362_v6 = vld [vmem:[#allocation7 + $0xac] sm:$0xf0]  ;;  %v4678_v10 = vld [vmem:[#allocation7 + $0x88] sm:$0xf] }
 0x2c6   :  { %5576 = vtanh.f32 %v6351_v11  ;;  %v1770_v56 = vadd.f32 %v5573_v17, %v1769_v26  ;;  %v5367_v26 = vld [vmem:[#allocation7 + $0xd4] sm:$0xf0]  ;;  %v4687_v0 = vor.u32 %v5362_v6, %v4686_v38  ;;  %v503_v12 = vadd.f32 %v5922_v40, %v6000_v58  ;;  %v4624_v6 = vld [vmem:[#allocation7 + $0x30] sm:$0xf0] }
 0x2c7   :  { %v4711_v61 = vor.u32 %v5367_v26, %v4710_v16  ;;  %v4671_v21 = vor.u32 %v5358_v7, %v4670_v15  ;;  %v5353_v15 = vld [vmem:[#allocation7 + $0x6c] sm:$0xf] }
 0x2c8   :  { %v1774_v22 = vsel %vm1773_vm5, %v5573_v17, %v1770_v56  ;;  %v4702_v17 = vld [vmem:[#allocation7 + $0xc0] sm:$0xf]  ;;  %v4707_v56 = vor.u32 %v5364_v23, %v4704_v19  ;;  %v5357_v23 = vld [vmem:[#allocation7 + $0x8c] sm:$0xf] }
 0x2c9   :  { %v1779_v27 = vsel %vm1776_vm7, %v1778_v8, %v1774_v22  ;;  %v4703_v63 = vor.u32 %v5366_v30, %v4702_v17  ;;  %2434 = vmatpush.bf16.msrb.mxu2 %v4711_v61  ;;  %2448 = vmatpush.bf16.msrb.mxu3 %v4715_v37  ;;  %v4675_v17 = vor.u32 %v5356_v53, %v4672_v57  ;;  %v5359_v30 = vld [vmem:[#allocation7 + $0x94] sm:$0xf0] }
 0x2ca   :  { %2420 = vmatpush.bf16.msrb.mxu1 %v4707_v56 }
 0x2cb   :  { %2406 = vmatpush.bf16.msrb.mxu0 %v4703_v63 }
 0x2cc   :  { %v5577_v43 = vpop.eup %5576 }
 0x2cd   :  { %v1790_v28 = vmul.f32 %v5577_v43, %v1779_v27  ;;  %v5360_v27 = vld [vmem:[#allocation7 + $0xa4] sm:$0xf] }
 0x2cf   :  { %v1810_v3 = vpack.c.bf16 %v1790_v28, %v1789_v48  ;;  %2407 = vmatpush.bf16.msrb.mxu0 %v4687_v0 }
 0x2d1   :  { %2011 = vmatmul.bf16.vlgmr.msra.gmra.mxu0 %v1810_v3  ;;  %2025 = vmatmul.bf16.vlgmr.msra.gmra.mxu1 %v1810_v3 }
 0x2d2   :  { %2039 = vmatmul.bf16.vlgmr.msra.gmra.mxu2 %v1810_v3  ;;  %2053 = vmatmul.bf16.vlgmr.msra.gmra.mxu3 %v1810_v3 }
 0x2d3   :  { %2408 = vmatpush.bf16.msrb.mxu0 %v4671_v21 }
 0x34e   :  { %v2012_v59 = vpop.f32.mrf.mxu0  ;;  %v2026_v49 = vpop.f32.mrf.mxu1 }
 0x34f   :  { %v2059_v18 = vadd.f32 %v2012_v59, %v354_v29  ;;  %v2060_v50 = vadd.f32 %v2026_v49, %v403_v51  ;;  %v4688_v29 = vld [vmem:[#allocation7 + $0xb0] sm:$0xf0] }
 0x350   :  { %v4691_v49 = vor.u32 %v5360_v27, %v4688_v29 }
 0x351   :  { %v4598_v20 = vmul.f32 -1.442695, %v2059_v18  ;;  %v4600_v1 = vmul.f32 -1.442695, %v2060_v50  ;;  %v4694_v18 = vld [vmem:[#allocation7 + $0xa8] sm:$0xf] }
 0x352   :  { %v5363_v50 = vld [vmem:[#allocation7 + $0xb4] sm:$0xf0]  ;;  %2421 = vmatpush.bf16.msrb.mxu1 %v4691_v49  ;;  %v4662_v49 = vld [vmem:[#allocation7 + $0x68] sm:$0xf] }
 0x353   :  { %5578 = vpow2.f32 %v4598_v20  ;;  %v452_v20 = vadd.f32 %v5912_v35, %v6013_v52  ;;  %v4695_v62 = vor.u32 %v5363_v50, %v4694_v18  ;;  %v5355_v18 = vld [vmem:[#allocation7 + $0x74] sm:$0xf0] }
 0x354   :  { %5580 = vpow2.f32 %v4600_v1 }
 0x355   :  { %v2054_v47 = vpop.f32.mrf.mxu3  ;;  %v2040_v59 = vpop.f32.mrf.mxu2  ;;  %2435 = vmatpush.bf16.msrb.mxu2 %v4695_v62 }
 0x356   :  { %v2062_v55 = vadd.f32 %v2054_v47, %v501_v34  ;;  %v2014_v36 = vpop.f32.mrf.mxu0  ;;  %v2028_v24 = vpop.f32.mrf.mxu1  ;;  %v2061_v25 = vadd.f32 %v2040_v59, %v452_v20  ;;  %v4699_v34 = vor.u32 %v5361_v32, %v4696_v60  ;;  %v4679_v47 = vor.u32 %v5359_v30, %v4678_v10  ;;  %2422 = vmatpush.bf16.msrb.mxu1 %v4675_v17  ;;  %v4656_v59 = vld [vmem:[#allocation7 + $0x70] sm:$0xf0]  ;;  %v4664_v20 = vld [vmem:[#allocation7 + $0x78] sm:$0xf0]  ;;  %v4638_v10 = vld [vmem:[#allocation7 + $0x40] sm:$0xf] }
 0x357   :  { %v2063_v46 = vadd.f32 %v2014_v36, %v356_v4  ;;  %v2064_v22 = vadd.f32 %v2028_v24, %v405_v31  ;;  %v4680_v4 = vld [vmem:[#allocation7 + $0x98] sm:$0xf0]  ;;  %v454_v36 = vadd.f32 %v5920_v39, %v6013_v52  ;;  %v4663_v30 = vor.u32 %v5355_v18, %v4662_v49  ;;  %v5345_v18 = vld [vmem:[#allocation7 + $0x2c] sm:$0xf] }
 0x358   :  { %v4602_v54 = vmul.f32 -1.442695, %v2062_v55  ;;  %2449 = vmatpush.bf16.msrb.mxu3 %v4699_v34  ;;  %v4683_v26 = vor.u32 %v5357_v23, %v4680_v4  ;;  %v5348_v23 = vld [vmem:[#allocation7 + $0x44] sm:$0xf]  ;;  %v4640_v4 = vld [vmem:[#allocation7 + $0x50] sm:$0xf0] }
 0x359   :  { %v5579_v8 = vpop.eup %5578  ;;  %v4599_v43 = vmul.f32 -1.442695, %v2063_v46  ;;  %v4601_v3 = vmul.f32 -1.442695, %v2064_v22  ;;  %2436 = vmatpush.bf16.msrb.mxu2 %v4679_v47 }
 0x35a   :  { %v5581_v48 = vpop.eup %5580  ;;  %v6373_v28 = vadd.f32 1.0, %v5579_v8  ;;  %5582 = vpow2.f32 %v4602_v54  ;;  %v4654_v8 = vld [vmem:[#allocation7 + $0x60] sm:$0xf] }
 0x35b   :  { %v6375_v51 = vadd.f32 1.0, %v5581_v48  ;;  %5584 = vpow2.f32 %v4599_v43  ;;  %v5354_v43 = vld [vmem:[#allocation7 + $0x6c] sm:$0xf0]  ;;  %v5352_v48 = vld [vmem:[#allocation7 + $0x64] sm:$0xf] }
 0x35c   :  { %5586 = vrcp.f32 %v6373_v28  ;;  %v2084_v19 = vand.u32 2147483647, %v6373_v28  ;;  %v2086_v56 = vand.u32 2147483648, %v6373_v28  ;;  %vm2080_vm8 = vweird.f32 %v6373_v28  ;;  %2450 = vmatpush.bf16.msrb.mxu3 %v4683_v26  ;;  %v5349_v26 = vld [vmem:[#allocation7 + $0x4c] sm:$0xf] }
 0x35d   :  { %5588 = vrcp.f32 %v6375_v51  ;;  %v2056_v1 = vpop.f32.mrf.mxu3  ;;  %v2124_v9 = vand.u32 2147483648, %v6375_v51  ;;  %v2122_v46 = vand.u32 2147483647, %v6375_v51  ;;  %v2042_v39 = vpop.f32.mrf.mxu2  ;;  %vm2118_vm11 = vweird.f32 %v6375_v51  ;;  %2437 = vmatpush.bf16.msrb.mxu2 %v4663_v30 }
 0x35e   :  { %5590 = vpow2.f32 %v4601_v3  ;;  %v2066_v35 = vadd.f32 %v2056_v1, %v503_v12  ;;  %vm6405_vm9 = vcmp.eq.f32.partialorder %v2084_v19, 8.507059e+37  ;;  %v2087_v27 = vor.u32 1.1754944e-38, %v2086_v56  ;;  %v5351_v19 = vld [vmem:[#allocation7 + $0x54] sm:$0xf0] }
 0x35f   :  { %5592 = vtanh.f32 %v2061_v25  ;;  %v2065_v29 = vadd.f32 %v2042_v39, %v454_v36  ;;  %v2125_v50 = vor.u32 1.1754944e-38, %v2124_v9  ;;  %v4655_v60 = vor.u32 %v5354_v43, %v4654_v8  ;;  %v5346_v9 = vld [vmem:[#allocation7 + $0x2c] sm:$0xf0] }
 0x360   :  { %v5583_v33 = vpop.eup %5582  ;;  %v4603_v54 = vmul.f32 -1.442695, %v2066_v35  ;;  %vm6426_vm14 = vcmp.eq.f32.partialorder %v2122_v46, 8.507059e+37  ;;  %v4659_v17 = vor.u32 %v5352_v48, %v4656_v59 }
 0x361   :  { %v5585_v31 = vpop.eup %5584  ;;  %v6386_v40 = vadd.f32 1.0, %v5583_v33  ;;  %v5350_v33 = vld [vmem:[#allocation7 + $0x4c] sm:$0xf0]  ;;  %2409 = vmatpush.bf16.msrb.mxu0 %v4655_v60 }
 0x362   :  { %v6383_v63 = vpop.eup %5586  ;;  %v6388_v16 = vadd.f32 1.0, %v5585_v31  ;;  %2423 = vmatpush.bf16.msrb.mxu1 %v4659_v17 }
 0x363   :  { %v6390_v55 = vpop.eup %5588  ;;  %v2076_v24 = vmul.f32 %v6383_v63, %v6373_v28  ;;  %vm2081_vm10 = vweird.f32 %v6383_v63  ;;  %v5340_v28 = vld [vmem:[#allocation7 + $0x4] sm:$0xf] }
 0x364   :  { %v5591_v61 = vpop.eup %5590  ;;  %v2114_v14 = vmul.f32 %v6390_v55, %v6375_v51  ;;  %5594 = vrcp.f32 %v6388_v16  ;;  %vm2119_vm12 = vweird.f32 %v6390_v55  ;;  %vm6421_vm13 = vmor %vm2080_vm8, %vm2081_vm10  ;;  %v2099_v57 = vand.u32 2147483647, %v6388_v16 }
 0x365   :  { %v2077_v22 = vsub.f32 1.0, %v2076_v24  ;;  %v6402_v37 = vadd.f32 1.0, %v5591_v61  ;;  %5596 = vrcp.f32 %v6386_v40  ;;  %v5593_v1 = vpop.eup %5592  ;;  %vm6438_vm15 = vmor %vm2118_vm11, %vm2119_vm12  ;;  %vm2095_vm0 = vweird.f32 %v6388_v16 }
 0x366   :  { %v2115_v38 = vsub.f32 1.0, %v2114_v14  ;;  %v4667_v61 = vor.u32 %v5353_v15, %v4664_v20  ;;  %v4648_v14 = vld [vmem:[#allocation7 + $0x58] sm:$0xf0]  ;;  %vm2100_vm5 = vcmp.eq.f32.partialorder %v2099_v57, 8.507059e+37 }
 0x367   :  { %v2078_v0 = vmul.f32 %v6383_v63, %v2077_v22  ;;  %5598 = vrcp.f32 %v6402_v37  ;;  %v2139_v62 = vand.u32 2147483648, %v6402_v37  ;;  %v2137_v21 = vand.u32 2147483647, %v6402_v37  ;;  %v4632_v20 = vld [vmem:[#allocation7 + $0x38] sm:$0xf0] }
 0x368   :  { %v2116_v3 = vmul.f32 %v6390_v55, %v2115_v38  ;;  %5600 = vpow2.f32 %v4603_v54  ;;  %v2101_v54 = vand.u32 2147483648, %v6388_v16  ;;  %v5344_v38 = vld [vmem:[#allocation7 + $0x24] sm:$0xf]  ;;  %2451 = vmatpush.bf16.msrb.mxu3 %v4667_v61  ;;  %vm2133_vm3 = vweird.f32 %v6402_v37 }
 0x369   :  { %v2079_v32 = vadd.f32 %v6383_v63, %v2078_v0  ;;  %5602 = vtanh.f32 %v2065_v29  ;;  %v4639_v0 = vor.u32 %v5350_v33, %v4638_v10  ;;  %v5347_v29 = vld [vmem:[#allocation7 + $0x34] sm:$0xf0]  ;;  %v4627_v15 = vor.u32 %v5344_v38, %v4624_v6  ;;  %v5342_v33 = vld [vmem:[#allocation7 + $0xc] sm:$0xf0] }
 0x36a   :  { %v2117_v53 = vadd.f32 %v6390_v55, %v2116_v3  ;;  %v6432_v25 = vpop.eup %5594  ;;  %v4630_v3 = vld [vmem:[#allocation7 + $0x28] sm:$0xf]  ;;  %v2102_v30 = vor.u32 1.1754944e-38, %v2101_v54  ;;  %vm2138_vm7 = vcmp.eq.f32.partialorder %v2137_v21, 8.507059e+37  ;;  %v2162_v38 = vand.u32 2147483647, %v6386_v40 }
 0x36b   :  { %v2083_v34 = vsel %vm6421_vm13, %v6383_v63, %v2079_v32  ;;  %v6446_v31 = vpop.eup %5596  ;;  %v2091_v47 = vmul.f32 %v6432_v25, %v6388_v16  ;;  %v4646_v63 = vld [vmem:[#allocation7 + $0x48] sm:$0xf]  ;;  %vm2096_vm1 = vweird.f32 %v6432_v25  ;;  %2410 = vmatpush.bf16.msrb.mxu0 %v4639_v0  ;;  %v4651_v32 = vor.u32 %v5349_v26, %v4648_v14  ;;  %v4616_v26 = vld [vmem:[#allocation7 + $0x18] sm:$0xf0] }
 0x36c   :  { %v2088_v51 = vsel %vm6405_vm9, %v2087_v27, %v2083_v34  ;;  %v2121_v35 = vsel %vm6438_vm15, %v6390_v55, %v2117_v53  ;;  %v4622_v55 = vld [vmem:[#allocation7 + $0x20] sm:$0xf]  ;;  %v2154_v43 = vmul.f32 %v6446_v31, %v6386_v40  ;;  %v4643_v27 = vor.u32 %v5348_v23, %v4640_v4  ;;  %v4608_v34 = vld [vmem:[#allocation7 + $0x10] sm:$0xf0]  ;;  %vm6480_vm4 = vmor %vm2095_vm0, %vm2096_vm1 }
 0x36d   :  { %v6455_v36 = vpop.eup %5598  ;;  %v2126_v24 = vsel %vm6426_vm14, %v2125_v50, %v2121_v35  ;;  %v2185_v56 = vmul.f32 %v5593_v1, %v2088_v51  ;;  %v2092_v22 = vsub.f32 1.0, %v2091_v47  ;;  %v4647_v48 = vor.u32 %v5351_v19, %v4646_v63  ;;  %v4606_v1 = vld [vmem:[#allocation7] sm:$0xf]  ;;  %2452 = vmatpush.bf16.msrb.mxu3 %v4651_v32  ;;  %v4614_v23 = vld [vmem:[#allocation7 + $0x8] sm:$0xf] }
 0x36e   :  { %v2183_v46 = vmul.f32 %v2126_v24, %v6332_v13  ;;  %v2129_v39 = vmul.f32 %v6455_v36, %v6402_v37  ;;  %v5601_v8 = vpop.eup %5600  ;;  %2424 = vmatpush.bf16.msrb.mxu1 %v4643_v27  ;;  %v4623_v60 = vor.u32 %v5346_v9, %v4622_v55  ;;  %vm2134_vm2 = vweird.f32 %v6455_v36  ;;  %v5343_v4 = vld [vmem:[#allocation7 + $0x14] sm:$0xf0]  ;;  %v5341_v19 = vld [vmem:[#allocation7 + $0xc] sm:$0xf] }
 0x36f   :  { %v2093_v49 = vmul.f32 %v6432_v25, %v2092_v22  ;;  %v6470_v50 = vadd.f32 1.0, %v5601_v8  ;;  %v5603_v7 = vpop.eup %5602  ;;  %2438 = vmatpush.bf16.msrb.mxu2 %v4647_v48  ;;  %v4631_v10 = vor.u32 %v5347_v29, %v4630_v3  ;;  %v2155_v51 = vsub.f32 1.0, %v2154_v43  ;;  %vm2135_vm6 = vmor %vm2133_vm3, %vm2134_vm2 }
 0x370   :  { %v6466_v59 = vadd.f32 %v2185_v56, %v2183_v46  ;;  %v2130_v13 = vsub.f32 1.0, %v2129_v39  ;;  %v4635_v63 = vor.u32 %v5345_v18, %v4632_v20  ;;  %v2140_v16 = vor.u32 1.1754944e-38, %v2139_v62  ;;  %2411 = vmatpush.bf16.msrb.mxu0 %v4623_v60 }
 0x371   :  { %v2094_v12 = vadd.f32 %v6432_v25, %v2093_v49  ;;  %5604 = vrcp.f32 %v6470_v50  ;;  %v4607_v24 = vor.u32 %v5342_v33, %v4606_v1  ;;  %v4611_v56 = vor.u32 %v5340_v28, %v4608_v34 }
 0x372   :  { %v2131_v53 = vmul.f32 %v6455_v36, %v2130_v13  ;;  %2425 = vmatpush.bf16.msrb.mxu1 %v4627_v15  ;;  %v4615_v14 = vor.u32 %v5343_v4, %v4614_v23  ;;  %2453 = vmatpush.bf16.msrb.mxu3 %v4635_v63  ;;  %v4619_v9 = vor.u32 %v5341_v19, %v4616_v26  ;;  %5606 = vtanh.f32 %v6466_v59  ;;  %v5402_v15 = vld [vmem:[#allocation7 + $0xec] sm:$0xf0]  ;;  %v4862_v23 = vld [vmem:[#allocation7 + $0xf8] sm:$0xf0]  ;;  %v5396_v63 = vld [vmem:[#allocation7 + $0xc4] sm:$0xf] }
 0x373   :  { %v2098_v35 = vsel %vm6480_vm4, %v6432_v25, %v2094_v12  ;;  %2439 = vmatpush.bf16.msrb.mxu2 %v4631_v10  ;;  %v2156_v46 = vmul.f32 %v6446_v31, %v2155_v51  ;;  %vm2159_vm8 = vweird.f32 %v6446_v31  ;;  %vm2158_vm9 = vweird.f32 %v6386_v40  ;;  %v4860_v12 = vld [vmem:[#allocation7 + $0xe8] sm:$0xf]  ;;  %v5403_v10 = vld [vmem:[#allocation7 + $0xf4] sm:$0xf0] }
 0x374   :  { %v2132_v47 = vadd.f32 %v6455_v36, %v2131_v53  ;;  %v2103_v57 = vsel %vm2100_vm5, %v2102_v30, %v2098_v35  ;;  %2412 = vmatpush.bf16.msrb.mxu0 %v4607_v24  ;;  %v2179_v54 = vand.u32 2147483648, %v6470_v50  ;;  %v2177_v8 = vand.u32 2147483647, %v6470_v50  ;;  %vm2160_vm11 = vmor %vm2158_vm9, %vm2159_vm8  ;;  %v4854_v53 = vld [vmem:[#allocation7 + $0xf0] sm:$0xf0] }
 0x375   :  { %v2186_v25 = vmul.f32 %v5603_v7, %v2103_v57  ;;  %v2157_v37 = vadd.f32 %v6446_v31, %v2156_v46  ;;  %vm2173_vm12 = vweird.f32 %v6470_v50  ;;  %vm2163_vm14 = vcmp.eq.f32.partialorder %v2162_v38, 8.507059e+37  ;;  %v5401_v30 = vld [vmem:[#allocation7 + $0xec] sm:$0xf]  ;;  %v4844_v24 = vld [vmem:[#allocation7 + $0xc8] sm:$0xf] }
 0x376   :  { %v2136_v61 = vsel %vm2135_vm6, %v6455_v36, %v2132_v47  ;;  %2426 = vmatpush.bf16.msrb.mxu1 %v4611_v56  ;;  %2454 = vmatpush.bf16.msrb.mxu3 %v4619_v9  ;;  %v2180_v3 = vor.u32 1.1754944e-38, %v2179_v54  ;;  %vm2178_vm15 = vcmp.eq.f32.partialorder %v2177_v8, 8.507059e+37  ;;  %v359_v20 = vadd.f32 %v5924_v41, %v5988_v2  ;;  %v4836_v41 = vld [vmem:[#allocation7 + $0xc0] sm:$0xf]  ;;  %v5398_v47 = vld [vmem:[#allocation7 + $0xcc] sm:$0xf0] }
 0x377   :  { %v2141_v55 = vsel %vm2138_vm7, %v2140_v16, %v2136_v61  ;;  %v5605_v22 = vpop.eup %5604  ;;  %2440 = vmatpush.bf16.msrb.mxu2 %v4615_v14  ;;  %v2161_v0 = vsel %vm2160_vm11, %v6446_v31, %v2157_v37  ;;  %v5400_v31 = vld [vmem:[#allocation7 + $0xe4] sm:$0xf]  ;;  %v408_v1 = vadd.f32 %v5926_v42, %v5993_v5  ;;  %v4861_v17 = vor.u32 %v5403_v10, %v4860_v12  ;;  %v4838_v16 = vld [vmem:[#allocation7 + $0xd0] sm:$0xf0]  ;;  %v5399_v56 = vld [vmem:[#allocation7 + $0xd4] sm:$0xf0] }
 0x378   :  { %v2184_v62 = vmul.f32 %v2141_v55, %v6351_v11  ;;  %v2169_v36 = vmul.f32 %v5605_v22, %v6470_v50  ;;  %v2164_v11 = vand.u32 2147483648, %v6386_v40  ;;  %vm2174_vm10 = vweird.f32 %v5605_v22  ;;  %v5607_v27 = vpop.eup %5606  ;;  %v4852_v50 = vld [vmem:[#allocation7 + $0xe0] sm:$0xf]  ;;  %v5397_v61 = vld [vmem:[#allocation7 + $0xcc] sm:$0xf] }
 0x379   :  { %vm2175_vm13 = vmor %vm2173_vm12, %vm2174_vm10  ;;  %v4853_v7 = vor.u32 %v5402_v15, %v4852_v50  ;;  %v4857_v34 = vor.u32 %v5400_v31, %v4854_v53  ;;  %v4865_v35 = vor.u32 %v5401_v30, %v4862_v23  ;;  %v4837_v26 = vor.u32 %v5398_v47, %v4836_v41  ;;  %v4846_v14 = vld [vmem:[#allocation7 + $0xd8] sm:$0xf0]  ;;  %v4820_v46 = vld [vmem:[#allocation7 + $0xa0] sm:$0xf] }
 0x37a   :  { %v6500_v39 = vadd.f32 %v2186_v25, %v2184_v62  ;;  %v2170_v21 = vsub.f32 1.0, %v2169_v36  ;;  %v2165_v48 = vor.u32 1.1754944e-38, %v2164_v11  ;;  %v4841_v57 = vor.u32 %v5396_v63, %v4838_v16  ;;  %v5394_v62 = vld [vmem:[#allocation7 + $0xac] sm:$0xf0]  ;;  %v7047_v37 = vld [vmem:[#allocation12_spill] sm:$0xff]  ;;  %v7049_v63 = vld [vmem:[#allocation14_spill] sm:$0xff] }
 0x37b   :  { %2807 = vmatpush.bf16.msra.mxu0 %v4853_v7  ;;  %2821 = vmatpush.bf16.msra.mxu1 %v4857_v34  ;;  %v4845_v25 = vor.u32 %v5399_v56, %v4844_v24  ;;  %v506_v55 = vadd.f32 %v5930_v44, %v6000_v58  ;;  %v4849_v9 = vor.u32 %v5397_v61, %v4846_v14  ;;  %v4822_v38 = vld [vmem:[#allocation7 + $0xb0] sm:$0xf0]  ;;  %v5395_v8 = vld [vmem:[#allocation7 + $0xb4] sm:$0xf0]  ;;  %v5388_v31 = vld [vmem:[#allocation7 + $0x84] sm:$0xf] }
 0x37c   :  { %5608 = vtanh.f32 %v6500_v39  ;;  %v2171_v6 = vmul.f32 %v5605_v22, %v2170_v21  ;;  %v2166_v49 = vsel %vm2163_vm14, %v2165_v48, %v2161_v0  ;;  %2835 = vmatpush.bf16.msra.mxu2 %v4861_v17  ;;  %2849 = vmatpush.bf16.msra.mxu3 %v4865_v35  ;;  %v361_v36 = vadd.f32 %v5932_v45, %v5988_v2  ;;  %v4806_v53 = vld [vmem:[#allocation7 + $0x90] sm:$0xf0]  ;;  %v5391_v34 = vld [vmem:[#allocation7 + $0x94] sm:$0xf0]  ;;  %v5389_v17 = vld [vmem:[#allocation7 + $0x8c] sm:$0xf] }
 0x37d   :  { %v2191_v18 = vmul.f32 %v5607_v27, %v2166_v49  ;;  %v410_v21 = vadd.f32 %v7047_v37, %v5993_v5  ;;  %v4821_v54 = vor.u32 %v5394_v62, %v4820_v46  ;;  %v4814_v30 = vld [vmem:[#allocation7 + $0x98] sm:$0xf0]  ;;  %v4788_v23 = vld [vmem:[#allocation7 + $0x60] sm:$0xf]  ;;  %v5386_v41 = vld [vmem:[#allocation7 + $0x6c] sm:$0xf0] }
 0x37e   :  { %v2172_v43 = vadd.f32 %v5605_v22, %v2171_v6  ;;  %v4828_v6 = vld [vmem:[#allocation7 + $0xa8] sm:$0xf]  ;;  %v5384_v47 = vld [vmem:[#allocation7 + $0x64] sm:$0xf]  ;;  %v4817_v56 = vor.u32 %v5389_v17, %v4814_v30  ;;  %v4789_v61 = vor.u32 %v5386_v41, %v4788_v23  ;;  %v5387_v14 = vld [vmem:[#allocation7 + $0x74] sm:$0xf0] }
 0x37f   :  { %2808 = vmatpush.bf16.msra.mxu0 %v4837_v26  ;;  %2822 = vmatpush.bf16.msra.mxu1 %v4841_v57  ;;  %v4829_v48 = vor.u32 %v5395_v8, %v4828_v6  ;;  %v4790_v26 = vld [vmem:[#allocation7 + $0x70] sm:$0xf0]  ;;  %v4796_v16 = vld [vmem:[#allocation7 + $0x68] sm:$0xf]  ;;  %v5381_v30 = vld [vmem:[#allocation7 + $0x4c] sm:$0xf] }
 0x380   :  { %v2176_v13 = vsel %vm2175_vm13, %v5605_v22, %v2172_v43  ;;  %v5392_v22 = vld [vmem:[#allocation7 + $0xa4] sm:$0xf]  ;;  %2836 = vmatpush.bf16.msra.mxu2 %v4845_v25  ;;  %2850 = vmatpush.bf16.msra.mxu3 %v4849_v9  ;;  %v4793_v25 = vor.u32 %v5384_v47, %v4790_v26  ;;  %v4798_v9 = vld [vmem:[#allocation7 + $0x78] sm:$0xf0]  ;;  %v7050_v6 = vld [vmem:[#allocation13_spill] sm:$0xff] }
 0x381   :  { %v2181_v40 = vsel %vm2178_vm15, %v2180_v3, %v2176_v13  ;;  %v4825_v27 = vor.u32 %v5392_v22, %v4822_v38  ;;  %v5393_v3 = vld [vmem:[#allocation7 + $0xac] sm:$0xf]  ;;  %v4797_v22 = vor.u32 %v5387_v14, %v4796_v16  ;;  %v459_v8 = vadd.f32 %v7050_v6, %v6013_v52  ;;  %v4782_v23 = vld [vmem:[#allocation7 + $0x58] sm:$0xf0] }
 0x382   :  { %v5609_v29 = vpop.eup %5608  ;;  %v4785_v6 = vor.u32 %v5381_v30, %v4782_v23 }
 0x383   :  { %v2192_v32 = vmul.f32 %v5609_v29, %v2181_v40  ;;  %v4830_v29 = vld [vmem:[#allocation7 + $0xb8] sm:$0xf0]  ;;  %2809 = vmatpush.bf16.msra.mxu0 %v4821_v54  ;;  %2823 = vmatpush.bf16.msra.mxu1 %v4825_v27 }
 0x384   :  { %v4833_v45 = vor.u32 %v5393_v3, %v4830_v29  ;;  %2837 = vmatpush.bf16.msra.mxu2 %v4829_v48 }
 0x385   :  { %v2212_v60 = vpack.c.bf16 %v2192_v32, %v2191_v18  ;;  %v4804_v18 = vld [vmem:[#allocation7 + $0x80] sm:$0xf]  ;;  %v5390_v32 = vld [vmem:[#allocation7 + $0x8c] sm:$0xf0] }
 0x386   :  { %v4805_v15 = vor.u32 %v5390_v32, %v4804_v18  ;;  %2851 = vmatpush.bf16.msra.mxu3 %v4833_v45  ;;  %v4772_v32 = vld [vmem:[#allocation7 + $0x40] sm:$0xf] }
 0x387   :  { %2413 = vmatmul.bf16.vlgmr.msrb.gmra.mxu0 %v2212_v60  ;;  %2427 = vmatmul.bf16.vlgmr.msrb.gmra.mxu1 %v2212_v60 }
 0x388   :  { %2441 = vmatmul.bf16.vlgmr.msrb.gmra.mxu2 %v2212_v60  ;;  %2455 = vmatmul.bf16.vlgmr.msrb.gmra.mxu3 %v2212_v60 }
 0x389   :  { %2810 = vmatpush.bf16.msra.mxu0 %v4805_v15 }
 0x38a   :  { %2852 = vmatpush.bf16.msra.mxu3 %v4817_v56 }
 0x38d   :  { %2811 = vmatpush.bf16.msra.mxu0 %v4789_v61  ;;  %v5376_v61 = vld [vmem:[#allocation7 + $0x24] sm:$0xf] }
 0x404   :  { %v2414_v33 = vpop.f32.mrf.mxu0  ;;  %v2428_v28 = vpop.f32.mrf.mxu1 }
 0x405   :  { %v2461_v4 = vadd.f32 %v2414_v33, %v359_v20  ;;  %v2462_v51 = vadd.f32 %v2428_v28, %v408_v1  ;;  %v4809_v33 = vor.u32 %v5388_v31, %v4806_v53  ;;  %v4812_v28 = vld [vmem:[#allocation7 + $0x88] sm:$0xf]  ;;  %v5380_v31 = vld [vmem:[#allocation7 + $0x44] sm:$0xf]  ;;  %v4774_v53 = vld [vmem:[#allocation7 + $0x50] sm:$0xf0] }
 0x407   :  { %v4732_v42 = vmul.f32 -1.442695, %v2461_v4  ;;  %v4734_v19 = vmul.f32 -1.442695, %v2462_v51  ;;  %2824 = vmatpush.bf16.msra.mxu1 %v4809_v33  ;;  %v7048_v4 = vld [vmem:[#allocation11_spill] sm:$0xff] }
 0x408   :  { %v457_v51 = vadd.f32 %v7048_v4, %v6013_v52  ;;  %v5383_v33 = vld [vmem:[#allocation7 + $0x54] sm:$0xf0] }
 0x409   :  { %5610 = vpow2.f32 %v4732_v42  ;;  %v508_v42 = vadd.f32 %v7049_v63, %v6000_v58 }
 0x40a   :  { %5612 = vpow2.f32 %v4734_v19  ;;  %v4813_v19 = vor.u32 %v5391_v34, %v4812_v28 }
 0x40b   :  { %v2456_v11 = vpop.f32.mrf.mxu3  ;;  %v2442_v10 = vpop.f32.mrf.mxu2  ;;  %2825 = vmatpush.bf16.msra.mxu1 %v4793_v25  ;;  %v4758_v25 = vld [vmem:[#allocation7 + $0x30] sm:$0xf0] }
 0x40c   :  { %v2464_v43 = vadd.f32 %v2456_v11, %v506_v55  ;;  %v2416_v44 = vpop.f32.mrf.mxu0  ;;  %v2430_v0 = vpop.f32.mrf.mxu1  ;;  %v2463_v24 = vadd.f32 %v2442_v10, %v457_v51  ;;  %v5385_v55 = vld [vmem:[#allocation7 + $0x6c] sm:$0xf]  ;;  %2838 = vmatpush.bf16.msra.mxu2 %v4813_v19  ;;  %v4780_v10 = vld [vmem:[#allocation7 + $0x48] sm:$0xf]  ;;  %v5378_v19 = vld [vmem:[#allocation7 + $0x2c] sm:$0xf0]  ;;  %v4761_v18 = vor.u32 %v5376_v61, %v4758_v25 }
 0x40d   :  { %v2465_v13 = vadd.f32 %v2416_v44, %v361_v36  ;;  %v2466_v49 = vadd.f32 %v2430_v0, %v410_v21  ;;  %v4801_v54 = vor.u32 %v5385_v55, %v4798_v9  ;;  %v4781_v56 = vor.u32 %v5383_v33, %v4780_v10  ;;  %v5373_v33 = vld [vmem:[#allocation7 + $0xc] sm:$0xf] }
 0x40e   :  { %v4736_v40 = vmul.f32 -1.442695, %v2464_v43 }
 0x40f   :  { %v5611_v60 = vpop.eup %5610  ;;  %v4733_v50 = vmul.f32 -1.442695, %v2465_v13  ;;  %v4735_v7 = vmul.f32 -1.442695, %v2466_v49  ;;  %2853 = vmatpush.bf16.msra.mxu3 %v4801_v54 }
 0x410   :  { %v5613_v20 = vpop.eup %5612  ;;  %v6524_v1 = vadd.f32 1.0, %v5611_v60  ;;  %5614 = vpow2.f32 %v4736_v40  ;;  %2839 = vmatpush.bf16.msra.mxu2 %v4797_v22  ;;  %v5382_v60 = vld [vmem:[#allocation7 + $0x4c] sm:$0xf0]  ;;  %v5377_v22 = vld [vmem:[#allocation7 + $0x2c] sm:$0xf] }
 0x411   :  { %v6526_v12 = vadd.f32 1.0, %v5613_v20  ;;  %5616 = vpow2.f32 %v4733_v50  ;;  %v4773_v17 = vor.u32 %v5382_v60, %v4772_v32  ;;  %v4748_v60 = vld [vmem:[#allocation7 + $0x8] sm:$0xf] }
 0x412   :  { %5618 = vrcp.f32 %v6524_v1  ;;  %v2486_v37 = vand.u32 2147483647, %v6524_v1  ;;  %v2488_v44 = vand.u32 2147483648, %v6524_v1  ;;  %vm2482_vm0 = vweird.f32 %v6524_v1 }
 0x413   :  { %5620 = vrcp.f32 %v6526_v12  ;;  %v2458_v35 = vpop.f32.mrf.mxu3  ;;  %v2526_v48 = vand.u32 2147483648, %v6526_v12  ;;  %v2524_v3 = vand.u32 2147483647, %v6526_v12  ;;  %v2444_v49 = vpop.f32.mrf.mxu2  ;;  %vm2520_vm3 = vweird.f32 %v6526_v12  ;;  %2812 = vmatpush.bf16.msra.mxu0 %v4773_v17  ;;  %2854 = vmatpush.bf16.msra.mxu3 %v4785_v6 }
 0x414   :  { %5622 = vpow2.f32 %v4735_v7  ;;  %v2468_v62 = vadd.f32 %v2458_v35, %v508_v42  ;;  %vm6556_vm1 = vcmp.eq.f32.partialorder %v2486_v37, 8.507059e+37  ;;  %v2489_v15 = vor.u32 1.1754944e-38, %v2488_v44  ;;  %v4756_v42 = vld [vmem:[#allocation7 + $0x20] sm:$0xf]  ;;  %2840 = vmatpush.bf16.msra.mxu2 %v4781_v56 }
 0x415   :  { %5624 = vtanh.f32 %v2463_v24  ;;  %v2467_v7 = vadd.f32 %v2444_v49, %v459_v8  ;;  %v2527_v28 = vor.u32 1.1754944e-38, %v2526_v48  ;;  %vm6577_vm6 = vcmp.eq.f32.partialorder %v2524_v3, 8.507059e+37  ;;  %v4766_v8 = vld [vmem:[#allocation7 + $0x38] sm:$0xf0]  ;;  %v5372_v3 = vld [vmem:[#allocation7 + $0x4] sm:$0xf] }
 0x416   :  { %v5615_v57 = vpop.eup %5614  ;;  %v4737_v45 = vmul.f32 -1.442695, %v2468_v62  ;;  %v4777_v24 = vor.u32 %v5380_v31, %v4774_v53  ;;  %v5379_v62 = vld [vmem:[#allocation7 + $0x34] sm:$0xf0] }
 0x417   :  { %v5617_v46 = vpop.eup %5616  ;;  %v6537_v21 = vadd.f32 1.0, %v5615_v57 }
 0x418   :  { %v6534_v36 = vpop.eup %5618  ;;  %v6539_v11 = vadd.f32 1.0, %v5617_v46  ;;  %v4764_v46 = vld [vmem:[#allocation7 + $0x28] sm:$0xf]  ;;  %2826 = vmatpush.bf16.msra.mxu1 %v4777_v24 }
 0x419   :  { %v6541_v38 = vpop.eup %5620  ;;  %v2478_v43 = vmul.f32 %v6534_v36, %v6524_v1  ;;  %vm2483_vm2 = vweird.f32 %v6534_v36  ;;  %v4765_v32 = vor.u32 %v5379_v62, %v4764_v46 }
 0x41a   :  { %v5623_v0 = vpop.eup %5622  ;;  %v2516_v27 = vmul.f32 %v6541_v38, %v6526_v12  ;;  %5626 = vrcp.f32 %v6539_v11  ;;  %vm2521_vm4 = vweird.f32 %v6541_v38  ;;  %vm6572_vm5 = vmor %vm2482_vm0, %vm2483_vm2  ;;  %v2501_v63 = vand.u32 2147483647, %v6539_v11 }
 0x41b   :  { %v2479_v29 = vsub.f32 1.0, %v2478_v43  ;;  %v6553_v13 = vadd.f32 1.0, %v5623_v0  ;;  %5628 = vrcp.f32 %v6537_v21  ;;  %v5625_v4 = vpop.eup %5624  ;;  %vm6589_vm7 = vmor %vm2520_vm3, %vm2521_vm4  ;;  %vm2497_vm8 = vweird.f32 %v6539_v11  ;;  %v5374_v43 = vld [vmem:[#allocation7 + $0xc] sm:$0xf0]  ;;  %2841 = vmatpush.bf16.msra.mxu2 %v4765_v32 }
 0x41c   :  { %v2517_v40 = vsub.f32 1.0, %v2516_v27  ;;  %v2503_v48 = vand.u32 2147483648, %v6539_v11  ;;  %2827 = vmatpush.bf16.msra.mxu1 %v4761_v18  ;;  %vm2502_vm13 = vcmp.eq.f32.partialorder %v2501_v63, 8.507059e+37  ;;  %v7060_v18 = vld [vmem:[#allocation16_spill] sm:$0xff] }
 0x41d   :  { %v2480_v50 = vmul.f32 %v6534_v36, %v2479_v29  ;;  %5630 = vrcp.f32 %v6553_v13  ;;  %v2541_v47 = vand.u32 2147483648, %v6553_v13  ;;  %v2539_v57 = vand.u32 2147483647, %v6553_v13  ;;  %v4742_v29 = vld [vmem:[#allocation7 + $0x10] sm:$0xf0] }
 0x41e   :  { %v2518_v20 = vmul.f32 %v6541_v38, %v2517_v40  ;;  %5632 = vpow2.f32 %v4737_v45  ;;  %v4757_v40 = vor.u32 %v5378_v19, %v4756_v42  ;;  %v4745_v10 = vor.u32 %v5372_v3, %v4742_v29  ;;  %v4988_v3 = vld [vmem:[#allocation7 + $0xf0] sm:$0xf0]  ;;  %v4994_v29 = vld [vmem:[#allocation7 + $0xe8] sm:$0xf] }
 0x41f   :  { %v2481_v34 = vadd.f32 %v6534_v36, %v2480_v50  ;;  %5634 = vtanh.f32 %v2467_v7  ;;  %v5375_v50 = vld [vmem:[#allocation7 + $0x14] sm:$0xf0]  ;;  %v4769_v7 = vor.u32 %v5377_v22, %v4766_v8  ;;  %vm2535_vm11 = vweird.f32 %v6553_v13 }
 0x420   :  { %v2519_v35 = vadd.f32 %v6541_v38, %v2518_v20  ;;  %v6583_v26 = vpop.eup %5626  ;;  %2813 = vmatpush.bf16.msra.mxu0 %v4757_v40  ;;  %v4749_v23 = vor.u32 %v5375_v50, %v4748_v60  ;;  %v2542_v19 = vor.u32 1.1754944e-38, %v2541_v47  ;;  %2828 = vmatpush.bf16.msra.mxu1 %v4745_v10  ;;  %vm2540_vm15 = vcmp.eq.f32.partialorder %v2539_v57, 8.507059e+37 }
 0x421   :  { %v2485_v16 = vsel %vm6572_vm5, %v6534_v36, %v2481_v34  ;;  %v6597_v14 = vpop.eup %5628  ;;  %v2493_v9 = vmul.f32 %v6583_v26, %v6539_v11  ;;  %vm2498_vm9 = vweird.f32 %v6583_v26  ;;  %2855 = vmatpush.bf16.msra.mxu3 %v4769_v7  ;;  %v2566_v57 = vand.u32 2147483648, %v6537_v21 }
 0x422   :  { %v2490_v12 = vsel %vm6556_vm1, %v2489_v15, %v2485_v16  ;;  %v2523_v55 = vsel %vm6589_vm7, %v6541_v38, %v2519_v35  ;;  %v4740_v38 = vld [vmem:[#allocation7] sm:$0xf]  ;;  %v2556_v45 = vmul.f32 %v6597_v14, %v6537_v21  ;;  %vm2499_vm12 = vmor %vm2497_vm8, %vm2498_vm9  ;;  %2842 = vmatpush.bf16.msra.mxu2 %v4749_v23  ;;  %vm2561_vm0 = vweird.f32 %v6597_v14  ;;  %v4972_v23 = vld [vmem:[#allocation7 + $0xd0] sm:$0xf0] }
 0x423   :  { %v6606_v36 = vpop.eup %5630  ;;  %v2528_v37 = vsel %vm6577_vm6, %v2527_v28, %v2523_v55  ;;  %v2587_v54 = vmul.f32 %v5625_v4, %v2490_v12  ;;  %v2494_v0 = vsub.f32 1.0, %v2493_v9  ;;  %v4741_v53 = vor.u32 %v5374_v43, %v4740_v38  ;;  %v4750_v28 = vld [vmem:[#allocation7 + $0x18] sm:$0xf0] }
 0x424   :  { %v2585_v44 = vmul.f32 %v2528_v37, %v6466_v59  ;;  %v2531_v27 = vmul.f32 %v6606_v36, %v6553_v13  ;;  %v5633_v49 = vpop.eup %5632  ;;  %vm2536_vm10 = vweird.f32 %v6606_v36  ;;  %v2504_v4 = vor.u32 1.1754944e-38, %v2503_v48 }
 0x425   :  { %v2495_v31 = vmul.f32 %v6583_v26, %v2494_v0  ;;  %v2554_v20 = vadd.f32 1.0, %v5633_v49  ;;  %v5635_v34 = vpop.eup %5634  ;;  %v2557_v51 = vsub.f32 1.0, %v2556_v45  ;;  %v4753_v42 = vor.u32 %v5373_v33, %v4750_v28  ;;  %vm2537_vm14 = vmor %vm2535_vm11, %vm2536_vm10  ;;  %2814 = vmatpush.bf16.msra.mxu0 %v4741_v53  ;;  %v4986_v0 = vld [vmem:[#allocation7 + $0xe0] sm:$0xf]  ;;  %v5435_v49 = vld [vmem:[#allocation7 + $0xf4] sm:$0xf0] }
 0x426   :  { %v6617_v15 = vadd.f32 %v2587_v54, %v2585_v44  ;;  %v2532_v59 = vsub.f32 1.0, %v2531_v27  ;;  %vm2560_vm1 = vweird.f32 %v6537_v21  ;;  %v5434_v27 = vld [vmem:[#allocation7 + $0xec] sm:$0xf0]  ;;  %v7059_v45 = vld [vmem:[#allocation15_spill] sm:$0xff]  ;;  %v413_v32 = vadd.f32 %v7060_v18, %v5993_v5 }
 0x427   :  { %v2496_v30 = vadd.f32 %v6583_v26, %v2495_v31  ;;  %5636 = vrcp.f32 %v2554_v20  ;;  %2856 = vmatpush.bf16.msra.mxu3 %v4753_v42  ;;  %v2581_v12 = vand.u32 2147483648, %v2554_v20  ;;  %v2579_v9 = vand.u32 2147483647, %v2554_v20  ;;  %vm2562_vm3 = vmor %vm2560_vm1, %vm2561_vm0  ;;  %v4996_v31 = vld [vmem:[#allocation7 + $0xf8] sm:$0xf0] }
 0x428   :  { %v2533_v17 = vmul.f32 %v6606_v36, %v2532_v59  ;;  %5638 = vtanh.f32 %v6617_v15  ;;  %vm2575_vm4 = vweird.f32 %v2554_v20  ;;  %v4987_v48 = vor.u32 %v5434_v27, %v4986_v0  ;;  %v5433_v59 = vld [vmem:[#allocation7 + $0xec] sm:$0xf]  ;;  %v4970_v28 = vld [vmem:[#allocation7 + $0xc0] sm:$0xf]  ;;  %v5422_v27 = vld [vmem:[#allocation7 + $0x8c] sm:$0xf0] }
 0x429   :  { %v2500_v35 = vsel %vm2499_vm12, %v6583_v26, %v2496_v30  ;;  %v2558_v26 = vmul.f32 %v6597_v14, %v2557_v51  ;;  %v2582_v37 = vor.u32 1.1754944e-38, %v2581_v12  ;;  %vm2580_vm7 = vcmp.eq.f32.partialorder %v2579_v9, 8.507059e+37  ;;  %v5431_v51 = vld [vmem:[#allocation7 + $0xd4] sm:$0xf0]  ;;  %v7063_v9 = vld [vmem:[#allocation20_spill] sm:$0xff] }
 0x42a   :  { %v2534_v41 = vadd.f32 %v6606_v36, %v2533_v17  ;;  %v2505_v1 = vsel %vm2502_vm13, %v2504_v4, %v2500_v35  ;;  %v364_v40 = vadd.f32 %v7059_v45, %v5988_v2  ;;  %v4995_v50 = vor.u32 %v5435_v49, %v4994_v29  ;;  %3209 = vmatpush.bf16.msrb.mxu0 %v4987_v48  ;;  %v5428_v17 = vld [vmem:[#allocation7 + $0xc4] sm:$0xf]  ;;  %v4978_v4 = vld [vmem:[#allocation7 + $0xc8] sm:$0xf]  ;;  %v5427_v12 = vld [vmem:[#allocation7 + $0xb4] sm:$0xf0] }
 0x42b   :  { %v2588_v11 = vmul.f32 %v5635_v34, %v2505_v1  ;;  %v2559_v25 = vadd.f32 %v6597_v14, %v2558_v26  ;;  %v4999_v53 = vor.u32 %v5433_v59, %v4996_v31  ;;  %v5430_v34 = vld [vmem:[#allocation7 + $0xcc] sm:$0xf0]  ;;  %v4975_v42 = vor.u32 %v5428_v17, %v4972_v23  ;;  %v5429_v1 = vld [vmem:[#allocation7 + $0xcc] sm:$0xf]  ;;  %v4938_v0 = vld [vmem:[#allocation7 + $0x80] sm:$0xf] }
 0x42c   :  { %v2538_v16 = vsel %vm2537_vm14, %v6606_v36, %v2534_v41  ;;  %v2567_v36 = vor.u32 1.1754944e-38, %v2566_v57  ;;  %3237 = vmatpush.bf16.msrb.mxu2 %v4995_v50  ;;  %v4971_v30 = vor.u32 %v5430_v34, %v4970_v28  ;;  %v5426_v26 = vld [vmem:[#allocation7 + $0xac] sm:$0xf0]  ;;  %v4962_v57 = vld [vmem:[#allocation7 + $0xa8] sm:$0xf] }
 0x42d   :  { %v2543_v63 = vsel %vm2540_vm15, %v2542_v19, %v2538_v16  ;;  %v5637_v56 = vpop.eup %5636  ;;  %v2563_v62 = vsel %vm2562_vm3, %v6597_v14, %v2559_v25  ;;  %v5432_v14 = vld [vmem:[#allocation7 + $0xe4] sm:$0xf]  ;;  %3251 = vmatpush.bf16.msrb.mxu3 %v4999_v53  ;;  %v4979_v19 = vor.u32 %v5431_v51, %v4978_v4  ;;  %v4980_v16 = vld [vmem:[#allocation7 + $0xd8] sm:$0xf0]  ;;  %v4940_v29 = vld [vmem:[#allocation7 + $0x90] sm:$0xf0] }
 0x42e   :  { %v2586_v24 = vmul.f32 %v2543_v63, %v6500_v39  ;;  %v2571_v47 = vmul.f32 %v5637_v56, %v2554_v20  ;;  %v2564_v39 = vand.u32 2147483647, %v6537_v21  ;;  %vm2576_vm2 = vweird.f32 %v5637_v56  ;;  %v5639_v22 = vpop.eup %5638  ;;  %3210 = vmatpush.bf16.msrb.mxu0 %v4971_v30  ;;  %v4954_v63 = vld [vmem:[#allocation7 + $0xa0] sm:$0xf]  ;;  %v4946_v49 = vld [vmem:[#allocation7 + $0x88] sm:$0xf] }
 0x42f   :  { %vm2577_vm5 = vmor %vm2575_vm4, %vm2576_vm2  ;;  %v4991_v60 = vor.u32 %v5432_v14, %v4988_v3  ;;  %v4955_v25 = vor.u32 %v5426_v26, %v4954_v63  ;;  %v5420_v14 = vld [vmem:[#allocation7 + $0x84] sm:$0xf]  ;;  %v4939_v3 = vor.u32 %v5422_v27, %v4938_v0  ;;  %v4922_v28 = vld [vmem:[#allocation7 + $0x60] sm:$0xf] }
 0x430   :  { %v6640_v61 = vadd.f32 %v2588_v11, %v2586_v24  ;;  %v2572_v13 = vsub.f32 1.0, %v2571_v47  ;;  %vm2565_vm6 = vcmp.eq.f32.partialorder %v2564_v39, 8.507059e+37  ;;  %3238 = vmatpush.bf16.msrb.mxu2 %v4979_v19  ;;  %v4983_v11 = vor.u32 %v5429_v1, %v4980_v16  ;;  %v5424_v24 = vld [vmem:[#allocation7 + $0xa4] sm:$0xf]  ;;  %v5418_v34 = vld [vmem:[#allocation7 + $0x6c] sm:$0xf0] }
 0x431   :  { %v2568_v8 = vsel %vm2565_vm6, %v2567_v36, %v2563_v62  ;;  %3223 = vmatpush.bf16.msrb.mxu1 %v4991_v60  ;;  %v7062_v39 = vld [vmem:[#allocation19_spill] sm:$0xff]  ;;  %v4963_v36 = vor.u32 %v5427_v12, %v4962_v57  ;;  %v5423_v60 = vld [vmem:[#allocation7 + $0x94] sm:$0xf0]  ;;  %v4924_v30 = vld [vmem:[#allocation7 + $0x70] sm:$0xf0]  ;;  %v4923_v1 = vor.u32 %v5418_v34, %v4922_v28 }
 0x432   :  { %5640 = vtanh.f32 %v6640_v61  ;;  %v2573_v55 = vmul.f32 %v5637_v56, %v2572_v13  ;;  %v2593_v43 = vmul.f32 %v5639_v22, %v2568_v8  ;;  %v4956_v13 = vld [vmem:[#allocation7 + $0xb0] sm:$0xf0]  ;;  %3252 = vmatpush.bf16.msrb.mxu3 %v4983_v11  ;;  %3211 = vmatpush.bf16.msrb.mxu0 %v4955_v25  ;;  %v4947_v31 = vor.u32 %v5423_v60, %v4946_v49  ;;  %v5416_v17 = vld [vmem:[#allocation7 + $0x64] sm:$0xf]  ;;  %v5417_v16 = vld [vmem:[#allocation7 + $0x6c] sm:$0xf] }
 0x433   :  { %v4959_v22 = vor.u32 %v5424_v24, %v4956_v13  ;;  %v7064_v23 = vld [vmem:[#allocation17_spill] sm:$0xff]  ;;  %v4932_v11 = vld [vmem:[#allocation7 + $0x78] sm:$0xf0]  ;;  %v4927_v24 = vor.u32 %v5416_v17, %v4924_v30  ;;  %v4906_v25 = vld [vmem:[#allocation7 + $0x40] sm:$0xf] }
 0x434   :  { %v2574_v46 = vadd.f32 %v5637_v56, %v2573_v55  ;;  %v366_v55 = vadd.f32 %v7062_v39, %v5988_v2  ;;  %3239 = vmatpush.bf16.msrb.mxu2 %v4963_v36  ;;  %v462_v4 = vadd.f32 %v7064_v23, %v6013_v52  ;;  %v5414_v13 = vld [vmem:[#allocation7 + $0x4c] sm:$0xf0]  ;;  %v5412_v57 = vld [vmem:[#allocation7 + $0x44] sm:$0xf] }
 0x435   :  { %3224 = vmatpush.bf16.msrb.mxu1 %v4975_v42  ;;  %v7065_v42 = vld [vmem:[#allocation22_spill] sm:$0xff]  ;;  %v5408_v23 = vld [vmem:[#allocation7 + $0x24] sm:$0xf] }
 0x436   :  { %v2578_v6 = vsel %vm2577_vm5, %v5637_v56, %v2574_v46  ;;  %v7061_v56 = vld [vmem:[#allocation18_spill] sm:$0xff]  ;;  %v415_v46 = vadd.f32 %v7063_v9, %v5993_v5  ;;  %3212 = vmatpush.bf16.msrb.mxu0 %v4939_v3  ;;  %v513_v19 = vadd.f32 %v7065_v42, %v6000_v58  ;;  %v4908_v9 = vld [vmem:[#allocation7 + $0x50] sm:$0xf0] }
 0x437   :  { %v2583_v38 = vsel %vm2580_vm7, %v2582_v37, %v2578_v6  ;;  %v511_v47 = vadd.f32 %v7061_v56, %v6000_v58  ;;  %v5425_v37 = vld [vmem:[#allocation7 + $0xac] sm:$0xf] }
 0x438   :  { %v5641_v54 = vpop.eup %5640  ;;  %3240 = vmatpush.bf16.msrb.mxu2 %v4947_v31 }
 0x439   :  { %v2594_v21 = vmul.f32 %v5641_v54, %v2583_v38  ;;  %v4964_v54 = vld [vmem:[#allocation7 + $0xb8] sm:$0xf0]  ;;  %3225 = vmatpush.bf16.msrb.mxu1 %v4959_v22 }
 0x43a   :  { %3213 = vmatpush.bf16.msrb.mxu0 %v4923_v1 }
 0x43b   :  { %v2614_v44 = vpack.c.bf16 %v2594_v21, %v2593_v43  ;;  %v4967_v43 = vor.u32 %v5425_v37, %v4964_v54  ;;  %v4911_v37 = vor.u32 %v5412_v57, %v4908_v9 }
 0x43d   :  { %2815 = vmatmul.bf16.vlgmr.msra.gmra.mxu0 %v2614_v44  ;;  %2829 = vmatmul.bf16.vlgmr.msra.gmra.mxu1 %v2614_v44 }
 0x43e   :  { %2843 = vmatmul.bf16.vlgmr.msra.gmra.mxu2 %v2614_v44  ;;  %2857 = vmatmul.bf16.vlgmr.msra.gmra.mxu3 %v2614_v44 }
 0x43f   :  { %3253 = vmatpush.bf16.msrb.mxu3 %v4967_v43 }
 0x4ba   :  { %v2816_v20 = vpop.f32.mrf.mxu0  ;;  %v2830_v7 = vpop.f32.mrf.mxu1 }
 0x4bb   :  { %v2863_v10 = vadd.f32 %v2816_v20, %v364_v40  ;;  %v2864_v33 = vadd.f32 %v2830_v7, %v413_v32  ;;  %v4943_v32 = vor.u32 %v5420_v14, %v4940_v29  ;;  %v5421_v20 = vld [vmem:[#allocation7 + $0x8c] sm:$0xf]  ;;  %v4948_v7 = vld [vmem:[#allocation7 + $0x98] sm:$0xf0] }
 0x4bd   :  { %v4866_v35 = vmul.f32 -1.442695, %v2863_v10  ;;  %v4868_v41 = vmul.f32 -1.442695, %v2864_v33  ;;  %3226 = vmatpush.bf16.msrb.mxu1 %v4943_v32  ;;  %v4951_v33 = vor.u32 %v5421_v20, %v4948_v7  ;;  %v4916_v7 = vld [vmem:[#allocation7 + $0x58] sm:$0xf0] }
 0x4bf   :  { %5642 = vpow2.f32 %v4866_v35  ;;  %3254 = vmatpush.bf16.msrb.mxu3 %v4951_v33  ;;  %v4930_v35 = vld [vmem:[#allocation7 + $0x68] sm:$0xf]  ;;  %v5410_v33 = vld [vmem:[#allocation7 + $0x2c] sm:$0xf0] }
 0x4c0   :  { %5644 = vpow2.f32 %v4868_v41  ;;  %v5419_v41 = vld [vmem:[#allocation7 + $0x74] sm:$0xf0] }
 0x4c1   :  { %v2858_v62 = vpop.f32.mrf.mxu3  ;;  %v2844_v10 = vpop.f32.mrf.mxu2  ;;  %v4931_v56 = vor.u32 %v5419_v41, %v4930_v35  ;;  %3227 = vmatpush.bf16.msrb.mxu1 %v4927_v24  ;;  %v5409_v24 = vld [vmem:[#allocation7 + $0x2c] sm:$0xf] }
 0x4c2   :  { %v2866_v6 = vadd.f32 %v2858_v62, %v511_v47  ;;  %v2818_v8 = vpop.f32.mrf.mxu0  ;;  %v2832_v38 = vpop.f32.mrf.mxu1  ;;  %v2865_v26 = vadd.f32 %v2844_v10, %v462_v4  ;;  %v4935_v47 = vor.u32 %v5417_v16, %v4932_v11  ;;  %v4890_v10 = vld [vmem:[#allocation7 + $0x20] sm:$0xf]  ;;  %v4892_v4 = vld [vmem:[#allocation7 + $0x30] sm:$0xf0] }
 0x4c3   :  { %v2867_v21 = vadd.f32 %v2818_v8, %v366_v55  ;;  %v2868_v44 = vadd.f32 %v2832_v38, %v415_v46  ;;  %v4907_v55 = vor.u32 %v5414_v13, %v4906_v25  ;;  %3241 = vmatpush.bf16.msrb.mxu2 %v4931_v56  ;;  %v4900_v56 = vld [vmem:[#allocation7 + $0x38] sm:$0xf0] }
 0x4c4   :  { %v4870_v48 = vmul.f32 -1.442695, %v2866_v6  ;;  %v7066_v6 = vld [vmem:[#allocation21_spill] sm:$0xff]  ;;  %3255 = vmatpush.bf16.msrb.mxu3 %v4935_v47 }
 0x4c5   :  { %v5643_v45 = vpop.eup %5642  ;;  %v4867_v40 = vmul.f32 -1.442695, %v2867_v21  ;;  %v4869_v18 = vmul.f32 -1.442695, %v2868_v44  ;;  %v464_v8 = vadd.f32 %v7066_v6, %v6013_v52  ;;  %3214 = vmatpush.bf16.msrb.mxu0 %v4907_v55  ;;  %3228 = vmatpush.bf16.msrb.mxu1 %v4911_v37  ;;  %v5404_v55 = vld [vmem:[#allocation7 + $0x4] sm:$0xf]  ;;  %v4895_v37 = vor.u32 %v5408_v23, %v4892_v4 }
 0x4c6   :  { %v5645_v50 = vpop.eup %5644  ;;  %v6660_v59 = vadd.f32 1.0, %v5643_v45  ;;  %5646 = vpow2.f32 %v4870_v48  ;;  %v4876_v6 = vld [vmem:[#allocation7 + $0x10] sm:$0xf0] }
 0x4c7   :  { %v6662_v53 = vadd.f32 1.0, %v5645_v50  ;;  %5648 = vpow2.f32 %v4867_v40  ;;  %v4914_v40 = vld [vmem:[#allocation7 + $0x48] sm:$0xf]  ;;  %v5413_v50 = vld [vmem:[#allocation7 + $0x4c] sm:$0xf] }
 0x4c8   :  { %5650 = vrcp.f32 %v6660_v59  ;;  %v2888_v62 = vand.u32 2147483647, %v6660_v59  ;;  %v2890_v43 = vand.u32 2147483648, %v6660_v59  ;;  %vm2884_vm12 = vweird.f32 %v6660_v59 }
 0x4c9   :  { %5652 = vrcp.f32 %v6662_v53  ;;  %v2860_v51 = vpop.f32.mrf.mxu3  ;;  %v2928_v0 = vand.u32 2147483648, %v6662_v53  ;;  %v2926_v27 = vand.u32 2147483647, %v6662_v53  ;;  %v2846_v3 = vpop.f32.mrf.mxu2  ;;  %vm2922_vm11 = vweird.f32 %v6662_v53  ;;  %3229 = vmatpush.bf16.msrb.mxu1 %v4895_v37  ;;  %v5120_v37 = vld [vmem:[#allocation7 + $0xe0] sm:$0xf] }
 0x4ca   :  { %5654 = vpow2.f32 %v4869_v18  ;;  %v2870_v39 = vadd.f32 %v2860_v51, %v513_v19  ;;  %vm6692_vm9 = vcmp.eq.f32.partialorder %v2888_v62, 8.507059e+37  ;;  %v5415_v18 = vld [vmem:[#allocation7 + $0x54] sm:$0xf0]  ;;  %v2891_v60 = vor.u32 1.1754944e-38, %v2890_v43  ;;  %v4898_v19 = vld [vmem:[#allocation7 + $0x28] sm:$0xf] }
 0x4cb   :  { %5656 = vtanh.f32 %v2865_v26  ;;  %v2869_v20 = vadd.f32 %v2846_v3, %v464_v8  ;;  %v2929_v28 = vor.u32 1.1754944e-38, %v2928_v0  ;;  %v4915_v30 = vor.u32 %v5415_v18, %v4914_v40  ;;  %v5411_v26 = vld [vmem:[#allocation7 + $0x34] sm:$0xf0]  ;;  %v4882_v8 = vld [vmem:[#allocation7 + $0x8] sm:$0xf] }
 0x4cc   :  { %v5647_v63 = vpop.eup %5646  ;;  %v4871_v29 = vmul.f32 -1.442695, %v2870_v39  ;;  %vm6717_vm15 = vcmp.eq.f32.partialorder %v2926_v27, 8.507059e+37  ;;  %v4919_v11 = vor.u32 %v5413_v50, %v4916_v7  ;;  %v5406_v39 = vld [vmem:[#allocation7 + $0xc] sm:$0xf0] }
 0x4cd   :  { %v5649_v12 = vpop.eup %5648  ;;  %v6673_v22 = vadd.f32 1.0, %v5647_v63  ;;  %3242 = vmatpush.bf16.msrb.mxu2 %v4915_v30  ;;  %v4891_v63 = vor.u32 %v5410_v33, %v4890_v10  ;;  %v5405_v0 = vld [vmem:[#allocation7 + $0xc] sm:$0xf]  ;;  %v4884_v27 = vld [vmem:[#allocation7 + $0x18] sm:$0xf0] }
 0x4ce   :  { %v6670_v46 = vpop.eup %5650  ;;  %v6675_v36 = vadd.f32 1.0, %v5649_v12  ;;  %v4874_v12 = vld [vmem:[#allocation7] sm:$0xf]  ;;  %3256 = vmatpush.bf16.msrb.mxu3 %v4919_v11 }
 0x4cf   :  { %v6677_v54 = vpop.eup %5652  ;;  %v2880_v38 = vmul.f32 %v6670_v46, %v6660_v59  ;;  %vm2885_vm8 = vweird.f32 %v6670_v46  ;;  %3215 = vmatpush.bf16.msrb.mxu0 %v4891_v63  ;;  %v4875_v45 = vor.u32 %v5406_v39, %v4874_v12 }
 0x4d0   :  { %v5655_v21 = vpop.eup %5654  ;;  %v2918_v44 = vmul.f32 %v6677_v54, %v6662_v53  ;;  %5658 = vrcp.f32 %v6675_v36  ;;  %vm2923_vm10 = vweird.f32 %v6677_v54  ;;  %vm6706_vm13 = vmor %vm2884_vm12, %vm2885_vm8  ;;  %v2903_v42 = vand.u32 2147483647, %v6675_v36 }
 0x4d1   :  { %v2881_v14 = vsub.f32 1.0, %v2880_v38  ;;  %v6689_v48 = vadd.f32 1.0, %v5655_v21  ;;  %5660 = vrcp.f32 %v6673_v22  ;;  %v5657_v53 = vpop.eup %5656  ;;  %vm6712_vm14 = vmor %vm2922_vm11, %vm2923_vm10  ;;  %vm2899_vm0 = vweird.f32 %v6675_v36 }
 0x4d2   :  { %v2919_v49 = vsub.f32 1.0, %v2918_v44  ;;  %v2905_v44 = vand.u32 2147483648, %v6675_v36  ;;  %vm2904_vm5 = vcmp.eq.f32.partialorder %v2903_v42, 8.507059e+37  ;;  %v2968_v42 = vand.u32 2147483648, %v6673_v22 }
 0x4d3   :  { %v2882_v32 = vmul.f32 %v6670_v46, %v2881_v14  ;;  %5662 = vrcp.f32 %v6689_v48  ;;  %v2943_v41 = vand.u32 2147483648, %v6689_v48  ;;  %v2941_v33 = vand.u32 2147483647, %v6689_v48  ;;  %3216 = vmatpush.bf16.msrb.mxu0 %v4875_v45 }
 0x4d4   :  { %v2920_v31 = vmul.f32 %v6677_v54, %v2919_v49  ;;  %5664 = vpow2.f32 %v4871_v29  ;;  %v4899_v29 = vor.u32 %v5411_v26, %v4898_v19  ;;  %v4903_v49 = vor.u32 %v5409_v24, %v4900_v56 }
 0x4d5   :  { %v2883_v34 = vadd.f32 %v6670_v46, %v2882_v32  ;;  %5666 = vtanh.f32 %v2869_v20  ;;  %vm2937_vm3 = vweird.f32 %v6689_v48  ;;  %v2944_v23 = vor.u32 1.1754944e-38, %v2943_v41 }
 0x4d6   :  { %v2921_v51 = vadd.f32 %v6677_v54, %v2920_v31  ;;  %v6723_v1 = vpop.eup %5658  ;;  %3243 = vmatpush.bf16.msrb.mxu2 %v4899_v29  ;;  %3257 = vmatpush.bf16.msrb.mxu3 %v4903_v49  ;;  %v4887_v31 = vor.u32 %v5405_v0, %v4884_v27  ;;  %vm2942_vm7 = vcmp.eq.f32.partialorder %v2941_v33, 8.507059e+37  ;;  %v7076_v0 = vld [vmem:[#allocation24_spill] sm:$0xff]  ;;  %v5130_v49 = vld [vmem:[#allocation7 + $0xf8] sm:$0xf0] }
 0x4d7   :  { %v2887_v16 = vsel %vm6706_vm13, %v6670_v46, %v2883_v34  ;;  %v6728_v47 = vpop.eup %5660  ;;  %v2895_v57 = vmul.f32 %v6723_v1, %v6675_v36  ;;  %vm2900_vm1 = vweird.f32 %v6723_v1  ;;  %v418_v27 = vadd.f32 %v7076_v0, %v5993_v5  ;;  %v5465_v29 = vld [vmem:[#allocation7 + $0xec] sm:$0xf]  ;;  %v5112_v33 = vld [vmem:[#allocation7 + $0xc8] sm:$0xf] }
 0x4d8   :  { %v2892_v25 = vsel %vm6692_vm9, %v2891_v60, %v2887_v16  ;;  %v2925_v13 = vsel %vm6712_vm14, %v6677_v54, %v2921_v51  ;;  %v5407_v54 = vld [vmem:[#allocation7 + $0x14] sm:$0xf0]  ;;  %v2958_v3 = vmul.f32 %v6728_v47, %v6673_v22  ;;  %v4879_v60 = vor.u32 %v5404_v55, %v4876_v6  ;;  %vm2901_vm4 = vmor %vm2899_vm0, %vm2900_vm1  ;;  %v5466_v6 = vld [vmem:[#allocation7 + $0xec] sm:$0xf0] }
 0x4d9   :  { %v5663_v9 = vpop.eup %5662  ;;  %v2930_v46 = vsel %vm6717_vm15, %v2929_v28, %v2925_v13  ;;  %v2989_v62 = vmul.f32 %v5657_v53, %v2892_v25  ;;  %v2896_v43 = vsub.f32 1.0, %v2895_v57  ;;  %v4883_v50 = vor.u32 %v5407_v54, %v4882_v8  ;;  %v5122_v54 = vld [vmem:[#allocation7 + $0xf0] sm:$0xf0] }
 0x4da   :  { %v2987_v38 = vmul.f32 %v2930_v46, %v6617_v15  ;;  %v2933_v21 = vmul.f32 %v5663_v9, %v6689_v48  ;;  %v5665_v14 = vpop.eup %5664  ;;  %vm2938_vm2 = vweird.f32 %v5663_v9  ;;  %v2906_v28 = vor.u32 1.1754944e-38, %v2905_v44  ;;  %3230 = vmatpush.bf16.msrb.mxu1 %v4879_v60  ;;  %3258 = vmatpush.bf16.msrb.mxu3 %v4887_v31  ;;  %v5462_v31 = vld [vmem:[#allocation7 + $0xcc] sm:$0xf0] }
 0x4db   :  { %v2897_v15 = vmul.f32 %v6723_v1, %v2896_v43  ;;  %v2956_v32 = vadd.f32 1.0, %v5665_v14  ;;  %v5667_v20 = vpop.eup %5666  ;;  %v2959_v34 = vsub.f32 1.0, %v2958_v3  ;;  %vm2939_vm6 = vmor %vm2937_vm3, %vm2938_vm2  ;;  %3244 = vmatpush.bf16.msrb.mxu2 %v4883_v50  ;;  %vm2963_vm8 = vweird.f32 %v6728_v47  ;;  %v5467_v43 = vld [vmem:[#allocation7 + $0xf4] sm:$0xf0]  ;;  %v5104_v50 = vld [vmem:[#allocation7 + $0xc0] sm:$0xf] }
 0x4dc   :  { %v6745_v40 = vadd.f32 %v2989_v62, %v2987_v38  ;;  %v2934_v18 = vsub.f32 1.0, %v2933_v21  ;;  %vm2962_vm9 = vweird.f32 %v6673_v22  ;;  %v2969_v13 = vor.u32 1.1754944e-38, %v2968_v42  ;;  %v5128_v38 = vld [vmem:[#allocation7 + $0xe8] sm:$0xf]  ;;  %v7075_v21 = vld [vmem:[#allocation23_spill] sm:$0xff] }
 0x4dd   :  { %v2898_v10 = vadd.f32 %v6723_v1, %v2897_v15  ;;  %5668 = vrcp.f32 %v2956_v32  ;;  %v2960_v35 = vmul.f32 %v6728_v47, %v2959_v34  ;;  %v2983_v11 = vand.u32 2147483648, %v2956_v32  ;;  %vm2964_vm11 = vmor %vm2962_vm9, %vm2963_vm8  ;;  %v5096_v42 = vld [vmem:[#allocation7 + $0xa8] sm:$0xf] }
 0x4de   :  { %v2935_v7 = vmul.f32 %v5663_v9, %v2934_v18  ;;  %5670 = vtanh.f32 %v6745_v40  ;;  %v2981_v26 = vand.u32 2147483647, %v2956_v32  ;;  %vm2977_vm12 = vweird.f32 %v2956_v32 }
 0x4df   :  { %v2902_v17 = vsel %vm2901_vm4, %v6723_v1, %v2898_v10  ;;  %v2961_v48 = vadd.f32 %v6728_v47, %v2960_v35  ;;  %v2984_v57 = vor.u32 1.1754944e-38, %v2983_v11  ;;  %v5121_v8 = vor.u32 %v5466_v6, %v5120_v37  ;;  %v5106_v10 = vld [vmem:[#allocation7 + $0xd0] sm:$0xf0]  ;;  %v5458_v35 = vld [vmem:[#allocation7 + $0xac] sm:$0xf0] }
 0x4e0   :  { %v2936_v30 = vadd.f32 %v5663_v9, %v2935_v7  ;;  %v2907_v4 = vsel %vm2904_vm5, %v2906_v28, %v2902_v17  ;;  %vm2982_vm15 = vcmp.eq.f32.partialorder %v2981_v26, 8.507059e+37  ;;  %v369_v44 = vadd.f32 %v7075_v21, %v5988_v2  ;;  %v5463_v28 = vld [vmem:[#allocation7 + $0xd4] sm:$0xf0]  ;;  %v7079_v26 = vld [vmem:[#allocation28_spill] sm:$0xff]  ;;  %v5072_v37 = vld [vmem:[#allocation7 + $0x80] sm:$0xf] }
 0x4e1   :  { %v2990_v59 = vmul.f32 %v5667_v20, %v2907_v4  ;;  %v2965_v56 = vsel %vm2964_vm11, %v6728_v47, %v2961_v48  ;;  %v5464_v47 = vld [vmem:[#allocation7 + $0xe4] sm:$0xf]  ;;  %v5129_v3 = vor.u32 %v5467_v43, %v5128_v38  ;;  %3611 = vmatpush.bf16.msra.mxu0 %v5121_v8  ;;  %v5133_v15 = vor.u32 %v5465_v29, %v5130_v49  ;;  %v5461_v4 = vld [vmem:[#allocation7 + $0xcc] sm:$0xf]  ;;  %v5459_v11 = vld [vmem:[#allocation7 + $0xb4] sm:$0xf0] }
 0x4e2   :  { %v2940_v53 = vsel %vm2939_vm6, %v5663_v9, %v2936_v30  ;;  %v5125_v14 = vor.u32 %v5464_v47, %v5122_v54  ;;  %v5460_v20 = vld [vmem:[#allocation7 + $0xc4] sm:$0xf]  ;;  %v5105_v7 = vor.u32 %v5462_v31, %v5104_v50  ;;  %v5454_v6 = vld [vmem:[#allocation7 + $0x8c] sm:$0xf0]  ;;  %v5074_v38 = vld [vmem:[#allocation7 + $0x90] sm:$0xf0] }
 0x4e3   :  { %v2945_v51 = vsel %vm2942_vm7, %v2944_v23, %v2940_v53  ;;  %v5669_v1 = vpop.eup %5668  ;;  %3639 = vmatpush.bf16.msra.mxu2 %v5129_v3  ;;  %3653 = vmatpush.bf16.msra.mxu3 %v5133_v15  ;;  %v5109_v30 = vor.u32 %v5460_v20, %v5106_v10  ;;  %v5113_v23 = vor.u32 %v5463_v28, %v5112_v33  ;;  %v5114_v53 = vld [vmem:[#allocation7 + $0xd8] sm:$0xf0]  ;;  %v5452_v47 = vld [vmem:[#allocation7 + $0x84] sm:$0xf]  ;;  %v5080_v43 = vld [vmem:[#allocation7 + $0x88] sm:$0xf] }
 0x4e4   :  { %v2988_v19 = vmul.f32 %v2945_v51, %v6640_v61  ;;  %v2973_v36 = vmul.f32 %v5669_v1, %v2956_v32  ;;  %v2966_v61 = vand.u32 2147483647, %v6673_v22  ;;  %vm2978_vm10 = vweird.f32 %v5669_v1  ;;  %v5671_v25 = vpop.eup %5670  ;;  %3625 = vmatpush.bf16.msra.mxu1 %v5125_v14  ;;  %v5088_v51 = vld [vmem:[#allocation7 + $0xa0] sm:$0xf]  ;;  %v5455_v14 = vld [vmem:[#allocation7 + $0x94] sm:$0xf0] }
 0x4e5   :  { %vm2979_vm13 = vmor %vm2977_vm12, %vm2978_vm10  ;;  %3612 = vmatpush.bf16.msra.mxu0 %v5105_v7  ;;  %v5089_v48 = vor.u32 %v5458_v35, %v5088_v51  ;;  %v5073_v54 = vor.u32 %v5454_v6, %v5072_v37  ;;  %v5081_v49 = vor.u32 %v5455_v14, %v5080_v43  ;;  %v5056_v50 = vld [vmem:[#allocation7 + $0x60] sm:$0xf]  ;;  %v5450_v31 = vld [vmem:[#allocation7 + $0x6c] sm:$0xf0] }
 0x4e6   :  { %v6761_v16 = vadd.f32 %v2990_v59, %v2988_v19  ;;  %v2974_v41 = vsub.f32 1.0, %v2973_v36  ;;  %vm2967_vm14 = vcmp.eq.f32.partialorder %v2966_v61, 8.507059e+37  ;;  %v5117_v59 = vor.u32 %v5461_v4, %v5114_v53  ;;  %v5456_v19 = vld [vmem:[#allocation7 + $0xa4] sm:$0xf]  ;;  %v5058_v7 = vld [vmem:[#allocation7 + $0x70] sm:$0xf0] }
 0x4e7   :  { %v2970_v55 = vsel %vm2967_vm14, %v2969_v13, %v2965_v56  ;;  %3640 = vmatpush.bf16.msra.mxu2 %v5113_v23  ;;  %v7078_v61 = vld [vmem:[#allocation27_spill] sm:$0xff]  ;;  %v5097_v13 = vor.u32 %v5459_v11, %v5096_v42  ;;  %v7080_v10 = vld [vmem:[#allocation25_spill] sm:$0xff]  ;;  %v5057_v4 = vor.u32 %v5450_v31, %v5056_v50  ;;  %v5449_v53 = vld [vmem:[#allocation7 + $0x6c] sm:$0xf] }
 0x4e8   :  { %5672 = vtanh.f32 %v6761_v16  ;;  %v2975_v63 = vmul.f32 %v5669_v1, %v2974_v41  ;;  %v2995_v46 = vmul.f32 %v5671_v25, %v2970_v55  ;;  %3626 = vmatpush.bf16.msra.mxu1 %v5109_v30  ;;  %v5090_v41 = vld [vmem:[#allocation7 + $0xb0] sm:$0xf0]  ;;  %3654 = vmatpush.bf16.msra.mxu3 %v5117_v59  ;;  %v5448_v20 = vld [vmem:[#allocation7 + $0x64] sm:$0xf]  ;;  %v467_v33 = vadd.f32 %v7080_v10, %v6013_v52  ;;  %v5066_v59 = vld [vmem:[#allocation7 + $0x78] sm:$0xf0] }
 0x4e9   :  { %v5093_v25 = vor.u32 %v5456_v19, %v5090_v41  ;;  %3613 = vmatpush.bf16.msra.mxu0 %v5089_v48  ;;  %v7081_v30 = vld [vmem:[#allocation29_spill] sm:$0xff]  ;;  %v5061_v19 = vor.u32 %v5448_v20, %v5058_v7  ;;  %v5040_v48 = vld [vmem:[#allocation7 + $0x40] sm:$0xf]  ;;  %v5444_v42 = vld [vmem:[#allocation7 + $0x44] sm:$0xf] }
 0x4ea   :  { %v2976_v24 = vadd.f32 %v5669_v1, %v2975_v63  ;;  %v371_v63 = vadd.f32 %v7078_v61, %v5988_v2  ;;  %v518_v23 = vadd.f32 %v7081_v30, %v6000_v58  ;;  %v5446_v41 = vld [vmem:[#allocation7 + $0x4c] sm:$0xf0]  ;;  %v5440_v10 = vld [vmem:[#allocation7 + $0x24] sm:$0xf] }
 0x4eb   :  { %3641 = vmatpush.bf16.msra.mxu2 %v5097_v13 }
 0x4ec   :  { %v2980_v39 = vsel %vm2979_vm13, %v5669_v1, %v2976_v24  ;;  %v7077_v1 = vld [vmem:[#allocation26_spill] sm:$0xff]  ;;  %v420_v24 = vadd.f32 %v7079_v26, %v5993_v5  ;;  %3627 = vmatpush.bf16.msra.mxu1 %v5093_v25  ;;  %v5042_v26 = vld [vmem:[#allocation7 + $0x50] sm:$0xf0] }
 0x4ed   :  { %v2985_v9 = vsel %vm2982_vm15, %v2984_v57, %v2980_v39  ;;  %v516_v36 = vadd.f32 %v7077_v1, %v6000_v58  ;;  %v5457_v57 = vld [vmem:[#allocation7 + $0xac] sm:$0xf]  ;;  %3614 = vmatpush.bf16.msra.mxu0 %v5073_v54 }
 0x4ee   :  { %v5673_v12 = vpop.eup %5672 }
 0x4ef   :  { %v2996_v22 = vmul.f32 %v5673_v12, %v2985_v9  ;;  %v5098_v12 = vld [vmem:[#allocation7 + $0xb8] sm:$0xf0]  ;;  %3642 = vmatpush.bf16.msra.mxu2 %v5081_v49 }
 0x4f1   :  { %v3016_v62 = vpack.c.bf16 %v2996_v22, %v2995_v46  ;;  %v5101_v46 = vor.u32 %v5457_v57, %v5098_v12  ;;  %3615 = vmatpush.bf16.msra.mxu0 %v5057_v4  ;;  %v5045_v57 = vor.u32 %v5444_v42, %v5042_v26 }
 0x4f3   :  { %3217 = vmatmul.bf16.vlgmr.msrb.gmra.mxu0 %v3016_v62  ;;  %3231 = vmatmul.bf16.vlgmr.msrb.gmra.mxu1 %v3016_v62 }
 0x4f4   :  { %3245 = vmatmul.bf16.vlgmr.msrb.gmra.mxu2 %v3016_v62  ;;  %3259 = vmatmul.bf16.vlgmr.msrb.gmra.mxu3 %v3016_v62 }
 0x4f5   :  { %3655 = vmatpush.bf16.msra.mxu3 %v5101_v46 }
 0x570   :  { %v3218_v45 = vpop.f32.mrf.mxu0  ;;  %v3232_v18 = vpop.f32.mrf.mxu1 }
 0x571   :  { %v3265_v32 = vadd.f32 %v3218_v45, %v369_v44  ;;  %v3266_v60 = vadd.f32 %v3232_v18, %v418_v27  ;;  %v5077_v27 = vor.u32 %v5452_v47, %v5074_v38  ;;  %v5453_v45 = vld [vmem:[#allocation7 + $0x8c] sm:$0xf]  ;;  %v5082_v18 = vld [vmem:[#allocation7 + $0x98] sm:$0xf0] }
 0x573   :  { %v5000_v34 = vmul.f32 -1.442695, %v3265_v32  ;;  %v5002_v17 = vmul.f32 -1.442695, %v3266_v60  ;;  %3628 = vmatpush.bf16.msra.mxu1 %v5077_v27  ;;  %v5085_v60 = vor.u32 %v5453_v45, %v5082_v18  ;;  %v5050_v18 = vld [vmem:[#allocation7 + $0x58] sm:$0xf0] }
 0x575   :  { %5674 = vpow2.f32 %v5000_v34  ;;  %3656 = vmatpush.bf16.msra.mxu3 %v5085_v60  ;;  %v5064_v34 = vld [vmem:[#allocation7 + $0x68] sm:$0xf]  ;;  %v5442_v60 = vld [vmem:[#allocation7 + $0x2c] sm:$0xf0] }
 0x576   :  { %5676 = vpow2.f32 %v5002_v17  ;;  %v5451_v17 = vld [vmem:[#allocation7 + $0x74] sm:$0xf0] }
 0x577   :  { %v3260_v56 = vpop.f32.mrf.mxu3  ;;  %v3246_v32 = vpop.f32.mrf.mxu2  ;;  %v5065_v1 = vor.u32 %v5451_v17, %v5064_v34  ;;  %3629 = vmatpush.bf16.msra.mxu1 %v5061_v19  ;;  %v5441_v19 = vld [vmem:[#allocation7 + $0x2c] sm:$0xf] }
 0x578   :  { %v3268_v39 = vadd.f32 %v3260_v56, %v516_v36  ;;  %v3220_v55 = vpop.f32.mrf.mxu0  ;;  %v3234_v9 = vpop.f32.mrf.mxu1  ;;  %v3267_v35 = vadd.f32 %v3246_v32, %v467_v33  ;;  %v5069_v36 = vor.u32 %v5449_v53, %v5066_v59  ;;  %v5024_v32 = vld [vmem:[#allocation7 + $0x20] sm:$0xf]  ;;  %v5026_v33 = vld [vmem:[#allocation7 + $0x30] sm:$0xf0] }
 0x579   :  { %v3269_v22 = vadd.f32 %v3220_v55, %v371_v63  ;;  %v3270_v62 = vadd.f32 %v3234_v9, %v420_v24  ;;  %v5041_v63 = vor.u32 %v5446_v41, %v5040_v48  ;;  %3643 = vmatpush.bf16.msra.mxu2 %v5065_v1  ;;  %v5034_v1 = vld [vmem:[#allocation7 + $0x38] sm:$0xf0] }
 0x57a   :  { %v5004_v8 = vmul.f32 -1.442695, %v3268_v39  ;;  %v7082_v39 = vld [vmem:[#allocation31_spill] sm:$0xff]  ;;  %3657 = vmatpush.bf16.msra.mxu3 %v5069_v36 }
 0x57b   :  { %v5675_v21 = vpop.eup %5674  ;;  %v5001_v44 = vmul.f32 -1.442695, %v3269_v22  ;;  %v5003_v0 = vmul.f32 -1.442695, %v3270_v62  ;;  %v469_v55 = vadd.f32 %v7082_v39, %v6013_v52  ;;  %3616 = vmatpush.bf16.msra.mxu0 %v5041_v63  ;;  %3630 = vmatpush.bf16.msra.mxu1 %v5045_v57  ;;  %v5436_v63 = vld [vmem:[#allocation7 + $0x4] sm:$0xf]  ;;  %v5029_v57 = vor.u32 %v5440_v10, %v5026_v33 }
 0x57c   :  { %v5677_v3 = vpop.eup %5676  ;;  %v6781_v29 = vadd.f32 1.0, %v5675_v21  ;;  %5678 = vpow2.f32 %v5004_v8  ;;  %v5010_v39 = vld [vmem:[#allocation7 + $0x10] sm:$0xf0] }
 0x57d   :  { %v6783_v15 = vadd.f32 1.0, %v5677_v3  ;;  %5680 = vpow2.f32 %v5001_v44  ;;  %v5048_v44 = vld [vmem:[#allocation7 + $0x48] sm:$0xf]  ;;  %v5445_v3 = vld [vmem:[#allocation7 + $0x4c] sm:$0xf] }
 0x57e   :  { %5682 = vrcp.f32 %v6781_v29  ;;  %v3290_v56 = vand.u32 2147483647, %v6781_v29  ;;  %v3292_v46 = vand.u32 2147483648, %v6781_v29  ;;  %vm3286_vm4 = vweird.f32 %v6781_v29 }
 0x57f   :  { %5684 = vrcp.f32 %v6783_v15  ;;  %v3262_v28 = vpop.f32.mrf.mxu3  ;;  %v3330_v37 = vand.u32 2147483648, %v6783_v15  ;;  %v3328_v6 = vand.u32 2147483647, %v6783_v15  ;;  %v3248_v54 = vpop.f32.mrf.mxu2  ;;  %vm3324_vm3 = vweird.f32 %v6783_v15  ;;  %3631 = vmatpush.bf16.msra.mxu1 %v5029_v57  ;;  %v7091_v57 = vld [vmem:[#allocation30_spill] sm:$0xff] }
 0x580   :  { %5686 = vpow2.f32 %v5003_v0  ;;  %v3272_v61 = vadd.f32 %v3262_v28, %v518_v23  ;;  %vm6813_vm1 = vcmp.eq.f32.partialorder %v3290_v56, 8.507059e+37  ;;  %v5447_v0 = vld [vmem:[#allocation7 + $0x54] sm:$0xf0]  ;;  %v3293_v14 = vor.u32 1.1754944e-38, %v3292_v46  ;;  %v5032_v23 = vld [vmem:[#allocation7 + $0x28] sm:$0xf] }
 0x581   :  { %5688 = vtanh.f32 %v3267_v35  ;;  %v3271_v45 = vadd.f32 %v3248_v54, %v469_v55  ;;  %v3331_v50 = vor.u32 1.1754944e-38, %v3330_v37  ;;  %v5049_v7 = vor.u32 %v5447_v0, %v5048_v44  ;;  %v5443_v35 = vld [vmem:[#allocation7 + $0x34] sm:$0xf0]  ;;  %v5016_v55 = vld [vmem:[#allocation7 + $0x8] sm:$0xf] }
 0x582   :  { %v5679_v51 = vpop.eup %5678  ;;  %v5005_v38 = vmul.f32 -1.442695, %v3272_v61  ;;  %vm6838_vm7 = vcmp.eq.f32.partialorder %v3328_v6, 8.507059e+37  ;;  %v5053_v59 = vor.u32 %v5445_v3, %v5050_v18  ;;  %v5438_v61 = vld [vmem:[#allocation7 + $0xc] sm:$0xf0] }
 0x583   :  { %v5681_v11 = vpop.eup %5680  ;;  %v6794_v25 = vadd.f32 1.0, %v5679_v51  ;;  %3644 = vmatpush.bf16.msra.mxu2 %v5049_v7  ;;  %v5025_v51 = vor.u32 %v5442_v60, %v5024_v32  ;;  %v5437_v37 = vld [vmem:[#allocation7 + $0xc] sm:$0xf]  ;;  %v5018_v6 = vld [vmem:[#allocation7 + $0x18] sm:$0xf0] }
 0x584   :  { %v6791_v24 = vpop.eup %5682  ;;  %v6796_v13 = vadd.f32 1.0, %v5681_v11  ;;  %v5008_v11 = vld [vmem:[#allocation7] sm:$0xf]  ;;  %3658 = vmatpush.bf16.msra.mxu3 %v5053_v59 }
 0x585   :  { %v6798_v12 = vpop.eup %5684  ;;  %v3282_v9 = vmul.f32 %v6791_v24, %v6781_v29  ;;  %vm3287_vm0 = vweird.f32 %v6791_v24  ;;  %3617 = vmatpush.bf16.msra.mxu0 %v5025_v51  ;;  %v5009_v21 = vor.u32 %v5438_v61, %v5008_v11 }
 0x586   :  { %v5687_v22 = vpop.eup %5686  ;;  %v3320_v62 = vmul.f32 %v6798_v12, %v6783_v15  ;;  %5690 = vrcp.f32 %v6796_v13  ;;  %vm3325_vm2 = vweird.f32 %v6798_v12  ;;  %vm6827_vm5 = vmor %vm3286_vm4, %vm3287_vm0  ;;  %v3305_v30 = vand.u32 2147483647, %v6796_v13 }
 0x587   :  { %v3283_v47 = vsub.f32 1.0, %v3282_v9  ;;  %v6810_v8 = vadd.f32 1.0, %v5687_v22  ;;  %5692 = vrcp.f32 %v6794_v25  ;;  %v5689_v15 = vpop.eup %5688  ;;  %vm6833_vm6 = vmor %vm3324_vm3, %vm3325_vm2  ;;  %vm3301_vm8 = vweird.f32 %v6796_v13 }
 0x588   :  { %v3321_v43 = vsub.f32 1.0, %v3320_v62  ;;  %v3307_v62 = vand.u32 2147483648, %v6796_v13  ;;  %vm3306_vm13 = vcmp.eq.f32.partialorder %v3305_v30, 8.507059e+37  ;;  %v3370_v30 = vand.u32 2147483648, %v6794_v25 }
 0x589   :  { %v3284_v27 = vmul.f32 %v6791_v24, %v3283_v47  ;;  %5694 = vrcp.f32 %v6810_v8  ;;  %v3345_v17 = vand.u32 2147483648, %v6810_v8  ;;  %v3343_v60 = vand.u32 2147483647, %v6810_v8  ;;  %3618 = vmatpush.bf16.msra.mxu0 %v5009_v21  ;;  %v7094_v21 = vld [vmem:[#allocation34_spill] sm:$0xff] }
 0x58a   :  { %v3322_v49 = vmul.f32 %v6798_v12, %v3321_v43  ;;  %5696 = vpow2.f32 %v5005_v38  ;;  %v5033_v38 = vor.u32 %v5443_v35, %v5032_v23  ;;  %v5037_v43 = vor.u32 %v5441_v19, %v5034_v1 }
 0x58b   :  { %v3285_v31 = vadd.f32 %v6791_v24, %v3284_v27  ;;  %5698 = vtanh.f32 %v3271_v45  ;;  %vm3339_vm11 = vweird.f32 %v6810_v8  ;;  %v3346_v10 = vor.u32 1.1754944e-38, %v3345_v17 }
 0x58c   :  { %v3323_v28 = vadd.f32 %v6798_v12, %v3322_v49  ;;  %v6844_v4 = vpop.eup %5690  ;;  %3645 = vmatpush.bf16.msra.mxu2 %v5033_v38  ;;  %3659 = vmatpush.bf16.msra.mxu3 %v5037_v43  ;;  %v5021_v49 = vor.u32 %v5437_v37, %v5018_v6  ;;  %vm3344_vm15 = vcmp.eq.f32.partialorder %v3343_v60, 8.507059e+37  ;;  %v5474_v37 = vld [vmem:[%s6990_s4 + $0x30] sm:$0xff]  ;;  %v5473_v43 = vld [vmem:[%s6990_s4 + $0x28] sm:$0xff] }
 0x58d   :  { %v3289_v53 = vsel %vm6827_vm5, %v6791_v24, %v3285_v31  ;;  %v6849_v36 = vpop.eup %5692  ;;  %v3297_v42 = vmul.f32 %v6844_v4, %v6796_v13  ;;  %vm3302_vm9 = vweird.f32 %v6844_v4 }
 0x58e   :  { %v3294_v48 = vsel %vm6813_vm1, %v3293_v14, %v3289_v53  ;;  %v3327_v41 = vsel %vm6833_vm6, %v6798_v12, %v3323_v28  ;;  %v5439_v12 = vld [vmem:[#allocation7 + $0x14] sm:$0xf0]  ;;  %v3360_v54 = vmul.f32 %v6849_v36, %v6794_v25  ;;  %v5013_v14 = vor.u32 %v5436_v63, %v5010_v39  ;;  %vm3303_vm12 = vmor %vm3301_vm8, %vm3302_vm9 }
 0x58f   :  { %v5695_v26 = vpop.eup %5694  ;;  %v3332_v24 = vsel %vm6838_vm7, %v3331_v50, %v3327_v41  ;;  %v3391_v56 = vmul.f32 %v5689_v15, %v3294_v48  ;;  %v3298_v46 = vsub.f32 1.0, %v3297_v42  ;;  %v5017_v3 = vor.u32 %v5439_v12, %v5016_v55  ;;  %v7092_v55 = vld [vmem:[#allocation32_spill] sm:$0xff] }
 0x590   :  { %v3389_v9 = vmul.f32 %v3332_v24, %v6745_v40  ;;  %v3335_v22 = vmul.f32 %v5695_v26, %v6810_v8  ;;  %v5697_v47 = vpop.eup %5696  ;;  %vm3340_vm10 = vweird.f32 %v5695_v26  ;;  %v3308_v50 = vor.u32 1.1754944e-38, %v3307_v62  ;;  %3632 = vmatpush.bf16.msra.mxu1 %v5013_v14  ;;  %3660 = vmatpush.bf16.msra.mxu3 %v5021_v49 }
 0x591   :  { %v3299_v40 = vmul.f32 %v6844_v4, %v3298_v46  ;;  %v3358_v27 = vadd.f32 1.0, %v5697_v47  ;;  %v5699_v45 = vpop.eup %5698  ;;  %v3361_v31 = vsub.f32 1.0, %v3360_v54  ;;  %vm3341_vm14 = vmor %vm3339_vm11, %vm3340_vm10  ;;  %3646 = vmatpush.bf16.msra.mxu2 %v5017_v3  ;;  %vm3365_vm0 = vweird.f32 %v6849_v36  ;;  %v7093_v54 = vld [vmem:[#allocation33_spill] sm:$0xff] }
 0x592   :  { %v6866_v44 = vadd.f32 %v3391_v56, %v3389_v9  ;;  %v3336_v0 = vsub.f32 1.0, %v3335_v22  ;;  %vm3364_vm1 = vweird.f32 %v6794_v25  ;;  %v3371_v41 = vor.u32 1.1754944e-38, %v3370_v30 }
 0x593   :  { %v3300_v32 = vadd.f32 %v6844_v4, %v3299_v40  ;;  %5700 = vrcp.f32 %v3358_v27  ;;  %v3362_v34 = vmul.f32 %v6849_v36, %v3361_v31  ;;  %v3385_v59 = vand.u32 2147483648, %v3358_v27  ;;  %vm3366_vm3 = vmor %vm3364_vm1, %vm3365_vm0  ;;  %v7095_v40 = vld [vmem:[#allocation35_spill] sm:$0xff] }
 0x594   :  { %v3337_v18 = vmul.f32 %v5695_v26, %v3336_v0  ;;  %5702 = vtanh.f32 %v6866_v44  ;;  %v3383_v35 = vand.u32 2147483647, %v3358_v27  ;;  %vm3379_vm4 = vweird.f32 %v3358_v27 }
 0x595   :  { %v3304_v20 = vsel %vm3303_vm12, %v6844_v4, %v3300_v32  ;;  %v3363_v8 = vadd.f32 %v6849_v36, %v3362_v34  ;;  %v3386_v42 = vor.u32 1.1754944e-38, %v3385_v59  ;;  %v374_v39 = vadd.f32 %v7091_v57, %v5988_v2 }
 0x596   :  { %v3338_v7 = vadd.f32 %v5695_v26, %v3337_v18  ;;  %v3309_v33 = vsel %vm3306_vm13, %v3308_v50, %v3304_v20  ;;  %vm3384_vm7 = vcmp.eq.f32.partialorder %v3383_v35, 8.507059e+37  ;;  %v423_v12 = vadd.f32 %v7092_v55, %v5993_v5  ;;  %v5472_v50 = vld [vmem:[%s6990_s4 + $0x20] sm:$0xff] }
 0x597   :  { %v3392_v29 = vmul.f32 %v5699_v45, %v3309_v33  ;;  %v3367_v1 = vsel %vm3366_vm3, %v6849_v36, %v3363_v8  ;;  %v5475_v36 = vld [vmem:[%s6990_s4 + $0x38] sm:$0xff]  ;;  %v521_v38 = vadd.f32 %v7093_v54, %v6000_v58  ;;  %v376_v0 = vadd.f32 %v7094_v21, %v5988_v2 }
 0x598   :  { %v3342_v15 = vsel %vm3341_vm14, %v5695_v26, %v3338_v7  ;;  %3879 = vmatpush.bf16.msrb.mxu0 %v5475_v36 }
 0x599   :  { %v3347_v28 = vsel %vm3344_vm15, %v3346_v10, %v3342_v15  ;;  %v5701_v4 = vpop.eup %5700  ;;  %v5471_v15 = vld [vmem:[%s6990_s4 + $0x18] sm:$0xff] }
 0x59a   :  { %v3390_v23 = vmul.f32 %v3347_v28, %v6761_v16  ;;  %v3375_v13 = vmul.f32 %v5701_v4, %v3358_v27  ;;  %v3368_v16 = vand.u32 2147483647, %v6794_v25  ;;  %vm3380_vm2 = vweird.f32 %v5701_v4  ;;  %v5703_v48 = vpop.eup %5702 }
 0x59b   :  { %vm3381_vm5 = vmor %vm3379_vm4, %vm3380_vm2  ;;  %v425_v27 = vadd.f32 %v7095_v40, %v5993_v5 }
 0x59c   :  { %v6882_v53 = vadd.f32 %v3392_v29, %v3390_v23  ;;  %v3376_v17 = vsub.f32 1.0, %v3375_v13  ;;  %vm3369_vm6 = vcmp.eq.f32.partialorder %v3368_v16, 8.507059e+37  ;;  %3880 = vmatpush.bf16.msrb.mxu0 %v5474_v37  ;;  %v7096_v29 = vld [vmem:[#allocation36_spill] sm:$0xff]  ;;  %v7097_v23 = vld [vmem:[#allocation37_spill] sm:$0xff] }
 0x59d   :  { %v3372_v63 = vsel %vm3369_vm6, %v3371_v41, %v3367_v1  ;;  %v472_v28 = vadd.f32 %v7096_v29, %v6013_v52  ;;  %v7098_v41 = vld [vmem:[#allocation38_spill] sm:$0xff] }
 0x59e   :  { %5704 = vtanh.f32 %v6882_v53  ;;  %v3377_v51 = vmul.f32 %v5701_v4, %v3376_v17  ;;  %v3397_v24 = vmul.f32 %v5703_v48, %v3372_v63  ;;  %v5470_v17 = vld [vmem:[%s6990_s4 + $0x10] sm:$0xff] }
 0x5a0   :  { %v3378_v19 = vadd.f32 %v5701_v4, %v3377_v51  ;;  %3881 = vmatpush.bf16.msrb.mxu0 %v5473_v43 }
 0x5a2   :  { %v3382_v61 = vsel %vm3381_vm5, %v5701_v4, %v3378_v19  ;;  %v523_v4 = vadd.f32 %v7097_v23, %v6000_v58  ;;  %v5469_v19 = vld [vmem:[%s6990_s4 + $0x8] sm:$0xff] }
 0x5a3   :  { %v3387_v26 = vsel %vm3384_vm7, %v3386_v42, %v3382_v61  ;;  %v474_v42 = vadd.f32 %v7098_v41, %v6013_v52  ;;  %v5468_v52 = vld [vmem:[%s6990_s4] sm:$0xff] }
 0x5a4   :  { %v5705_v11 = vpop.eup %5704  ;;  %3882 = vmatpush.bf16.msrb.mxu0 %v5472_v50 }
 0x5a5   :  { %v3398_v25 = vmul.f32 %v5705_v11, %v3387_v26 }
 0x5a7   :  { %v3418_v56 = vpack.c.bf16 %v3398_v25, %v3397_v24 }
 0x5a8   :  { %3883 = vmatpush.bf16.msrb.mxu0 %v5471_v15 }
 0x5a9   :  { %3619 = vmatmul.bf16.vlgmr.msra.gmra.mxu0 %v3418_v56  ;;  %3633 = vmatmul.bf16.vlgmr.msra.gmra.mxu1 %v3418_v56 }
 0x5aa   :  { %3647 = vmatmul.bf16.vlgmr.msra.gmra.mxu2 %v3418_v56  ;;  %3661 = vmatmul.bf16.vlgmr.msra.gmra.mxu3 %v3418_v56 }
 0x5ac   :  { %3884 = vmatpush.bf16.msrb.mxu0 %v5470_v17 }
 0x5b0   :  { %3885 = vmatpush.bf16.msrb.mxu0 %v5469_v19 }
 0x5b4   :  { %3886 = vmatpush.bf16.msrb.mxu0 %v5468_v52 }
 0x626   :  { %v3620_v9 = vpop.f32.mrf.mxu0  ;;  %v3634_v46 = vpop.f32.mrf.mxu1 }
 0x627   :  { %v3667_v22 = vadd.f32 %v3620_v9, %v374_v39  ;;  %v3668_v62 = vadd.f32 %v3634_v46, %v423_v12 }
 0x629   :  { %v5134_v6 = vmul.f32 -1.442695, %v3667_v22  ;;  %v5136_v47 = vmul.f32 -1.442695, %v3668_v62 }
 0x62b   :  { %5706 = vpow2.f32 %v5134_v6 }
 0x62c   :  { %5708 = vpow2.f32 %v5136_v47 }
 0x62d   :  { %v3662_v14 = vpop.f32.mrf.mxu3  ;;  %v3648_v33 = vpop.f32.mrf.mxu2 }
 0x62e   :  { %v3670_v3 = vadd.f32 %v3662_v14, %v521_v38  ;;  %v3622_v49 = vpop.f32.mrf.mxu0  ;;  %v3636_v45 = vpop.f32.mrf.mxu1  ;;  %v3669_v8 = vadd.f32 %v3648_v33, %v472_v28 }
 0x62f   :  { %v3671_v18 = vadd.f32 %v3622_v49, %v376_v0  ;;  %v3672_v32 = vadd.f32 %v3636_v45, %v425_v27 }
 0x630   :  { %v5138_v60 = vmul.f32 -1.442695, %v3670_v3 }
 0x631   :  { %v5707_v31 = vpop.eup %5706  ;;  %v5135_v20 = vmul.f32 -1.442695, %v3671_v18  ;;  %v5137_v2 = vmul.f32 -1.442695, %v3672_v32 }
 0x632   :  { %v5709_v7 = vpop.eup %5708  ;;  %v6914_v10 = vadd.f32 1.0, %v5707_v31  ;;  %5710 = vpow2.f32 %v5138_v60 }
 0x633   :  { %v3719_v5 = vadd.f32 1.0, %v5709_v7  ;;  %5712 = vpow2.f32 %v5135_v20 }
 0x634   :  { %5714 = vrcp.f32 %v6914_v10  ;;  %v3692_v56 = vand.u32 2147483647, %v6914_v10  ;;  %v3694_v36 = vand.u32 2147483648, %v6914_v10  ;;  %vm3688_vm10 = vweird.f32 %v6914_v10 }
 0x635   :  { %5716 = vrcp.f32 %v3719_v5  ;;  %v3664_v34 = vpop.f32.mrf.mxu3  ;;  %v3732_v25 = vand.u32 2147483648, %v3719_v5  ;;  %v3650_v57 = vpop.f32.mrf.mxu2  ;;  %v3730_v55 = vand.u32 2147483647, %v3719_v5  ;;  %vm3726_vm11 = vweird.f32 %v3719_v5 }
 0x636   :  { %5718 = vpow2.f32 %v5137_v2  ;;  %v3674_v16 = vadd.f32 %v3664_v34, %v523_v4  ;;  %v3673_v22 = vadd.f32 %v3650_v57, %v474_v42  ;;  %v3695_v37 = vor.u32 1.1754944e-38, %v3694_v36 }
 0x637   :  { %v3733_v38 = vor.u32 1.1754944e-38, %v3732_v25  ;;  %vm3693_vm14 = vcmp.eq.f32.partialorder %v3692_v56, 8.507059e+37  ;;  %vm3731_vm15 = vcmp.eq.f32.partialorder %v3730_v55, 8.507059e+37 }
 0x638   :  { %v5711_v13 = vpop.eup %5710  ;;  %v5139_v26 = vmul.f32 -1.442695, %v3674_v16 }
 0x639   :  { %v5713_v30 = vpop.eup %5712  ;;  %v6927_v59 = vadd.f32 1.0, %v5711_v13 }
 0x63a   :  { %v5715_v51 = vpop.eup %5714  ;;  %v6929_v35 = vadd.f32 1.0, %v5713_v30 }
 0x63b   :  { %v5717_v1 = vpop.eup %5716  ;;  %v3684_v58 = vmul.f32 %v5715_v51, %v6914_v10  ;;  %5720 = vrcp.f32 %v6927_v59  ;;  %vm3689_vm8 = vweird.f32 %v5715_v51  ;;  %v3772_v45 = vand.u32 2147483648, %v6927_v59 }
 0x63c   :  { %v5719_v48 = vpop.eup %5718  ;;  %v3722_v11 = vmul.f32 %v5717_v1, %v3719_v5  ;;  %5722 = vtanh.f32 %v3669_v8  ;;  %vm3727_vm9 = vweird.f32 %v5717_v1  ;;  %vm3690_vm12 = vmor %vm3688_vm10, %vm3689_vm8  ;;  %vm3703_vm0 = vweird.f32 %v6929_v35 }
 0x63d   :  { %v3685_v61 = vsub.f32 1.0, %v3684_v58  ;;  %5724 = vrcp.f32 %v6929_v35  ;;  %v6939_v63 = vadd.f32 1.0, %v5719_v48  ;;  %vm3728_vm13 = vmor %vm3726_vm11, %vm3727_vm9  ;;  %v3707_v7 = vand.u32 2147483647, %v6929_v35 }
 0x63e   :  { %v3723_v24 = vsub.f32 1.0, %v3722_v11  ;;  %v3709_v10 = vand.u32 2147483648, %v6929_v35  ;;  %vm3766_vm4 = vweird.f32 %v6927_v59  ;;  %v3770_v4 = vand.u32 2147483647, %v6927_v59 }
 0x63f   :  { %v3686_v39 = vmul.f32 %v5715_v51, %v3685_v61  ;;  %5726 = vrcp.f32 %v6939_v63  ;;  %v3747_v20 = vand.u32 2147483648, %v6939_v63  ;;  %v3745_v15 = vand.u32 2147483647, %v6939_v63 }
 0x640   :  { %v3724_v12 = vmul.f32 %v5717_v1, %v3723_v24  ;;  %5728 = vpow2.f32 %v5139_v26  ;;  %v3710_v13 = vor.u32 1.1754944e-38, %v3709_v10  ;;  %vm3741_vm7 = vweird.f32 %v6939_v63 }
 0x641   :  { %v6947_v9 = vpop.eup %5720  ;;  %v3687_v46 = vadd.f32 %v5715_v51, %v3686_v39  ;;  %5730 = vtanh.f32 %v3673_v22  ;;  %vm3708_vm8 = vcmp.eq.f32.partialorder %v3707_v7, 8.507059e+37  ;;  %v3748_v16 = vor.u32 1.1754944e-38, %v3747_v20 }
 0x642   :  { %v5723_v62 = vpop.eup %5722  ;;  %v3725_v6 = vadd.f32 %v5717_v1, %v3724_v12  ;;  %v3762_v47 = vmul.f32 %v6947_v9, %v6927_v59  ;;  %vm3767_vm2 = vweird.f32 %v6947_v9  ;;  %vm3746_vm10 = vcmp.eq.f32.partialorder %v3745_v15, 8.507059e+37 }
 0x643   :  { %v5725_v54 = vpop.eup %5724  ;;  %v3691_v43 = vsel %vm3690_vm12, %v5715_v51, %v3687_v46  ;;  %vm6968_vm6 = vmor %vm3766_vm4, %vm3767_vm2  ;;  %vm3771_vm11 = vcmp.eq.f32.partialorder %v3770_v4, 8.507059e+37  ;;  %v5481_v46 = vld [vmem:[%s6991_s5] ss:$0 sm:$0xff] }
 0x644   :  { %v3696_v21 = vsel %vm3693_vm14, %v3695_v37, %v3691_v43  ;;  %v3729_v0 = vsel %vm3728_vm13, %v5717_v1, %v3725_v6  ;;  %v3763_v40 = vsub.f32 1.0, %v3762_v47  ;;  %v3699_v27 = vmul.f32 %v5725_v54, %v6929_v35 }
 0x645   :  { %v5727_v14 = vpop.eup %5726  ;;  %v3734_v3 = vsel %vm3731_vm15, %v3733_v38, %v3729_v0  ;;  %v3793_v49 = vmul.f32 %v5723_v62, %v3696_v21  ;;  %vm3704_vm1 = vweird.f32 %v5725_v54  ;;  %v3773_v35 = vor.u32 1.1754944e-38, %v3772_v45 }
 0x646   :  { %v3791_v18 = vmul.f32 %v3734_v3, %v6866_v44  ;;  %v3764_v32 = vmul.f32 %v6947_v9, %v3763_v40  ;;  %v3700_v60 = vsub.f32 1.0, %v3699_v27  ;;  %v3737_v50 = vmul.f32 %v5727_v14, %v6939_v63  ;;  %v5729_v31 = vpop.eup %5728  ;;  %vm3705_vm5 = vmor %vm3703_vm0, %vm3704_vm1 }
 0x647   :  { %v3760_v29 = vadd.f32 1.0, %v5729_v31  ;;  %vm3742_vm3 = vweird.f32 %v5727_v14  ;;  %v5731_v23 = vpop.eup %5730 }
 0x648   :  { %v3795_v2 = vadd.f32 %v3793_v49, %v3791_v18  ;;  %v3738_v5 = vsub.f32 1.0, %v3737_v50  ;;  %v3701_v33 = vmul.f32 %v5725_v54, %v3700_v60  ;;  %v3765_v44 = vadd.f32 %v6947_v9, %v3764_v32  ;;  %vm3743_vm9 = vmor %vm3741_vm7, %vm3742_vm3 }
 0x649   :  { %v3787_v25 = vand.u32 2147483648, %v3760_v29  ;;  %v3785_v36 = vand.u32 2147483647, %v3760_v29  ;;  %vm3781_vm13 = vweird.f32 %v3760_v29 }
 0x64a   :  { %5732 = vtanh.f32 %v3795_v2  ;;  %v3739_v28 = vmul.f32 %v5727_v14, %v3738_v5  ;;  %v3702_v34 = vadd.f32 %v5725_v54, %v3701_v33  ;;  %v3769_v59 = vsel %vm6968_vm6, %v6947_v9, %v3765_v44 }
 0x64b   :  { %5734 = vrcp.f32 %v3760_v29  ;;  %v3774_v42 = vsel %vm3771_vm11, %v3773_v35, %v3769_v59  ;;  %v3788_v52 = vor.u32 1.1754944e-38, %v3787_v25  ;;  %vm3786_vm15 = vcmp.eq.f32.partialorder %v3785_v36, 8.507059e+37 }
 0x64c   :  { %v3706_v17 = vsel %vm3705_vm5, %v5725_v54, %v3702_v34  ;;  %v3740_v30 = vadd.f32 %v5727_v14, %v3739_v28 }
 0x64d   :  { %v3711_v51 = vsel %vm3708_vm8, %v3710_v13, %v3706_v17 }
 0x64e   :  { %v3744_v19 = vsel %vm3743_vm9, %v5727_v14, %v3740_v30  ;;  %v3794_v1 = vmul.f32 %v5731_v23, %v3711_v51 }
 0x64f   :  { %v3749_v58 = vsel %vm3746_vm10, %v3748_v16, %v3744_v19 }
 0x650   :  { %v5733_v48 = vpop.eup %5732  ;;  %v3792_v41 = vmul.f32 %v3749_v58, %v6882_v53 }
 0x651   :  { %v5735_v11 = vpop.eup %5734  ;;  %v3799_v61 = vmul.f32 %v5733_v48, %v3774_v42 }
 0x652   :  { %v3796_v63 = vadd.f32 %v3794_v1, %v3792_v41  ;;  %v3777_v26 = vmul.f32 %v5735_v11, %v3760_v29  ;;  %vm3782_vm12 = vweird.f32 %v5735_v11 }
 0x653   :  { %vm3783_vm14 = vmor %vm3781_vm13, %vm3782_vm12 }
 0x654   :  { %5736 = vtanh.f32 %v3796_v63  ;;  %v3778_v24 = vsub.f32 1.0, %v3777_v26 }
 0x656   :  { %v3779_v56 = vmul.f32 %v5735_v11, %v3778_v24 }
 0x658   :  { %v3780_v57 = vadd.f32 %v5735_v11, %v3779_v56 }
 0x65a   :  { %v5737_v39 = vpop.eup %5736  ;;  %v3784_v55 = vsel %vm3783_vm14, %v5735_v11, %v3780_v57 }
 0x65b   :  { %v3789_v12 = vsel %vm3786_vm15, %v3788_v52, %v3784_v55 }
 0x65c   :  { %v3800_v53 = vmul.f32 %v5737_v39, %v3789_v12 }
 0x65e   :  { %v3810_v9 = vpack.c.bf16 %v3800_v53, %v3799_v61 }
 0x660   :  { %3887 = vmatmul.bf16.vlgmr.msrb.gmra.mxu0 %v3810_v9 }
 0x6dd   :  { %v3888_v22 = vpop.f32.mrf.mxu0 }
 0x6de   :  { %v3889_v62 = vadd.f32 %v5481_v46, %v3888_v22 }
 0x6e0   :  { %3893 = vst [vmem:[%s6992_s6] sm:$0xff] %v3889_v62 }
 0x6e5   :  { %v3890_v37 = vpop.f32.mrf.mxu0 }
 0x6e6   :  { %v3891_v6 = vadd.f32 %v5481_v46, %v3890_v37 }
 0x6e8   :  { %3894 = vst [vmem:[%s6992_s6 + $0x8] sm:$0xff] %v3891_v6 }
 0x6e9   :  { %3899 = vsyncpa [#allocation6], 1 }
 0x6ea   :  { %3900 = vsyncpa [#allocation8], 1 }

</bundles_post_ra>
